<compile_context>
chip_gen: v7x
topology: tpu7x:2x2x1
jax: 0.10.0
libtpu: 0.0.40
codegen_flags: <defaults>
</compile_context>

<pallas_src>
import functools

import numpy as np

import jax
import jax.numpy as jnp
from jax import lax
from jax.experimental import pallas as pl
from jax.experimental.pallas import tpu as pltpu


def _relpos_kernel(ri_ref, rje_ref, vb_ref, w_ref, b_ref, out_ref, *,
                   rows_per_chunk, num_chunks, max_rel):
    # ri_ref  : (1, R, 1)       residue index of the R rows handled by this tile (f32)
    # rje_ref : (1, Q, M)       pre-expanded rj: rje[q, t*n_bins + k] = r[q*G + t] (f32)
    # vb_ref  : (1, M)          vb[t*n_bins + k] = (k+1) - max_rel  (values -31..+32) (f32)
    # w_ref   : (M, 128)        block-diagonal grouped (W[:,1:] - W[:,:1])^T (bf16)
    # b_ref   : (1, 128)        (bias + W[:,0]) tiled G times (f32)
    # out_ref : (1, R, Q, 128)  G pairs x attn_dim channels per 128-lane row (bf16)
    rje = rje_ref[0]            # (Q, M)
    vb = vb_ref[...]            # (1, M)
    w = w_ref[...]              # (M, 128)
    bb = b_ref[...]             # (1, 128)
    q_rows, m = rje.shape
    c_rows = rows_per_chunk
    lo = -float(max_rel)
    hi = float(max_rel)
    vb3 = vb.reshape(1, 1, m)

    def chunk(c, carry):
        r0 = pl.multiple_of(c * c_rows, c_rows)
        ri_c = ri_ref[0, pl.ds(r0, c_rows), :]                   # (C, 1)
        # Compare chain in f32 (exact for integer indices on all chips), one-hot in bf16.
        d = ri_c.reshape(c_rows, 1, 1) - rje[None]               # (C, Q, M)
        one_hot = (jnp.clip(d, lo, hi) == vb3).astype(jnp.bfloat16)
        # One fused MXU matmul over the whole chunk: (C*Q, M) x (M, 128), f32 accum.
        acc = jnp.dot(one_hot.reshape(c_rows * q_rows, m), w,
                      preferred_element_type=jnp.float32)        # (C*Q, 128)
        res = (acc + bb).astype(out_ref.dtype)
        out_ref[0, pl.ds(r0, c_rows)] = res.reshape(c_rows, q_rows, 128)
        return carry

    lax.fori_loop(0, num_chunks, chunk, 0, unroll=True)


def _pick_tiles(l_pad, q_rows, out_bytes):
    """Pick (rows-per-grid-step R, rows-per-matmul-chunk C)."""
    budget_out = 4 << 20  # ~4 MiB output block per grid step
    row_divs = [d for d in range(8, l_pad + 1, 8) if l_pad % d == 0]
    fits = [d for d in row_divs if d * q_rows * 128 * out_bytes <= budget_out]
    rows = max(fits) if fits else min(row_divs)
    # Chunk so the fused LHS has <= 512 rows (keeps the (C*Q, M) one-hot ~1-2 MiB)
    # while still filling the 128/256-tall MXU.
    chunk_divs = [d for d in range(8, rows + 1, 8) if rows % d == 0]
    good = [d for d in chunk_divs if d * q_rows <= 512]
    chunk = max(good) if good else min(chunk_divs)
    return rows, chunk


def relative_positional_encoding(residue_index, weight, bias, *, max_rel_idx=32,
                                 out_dtype=jnp.bfloat16):
    """residue_index: [B, L] (integer-valued); weight: [attn_dim, n_rel]; bias: [attn_dim]."""
    n_rel = 2 * max_rel_idx + 1
    attn_dim = weight.shape[0]
    assert weight.shape == (attn_dim, n_rel)
    assert 128 % attn_dim == 0, "attn_dim must divide 128 for lane-dense packing"

    G = 128 // attn_dim            # pairs packed per 128-lane output row (16 for attn_dim=8)
    lane_w = G * attn_dim          # == 128
    n_bins = n_rel - 1             # bin 0 folded into the bias
    M = G * n_bins                 # grouped one-hot width (1024 for the default config)

    B, L = residue_index.shape
    pad_to = 8 * G                 # Lp % 128 == 0  =>  Q % 8 == 0 (dense sublane tiles)
    Lp = ((L + pad_to - 1) // pad_to) * pad_to
    Q = Lp // G

    r = residue_index.astype(jnp.float32)
    if Lp != L:
        r = jnp.pad(r, ((0, 0), (0, Lp - L)))

    # Tiny side inputs (all << output traffic).
    ri = r.reshape(B, Lp, 1)                                     # per-row residue index
    rje = jnp.repeat(r.reshape(B, Q, G), n_bins, axis=-1)        # (B, Q, M)
    vb = jnp.tile(jnp.arange(1, n_rel, dtype=jnp.float32) - max_rel_idx,
                  (G,)).reshape(1, M)
    w32 = weight.astype(jnp.float32)
    wt = (w32[:, 1:] - w32[:, :1]).T                             # (n_bins, attn_dim)
    w_big = jnp.einsum("tu,kc->tkuc", jnp.eye(G, dtype=jnp.float32), wt)
    w_big = w_big.reshape(M, lane_w).astype(jnp.bfloat16)        # block-diag grouped W'^T
    b_big = jnp.tile(bias.astype(jnp.float32) + w32[:, 0], (G,)).reshape(1, lane_w)

    out_bytes = np.dtype(out_dtype).itemsize
    R, C = _pick_tiles(Lp, Q, out_bytes)
    num_chunks = R // C

    kernel = functools.partial(_relpos_kernel, rows_per_chunk=C,
                               num_chunks=num_chunks, max_rel=max_rel_idx)

    out = pl.pallas_call(
        kernel,
        out_shape=jax.ShapeDtypeStruct((B, Lp, Q, lane_w), out_dtype),
        grid=(B, Lp // R),
        in_specs=[
            pl.BlockSpec((1, R, 1), lambda b, it: (b, it, 0)),
            pl.BlockSpec((1, Q, M), lambda b, it: (b, 0, 0)),
            pl.BlockSpec((1, M), lambda b, it: (0, 0)),
            pl.BlockSpec((M, lane_w), lambda b, it: (0, 0)),
            pl.BlockSpec((1, lane_w), lambda b, it: (0, 0)),
        ],
        out_specs=pl.BlockSpec((1, R, Q, lane_w), lambda b, it: (b, it, 0, 0)),
        compiler_params=pltpu.CompilerParams(
            dimension_semantics=("parallel", "parallel")),
    )(ri, rje, vb, w_big, b_big)

    # (Q, 128) -> (Lp, attn_dim) is the identical row-major layout: free reshape.
    out = out.reshape(B, Lp, Lp, attn_dim)
    if Lp != L:
        # TODO(synk): fuse/skip this crop when the downstream consumer can take
        # the padded [B, Lp, Lp, attn_dim] layout (the slice is an extra HBM pass).
        out = out[:, :L, :L, :]
    return out


def _reference(residue_index, weight, bias, *, max_rel_idx=32):
    """Pure-JAX mirror of the PyTorch forward, for correctness checking."""
    n_rel = 2 * max_rel_idx + 1
    d_ij = residue_index[..., :, None] - residue_index[..., None, :]
    v_bins = jnp.arange(n_rel) - max_rel_idx
    idxs = jnp.argmin(jnp.abs(d_ij[..., None] - v_bins[None, None]), axis=-1)
    p_ij = jax.nn.one_hot(idxs, n_rel, dtype=jnp.float32)
    return p_ij @ weight.T.astype(jnp.float32) + bias.astype(jnp.float32)


if __name__ == "__main__":
    # Module hyper-params (from __init__ defaults)
    ATTN_DIM = 8
    MAX_REL_IDX = 32
    N_REL_POS = 2 * MAX_REL_IDX + 1   # 65

    # Small example shapes (L not a multiple of the group size -> exercises pad + crop)
    B, L = 2, 40

    key = jax.random.PRNGKey(0)
    k_idx, k_w, k_b = jax.random.split(key, 3)

    # Deterministic synthetic parameters (nn.Linear(n_rel_pos, attn_dim))
    bound = 1.0 / jnp.sqrt(jnp.float32(N_REL_POS))
    weight = jax.random.uniform(k_w, (ATTN_DIM, N_REL_POS), jnp.float32, -bound, bound)
    bias = jax.random.uniform(k_b, (ATTN_DIM,), jnp.float32, -bound, bound)

    # Deterministic integer residue indices (range exercises the clipped bins)
    residue_index = jax.random.randint(k_idx, (B, L), 0, 64, dtype=jnp.int32)

    out = relative_positional_encoding(
        residue_index, weight, bias, max_rel_idx=MAX_REL_IDX
    )
    out = jax.block_until_ready(out)

    ref = _reference(residue_index, weight, bias, max_rel_idx=MAX_REL_IDX)
    assert out.shape == (B, L, L, ATTN_DIM), out.shape
    assert out.dtype == jnp.bfloat16, out.dtype
    max_err = jnp.max(jnp.abs(out.astype(jnp.float32) - ref))
    assert max_err < 1e-2, f"max abs error {max_err} vs reference"

    print("KERNEL_OK")
</pallas_src>

<mosaic_0001>
module attributes {stable_mosaic.version = 11 : i64} {
  func.func @_relpos_kernel(%arg0: i32, %arg1: i32, %arg2: memref<1x128x1xf32, #tpu.memory_space<vmem>>, %arg3: memref<1x8x1024xf32, #tpu.memory_space<vmem>>, %arg4: memref<1x1024xf32, #tpu.memory_space<vmem>>, %arg5: memref<1024x128xbf16, #tpu.memory_space<vmem>>, %arg6: memref<1x128xf32, #tpu.memory_space<vmem>>, %arg7: memref<1x128x8x128xbf16, #tpu.memory_space<vmem>>) attributes {dimension_semantics = [#tpu.dimension_semantics<parallel>, #tpu.dimension_semantics<parallel>], iteration_bounds = array<i64: 2, 1>, scalar_prefetch = 0 : i64, scratch_operands = 0 : i64, tpu.core_type = #tpu.core_type<tc>, window_params = [{transform_indices = @transform_0, window_bounds = array<i64: 1, 128, 1>}, {transform_indices = @transform_1, window_bounds = array<i64: 1, 8, 1024>}, {pipeline_mode = #tpu.pipeline_mode<synchronous>, transform_indices = @transform_2, window_bounds = array<i64: 1, 1024>}, {pipeline_mode = #tpu.pipeline_mode<synchronous>, transform_indices = @transform_3, window_bounds = array<i64: 1024, 128>}, {pipeline_mode = #tpu.pipeline_mode<synchronous>, transform_indices = @transform_4, window_bounds = array<i64: 1, 128>}, {transform_indices = @transform_5, window_bounds = array<i64: 1, 128, 8, 128>}]} {
    %c0 = arith.constant 0 : index
    %c0_0 = arith.constant 0 : index
    %c0_1 = arith.constant 0 : index
    %0 = vector.load %arg3[%c0, %c0_0, %c0_1] : memref<1x8x1024xf32, #tpu.memory_space<vmem>>, vector<1x8x1024xf32>
    %1 = vector.shape_cast %0 : vector<1x8x1024xf32> to vector<8x1024xf32>
    %c0_2 = arith.constant 0 : index
    %c0_3 = arith.constant 0 : index
    %2 = vector.load %arg4[%c0_2, %c0_3] : memref<1x1024xf32, #tpu.memory_space<vmem>>, vector<1x1024xf32>
    %c0_4 = arith.constant 0 : index
    %c0_5 = arith.constant 0 : index
    %3 = vector.load %arg5[%c0_4, %c0_5] : memref<1024x128xbf16, #tpu.memory_space<vmem>>, vector<1024x128xbf16>
    %c0_6 = arith.constant 0 : index
    %c0_7 = arith.constant 0 : index
    %4 = vector.load %arg6[%c0_6, %c0_7] : memref<1x128xf32, #tpu.memory_space<vmem>>, vector<1x128xf32>
    %5 = vector.shape_cast %2 : vector<1x1024xf32> to vector<1x1x1024xf32>
    %c0_i32 = arith.constant 0 : i32
    %c64_i32 = arith.constant 64 : i32
    %6 = arith.muli %c0_i32, %c64_i32 : i32
    %7 = tpu.assume_multiple %6, 64 : i32
    %c0_8 = arith.constant 0 : index
    %8 = arith.index_cast %7 : i32 to index
    %c0_9 = arith.constant 0 : index
    %9 = vector.load %arg2[%c0_8, %8, %c0_9] : memref<1x128x1xf32, #tpu.memory_space<vmem>>, vector<1x64x1xf32>
    %10 = vector.shape_cast %9 : vector<1x64x1xf32> to vector<64x1xf32>
    %11 = vector.shape_cast %10 : vector<64x1xf32> to vector<64x1x1xf32>
    %12 = vector.shape_cast %1 : vector<8x1024xf32> to vector<1x8x1024xf32>
    %13 = vector.broadcast %11 : vector<64x1x1xf32> to vector<64x8x1024xf32>
    %14 = vector.broadcast %12 : vector<1x8x1024xf32> to vector<64x8x1024xf32>
    %15 = arith.subf %13, %14 : vector<64x8x1024xf32>
    %cst = arith.constant -3.200000e+01 : f32
    %cst_10 = arith.constant 3.200000e+01 : f32
    %16 = vector.broadcast %cst : f32 to vector<64x8x1024xf32>
    %17 = arith.maximumf %16, %15 : vector<64x8x1024xf32>
    %18 = vector.broadcast %cst_10 : f32 to vector<64x8x1024xf32>
    %19 = arith.minimumf %18, %17 : vector<64x8x1024xf32>
    %20 = vector.broadcast %5 : vector<1x1x1024xf32> to vector<64x8x1024xf32>
    %21 = arith.cmpf oeq, %19, %20 : vector<64x8x1024xf32>
    %22 = arith.extui %21 : vector<64x8x1024xi1> to vector<64x8x1024xi32>
    %23 = arith.sitofp %22 : vector<64x8x1024xi32> to vector<64x8x1024xf32>
    %24 = arith.truncf %23 : vector<64x8x1024xf32> to vector<64x8x1024xbf16>
    %25 = vector.shape_cast %24 : vector<64x8x1024xbf16> to vector<512x1024xbf16>
    %cst_11 = arith.constant dense<0.000000e+00> : vector<512x128xf32>
    %26 = tpu.matmul %25, %3, %cst_11 {dimension_numbers = #tpu.dot_dimension_numbers<[1], [0], [0], [1], [0, 0, 1, 1], [], []>} : vector<512x1024xbf16>, vector<1024x128xbf16>, vector<512x128xf32> -> vector<512x128xf32>
    %27 = vector.broadcast %4 : vector<1x128xf32> to vector<512x128xf32>
    %28 = arith.addf %26, %27 : vector<512x128xf32>
    %29 = arith.truncf %28 : vector<512x128xf32> to vector<512x128xbf16>
    %30 = vector.shape_cast %29 : vector<512x128xbf16> to vector<64x8x128xbf16>
    %c0_12 = arith.constant 0 : index
    %31 = arith.index_cast %7 : i32 to index
    %c0_13 = arith.constant 0 : index
    %c0_14 = arith.constant 0 : index
    %32 = vector.load %arg7[%c0_12, %31, %c0_13, %c0_14] : memref<1x128x8x128xbf16, #tpu.memory_space<vmem>>, vector<1x64x8x128xbf16>
    %33 = vector.shape_cast %32 : vector<1x64x8x128xbf16> to vector<64x8x128xbf16>
    %34 = vector.shape_cast %30 : vector<64x8x128xbf16> to vector<1x64x8x128xbf16>
    tpu.vector_store %arg7[%c0_12, %31, %c0_13, %c0_14], %34 {strides = array<i32>} : memref<1x128x8x128xbf16, #tpu.memory_space<vmem>>, vector<1x64x8x128xbf16>,
    %c1_i32 = arith.constant 1 : i32
    %c64_i32_15 = arith.constant 64 : i32
    %35 = arith.muli %c1_i32, %c64_i32_15 : i32
    %36 = tpu.assume_multiple %35, 64 : i32
    %c0_16 = arith.constant 0 : index
    %37 = arith.index_cast %36 : i32 to index
    %c0_17 = arith.constant 0 : index
    %38 = vector.load %arg2[%c0_16, %37, %c0_17] : memref<1x128x1xf32, #tpu.memory_space<vmem>>, vector<1x64x1xf32>
    %39 = vector.shape_cast %38 : vector<1x64x1xf32> to vector<64x1xf32>
    %40 = vector.shape_cast %39 : vector<64x1xf32> to vector<64x1x1xf32>
    %41 = vector.shape_cast %1 : vector<8x1024xf32> to vector<1x8x1024xf32>
    %42 = vector.broadcast %40 : vector<64x1x1xf32> to vector<64x8x1024xf32>
    %43 = vector.broadcast %41 : vector<1x8x1024xf32> to vector<64x8x1024xf32>
    %44 = arith.subf %42, %43 : vector<64x8x1024xf32>
    %cst_18 = arith.constant -3.200000e+01 : f32
    %cst_19 = arith.constant 3.200000e+01 : f32
    %45 = vector.broadcast %cst_18 : f32 to vector<64x8x1024xf32>
    %46 = arith.maximumf %45, %44 : vector<64x8x1024xf32>
    %47 = vector.broadcast %cst_19 : f32 to vector<64x8x1024xf32>
    %48 = arith.minimumf %47, %46 : vector<64x8x1024xf32>
    %49 = vector.broadcast %5 : vector<1x1x1024xf32> to vector<64x8x1024xf32>
    %50 = arith.cmpf oeq, %48, %49 : vector<64x8x1024xf32>
    %51 = arith.extui %50 : vector<64x8x1024xi1> to vector<64x8x1024xi32>
    %52 = arith.sitofp %51 : vector<64x8x1024xi32> to vector<64x8x1024xf32>
    %53 = arith.truncf %52 : vector<64x8x1024xf32> to vector<64x8x1024xbf16>
    %54 = vector.shape_cast %53 : vector<64x8x1024xbf16> to vector<512x1024xbf16>
    %cst_20 = arith.constant dense<0.000000e+00> : vector<512x128xf32>
    %55 = tpu.matmul %54, %3, %cst_20 {dimension_numbers = #tpu.dot_dimension_numbers<[1], [0], [0], [1], [0, 0, 1, 1], [], []>} : vector<512x1024xbf16>, vector<1024x128xbf16>, vector<512x128xf32> -> vector<512x128xf32>
    %56 = vector.broadcast %4 : vector<1x128xf32> to vector<512x128xf32>
    %57 = arith.addf %55, %56 : vector<512x128xf32>
    %58 = arith.truncf %57 : vector<512x128xf32> to vector<512x128xbf16>
    %59 = vector.shape_cast %58 : vector<512x128xbf16> to vector<64x8x128xbf16>
    %c0_21 = arith.constant 0 : index
    %60 = arith.index_cast %36 : i32 to index
    %c0_22 = arith.constant 0 : index
    %c0_23 = arith.constant 0 : index
    %61 = vector.load %arg7[%c0_21, %60, %c0_22, %c0_23] : memref<1x128x8x128xbf16, #tpu.memory_space<vmem>>, vector<1x64x8x128xbf16>
    %62 = vector.shape_cast %61 : vector<1x64x8x128xbf16> to vector<64x8x128xbf16>
    %63 = vector.shape_cast %59 : vector<64x8x128xbf16> to vector<1x64x8x128xbf16>
    tpu.vector_store %arg7[%c0_21, %60, %c0_22, %c0_23], %63 {strides = array<i32>} : memref<1x128x8x128xbf16, #tpu.memory_space<vmem>>, vector<1x64x8x128xbf16>,
    %c2_i32 = arith.constant 2 : i32
    return
  }
  func.func @transform_0(%arg0: i32, %arg1: i32) -> (i32, i32, i32) {
    %c0_i32 = arith.constant 0 : i32
    %c0_i32_0 = arith.constant 0 : i32
    return %arg0, %arg1, %c0_i32 : i32, i32, i32
  }
  func.func @transform_1(%arg0: i32, %arg1: i32) -> (i32, i32, i32) {
    %c0_i32 = arith.constant 0 : i32
    %c0_i32_0 = arith.constant 0 : i32
    %c0_i32_1 = arith.constant 0 : i32
    return %arg0, %c0_i32, %c0_i32_0 : i32, i32, i32
  }
  func.func @transform_2(%arg0: i32, %arg1: i32) -> (i32, i32) {
    %c0_i32 = arith.constant 0 : i32
    %c0_i32_0 = arith.constant 0 : i32
    %c0_i32_1 = arith.constant 0 : i32
    return %c0_i32, %c0_i32_0 : i32, i32
  }
  func.func @transform_3(%arg0: i32, %arg1: i32) -> (i32, i32) {
    %c0_i32 = arith.constant 0 : i32
    %c0_i32_0 = arith.constant 0 : i32
    %c0_i32_1 = arith.constant 0 : i32
    return %c0_i32, %c0_i32_0 : i32, i32
  }
  func.func @transform_4(%arg0: i32, %arg1: i32) -> (i32, i32) {
    %c0_i32 = arith.constant 0 : i32
    %c0_i32_0 = arith.constant 0 : i32
    %c0_i32_1 = arith.constant 0 : i32
    return %c0_i32, %c0_i32_0 : i32, i32
  }
  func.func @transform_5(%arg0: i32, %arg1: i32) -> (i32, i32, i32, i32) {
    %c0_i32 = arith.constant 0 : i32
    %c0_i32_0 = arith.constant 0 : i32
    %c0_i32_1 = arith.constant 0 : i32
    return %arg0, %arg1, %c0_i32, %c0_i32_0 : i32, i32, i32, i32
  }
}

</mosaic_0001>

<bundles_post_ra>
// kernel: tpu_custom_call.1
= control target key start
LH: loop header
LB: loop body
LE: loop exit
PB: predicated region body
PF: predicated region fallthrough
CT: control target
= control target key end

     0   :  { %10 = vsyncpa [#allocation3], 0  ;;  %s27889_s0 = inlined_call_operand.vmem [shape: f32[2,128,1], index: 0, kind: input, shape index: {}]   ;;  %s27890_s1 = inlined_call_operand.vmem [shape: f32[2,8,1024], index: 1, kind: input, shape index: {}]   ;;  %s27891_s2 = inlined_call_operand.vmem [shape: f32[1,1024], index: 2, kind: input, shape index: {}]   ;;  %s27892_s3 = inlined_call_operand.hbm [shape: bf16[1024,128], index: 3, kind: input, shape index: {}]   ;;  %s27893_s4 = inlined_call_operand.vmem [shape: f32[1,128], index: 4, kind: input, shape index: {}]   ;;  %s27894_s5 = inlined_call_operand.hbm [shape: bf16[2,128,8,128], index: 5, kind: output, shape index: {}]  }
   0x1   :  { %11 = vsyncpa [#allocation4], 0 }
   0x2   :  { %13 = vsyncpa [#allocation4 + $0x1], 0  ;;  %s22123_s18 = smov 0   ;;  %s22125_s19 = smov 0  }
   0x3   :  { %s22127_s20 = smov 0   ;;  %s22129_s21 = smov 0  }
   0x4   :  { %s22131_s22 = smov 0   ;;  %s22133_s23 = smov 0  }
   0x5 LB: > { %s16012_s24 = sadd.s32 4294967295, %s22082_s23   ;;  %s16013_s25 = sadd.s32 4294967294, %s22082_s23   ;;  %s22082_s23 = sphi %s22133_s23, %s19_s23   ;;  %s22078_s22 = sphi %s22131_s22, %s28744_s22   ;;  %s22074_s21 = sphi %s22129_s21, %s28743_s21   ;;  %s22070_s20 = sphi %s22127_s20, %s28742_s20   ;;  %s22066_s19 = sphi %s22125_s19, %s28741_s19   ;;  %s22062_s18 = sphi %s22123_s18, %s28740_s18  }
   0x6   : > { %s31_s26 = sadd.s32 1, %s22078_s22  ;;  %s157_s27 = sadd.s32 1, %s22070_s20 }
   0x7   : > { %p33_p0 = scmp.ge.s32.totalorder %s31_s26, 2  ;;  %p167_p1 = scmp.ne.s32.totalorder %s22070_s20, %s22066_s19 }
   0x8   : > { %p168_p2 = scmp.eq.s32.totalorder %s16012_s24, 1  ;;  %p173_p3 = scmp.ne.s32.totalorder %s22066_s19, %s22062_s18 }
   0x9   : > { %s28746_s26 = smov (%p33_p0, %s31_s26), 0  ;;  %p174_p5 = scmp.eq.s32.totalorder %s16013_s25, 1 }
   0xa   : > { %p22163_p4 = por %p168_p2, %p167_p1  ;;  %s152_s29 = ssub.s32 %s22078_s22, %s28746_s26 }
   0xb   : > { %p16014_p6 = scmp.ge.s32.totalorder %s22082_s23, 1  ;;  %p155_p7 = scmp.eq.s32.totalorder %s152_s29, 0 }
   0xc   : > { %s28280_s28 = scalar_select %p22163_p4, 1, 0 }
   0xd   : > { %p22170_p8 = por %p174_p5, %p173_p3  ;;  %p181_p9 = scmp.lt.s32.totalorder %s22082_s23, 3 }
   0xe   : > { %s22176_s6 = scalar_select %p155_p7, %s22070_s20, %s157_s27  }
   0xf   : > { %s28281_s30 = scalar_select %p22170_p8, 1, 0 }
  0x10   : > { %p22178_p10 = pnand %p16014_p6, %p181_p9  ;;  %p22182_p11 = scmp.eq.s32.totalorder %s16012_s24, 0 }
  0x11   : > { %s22084_s9 = smov [#allocation2]   ;;  %s21972_s14 = scalar_lea.hbm %s27892_s3, 8192 }
  0x12   : > { %s28282_s7 = scalar_select %p22178_p10, 1, 0 }
  0x13   : > { %s28283_s8 = scalar_select %p22182_p11, 1, 0 }
  0x14   : > { %p21806_p12 = pneg %p22178_p10  ;;  %s196_s10 = sshll.u32 %s22084_s9, 4  ;;  %s197_s10 = int_to_ptr.vmem [resolvable:$true] %s196_s10 }
  0x15   : > { %p21973_p0 = scmp.ne.s32.totalorder %s27892_s3, %s21972_s14  ;;  %p21979_p5 = scmp.lt.u32.totalorder %s21972_s14, %s27892_s3 }
  0x16   : > { %p22190_p13 = pnand %p22182_p11, %p21806_p12 }
  0x18   : > { %p21974_p1 = pneg %p22190_p13 }
  0x1a   : > { %p21975_p2 = pnand %p21974_p1, %p21973_p0 }
  0x1c   : > { %p21976_p3 = pneg %p21975_p2 }
  0x1e   : > { %p21981_p6 = pnand %p21979_p5, %p21976_p3 }
  0x20   : > { %21984 = shalt.err (!%p21981_p6)
}
  0x21   : > { %s21985_s25 = scalar_lea.vmem %s197_s10, 8192  ;;  %p21993_p8 = scmp.lt.s32.totalorder %s197_s10, %s197_s10 }
  0x22   : > { %p21986_p7 = scmp.ne.s32.totalorder %s197_s10, %s21985_s25  ;;  %p21994_p4 = scmp.lt.s32.totalorder %s21985_s25, %s21985_s25 }
  0x24   : > { %p21988_p9 = pnand %p21986_p7, %p21974_p1  ;;  %p21995_p11 = por %p21994_p4, %p21993_p8 }
  0x26   : > { %p21989_p12 = pneg %p21988_p9 }
  0x28   : > { %p21996_p10 = pnand %p21995_p11, %p21989_p12 }
  0x2a   : > { %21999 = shalt.err (!%p21996_p10)
}
  0x2b   : > { %s22085_s27 = smov 64   ;;  %s22086_s29 = smov 4  }
  0x2c   : > { %21809 = dma.hbm_to_vmem [thread:$0]  (!%p22190_p13), %s27892_s3, 8192, %s197_s10, [#allocation3], %s22085_s27, %s22085_s27, %s22086_s29  }
  0x2d   : > { %p28285_p0 = scmp.ne.s32.totalorder %s28282_s7, 0 }
  0x2f   : > { %236 = sbr.rel (%p28285_p0) target bundleno = 1464 (0x5b8), region = 40 }
  0x36   : > { %p28286_p2 = scmp.ne.s32.totalorder %s28283_s8, 0 }
  0x38   : > { %22053 = dma.done.wait (%p28286_p2), [#allocation3], 8192  }
  0x39   : > { %22055 = vsyncadd (%p28286_p2), [#allocation3], 4294959104  ;;  %p274_p4 = scmp.lt.s32.totalorder %s22074_s21, 1  ;;  %v448_v0 = vlaneseq  ;;  %v27899_v1 = vmov 0   ;;  %v22088_v2 = vmov 1966171168  }
  0x3a   : > { %21874 = vset.pattern.permute.xlu1 %v27899_v1  ;;  %21873 = vset.pattern.permute.xlu0 %v27899_v1  ;;  %v446_v3 = vunpack.c.l.s4 %v22088_v2  ;;  %v22250_v17 = vld [vmem:[%s27891_s2] sm:$0xff]  ;;  %v21880_v38 = vld [vmem:[#allocation2 + $0x8] sm:$0xff]   ;;  %v21882_v48 = vld [vmem:[#allocation2 + $0x10] sm:$0xff]   ;;  %s270_s27 = sand.u32 1, %s22066_s19   ;;  %s20520_s11 = sshll.u32 %s22074_s21, 13 }
  0x3b   : > { %s22220_s10 = scalar_select %p274_p4, %s22074_s21, 1  ;;  %v22222_v4 = vshrl.u32 %v448_v0, 7  ;;  %6899 = vmatprep.subr.bf16.mxu0 %v27899_v1  ;;  %14416 = vmatprep.subr.bf16.mxu1 %v27899_v1  ;;  %v21879_v27 = vld [vmem:[#allocation2] sm:$0xff]   ;;  %v21884_v57 = vld [vmem:[#allocation2 + $0x18] sm:$0xff]  }
  0x3c   : > { %v447_v5 = vunpack.c.0.s8 %v446_v3  ;;  %6900 = vmatpush1.bf16.msra.mxu0 %v21879_v27  ;;  %14417 = vmatpush1.bf16.msra.mxu1 %v21879_v27  ;;  %v21885_v0 = vld [vmem:[#allocation2 + $0x20] sm:$0xff]   ;;  %s27462_s12 = sshll.u32 %s270_s27, 9  ;;  %s27843_s21 = scalar_lea.sflag [#allocation4], %s270_s27 }
  0x3d   : > { %s18854_s7 = sshll.u32 %s22220_s10, 7  ;;  %v22236_v7 = vsub.s32 0, %v22222_v4  ;;  %v2895_v8 = vsub.s32 2, %v22222_v4  ;;  %v2899_v9 = vsub.s32 3, %v22222_v4  ;;  %v2903_v10 = vsub.s32 4, %v22222_v4  ;;  %6901 = vmatprep.subr.bf16.mxu0 %v27899_v1  ;;  %14418 = vmatprep.subr.bf16.mxu1 %v27899_v1  ;;  %s18855_s16 = sshll.u32 %s22220_s10, 6 }
  0x3e   : > { %s22230_s13 = scalar_lea.vmem %s27889_s0, %s18854_s7  ;;  %v22233_v6 = vsub.s32 %v447_v5, %v22222_v4  ;;  %v2907_v12 = vsub.s32 5, %v22222_v4  ;;  %v2911_v13 = vsub.s32 6, %v22222_v4  ;;  %v2915_v14 = vsub.s32 7, %v22222_v4  ;;  %s22461_s25 = scalar_lea.vmem %s27890_s1, %s18855_s16 }
  0x3f   : > { %v17433_v11 = vld [vmem:[%s22230_s13 + $0x40] sm:$0xff]  ;;  %v22254_v20 = vrot.slane %v22250_v17, %v2895_v8  ;;  %v22257_v21 = vrot.slane %v22250_v17, %v2899_v9  ;;  %v22260_v22 = vrot.slane %v22250_v17, %v2903_v10  ;;  %v429_v56 = vld [vmem:[%s22230_s13 + $0x8] sm:$0xff]  ;;  %s27509_s10 = scalar_lea.vmem [#allocation5], %s27462_s12  ;;  %s27835_s16 = scalar_lea.hbm %s27894_s5, %s20520_s11 }
  0x40   : > { %v8399_v15 = vrot.slane %v17433_v11, %v22233_v6  ;;  %v428_v19 = vld [vmem:[%s22230_s13] sm:$0xff]  ;;  %v22264_v24 = vrot.slane %v22250_v17, %v2907_v12  ;;  %v22267_v25 = vrot.slane %v22250_v17, %v2911_v13  ;;  %v22270_v26 = vrot.slane %v22250_v17, %v2915_v14  ;;  %6902 = vmatpush1.bf16.msra.mxu0 %v21880_v38  ;;  %v22298_v60 = vld [vmem:[%s22230_s13 + $0x48] sm:$0xff]  ;;  %p28738_p10 = scmp.ne.s32.totalorder %s28280_s28, 0  ;;  %s22090_s24 = smov [#allocation5]  }
  0x41   : > { %28287 = vst [vmem:[#allocation8_spill] sm:$0xff] %v22260_v22  ;;  %v451_v28 = vrot.slane %v428_v19, %v22233_v6  ;;  %v444_v29 = vcombine.high %v428_v19, %v428_v19  ;;  %v8392_v31 = vcombine.high %v17433_v11, %v17433_v11  ;;  %14419 = vmatpush1.bf16.msra.mxu1 %v21880_v38  ;;  %v21886_v11 = vld [vmem:[#allocation2 + $0x28] sm:$0xff]  }
  0x42   : > { %v8415_v16 = vrot.slane %v8399_v15, %v22233_v6  ;;  %v8407_v18 = vcombine.high %v8399_v15, %v8399_v15  ;;  %28288 = vst [vmem:[#allocation9_spill] sm:$0xff] %v22264_v24  ;;  %28289 = vst [vmem:[#allocation10_spill] sm:$0xff] %v22267_v25  ;;  %6903 = vmatprep.subr.bf16.mxu0 %v27899_v1  ;;  %14420 = vmatprep.subr.bf16.mxu1 %v27899_v1  ;;  %v28314_v24 = vmov 0  }
  0x43   : > { %28290 = vst [vmem:[#allocation11_spill] sm:$0xff] %v22270_v26  ;;  %v467_v32 = vrot.slane %v451_v28, %v22233_v6  ;;  %v459_v33 = vcombine.high %v451_v28, %v451_v28  ;;  %v458_v35 = vrot.slane %v444_v29, %v22233_v6  ;;  %v8406_v40 = vrot.slane %v8392_v31, %v22233_v6 }
  0x44   : > { %v8787_v23 = vrot.slane %v8415_v16, %v22236_v7  ;;  %v8429_v30 = vrot.slane %v8407_v18, %v22233_v6  ;;  %v8437_v46 = vcombine.high %v8415_v16, %v8415_v16  ;;  %6904 = vmatpush1.bf16.msra.mxu0 %v21882_v48  ;;  %v500_v59 = vrot.slane %v429_v56, %v22233_v6  ;;  %v21887_v18 = vld [vmem:[#allocation2 + $0x30] sm:$0xff]  }
  0x45   : > { %v839_v36 = vrot.slane %v467_v32, %v22236_v7  ;;  %v481_v37 = vrot.slane %v459_v33, %v22233_v6  ;;  %v489_v41 = vcombine.high %v467_v32, %v467_v32  ;;  %v460_v44 = vcombine.high %v458_v35, %v458_v35  ;;  %14421 = vmatpush1.bf16.msra.mxu1 %v21882_v48 }
  0x46   : > { %9041 = vperm.xlu1 %21874, %v8787_v23   ;;  %v8791_v34 = vrot.slane %v8429_v30, %v22236_v7  ;;  %v8439_v39 = vcombine.high %v8429_v30, %v8429_v30  ;;  %v8408_v47 = vcombine.high %v8406_v40, %v8406_v40  ;;  %v8795_v52 = vrot.slane %v8437_v46, %v22236_v7  ;;  %v21888_v30 = vld [vmem:[#allocation2 + $0x38] sm:$0xff]  }
  0x47   : > { %1093 = vperm.xlu0 %21873, %v839_v36   ;;  %v843_v42 = vrot.slane %v481_v37, %v22236_v7  ;;  %v491_v43 = vcombine.high %v481_v37, %v481_v37  ;;  %v847_v49 = vrot.slane %v489_v41, %v22236_v7  ;;  %v488_v51 = vrot.slane %v460_v44, %v22233_v6  ;;  %v21889_v37 = vld [vmem:[#allocation2 + $0x40] sm:$0xff]   ;;  %v21890_v44 = vld [vmem:[#allocation2 + $0x48] sm:$0xff]  }
  0x48   : > { %v8799_v50 = vrot.slane %v8439_v39, %v22236_v7  ;;  %v474_v53 = vrot.slane %v458_v35, %v22233_v6  ;;  %v8436_v55 = vrot.slane %v8408_v47, %v22233_v6  ;;  %6905 = vmatprep.subr.bf16.mxu0 %v27899_v1  ;;  %v8422_v58 = vrot.slane %v8406_v40, %v22233_v6 }
  0x49   : > { %v851_v45 = vrot.slane %v491_v43, %v22236_v7  ;;  %v859_v54 = vrot.slane %v488_v51, %v22236_v7  ;;  %14422 = vmatprep.subr.bf16.mxu1 %v27899_v1  ;;  %v492_v63 = vcombine.high %v488_v51, %v488_v51  ;;  %6906 = vmatpush1.bf16.msra.mxu0 %v21884_v57  ;;  %v22339_v51 = vld [vmem:[%s22230_s13 + $0x10] sm:$0xff] }
  0x4a   : > { %9045 = vperm.xlu1 %21874, %v8791_v34   ;;  %v855_v61 = vrot.slane %v474_v53, %v22236_v7  ;;  %v8807_v62 = vrot.slane %v8436_v55, %v22236_v7  ;;  %14423 = vmatpush1.bf16.msra.mxu1 %v21884_v57  ;;  %v8803_v2 = vrot.slane %v8422_v58, %v22236_v7 }
  0x4b   : > { %1097 = vperm.xlu0 %21873, %v843_v42   ;;  %v490_v3 = vcombine.high %v474_v53, %v474_v53  ;;  %v8448_v5 = vrot.slane %v22298_v60, %v22233_v6  ;;  %6907 = vmatprep.subr.bf16.mxu0 %v27899_v1  ;;  %v867_v8 = vrot.slane %v492_v63, %v22236_v7  ;;  %v21895_v63 = vld [vmem:[#allocation2 + $0x60] sm:$0xff]  }
  0x4c   : > { %v8440_v9 = vcombine.high %v8436_v55, %v8436_v55  ;;  %v508_v10 = vcombine.high %v500_v59, %v500_v59  ;;  %14424 = vmatprep.subr.bf16.mxu1 %v27899_v1  ;;  %v8438_v13 = vcombine.high %v8422_v58, %v8422_v58  ;;  %v516_v23 = vrot.slane %v500_v59, %v22233_v6 }
  0x4d   : > { %6908 = vmatpush1.bf16.msra.mxu0 %v21885_v0  ;;  %v863_v12 = vrot.slane %v490_v3, %v22236_v7  ;;  %v8456_v16 = vcombine.high %v8448_v5, %v8448_v5  ;;  %v493_v29 = vcombine.high %v429_v56, %v429_v56  ;;  %v8464_v32 = vrot.slane %v8448_v5, %v22233_v6  ;;  %v21894_v56 = vld [vmem:[#allocation2 + $0x58] sm:$0xff]  }
  0x4e   : > { %1105 = vperm.xlu1 %21874, %v851_v45   ;;  %14425 = vmatpush1.bf16.msra.mxu1 %v21885_v0  ;;  %v8815_v14 = vrot.slane %v8440_v9, %v22236_v7  ;;  %v530_v15 = vrot.slane %v508_v10, %v22233_v6  ;;  %v8811_v19 = vrot.slane %v8438_v13, %v22236_v7  ;;  %v21896_v10 = vld [vmem:[#allocation2 + $0x68] sm:$0xff]  }
  0x4f   : > { %1101 = vperm.xlu0 %21873, %v847_v49   ;;  %6909 = vmatprep.subr.bf16.mxu0 %v27899_v1  ;;  %v8478_v28 = vrot.slane %v8456_v16, %v22233_v6  ;;  %v871_v31 = vrot.slane %v516_v23, %v22236_v7  ;;  %v507_v35 = vrot.slane %v493_v29, %v22233_v6  ;;  %v21897_v16 = vld [vmem:[#allocation2 + $0x70] sm:$0xff]   ;;  %v21898_v29 = vld [vmem:[#allocation2 + $0x78] sm:$0xff]  }
  0x50   : > { %14426 = vmatprep.subr.bf16.mxu1 %v27899_v1  ;;  %v875_v27 = vrot.slane %v530_v15, %v22236_v7  ;;  %v540_v33 = vcombine.high %v530_v15, %v530_v15  ;;  %v8441_v36 = vcombine.high %v22298_v60, %v22298_v60  ;;  %v8819_v38 = vrot.slane %v8464_v32, %v22236_v7 }
  0x51   : > { %6910 = vmatpush1.bf16.msra.mxu0 %v21886_v11  ;;  %v8823_v34 = vrot.slane %v8478_v28, %v22236_v7  ;;  %v538_v39 = vcombine.high %v516_v23, %v516_v23  ;;  %v8488_v41 = vcombine.high %v8478_v28, %v8478_v28  ;;  %v509_v42 = vcombine.high %v507_v35, %v507_v35 }
  0x52   : > { %9053 = vperm.xlu1 %21874, %v8799_v50   ;;  %14427 = vmatpush1.bf16.msra.mxu1 %v21886_v11  ;;  %v883_v40 = vrot.slane %v540_v33, %v22236_v7  ;;  %v8455_v43 = vrot.slane %v8441_v36, %v22233_v6  ;;  %v8486_v46 = vcombine.high %v8464_v32, %v8464_v32  ;;  %v21892_v50 = vld [vmem:[#allocation2 + $0x50] sm:$0xff]  }
  0x53   : > { %9049 = vperm.xlu0 %21873, %v8795_v52   ;;  %6911 = vmatprep.subr.bf16.mxu0 %v27899_v1  ;;  %v879_v45 = vrot.slane %v538_v39, %v22236_v7  ;;  %v8831_v47 = vrot.slane %v8488_v41, %v22236_v7  ;;  %v537_v48 = vrot.slane %v509_v42, %v22233_v6 }
  0x54   : > { %14428 = vmatprep.subr.bf16.mxu1 %v27899_v1  ;;  %v8457_v49 = vcombine.high %v8455_v43, %v8455_v43  ;;  %v8827_v52 = vrot.slane %v8486_v46, %v22236_v7  ;;  %v523_v53 = vrot.slane %v507_v35, %v22233_v6  ;;  %v8471_v57 = vrot.slane %v8455_v43, %v22233_v6 }
  0x55   : > { %6912 = vmatpush1.bf16.msra.mxu0 %v21887_v18  ;;  %v549_v58 = vrot.slane %v22339_v51, %v22233_v6  ;;  %v542_v28 = vcombine.high %v22339_v51, %v22339_v51  ;;  %v431_v51 = vld [vmem:[%s22230_s13 + $0x18] sm:$0xff] }
  0x56   : > { %1113 = vperm.xlu1 %21874, %v859_v54   ;;  %14429 = vmatpush1.bf16.msra.mxu1 %v21887_v18  ;;  %v891_v54 = vrot.slane %v537_v48, %v22236_v7  ;;  %v8485_v55 = vrot.slane %v8457_v49, %v22233_v6  ;;  %v887_v59 = vrot.slane %v523_v53, %v22236_v7 }
  0x57   : > { %1109 = vperm.xlu0 %21873, %v855_v61   ;;  %6913 = vmatprep.subr.bf16.mxu0 %v27899_v1  ;;  %v541_v61 = vcombine.high %v537_v48, %v537_v48  ;;  %v8835_v0 = vrot.slane %v8471_v57, %v22236_v7  ;;  %v539_v5 = vcombine.high %v523_v53, %v523_v53 }
  0x58   : > { %14430 = vmatprep.subr.bf16.mxu1 %v27899_v1  ;;  %v8839_v60 = vrot.slane %v8485_v55, %v22236_v7  ;;  %v8489_v9 = vcombine.high %v8485_v55, %v8485_v55  ;;  %v8487_v11 = vcombine.high %v8471_v57, %v8471_v57  ;;  %v565_v18 = vrot.slane %v549_v58, %v22233_v6  ;;  %v17436_v57 = vld [vmem:[%s22230_s13 + $0x58] sm:$0xff] }
  0x59   : > { %6914 = vmatpush1.bf16.msra.mxu0 %v21888_v30  ;;  %v895_v13 = vrot.slane %v539_v5, %v22236_v7  ;;  %v598_v53 = vrot.slane %v431_v51, %v22233_v6 }
  0x5a   : > { %9061 = vperm.xlu1 %21874, %v8807_v62   ;;  %14431 = vmatpush1.bf16.msra.mxu1 %v21888_v30  ;;  %v22354_v62 = vld [vmem:[%s22230_s13 + $0x50] sm:$0xff]  ;;  %v8843_v23 = vrot.slane %v8487_v11, %v22236_v7  ;;  %v903_v30 = vrot.slane %v565_v18, %v22236_v7 }
  0x5b   : > { %9057 = vperm.xlu0 %21873, %v8803_v2   ;;  %6915 = vmatprep.subr.bf16.mxu0 %v27899_v1  ;;  %v557_v2 = vcombine.high %v549_v58, %v549_v58  ;;  %v8497_v3 = vrot.slane %v22354_v62, %v22233_v6  ;;  %v8490_v35 = vcombine.high %v22354_v62, %v22354_v62 }
  0x5c   : > { %14432 = vmatprep.subr.bf16.mxu1 %v27899_v1 }
  0x5d   : > { %6916 = vmatpush1.bf16.msra.mxu0 %v21889_v37  ;;  %v8505_v15 = vcombine.high %v8497_v3, %v8497_v3  ;;  %v8504_v41 = vrot.slane %v8490_v35, %v22233_v6 }
  0x5e   : > { %1121 = vperm.xlu1 %21874, %v867_v8   ;;  %14433 = vmatpush1.bf16.msra.mxu1 %v21889_v37  ;;  %v899_v8 = vrot.slane %v541_v61, %v22236_v7  ;;  %v587_v37 = vcombine.high %v565_v18, %v565_v18 }
  0x5f   : > { %1117 = vperm.xlu0 %21873, %v863_v12   ;;  %6917 = vmatprep.subr.bf16.mxu0 %v27899_v1  ;;  %v579_v12 = vrot.slane %v557_v2, %v22233_v6  ;;  %v8506_v46 = vcombine.high %v8504_v41, %v8504_v41 }
  0x60   : > { %14434 = vmatprep.subr.bf16.mxu1 %v27899_v1  ;;  %v911_v42 = vrot.slane %v587_v37, %v22236_v7 }
  0x61   : > { %6918 = vmatpush1.bf16.msra.mxu0 %v21890_v44  ;;  %v589_v32 = vcombine.high %v579_v12, %v579_v12 }
  0x62   : > { %9069 = vperm.xlu1 %21874, %v8815_v14   ;;  %14435 = vmatpush1.bf16.msra.mxu1 %v21890_v44  ;;  %v8847_v14 = vrot.slane %v8489_v9, %v22236_v7  ;;  %v614_v9 = vrot.slane %v598_v53, %v22233_v6 }
  0x63   : > { %9065 = vperm.xlu0 %21873, %v8811_v19   ;;  %6919 = vmatprep.subr.bf16.mxu0 %v27899_v1  ;;  %v907_v19 = vrot.slane %v579_v12, %v22236_v7  ;;  %v915_v39 = vrot.slane %v589_v32, %v22236_v7 }
  0x64   : > { %14436 = vmatprep.subr.bf16.mxu1 %v27899_v1 }
  0x65   : > { %6920 = vmatpush1.bf16.msra.mxu0 %v21892_v50 }
  0x66   : > { %1129 = vperm.xlu1 %21874, %v875_v27   ;;  %14437 = vmatpush1.bf16.msra.mxu1 %v21892_v50  ;;  %v8527_v27 = vrot.slane %v8505_v15, %v22233_v6  ;;  %v8534_v50 = vrot.slane %v8506_v46, %v22233_v6 }
  0x67   : > { %1125 = vperm.xlu0 %21873, %v871_v31   ;;  %6921 = vmatprep.subr.bf16.mxu0 %v27899_v1  ;;  %v8513_v31 = vrot.slane %v8497_v3, %v22233_v6 }
  0x68   : > { %14438 = vmatprep.subr.bf16.mxu1 %v27899_v1  ;;  %v8855_v33 = vrot.slane %v8527_v27, %v22236_v7  ;;  %v8871_v55 = vrot.slane %v8534_v50, %v22236_v7 }
  0x69   : > { %6922 = vmatpush1.bf16.msra.mxu0 %v21894_v56  ;;  %v8851_v36 = vrot.slane %v8513_v31, %v22236_v7  ;;  %v8535_v43 = vcombine.high %v8513_v31, %v8513_v31 }
  0x6a   : > { %9077 = vperm.xlu1 %21874, %v8823_v34   ;;  %14439 = vmatpush1.bf16.msra.mxu1 %v21894_v56  ;;  %v556_v34 = vrot.slane %v542_v28, %v22233_v6  ;;  %v636_v28 = vcombine.high %v614_v9, %v614_v9 }
  0x6b   : > { %9073 = vperm.xlu0 %21873, %v8819_v38   ;;  %6923 = vmatprep.subr.bf16.mxu0 %v27899_v1  ;;  %v8537_v38 = vcombine.high %v8527_v27, %v8527_v27 }
  0x6c   : > { %14440 = vmatprep.subr.bf16.mxu1 %v27899_v1  ;;  %v572_v48 = vrot.slane %v556_v34, %v22233_v6 }
  0x6d   : > { %6924 = vmatpush1.bf16.msra.mxu0 %v21895_v63  ;;  %v8863_v44 = vrot.slane %v8537_v38, %v22236_v7  ;;  %v432_v38 = vld [vmem:[%s22230_s13 + $0x20] sm:$0xff] }
  0x6e   : > { %1137 = vperm.xlu1 %21874, %v883_v40   ;;  %14441 = vmatpush1.bf16.msra.mxu1 %v21895_v63  ;;  %v558_v40 = vcombine.high %v556_v34, %v556_v34  ;;  %v588_v61 = vcombine.high %v572_v48, %v572_v48  ;;  %v8538_v63 = vcombine.high %v8534_v50, %v8534_v50 }
  0x6f   : > { %1133 = vperm.xlu0 %21873, %v879_v45   ;;  %6925 = vmatprep.subr.bf16.mxu0 %v27899_v1 }
  0x70   : > { %14442 = vmatprep.subr.bf16.mxu1 %v27899_v1  ;;  %v586_v45 = vrot.slane %v558_v40, %v22233_v6  ;;  %v927_v3 = vrot.slane %v588_v61, %v22236_v7  ;;  %v8879_v5 = vrot.slane %v8538_v63, %v22236_v7 }
  0x71   : > { %6926 = vmatpush1.bf16.msra.mxu0 %v21896_v10 }
  0x72   : > { %9085 = vperm.xlu1 %21874, %v8831_v47   ;;  %14443 = vmatpush1.bf16.msra.mxu1 %v21896_v10  ;;  %v8859_v47 = vrot.slane %v8535_v43, %v22236_v7  ;;  %v923_v49 = vrot.slane %v586_v45, %v22236_v7  ;;  %v590_v56 = vcombine.high %v586_v45, %v586_v45 }
  0x73   : > { %9081 = vperm.xlu0 %21873, %v8827_v52   ;;  %6927 = vmatprep.subr.bf16.mxu0 %v27899_v1  ;;  %v8520_v52 = vrot.slane %v8504_v41, %v22233_v6  ;;  %v591_v10 = vcombine.high %v431_v51, %v431_v51  ;;  %v647_v43 = vrot.slane %v432_v38, %v22233_v6 }
  0x74   : > { %14444 = vmatprep.subr.bf16.mxu1 %v27899_v1  ;;  %v931_v62 = vrot.slane %v590_v56, %v22236_v7 }
  0x75   : > { %6928 = vmatpush1.bf16.msra.mxu0 %v21897_v16  ;;  %v8867_v58 = vrot.slane %v8520_v52, %v22236_v7  ;;  %v655_v50 = vcombine.high %v647_v43, %v647_v43  ;;  %v22441_v61 = vrot.slane %v647_v43, %v22233_v6 }
  0x76   : > { %1145 = vperm.xlu1 %21874, %v891_v54   ;;  %14445 = vmatpush1.bf16.msra.mxu1 %v21897_v16  ;;  %v919_v54 = vrot.slane %v572_v48, %v22236_v7  ;;  %v8539_v16 = vcombine.high %v17436_v57, %v17436_v57 }
  0x77   : > { %1141 = vperm.xlu0 %21873, %v887_v59   ;;  %6929 = vmatprep.subr.bf16.mxu0 %v27899_v1  ;;  %v606_v59 = vcombine.high %v598_v53, %v598_v53  ;;  %v2891_v53 = vsub.s32 1, %v22222_v4 }
  0x78   : > { %14446 = vmatprep.subr.bf16.mxu1 %v27899_v1 }
  0x79   : > { %6930 = vmatpush1.bf16.msra.mxu0 %v21898_v29  ;;  %v628_v2 = vrot.slane %v606_v59, %v22233_v6  ;;  %v22438_v59 = vld [vmem:[%s22230_s13 + $0x28] sm:$0xff] }
  0x7a   : > { %9093 = vperm.xlu1 %21874, %v8839_v60   ;;  %14447 = vmatpush1.bf16.msra.mxu1 %v21898_v29  ;;  %v8546_v60 = vrot.slane %v17436_v57, %v22233_v6  ;;  %v8553_v29 = vrot.slane %v8539_v16, %v22233_v6 }
  0x7b   : > { %9089 = vperm.xlu0 %21873, %v8835_v0   ;;  %7188 = vmatprep.subr.bf16.mxu0 %v27899_v1  ;;  %v8536_v0 = vcombine.high %v8520_v52, %v8520_v52  ;;  %v939_v12 = vrot.slane %v628_v2, %v22236_v7 }
  0x7c   : > { %14705 = vmatprep.subr.bf16.mxu1 %v27899_v1  ;;  %v8562_v15 = vrot.slane %v8546_v60, %v22233_v6  ;;  %v8555_v37 = vcombine.high %v8553_v29, %v8553_v29  ;;  %v8569_v46 = vrot.slane %v8553_v29, %v22233_v6 }
  0x7d   : > { %v8875_v11 = vrot.slane %v8536_v0, %v22236_v7 }
  0x7e   : > { %1153 = vperm.xlu1 %21874, %v899_v8   ;;  %v8554_v8 = vcombine.high %v8546_v60, %v8546_v60  ;;  %v8883_v27 = vrot.slane %v8562_v15, %v22236_v7  ;;  %v8584_v34 = vcombine.high %v8562_v15, %v8562_v15  ;;  %v8585_v60 = vcombine.high %v8569_v46, %v8569_v46 }
  0x7f   : > { %1149 = vperm.xlu0 %21873, %v895_v13  }
  0x80   : > { %v8576_v13 = vrot.slane %v8554_v8, %v22233_v6  ;;  %v8891_v40 = vrot.slane %v8584_v34, %v22236_v7  ;;  %v696_v8 = vrot.slane %v22438_v59, %v22233_v6 }
  0x82   : > { %9101 = vperm.xlu1 %21874, %v8847_v14   ;;  %v935_v14 = vrot.slane %v614_v9, %v22236_v7  ;;  %v8887_v18 = vrot.slane %v8576_v13, %v22236_v7  ;;  %v8586_v31 = vcombine.high %v8576_v13, %v8576_v13  ;;  %v967_v13 = vrot.slane %v22441_v61, %v22236_v7 }
  0x83   : > { %9097 = vperm.xlu0 %21873, %v8843_v23   ;;  %v605_v23 = vrot.slane %v591_v10, %v22233_v6 }
  0x84   : > { %v8895_v35 = vrot.slane %v8586_v31, %v22236_v7  ;;  %v704_v31 = vcombine.high %v696_v8, %v696_v8 }
  0x85   : > { %v607_v32 = vcombine.high %v605_v23, %v605_v23 }
  0x86   : > { %1161 = vperm.xlu1 %21874, %v907_v19   ;;  %v638_v19 = vcombine.high %v628_v2, %v628_v2  ;;  %v22450_v2 = vrot.slane %v22250_v17, %v2891_v53 }
  0x87   : > { %1157 = vperm.xlu0 %21873, %v903_v30  }
  0x88   : > { %v947_v30 = vrot.slane %v638_v19, %v22236_v7  ;;  %v22474_v19 = vrot.slane %v22250_v17, %v22236_v7 }
  0x8a   : > { %9109 = vperm.xlu1 %21874, %v8855_v33   ;;  %v943_v33 = vrot.slane %v636_v28, %v22236_v7 }
  0x8b   : > { %9105 = vperm.xlu0 %21873, %v8851_v36   ;;  %v635_v36 = vrot.slane %v607_v32, %v22233_v6  ;;  %v22486_v32 = vld [vmem:[%s22461_s25 + $0x8] sm:$0xff] }
  0x8d   : > { %v955_v41 = vrot.slane %v635_v36, %v22236_v7  ;;  %v639_v48 = vcombine.high %v635_v36, %v635_v36 }
  0x8e   : > { %1169 = vperm.xlu1 %21874, %v915_v39   ;;  %v621_v39 = vrot.slane %v605_v23, %v22233_v6 }
  0x8f   : > { %1165 = vperm.xlu0 %21873, %v911_v42   ;;  %v8583_v42 = vrot.slane %v8555_v37, %v22233_v6  ;;  %v963_v56 = vrot.slane %v639_v48, %v22236_v7  ;;  %v689_v48 = vcombine.high %v22438_v59, %v22438_v59 }
  0x90   : > { %v951_v45 = vrot.slane %v621_v39, %v22236_v7 }
  0x91   : > { %v8587_v57 = vcombine.high %v8583_v42, %v8583_v42 }
  0x92   : > { %9117 = vperm.xlu1 %21874, %v8863_v44   ;;  %v17437_v44 = vld [vmem:[%s22230_s13 + $0x60] sm:$0xff] }
  0x93   : > { %9113 = vperm.xlu0 %21873, %v8859_v47   ;;  %v8903_v47 = vrot.slane %v8583_v42, %v22236_v7  ;;  %v8595_v51 = vrot.slane %v17437_v44, %v22233_v6  ;;  %v8588_v52 = vcombine.high %v17437_v44, %v17437_v44  ;;  %v8911_v10 = vrot.slane %v8587_v57, %v22236_v7 }
  0x95   : > { %v8603_v63 = vcombine.high %v8595_v51, %v8595_v51  ;;  %v22446_v4 = vrot.slane %v8595_v51, %v22233_v6  ;;  %v8602_v0 = vrot.slane %v8588_v52, %v22233_v6 }
  0x96   : > { %1177 = vperm.xlu1 %21874, %v923_v49   ;;  %v640_v49 = vcombine.high %v432_v38, %v432_v38  ;;  %v22505_v38 = vrot.slane %v696_v8, %v22233_v6 }
  0x97   : > { %1173 = vperm.xlu0 %21873, %v919_v54   ;;  %v8899_v54 = vrot.slane %v8569_v46, %v22236_v7  ;;  %v8633_v15 = vcombine.high %v22446_v4, %v22446_v4  ;;  %v8604_v23 = vcombine.high %v8602_v0, %v8602_v0  ;;  %v22495_v34 = vrot.slane %v8602_v0, %v22233_v6 }
  0x99   : > { %v22502_v37 = vrot.slane %v8633_v15, %v22236_v7  ;;  %v8634_v44 = vcombine.high %v22495_v34, %v22495_v34 }
  0x9a   : > { %9125 = vperm.xlu1 %21874, %v8871_v55   ;;  %v637_v55 = vcombine.high %v621_v39, %v621_v39 }
  0x9b   : > { %9121 = vperm.xlu0 %21873, %v8867_v58   ;;  %v654_v58 = vrot.slane %v640_v49, %v22233_v6 }
  0x9c   : > { %v959_v9 = vrot.slane %v637_v55, %v22236_v7 }
  0x9e   : > { %1185 = vperm.xlu1 %21874, %v931_v62   ;;  %v677_v62 = vrot.slane %v655_v50, %v22233_v6 }
  0x9f   : > { %1181 = vperm.xlu0 %21873, %v927_v3   ;;  %v685_v3 = vcombine.high %v22441_v61, %v22441_v61 }
  0xa0   : > { %v971_v16 = vrot.slane %v677_v62, %v22236_v7 }
  0xa1   : > { %v22480_v28 = vrot.slane %v685_v3, %v22236_v7 }
  0xa2   : > { %9133 = vperm.xlu1 %21874, %v8879_v5   ;;  %v687_v5 = vcombine.high %v677_v62, %v677_v62 }
  0xa3   : > { %9129 = vperm.xlu0 %21873, %v8875_v11   ;;  %v656_v11 = vcombine.high %v654_v58, %v654_v58 }
  0xa4   : > { %v22483_v29 = vrot.slane %v687_v5, %v22236_v7 }
  0xa5   : > { %v22492_v17 = vrot.slane %v656_v11, %v22233_v6 }
  0xa6   : > { %1193 = vperm.xlu1 %21874, %v939_v12   ;;  %v8907_v12 = vrot.slane %v8585_v60, %v22236_v7  ;;  %v22559_v60 = vrot.slane %v8634_v44, %v22236_v7 }
  0xa7   : > { %1189 = vperm.xlu0 %21873, %v935_v14   ;;  %v8625_v14 = vrot.slane %v8603_v63, %v22233_v6  ;;  %v688_v43 = vcombine.high %v22492_v17, %v22492_v17  ;;  %v987_v53 = vrot.slane %v22492_v17, %v22236_v7  ;;  %v22686_v17 = vld [vmem:[%s22230_s13 + $0x30] sm:$0xff] }
  0xa9   : > { %v8919_v36 = vrot.slane %v8625_v14, %v22236_v7  ;;  %v22556_v59 = vrot.slane %v688_v43, %v22236_v7 }
  0xaa   : > { %9141 = vperm.xlu1 %21874, %v8887_v18   ;;  %v8915_v18 = vrot.slane %v22446_v4, %v22236_v7 }
  0xab   : > { %9137 = vperm.xlu0 %21873, %v8883_v27   ;;  %v22477_v27 = vld [vmem:[%s22230_s13 + $0x68] sm:$0xff] }
  0xac   : > { %v22509_v39 = vrot.slane %v22477_v27, %v22233_v6 }
  0xae   : > { %1201 = vperm.xlu1 %21874, %v947_v30   ;;  %v8635_v30 = vcombine.high %v8625_v14, %v8625_v14  ;;  %v22538_v51 = vrot.slane %v22509_v39, %v22233_v6  ;;  %v8652_v15 = vcombine.high %v22509_v39, %v22509_v39  ;;  %v21899_v39 = vld [vmem:[#allocation2 + $0x80] sm:$0xff]  }
  0xaf   : > { %1197 = vperm.xlu0 %21873, %v943_v33   ;;  %v22489_v33 = vrot.slane %v654_v58, %v22233_v6 }
  0xb0   : > { %v22525_v46 = vrot.slane %v8635_v30, %v22236_v7  ;;  %v22587_v30 = vrot.slane %v689_v48, %v22233_v6 }
  0xb1   : > { %v686_v42 = vcombine.high %v22489_v33, %v22489_v33  ;;  %v983_v52 = vrot.slane %v22489_v33, %v22236_v7 }
  0xb2   : > { %9149 = vperm.xlu1 %21874, %v8895_v35   ;;  %v22498_v35 = vld [vmem:[%s22461_s25] sm:$0xff] }
  0xb3   : > { %9145 = vperm.xlu0 %21873, %v8891_v40   ;;  %v22553_v58 = vrot.slane %v686_v42, %v22236_v7 }
  0xb6   : > { %1209 = vperm.xlu1 %21874, %v955_v41   ;;  %v22514_v41 = vrot.slane %v8604_v23, %v22233_v6  ;;  %v8682_v23 = vcombine.high %v22538_v51, %v22538_v51 }
  0xb7   : > { %1205 = vperm.xlu0 %21873, %v951_v45  }
  0xb8   : > { %v8636_v50 = vcombine.high %v22514_v41, %v22514_v41  ;;  %v8935_v57 = vrot.slane %v22514_v41, %v22236_v7 }
  0xba   : > { %9157 = vperm.xlu1 %21874, %v8903_v47   ;;  %v22528_v47 = vrot.slane %v704_v31, %v22233_v6 }
  0xbb   : > { %9153 = vperm.xlu0 %21873, %v8899_v54   ;;  %v8931_v54 = vrot.slane %v22495_v34, %v22236_v7 }
  0xbc   : > { %v1003_v3 = vrot.slane %v22528_v47, %v22236_v7 }
  0xbe   : > { %1217 = vperm.xlu1 %21874, %v963_v56  }
  0xbf   : > { %1213 = vperm.xlu0 %21873, %v959_v9   ;;  %v22572_v9 = vrot.slane %v8636_v50, %v22236_v7 }
  0xc2   : > { %9165 = vperm.xlu1 %21874, %v8911_v10  }
  0xc3   : > { %9161 = vperm.xlu0 %21873, %v8907_v12  }
  0xc5   : > { %v22511_v40 = vpop.permute.xlu1 %9041 }
  0xc6   : > { %28291 = vst [vmem:[#allocation12_spill] sm:$0xff] %v22511_v40  ;;  %v9297_v45 = vsub.f32 %v22511_v40, %v22486_v32  ;;  %1225 = vperm.xlu1 %21874, %v971_v16   ;;  %v9296_v49 = vsub.f32 %v22511_v40, %v22498_v35  ;;  %v22561_v61 = vpop.permute.xlu0 %1093  ;;  %v736_v16 = vcombine.high %v22528_v47, %v22528_v47 }
  0xc7   : > { %28292 = vst [vmem:[#allocation13_spill] sm:$0xff] %v22561_v61  ;;  %1221 = vperm.xlu0 %21873, %v967_v13   ;;  %v1349_v5 = vsub.f32 %v22561_v61, %v22486_v32  ;;  %v1348_v12 = vsub.f32 %v22561_v61, %v22498_v35  ;;  %v734_v13 = vcombine.high %v22505_v38, %v22505_v38 }
  0xc8   : > { %v17442_v63 = vclamps-f32 %v9297_v45, 32.0  ;;  %v17441_v8 = vclamps-f32 %v9296_v49, 32.0  ;;  %v27901_v45 = vmov 1.0|1.0  }
  0xc9   : > { %v22548_v56 = vpop.permute.xlu1 %9045  ;;  %v16025_v42 = vclamps-f32 %v1349_v5, 32.0  ;;  %v16024_v48 = vclamps-f32 %v1348_v12, 32.0  ;;  %v22627_v12 = vrot.slane %v736_v16, %v22236_v7 }
  0xca   : > { %v9305_v62 = vsub.f32 %v22548_v56, %v22486_v32  ;;  %v9304_v0 = vsub.f32 %v22548_v56, %v22498_v35  ;;  %9173 = vperm.xlu1 %21874, %v8919_v36   ;;  %v22589_v31 = vpop.permute.xlu0 %1097  ;;  %vm10833_vm0 = vcmp.eq.f32.partialorder %v17442_v63, %v22450_v2  ;;  %vm10832_vm4 = vcmp.eq.f32.partialorder %v17441_v8, %v22474_v19 }
  0xcb   : > { %9169 = vperm.xlu0 %21873, %v8915_v18   ;;  %v1357_v43 = vsub.f32 %v22589_v31, %v22486_v32  ;;  %v1356_v44 = vsub.f32 %v22589_v31, %v22498_v35  ;;  %v22617_v63 = vrot.slane %v734_v13, %v22236_v7  ;;  %vm2926_vm6 = vcmp.eq.f32.partialorder %v16025_v42, %v22450_v2 }
  0xcc   : > { %v17450_v11 = vclamps-f32 %v9305_v62, 32.0  ;;  %v17449_v14 = vclamps-f32 %v9304_v0, 32.0  ;;  %v22614_v62 = vrot.slane %v8652_v15, %v22233_v6  ;;  %vm2925_vm10 = vcmp.eq.f32.partialorder %v16024_v48, %v22474_v19 }
  0xcd   : > { %v22591_v36 = vpop.permute.xlu1 %1105  ;;  %v16033_v49 = vclamps-f32 %v1357_v43, 32.0  ;;  %v16032_v50 = vclamps-f32 %v1356_v44, 32.0  ;;  %v22650_v42 = vrot.slane %v22587_v30, %v22233_v6 }
  0xce   : > { %28293 = vst [vmem:[#allocation14_spill] sm:$0xff] %v22591_v36  ;;  %vm10841_vm1 = vcmp.eq.f32.partialorder %v17450_v11, %v22450_v2  ;;  %vm10840_vm2 = vcmp.eq.f32.partialorder %v17449_v14, %v22474_v19  ;;  %1233 = vperm.xlu1 %21874, %v22483_v29   ;;  %v1373_v4 = vsub.f32 %v22591_v36, %v22486_v32  ;;  %v22619_v0 = vpop.permute.xlu0 %1101  ;;  %v22624_v11 = vld [vmem:[#allocation2 + $0x88] sm:$0xff]  }
  0xcf   : > { %vm19944_vm3 = vmpackc.low %vm10841_vm1, %vm10833_vm0  ;;  %v1372_v18 = vsub.f32 %v22591_v36, %v22498_v35  ;;  %v8637_v29 = vcombine.high %v22477_v27, %v22477_v27  ;;  %28294 = vst [vmem:[#allocation15_spill] sm:$0xff] %v22619_v0  ;;  %v22630_v14 = vrot.slane %v8682_v23, %v22236_v7  ;;  %1229 = vperm.xlu0 %21873, %v22480_v28  }
  0xd0   : > { %19945 = vmatprep.mubr.msk.bf16.mxu1 %vm19944_vm3, %v27901_v45  ;;  %vm19946_vm5 = vmpackc.low %vm10840_vm2, %vm10832_vm4  ;;  %v16049_v8 = vclamps-f32 %v1373_v4, 32.0  ;;  %vm2934_vm7 = vcmp.eq.f32.partialorder %v16033_v49, %v22450_v2  ;;  %vm2933_vm8 = vcmp.eq.f32.partialorder %v16032_v50, %v22474_v19  ;;  %v1365_v15 = vsub.f32 %v22619_v0, %v22486_v32  ;;  %v22660_v49 = vld [vmem:[#allocation2 + $0x90] sm:$0xff]  }
  0xd1   : > { %19947 = vmatmul.mubr.msk.bf16.vlgmr.msra.gmra.mrb[0].mxu1 %vm19946_vm5, %v27901_v45  ;;  %v22622_v5 = vpop.permute.xlu1 %9053  ;;  %vm19112_vm9 = vmpackc.low %vm2934_vm7, %vm2926_vm6  ;;  %v1364_v16 = vsub.f32 %v22619_v0, %v22498_v35  ;;  %v16048_v23 = vclamps-f32 %v1372_v18, 32.0  ;;  %v705_v50 = vcombine.high %v22587_v30, %v22587_v30 }
  0xd2   : > { %14706 = vmatpush1.bf16.msra.mxu1 %v21899_v39  ;;  %9181 = vperm.xlu1 %21874, %v22525_v46   ;;  %v9321_v13 = vsub.f32 %v22622_v5, %v22486_v32  ;;  %vm19114_vm11 = vmpackc.low %vm2933_vm8, %vm2925_vm10  ;;  %v16041_v28 = vclamps-f32 %v1365_v15, 32.0  ;;  %vm2950_vm12 = vcmp.eq.f32.partialorder %v16049_v8, %v22450_v2  ;;  %v9320_v46 = vsub.f32 %v22622_v5, %v22498_v35  ;;  %v22652_v43 = vpop.permute.xlu0 %9049 }
  0xd3   : > { %14707 = vmatprep.subr.bf16.mxu1 %v27899_v1  ;;  %19113 = vmatprep.mubr.msk.bf16.mxu0 %vm19112_vm9, %v27901_v45  ;;  %28295 = vst [vmem:[#allocation16_spill] sm:$0xff] %v22652_v43  ;;  %v16040_v4 = vclamps-f32 %v1364_v16, 32.0  ;;  %v9313_v15 = vsub.f32 %v22652_v43, %v22486_v32  ;;  %vm2949_vm0 = vcmp.eq.f32.partialorder %v16048_v23, %v22474_v19 }
  0xd4   : > { %19115 = vmatmul.mubr.msk.bf16.vlgmr.msra.gmra.mrb[0].mxu0 %vm19114_vm11, %v27901_v45  ;;  %v17466_v48 = vclamps-f32 %v9321_v13, 32.0  ;;  %9177 = vperm.xlu0 %21873, %v22502_v37   ;;  %vm2942_vm13 = vcmp.eq.f32.partialorder %v16041_v28, %v22450_v2  ;;  %v9312_v13 = vsub.f32 %v22652_v43, %v22498_v35  ;;  %v17465_v16 = vclamps-f32 %v9320_v46, 32.0 }
  0xd5   : > { %v22655_v44 = vpop.permute.xlu1 %1113  ;;  %7189 = vmatpush1.bf16.msra.mxu0 %v21899_v39  ;;  %vm19116_vm14 = vmpackc.low %vm2950_vm12, %vm2942_vm13  ;;  %vm2941_vm15 = vcmp.eq.f32.partialorder %v16040_v4, %v22474_v19  ;;  %v17458_v30 = vclamps-f32 %v9313_v15, 32.0  ;;  %v8684_v15 = vcombine.high %v22614_v62, %v22614_v62  ;;  %v22731_v4 = vrot.slane %v22686_v17, %v22233_v6 }
  0xd6   : > { %14708 = vmatpush1.bf16.msra.mxu1 %v22624_v11  ;;  %1241 = vperm.xlu1 %21874, %v987_v53   ;;  %v1389_v37 = vsub.f32 %v22655_v44, %v22486_v32  ;;  %vm10857_vm1 = vcmp.eq.f32.partialorder %v17466_v48, %v22450_v2  ;;  %v17457_v39 = vclamps-f32 %v9312_v13, 32.0  ;;  %v1388_v8 = vsub.f32 %v22655_v44, %v22498_v35  ;;  %v22688_v53 = vpop.permute.xlu0 %1109  ;;  %vm22710_vm4 = vmpackc.low %vm2949_vm0, %vm2941_vm15 }
  0xd7   : > { %7190 = vmatprep.subr.bf16.mxu0 %v27899_v1  ;;  %19117 = vmatprep.mubr.msk.bf16.mxu0 %vm19116_vm14, %v27901_v45  ;;  %vm10856_vm2 = vcmp.eq.f32.partialorder %v17465_v16, %v22474_v19  ;;  %v22700_v13 = vrot.slane %v8637_v29, %v22233_v6  ;;  %vm10849_vm3 = vcmp.eq.f32.partialorder %v17458_v30, %v22450_v2 }
  0xd8   : > { %14709 = vmatprep.subr.bf16.mxu1 %v27899_v1  ;;  %v16065_v46 = vclamps-f32 %v1389_v37, 32.0  ;;  %1237 = vperm.xlu0 %21873, %v983_v52   ;;  %vm10848_vm5 = vcmp.eq.f32.partialorder %v17457_v39, %v22474_v19  ;;  %v1381_v27 = vsub.f32 %v22688_v53, %v22486_v32  ;;  %vm19948_vm6 = vmpackc.low %vm10857_vm1, %vm10849_vm3  ;;  %v1380_v33 = vsub.f32 %v22688_v53, %v22498_v35 }
  0xd9   : > { %v22690_v28 = vpop.permute.xlu1 %9061  ;;  %v16064_v52 = vclamps-f32 %v1388_v8, 32.0  ;;  %7191 = vmatpush1.bf16.msra.mxu0 %v22624_v11  ;;  %19949 = vmatprep.mubr.msk.bf16.mxu1 %vm19948_vm6, %v27901_v45  ;;  %vm19950_vm7 = vmpackc.low %vm10856_vm2, %vm10848_vm5  ;;  %v22749_v8 = vrot.slane %v705_v50, %v22233_v6  ;;  %v22858_v47 = vrot.slane %v22731_v4, %v22233_v6 }
  0xda   : > { %28296 = vst [vmem:[#allocation17_spill] sm:$0xff] %v22690_v28  ;;  %14710 = vmatpush1.bf16.msra.mxu1 %v22660_v49  ;;  %v9337_v29 = vsub.f32 %v22690_v28, %v22486_v32  ;;  %9189 = vperm.xlu1 %21874, %v8935_v57   ;;  %v9336_v23 = vsub.f32 %v22690_v28, %v22498_v35  ;;  %v16057_v41 = vclamps-f32 %v1381_v27, 32.0  ;;  %v22740_v48 = vpop.permute.xlu0 %9057  ;;  %v16056_v16 = vclamps-f32 %v1380_v33, 32.0 }
  0xdb   : > { %vm2966_vm8 = vcmp.eq.f32.partialorder %v16065_v46, %v22450_v2  ;;  %7192 = vmatprep.subr.bf16.mxu0 %v27899_v1  ;;  %28299 = vst [vmem:[#allocation18_spill] sm:$0xff] %v22740_v48  ;;  %19951 = vmatmul.mubr.msk.bf16.gmra.mrb[4].mxu1 %vm19950_vm7, %v27901_v45  ;;  %v735_v27 = vcombine.high %v22650_v42, %v22650_v42  ;;  %v21906_v46 = vld [vmem:[#allocation2 + $0x98] sm:$0xff]  }
  0xdc   : > { %v17482_v57 = vclamps-f32 %v9337_v29, 32.0  ;;  %19119 = vmatmul.mubr.msk.bf16.gmra.mrb[4].mxu0 %vm22710_vm4, %v27901_v45  ;;  %v17481_v39 = vclamps-f32 %v9336_v23, 32.0  ;;  %9185 = vperm.xlu0 %21873, %v8931_v54   ;;  %vm2958_vm9 = vcmp.eq.f32.partialorder %v16057_v41, %v22450_v2  ;;  %v9329_v37 = vsub.f32 %v22740_v48, %v22486_v32 }
  0xdd   : > { %v22746_v30 = vpop.permute.xlu1 %1121  ;;  %v9328_v29 = vsub.f32 %v22740_v48, %v22498_v35  ;;  %v22762_v33 = vrot.slane %v8684_v15, %v22236_v7  ;;  %vm19120_vm10 = vmpackc.low %vm2966_vm8, %vm2958_vm9  ;;  %vm2957_vm11 = vcmp.eq.f32.partialorder %v16056_v16, %v22474_v19  ;;  %vm2965_vm12 = vcmp.eq.f32.partialorder %v16064_v52, %v22474_v19  ;;  %7193 = vmatpush1.bf16.msra.mxu0 %v22660_v49 }
  0xde   : > { %1249 = vperm.xlu1 %21874, %v22556_v59   ;;  %v1405_v34 = vsub.f32 %v22746_v30, %v22486_v32  ;;  %v1404_v54 = vsub.f32 %v22746_v30, %v22498_v35  ;;  %19121 = vmatprep.mubr.msk.bf16.mxu0 %vm19120_vm10, %v27901_v45  ;;  %v17474_v50 = vclamps-f32 %v9329_v37, 32.0  ;;  %vm10873_vm13 = vcmp.eq.f32.partialorder %v17482_v57, %v22450_v2  ;;  %v22780_v23 = vpop.permute.xlu0 %1117  ;;  %vm22797_vm0 = vmpackc.low %vm2965_vm12, %vm2957_vm11 }
  0xdf   : > { %v17473_v15 = vclamps-f32 %v9328_v29, 32.0  ;;  %v22778_v59 = vrot.slane %v22700_v13, %v22233_v6  ;;  %vm10872_vm14 = vcmp.eq.f32.partialorder %v17481_v39, %v22474_v19  ;;  %v8653_v29 = vcombine.high %v22700_v13, %v22700_v13  ;;  %7194 = vmatprep.subr.bf16.mxu0 %v27899_v1  ;;  %14711 = vmatprep.subr.bf16.mxu1 %v27899_v1 }
  0xe0   : > { %v16081_v11 = vclamps-f32 %v1405_v34, 32.0  ;;  %1245 = vperm.xlu0 %21873, %v22553_v58   ;;  %vm10865_vm15 = vcmp.eq.f32.partialorder %v17474_v50, %v22450_v2  ;;  %v1397_v13 = vsub.f32 %v22780_v23, %v22486_v32  ;;  %v1396_v58 = vsub.f32 %v22780_v23, %v22498_v35  ;;  %14712 = vmatpush1.bf16.msra.mxu1 %v21906_v46 }
  0xe1   : > { %v22782_v41 = vpop.permute.xlu1 %9069  ;;  %vm10864_vm1 = vcmp.eq.f32.partialorder %v17473_v15, %v22474_v19  ;;  %vm19952_vm2 = vmpackc.low %vm10873_vm13, %vm10865_vm15  ;;  %v16080_v52 = vclamps-f32 %v1404_v54, 32.0  ;;  %v22814_v50 = vrot.slane %v735_v27, %v22236_v7  ;;  %7195 = vmatpush1.bf16.msra.mxu0 %v21906_v46  ;;  %14713 = vmatprep.subr.bf16.mxu1 %v27899_v1  ;;  %v28305_v46 = vrot.slane %v22505_v38, %v22236_v7 }
  0xe2   : > { %v9353_v34 = vsub.f32 %v22782_v41, %v22486_v32  ;;  %9197 = vperm.xlu1 %21874, %v22572_v9   ;;  %v9352_v16 = vsub.f32 %v22782_v41, %v22498_v35  ;;  %19953 = vmatprep.mubr.msk.bf16.mxu1 %vm19952_vm2, %v27901_v45  ;;  %vm19954_vm3 = vmpackc.low %vm10872_vm14, %vm10864_vm1  ;;  %v16073_v15 = vclamps-f32 %v1397_v13, 32.0  ;;  %vm2982_vm4 = vcmp.eq.f32.partialorder %v16081_v11, %v22450_v2  ;;  %v22822_v54 = vpop.permute.xlu0 %9065 }
  0xe3   : > { %v737_v9 = vcombine.high %v22749_v8, %v22749_v8  ;;  %19955 = vmatmul.mubr.msk.bf16.gmra.mrb[8].mxu1 %vm19954_vm3, %v27901_v45  ;;  %v16072_v39 = vclamps-f32 %v1396_v58, 32.0  ;;  %v9345_v49 = vsub.f32 %v22822_v54, %v22486_v32  ;;  %v9344_v10 = vsub.f32 %v22822_v54, %v22498_v35  ;;  %7196 = vmatprep.subr.bf16.mxu0 %v27899_v1 }
  0xe4   : > { %v17498_v57 = vclamps-f32 %v9353_v34, 32.0  ;;  %19123 = vmatmul.mubr.msk.bf16.gmra.mrb[8].mxu0 %vm22797_vm0, %v27901_v45  ;;  %v17497_v37 = vclamps-f32 %v9352_v16, 32.0  ;;  %v22833_v34 = vrot.slane %v8653_v29, %v22233_v6  ;;  %9193 = vperm.xlu0 %21873, %v22559_v60   ;;  %vm2974_vm5 = vcmp.eq.f32.partialorder %v16073_v15, %v22450_v2  ;;  %v21908_v15 = vld [vmem:[#allocation2 + $0xa0] sm:$0xff]  }
  0xe5   : > { %v22828_v27 = vpop.permute.xlu1 %1129  ;;  %v8683_v58 = vcombine.high %v22778_v59, %v22778_v59  ;;  %vm19124_vm6 = vmpackc.low %vm2982_vm4, %vm2974_vm5  ;;  %vm2973_vm7 = vcmp.eq.f32.partialorder %v16072_v39, %v22474_v19  ;;  %vm2981_vm8 = vcmp.eq.f32.partialorder %v16080_v52, %v22474_v19  ;;  %v17490_v16 = vclamps-f32 %v9345_v49, 32.0  ;;  %7197 = vmatpush1.bf16.msra.mxu0 %v21908_v15  ;;  %14714 = vmatpush1.bf16.msra.mxu1 %v21908_v15 }
  0xe6   : > { %28302 = vst [vmem:[#allocation19_spill] sm:$0xff] %v22828_v27  ;;  %1257 = vperm.xlu1 %21874, %v1003_v3   ;;  %v1421_v60 = vsub.f32 %v22828_v27, %v22486_v32  ;;  %v1420_v29 = vsub.f32 %v22828_v27, %v22498_v35  ;;  %19125 = vmatprep.mubr.msk.bf16.mxu0 %vm19124_vm6, %v27901_v45  ;;  %v17489_v11 = vclamps-f32 %v9344_v10, 32.0  ;;  %v22861_v3 = vld [vmem:[%s22230_s13 + $0x70] sm:$0xff]  ;;  %v22863_v13 = vpop.permute.xlu0 %1125  ;;  %vm22883_vm12 = vmpackc.low %vm2981_vm8, %vm2973_vm7 }
  0xe7   : > { %vm10889_vm9 = vcmp.eq.f32.partialorder %v17498_v57, %v22450_v2  ;;  %28303 = vst [vmem:[#allocation20_spill] sm:$0xff] %v22863_v13  ;;  %vm10888_vm10 = vcmp.eq.f32.partialorder %v17497_v37, %v22474_v19  ;;  %v22869_v49 = vrot.slane %v737_v9, %v22236_v7  ;;  %vm10881_vm11 = vcmp.eq.f32.partialorder %v17490_v16, %v22450_v2 }
  0xe8   : > { %v16097_v55 = vclamps-f32 %v1421_v60, 32.0  ;;  %1253 = vperm.xlu0 %21873, %v28305_v46   ;;  %vm10880_vm13 = vcmp.eq.f32.partialorder %v17489_v11, %v22474_v19  ;;  %v1413_v60 = vsub.f32 %v22863_v13, %v22486_v32  ;;  %vm19956_vm14 = vmpackc.low %vm10889_vm9, %vm10881_vm11  ;;  %v28308_v38 = vrot.slane %v22614_v62, %v22236_v7  ;;  %7198 = vmatprep.subr.bf16.mxu0 %v28314_v24 }
  0xe9   : > { %v22865_v18 = vpop.permute.xlu1 %9077  ;;  %v1412_v52 = vsub.f32 %v22863_v13, %v22498_v35  ;;  %v16096_v39 = vclamps-f32 %v1420_v29, 32.0  ;;  %v22903_v11 = vrot.slane %v22861_v3, %v22233_v6  ;;  %19957 = vmatprep.mubr.msk.bf16.mxu1 %vm19956_vm14, %v27901_v45  ;;  %vm19958_vm15 = vmpackc.low %vm10888_vm10, %vm10880_vm13  ;;  %v28311_v46 = vrot.slane %v22538_v51, %v22236_v7  ;;  %14715 = vmatprep.subr.bf16.mxu1 %v28314_v24 }
  0xea   : > { %28304 = vst [vmem:[#allocation21_spill] sm:$0xff] %v22865_v18  ;;  %v9369_v10 = vsub.f32 %v22865_v18, %v22486_v32  ;;  %9205 = vperm.xlu1 %21874, %v28308_v38   ;;  %v9368_v16 = vsub.f32 %v22865_v18, %v22498_v35  ;;  %v16089_v57 = vclamps-f32 %v1413_v60, 32.0  ;;  %vm2998_vm0 = vcmp.eq.f32.partialorder %v16097_v55, %v22450_v2  ;;  %v22911_v29 = vpop.permute.xlu0 %9073 }
  0xeb   : > { %28309 = vst [vmem:[#allocation22_spill] sm:$0xff] %v22911_v29  ;;  %19959 = vmatmul.mubr.msk.bf16.gmra.mrb[12].mxu1 %vm19958_vm15, %v27901_v45  ;;  %v16088_v37 = vclamps-f32 %v1412_v52, 32.0  ;;  %v22920_v60 = vrot.slane %v8683_v58, %v22236_v7  ;;  %v9361_v9 = vsub.f32 %v22911_v29, %v22486_v32  ;;  %vm2997_vm4 = vcmp.eq.f32.partialorder %v16096_v39, %v22474_v19 }
  0xec   : > { %v17514_v62 = vclamps-f32 %v9369_v10, 32.0  ;;  %19127 = vmatmul.mubr.msk.bf16.gmra.mrb[12].mxu0 %vm22883_vm12, %v27901_v45  ;;  %v17513_v1 = vclamps-f32 %v9368_v16, 32.0  ;;  %v8685_v10 = vcombine.high %v22833_v34, %v22833_v34  ;;  %9201 = vperm.xlu0 %21873, %v28311_v46   ;;  %vm2990_vm1 = vcmp.eq.f32.partialorder %v16089_v57, %v22450_v2 }
  0xed   : > { %v22917_v38 = vpop.permute.xlu1 %1137  ;;  %v9360_v45 = vsub.f32 %v22911_v29, %v22498_v35  ;;  %vm19128_vm2 = vmpackc.low %vm2998_vm0, %vm2990_vm1  ;;  %vm2989_vm3 = vcmp.eq.f32.partialorder %v16088_v37, %v22474_v19  ;;  %v28312_v16 = vmov 1.0|1.0   ;;  %v17506_v57 = vclamps-f32 %v9361_v9, 32.0 }
  0xee   : > { %28310 = vst [vmem:[#allocation23_spill] sm:$0xff] %v22917_v38  ;;  %1265 = vperm.xlu1 %21874, %v22627_v12   ;;  %v1437_v51 = vsub.f32 %v22917_v38, %v22486_v32  ;;  %v1436_v58 = vsub.f32 %v22917_v38, %v22498_v35  ;;  %19129 = vmatprep.mubr.msk.bf16.mxu0 %vm19128_vm2, %v28312_v16  ;;  %v21910_v12 = vld [vmem:[#allocation2 + $0xa8] sm:$0xff]   ;;  %v22947_v52 = vpop.permute.xlu0 %1133  ;;  %vm22964_vm8 = vmpackc.low %vm2997_vm4, %vm2989_vm3 }
  0xef   : > { %vm10905_vm5 = vcmp.eq.f32.partialorder %v17514_v62, %v22450_v2  ;;  %v17505_v46 = vclamps-f32 %v9360_v45, 32.0  ;;  %vm10904_vm6 = vcmp.eq.f32.partialorder %v17513_v1, %v22474_v19  ;;  %v8701_v9 = vcombine.high %v22903_v11, %v22903_v11  ;;  %7199 = vmatpush1.bf16.msra.mxu0 %v21910_v12  ;;  %14716 = vmatpush1.bf16.msra.mxu1 %v21910_v12 }
  0xf0   : > { %v16113_v26 = vclamps-f32 %v1437_v51, 32.0  ;;  %1261 = vperm.xlu0 %21873, %v22617_v63   ;;  %vm10897_vm7 = vcmp.eq.f32.partialorder %v17506_v57, %v22450_v2  ;;  %v1429_v15 = vsub.f32 %v22947_v52, %v22486_v32  ;;  %v1428_v63 = vsub.f32 %v22947_v52, %v22498_v35  ;;  %7200 = vmatprep.subr.bf16.mxu0 %v28314_v24 }
  0xf1   : > { %v22949_v25 = vpop.permute.xlu1 %9085  ;;  %vm10896_vm9 = vcmp.eq.f32.partialorder %v17505_v46, %v22474_v19  ;;  %vm19960_vm10 = vmpackc.low %vm10905_vm5, %vm10897_vm7  ;;  %v16112_v39 = vclamps-f32 %v1436_v58, 32.0  ;;  %v22981_v57 = vrot.slane %v8685_v10, %v22236_v7  ;;  %14717 = vmatprep.subr.bf16.mxu1 %v28314_v24  ;;  %v28323_v12 = vrot.slane %v22650_v42, %v22236_v7 }
  0xf2   : > { %28313 = vst [vmem:[#allocation24_spill] sm:$0xff] %v22949_v25  ;;  %v9385_v51 = vsub.f32 %v22949_v25, %v22486_v32  ;;  %9213 = vperm.xlu1 %21874, %v22762_v33   ;;  %v9384_v37 = vsub.f32 %v22949_v25, %v22498_v35  ;;  %19961 = vmatprep.mubr.msk.bf16.mxu1 %vm19960_vm10, %v28312_v16  ;;  %vm19962_vm11 = vmpackc.low %vm10904_vm6, %vm10896_vm9  ;;  %v16105_v46 = vclamps-f32 %v1429_v15, 32.0  ;;  %v22993_v22 = vpop.permute.xlu0 %9081  ;;  %v16104_v10 = vclamps-f32 %v1428_v63, 32.0 }
  0xf3   : > { %vm3014_vm12 = vcmp.eq.f32.partialorder %v16113_v26, %v22450_v2  ;;  %v28317_v33 = vcombine.high %v22731_v4, %v22731_v4  ;;  %28318 = vst [vmem:[#allocation25_spill] sm:$0xff] %v22993_v22  ;;  %19963 = vmatmul.mubr.msk.bf16.gmra.mrb[16].mxu1 %vm19962_vm11, %v28312_v16  ;;  %v23006_v4 = vrot.slane %v8701_v9, %v22233_v6 }
  0xf4   : > { %v17530_v62 = vclamps-f32 %v9385_v51, 32.0  ;;  %19131 = vmatmul.mubr.msk.bf16.gmra.mrb[16].mxu0 %vm22964_vm8, %v28312_v16  ;;  %v17529_v15 = vclamps-f32 %v9384_v37, 32.0  ;;  %v23003_v51 = vrot.slane %v22903_v11, %v22233_v6  ;;  %9209 = vperm.xlu0 %21873, %v22630_v14   ;;  %vm3006_vm13 = vcmp.eq.f32.partialorder %v16105_v46, %v22450_v2  ;;  %v21911_v46 = vld [vmem:[#allocation2 + $0xb0] sm:$0xff]  }
  0xf5   : > { %v22991_v58 = vrot.slane %v28317_v33, %v22233_v6  ;;  %v22999_v1 = vpop.permute.xlu1 %1145  ;;  %v9377_v45 = vsub.f32 %v22993_v22, %v22486_v32  ;;  %v9376_v33 = vsub.f32 %v22993_v22, %v22498_v35  ;;  %vm19132_vm14 = vmpackc.low %vm3014_vm12, %vm3006_vm13  ;;  %v28320_v11 = vrot.slane %v22749_v8, %v22236_v7  ;;  %7201 = vmatpush1.bf16.msra.mxu0 %v21911_v46 }
  0xf6   : > { %28319 = vst [vmem:[#allocation26_spill] sm:$0xff] %v22999_v1  ;;  %vm3005_vm15 = vcmp.eq.f32.partialorder %v16104_v10, %v22474_v19  ;;  %vm3013_vm0 = vcmp.eq.f32.partialorder %v16112_v39, %v22474_v19  ;;  %v1453_v14 = vsub.f32 %v22999_v1, %v22486_v32  ;;  %v1452_v9 = vsub.f32 %v22999_v1, %v22498_v35 }
  0xf7   : > { %v785_v63 = vcombine.high %v22991_v58, %v22991_v58  ;;  %1273 = vperm.xlu1 %21874, %v28320_v11   ;;  %19133 = vmatprep.mubr.msk.bf16.mxu0 %vm19132_vm14, %v28312_v16  ;;  %v17522_v37 = vclamps-f32 %v9377_v45, 32.0  ;;  %vm10921_vm1 = vcmp.eq.f32.partialorder %v17530_v62, %v22450_v2  ;;  %v17521_v26 = vclamps-f32 %v9376_v33, 32.0  ;;  %v23031_v11 = vpop.permute.xlu0 %1141  ;;  %vm23050_vm4 = vmpackc.low %vm3013_vm0, %vm3005_vm15 }
  0xf8   : > { %28321 = vst [vmem:[#allocation27_spill] sm:$0xff] %v23031_v11  ;;  %vm10920_vm2 = vcmp.eq.f32.partialorder %v17529_v15, %v22474_v19  ;;  %v16129_v25 = vclamps-f32 %v1453_v14, 32.0  ;;  %1269 = vperm.xlu0 %21873, %v28323_v12   ;;  %v1445_v14 = vsub.f32 %v23031_v11, %v22486_v32  ;;  %v28326_v42 = vrot.slane %v22833_v34, %v22236_v7 }
  0xf9   : > { %v23033_v55 = vpop.permute.xlu1 %9093  ;;  %vm10913_vm3 = vcmp.eq.f32.partialorder %v17522_v37, %v22450_v2  ;;  %vm10912_vm5 = vcmp.eq.f32.partialorder %v17521_v26, %v22474_v19  ;;  %v1444_v39 = vsub.f32 %v23031_v11, %v22498_v35  ;;  %v16128_v10 = vclamps-f32 %v1452_v9, 32.0  ;;  %14718 = vmatpush1.bf16.msra.mxu1 %v21911_v46  ;;  %7202 = vmatprep.subr.bf16.mxu0 %v28314_v24 }
  0xfa   : > { %28322 = vst [vmem:[#allocation28_spill] sm:$0xff] %v23033_v55  ;;  %v9401_v1 = vsub.f32 %v23033_v55, %v22486_v32  ;;  %vm19964_vm6 = vmpackc.low %vm10921_vm1, %vm10913_vm3  ;;  %v9400_v37 = vsub.f32 %v23033_v55, %v22498_v35  ;;  %v28327_v26 = vcombine.high %v22858_v47, %v22858_v47  ;;  %v16121_v34 = vclamps-f32 %v1445_v14, 32.0  ;;  %14719 = vmatprep.subr.bf16.mxu1 %v28314_v24 }
  0xfb   : > { %9221 = vperm.xlu1 %21874, %v28326_v42   ;;  %19965 = vmatprep.mubr.msk.bf16.mxu1 %vm19964_vm6, %v28312_v16  ;;  %vm19966_vm7 = vmpackc.low %vm10920_vm2, %vm10912_vm5  ;;  %vm3030_vm8 = vcmp.eq.f32.partialorder %v16129_v25, %v22450_v2  ;;  %v23079_v9 = vrot.slane %v785_v63, %v22236_v7  ;;  %v23081_v42 = vpop.permute.xlu0 %9089  ;;  %v16120_v15 = vclamps-f32 %v1444_v39, 32.0  ;;  %v8686_v63 = vcombine.high %v22861_v3, %v22861_v3 }
  0xfc   : > { %v23072_v12 = vrot.slane %v28327_v26, %v22236_v7  ;;  %v17546_v62 = vclamps-f32 %v9401_v1, 32.0  ;;  %28328 = vst [vmem:[#allocation29_spill] sm:$0xff] %v23081_v42  ;;  %19135 = vmatmul.mubr.msk.bf16.gmra.mrb[20].mxu0 %vm23050_vm4, %v28312_v16  ;;  %19967 = vmatmul.mubr.msk.bf16.gmra.mrb[20].mxu1 %vm19966_vm7, %v28312_v16  ;;  %v17545_v45 = vclamps-f32 %v9400_v37, 32.0  ;;  %v28330_v1 = vcombine.high %v22686_v17, %v22686_v17 }
  0xfd   : > { %v23087_v26 = vpop.permute.xlu1 %1153  ;;  %v28331_v8 = vrot.slane %v22778_v59, %v22236_v7  ;;  %vm3022_vm9 = vcmp.eq.f32.partialorder %v16121_v34, %v22450_v2  ;;  %v9393_v33 = vsub.f32 %v23081_v42, %v22486_v32  ;;  %v9392_v39 = vsub.f32 %v23081_v42, %v22498_v35 }
  0xfe   : > { %28329 = vst [vmem:[#allocation30_spill] sm:$0xff] %v23087_v26  ;;  %v752_v14 = vrot.slane %v28330_v1, %v22233_v6  ;;  %v8731_v37 = vcombine.high %v23003_v51, %v23003_v51  ;;  %vm19136_vm10 = vmpackc.low %vm3030_vm8, %vm3022_vm9  ;;  %vm3021_vm11 = vcmp.eq.f32.partialorder %v16120_v15, %v22474_v19  ;;  %vm3029_vm12 = vcmp.eq.f32.partialorder %v16128_v10, %v22474_v19 }
  0xff   : > { %9217 = vperm.xlu0 %21873, %v28331_v8   ;;  %1281 = vperm.xlu1 %21874, %v22869_v49   ;;  %v1469_v17 = vsub.f32 %v23087_v26, %v22486_v32  ;;  %v1468_v59 = vsub.f32 %v23087_v26, %v22498_v35  ;;  %v17538_v3 = vclamps-f32 %v9393_v33, 32.0  ;;  %vm10937_vm13 = vcmp.eq.f32.partialorder %v17546_v62, %v22450_v2  ;;  %v21914_v49 = vld [vmem:[#allocation2 + $0xb8] sm:$0xff]   ;;  %v23118_v34 = vpop.permute.xlu0 %1149  ;;  %vm23132_vm0 = vmpackc.low %vm3029_vm12, %vm3021_vm11 }
 0x100   : > { %19137 = vmatprep.mubr.msk.bf16.mxu0 %vm19136_vm10, %v28312_v16  ;;  %v17537_v8 = vclamps-f32 %v9392_v39, 32.0  ;;  %v8733_v25 = vcombine.high %v23006_v4, %v23006_v4  ;;  %28332 = vst [vmem:[#allocation31_spill] sm:$0xff] %v23118_v34  ;;  %vm10936_vm14 = vcmp.eq.f32.partialorder %v17545_v45, %v22474_v19  ;;  %v754_v42 = vcombine.high %v752_v14, %v752_v14 }
 0x101   : > { %v23120_v1 = vpop.permute.xlu1 %9101  ;;  %v16145_v55 = vclamps-f32 %v1469_v17, 32.0  ;;  %v8700_v26 = vrot.slane %v8686_v63, %v22233_v6  ;;  %vm10929_vm15 = vcmp.eq.f32.partialorder %v17538_v3, %v22450_v2  ;;  %v1461_v63 = vsub.f32 %v23118_v34, %v22486_v32  ;;  %7203 = vmatpush1.bf16.msra.mxu0 %v21914_v49  ;;  %14720 = vmatpush1.bf16.msra.mxu1 %v21914_v49 }
 0x102   : > { %28333 = vst [vmem:[#allocation32_spill] sm:$0xff] %v23120_v1  ;;  %vm10928_vm1 = vcmp.eq.f32.partialorder %v17537_v8, %v22474_v19  ;;  %v9417_v33 = vsub.f32 %v23120_v1, %v22486_v32  ;;  %vm19968_vm2 = vmpackc.low %vm10937_vm13, %vm10929_vm15  ;;  %v16144_v10 = vclamps-f32 %v1468_v59, 32.0  ;;  %v9416_v15 = vsub.f32 %v23120_v1, %v22498_v35  ;;  %7204 = vmatprep.subr.bf16.mxu0 %v28314_v24 }
 0x103   : > { %1277 = vperm.xlu0 %21873, %v22814_v50   ;;  %9229 = vperm.xlu1 %21874, %v22981_v57   ;;  %v1460_v50 = vsub.f32 %v23118_v34, %v22498_v35  ;;  %v23149_v39 = vrot.slane %v8731_v37, %v22236_v7  ;;  %vm19970_vm3 = vmpackc.low %vm10936_vm14, %vm10928_vm1  ;;  %v16137_v17 = vclamps-f32 %v1461_v63, 32.0  ;;  %vm3046_vm4 = vcmp.eq.f32.partialorder %v16145_v55, %v22450_v2  ;;  %v23158_v59 = vpop.permute.xlu0 %9097 }
 0x104   : > { %19969 = vmatprep.mubr.msk.bf16.mxu1 %vm19968_vm2, %v28312_v16  ;;  %v17562_v62 = vclamps-f32 %v9417_v33, 32.0  ;;  %v23156_v57 = vrot.slane %v752_v14, %v22233_v6  ;;  %28336 = vst [vmem:[#allocation33_spill] sm:$0xff] %v23158_v59  ;;  %19139 = vmatmul.mubr.msk.bf16.gmra.mrb[24].mxu0 %vm23132_vm0, %v28312_v16  ;;  %v17561_v3 = vclamps-f32 %v9416_v15, 32.0  ;;  %v23167_v8 = vrot.slane %v8733_v25, %v22236_v7  ;;  %v21915_v15 = vld [vmem:[#allocation2 + $0xc0] sm:$0xff]  }
 0x105   : > { %19971 = vmatmul.mubr.msk.bf16.gmra.mrb[24].mxu1 %vm19970_vm3, %v28312_v16  ;;  %v23164_v37 = vpop.permute.xlu1 %1161  ;;  %v16136_v45 = vclamps-f32 %v1460_v50, 32.0  ;;  %v8702_v63 = vcombine.high %v8700_v26, %v8700_v26  ;;  %vm3038_vm5 = vcmp.eq.f32.partialorder %v16137_v17, %v22450_v2  ;;  %v9409_v14 = vsub.f32 %v23158_v59, %v22486_v32  ;;  %14721 = vmatprep.subr.bf16.mxu1 %v28314_v24 }
 0x106   : > { %28337 = vst [vmem:[#allocation34_spill] sm:$0xff] %v23164_v37  ;;  %v9408_v46 = vsub.f32 %v23158_v59, %v22498_v35  ;;  %v23176_v33 = vrot.slane %v754_v42, %v22233_v6  ;;  %vm19140_vm6 = vmpackc.low %vm3046_vm4, %vm3038_vm5  ;;  %v28338_v25 = vrot.slane %v22991_v58, %v22236_v7  ;;  %vm3045_vm8 = vcmp.eq.f32.partialorder %v16144_v10, %v22474_v19 }
 0x107   : > { %9225 = vperm.xlu0 %21873, %v22920_v60   ;;  %vm3037_vm7 = vcmp.eq.f32.partialorder %v16136_v45, %v22474_v19  ;;  %v1485_v60 = vsub.f32 %v23164_v37, %v22486_v32  ;;  %v1484_v50 = vsub.f32 %v23164_v37, %v22498_v35  ;;  %19141 = vmatprep.mubr.msk.bf16.mxu0 %vm19140_vm6, %v28312_v16  ;;  %v17554_v42 = vclamps-f32 %v9409_v14, 32.0  ;;  %v23193_v17 = vpop.permute.xlu0 %1157 }
 0x108   : > { %1289 = vperm.xlu1 %21874, %v28338_v25   ;;  %vm10953_vm9 = vcmp.eq.f32.partialorder %v17562_v62, %v22450_v2  ;;  %v17553_v55 = vclamps-f32 %v9408_v46, 32.0  ;;  %28339 = vst [vmem:[#allocation35_spill] sm:$0xff] %v23193_v17  ;;  %vm10952_vm10 = vcmp.eq.f32.partialorder %v17561_v3, %v22474_v19  ;;  %v23199_v37 = vrot.slane %v8700_v26, %v22233_v6  ;;  %vm23214_vm12 = vmpackc.low %vm3045_vm8, %vm3037_vm7 }
 0x109   : > { %v23195_v25 = vpop.permute.xlu1 %9109  ;;  %v16161_v1 = vclamps-f32 %v1485_v60, 32.0  ;;  %v23202_v14 = vrot.slane %v8702_v63, %v22233_v6  ;;  %v28341_v49 = vrot.slane %v22858_v47, %v22236_v7  ;;  %vm10945_vm11 = vcmp.eq.f32.partialorder %v17554_v42, %v22450_v2  ;;  %7205 = vmatpush1.bf16.msra.mxu0 %v21915_v15  ;;  %14722 = vmatpush1.bf16.msra.mxu1 %v21915_v15 }
 0x10a   : > { %28340 = vst [vmem:[#allocation36_spill] sm:$0xff] %v23195_v25  ;;  %vm10944_vm13 = vcmp.eq.f32.partialorder %v17553_v55, %v22474_v19  ;;  %v1477_v63 = vsub.f32 %v23193_v17, %v22486_v32  ;;  %v9433_v46 = vsub.f32 %v23195_v25, %v22486_v32  ;;  %vm19972_vm14 = vmpackc.low %vm10953_vm9, %vm10945_vm11  ;;  %v28344_v47 = vrot.slane %v23006_v4, %v22236_v7 }
 0x10b   : > { %1285 = vperm.xlu0 %21873, %v28341_v49   ;;  %v1476_v10 = vsub.f32 %v23193_v17, %v22498_v35  ;;  %v16160_v45 = vclamps-f32 %v1484_v50, 32.0  ;;  %v9432_v60 = vsub.f32 %v23195_v25, %v22498_v35  ;;  %19973 = vmatprep.mubr.msk.bf16.mxu1 %vm19972_vm14, %v28312_v16  ;;  %vm19974_vm15 = vmpackc.low %vm10952_vm10, %vm10944_vm13  ;;  %vm3062_vm0 = vcmp.eq.f32.partialorder %v16161_v1, %v22450_v2  ;;  %v23240_v50 = vpop.permute.xlu0 %9105 }
 0x10c   : > { %9237 = vperm.xlu1 %21874, %v28344_v47   ;;  %v16153_v62 = vclamps-f32 %v1477_v63, 32.0  ;;  %v17578_v4 = vclamps-f32 %v9433_v46, 32.0  ;;  %v784_v55 = vcombine.high %v23156_v57, %v23156_v57  ;;  %28345 = vst [vmem:[#allocation37_spill] sm:$0xff] %v23240_v50  ;;  %19143 = vmatmul.mubr.msk.bf16.gmra.mrb[28].mxu0 %vm23214_vm12, %v28312_v16  ;;  %v28347_v58 = vrot.slane %v23003_v51, %v22236_v7 }
 0x10d   : > { %19975 = vmatmul.mubr.msk.bf16.gmra.mrb[28].mxu1 %vm19974_vm15, %v28312_v16  ;;  %v23246_v49 = vpop.permute.xlu1 %1169  ;;  %v16152_v3 = vclamps-f32 %v1476_v10, 32.0  ;;  %v17577_v63 = vclamps-f32 %v9432_v60, 32.0  ;;  %v9425_v26 = vsub.f32 %v23240_v50, %v22486_v32  ;;  %v9424_v42 = vsub.f32 %v23240_v50, %v22498_v35  ;;  %v23263_v60 = vld [vmem:[%s22230_s13 + $0x38] sm:$0xff]  ;;  %7206 = vmatprep.subr.bf16.mxu0 %v28314_v24 }
 0x10e   : > { %28346 = vst [vmem:[#allocation38_spill] sm:$0xff] %v23246_v49  ;;  %vm3054_vm1 = vcmp.eq.f32.partialorder %v16153_v62, %v22450_v2  ;;  %v786_v10 = vcombine.high %v23176_v33, %v23176_v33  ;;  %vm3061_vm4 = vcmp.eq.f32.partialorder %v16160_v45, %v22474_v19  ;;  %v1501_v51 = vsub.f32 %v23246_v49, %v22486_v32  ;;  %v23315_v45 = vld [vmem:[%s22461_s25] sm:$0xff] }
 0x10f   : > { %9233 = vperm.xlu0 %21873, %v28347_v58   ;;  %vm19144_vm2 = vmpackc.low %vm3062_vm0, %vm3054_vm1  ;;  %vm3053_vm3 = vcmp.eq.f32.partialorder %v16152_v3, %v22474_v19  ;;  %v1500_v58 = vsub.f32 %v23246_v49, %v22498_v35  ;;  %v17570_v62 = vclamps-f32 %v9425_v26, 32.0  ;;  %vm10969_vm5 = vcmp.eq.f32.partialorder %v17578_v4, %v22450_v2  ;;  %v23279_v47 = vpop.permute.xlu0 %1165  ;;  %14723 = vmatprep.subr.bf16.mxu1 %v28314_v24 }
 0x110   : > { %1297 = vperm.xlu1 %21874, %v23079_v9   ;;  %19145 = vmatprep.mubr.msk.bf16.mxu0 %vm19144_vm2, %v28312_v16  ;;  %v17569_v46 = vclamps-f32 %v9424_v42, 32.0  ;;  %v23277_v1 = vrot.slane %v784_v55, %v22236_v7  ;;  %v21916_v9 = vld [vmem:[#allocation2 + $0xc8] sm:$0xff]   ;;  %28348 = vst [vmem:[#allocation39_spill] sm:$0xff] %v23279_v47  ;;  %vm10968_vm6 = vcmp.eq.f32.partialorder %v17577_v63, %v22474_v19  ;;  %v16177_v32 = vclamps-f32 %v1501_v51, 32.0  ;;  %vm23296_vm8 = vmpackc.low %vm3061_vm4, %vm3053_vm3  ;;  %v23309_v51 = vld [vmem:[%s22230_s13 + $0x78] sm:$0xff]  ;;  %s15909_s13 = sshll.u32 %s27509_s10, 4  ;;  %s27837_s13 = int_to_ptr.vmem [resolvable:$true] %s15909_s13 }
 0x111   : > { %v23281_v25 = vpop.permute.xlu1 %9117  ;;  %v8732_v35 = vcombine.high %v23199_v37, %v23199_v37  ;;  %v794_v42 = vrot.slane %v23263_v60, %v22233_v6  ;;  %vm10961_vm7 = vcmp.eq.f32.partialorder %v17570_v62, %v22450_v2  ;;  %v23302_v55 = vld [vmem:[%s22461_s25 + $0x8] sm:$0xff]  ;;  %v1492_v3 = vsub.f32 %v23279_v47, %v23315_v45  ;;  %7207 = vmatpush1.bf16.msra.mxu0 %v21916_v9  ;;  %s22000_s17 = scalar_lea.vmem %s27837_s13, 8192 }
 0x112   : > { %28349 = vst [vmem:[#allocation40_spill] sm:$0xff] %v23281_v25  ;;  %vm10960_vm9 = vcmp.eq.f32.partialorder %v17569_v46, %v22474_v19  ;;  %v1493_v26 = vsub.f32 %v23279_v47, %v23302_v55  ;;  %vm19976_vm10 = vmpackc.low %vm10969_vm5, %vm10961_vm7  ;;  %v16176_v46 = vclamps-f32 %v1500_v58, 32.0  ;;  %v9448_v62 = vsub.f32 %v23281_v25, %v23315_v45  ;;  %14724 = vmatpush1.bf16.msra.mxu1 %v21916_v9  ;;  %p22001_p8 = scmp.ne.s32.totalorder %s27837_s13, %s22000_s17 }
 0x113   : > { %1293 = vperm.xlu0 %21873, %v23072_v12   ;;  %v9449_v12 = vsub.f32 %v23281_v25, %v23302_v55  ;;  %v23322_v49 = vrot.slane %v786_v10, %v22236_v7  ;;  %19977 = vmatprep.mubr.msk.bf16.mxu1 %vm19976_vm10, %v28312_v16  ;;  %vm19978_vm11 = vmpackc.low %vm10968_vm6, %vm10960_vm9  ;;  %vm3078_vm12 = vcmp.eq.f32.partialorder %v16177_v32, %v22450_v2  ;;  %v23330_v58 = vpop.permute.xlu0 %9113  ;;  %v16168_v63 = vclamps-f32 %v1492_v3, 32.0 }
 0x114   : > { %9245 = vperm.xlu1 %21874, %v23167_v8   ;;  %v16169_v4 = vclamps-f32 %v1493_v26, 32.0  ;;  %v8734_v50 = vcombine.high %v23202_v14, %v23202_v14  ;;  %28352 = vst [vmem:[#allocation41_spill] sm:$0xff] %v23330_v58  ;;  %19147 = vmatmul.mubr.msk.bf16.gmra.mrb[32].mxu0 %vm23296_vm8, %v28312_v16  ;;  %v17593_v25 = vclamps-f32 %v9448_v62, 32.0  ;;  %v802_v26 = vcombine.high %v794_v42, %v794_v42  ;;  %p22002_p11 = pnand %p22001_p8, %p28738_p10 }
 0x115   : > { %v17594_v8 = vclamps-f32 %v9449_v12, 32.0  ;;  %19979 = vmatmul.mubr.msk.bf16.gmra.mrb[32].mxu1 %vm19978_vm11, %v28312_v16  ;;  %v23336_v10 = vpop.permute.xlu1 %1177  ;;  %v8742_v12 = vrot.slane %v23309_v51, %v22233_v6  ;;  %v9441_v47 = vsub.f32 %v23330_v58, %v23302_v55  ;;  %v9440_v15 = vsub.f32 %v23330_v58, %v23315_v45  ;;  %7208 = vmatprep.subr.bf16.mxu0 %v28314_v24 }
 0x116   : > { %28353 = vst [vmem:[#allocation42_spill] sm:$0xff] %v23336_v10  ;;  %vm3070_vm13 = vcmp.eq.f32.partialorder %v16169_v4, %v22450_v2  ;;  %v23347_v17 = vrot.slane %v8732_v35, %v22236_v7  ;;  %v28354_v3 = vrot.slane %v23176_v33, %v22236_v7  ;;  %vm3069_vm15 = vcmp.eq.f32.partialorder %v16168_v63, %v22474_v19  ;;  %v21917_v33 = vld [vmem:[#allocation2 + $0xd0] sm:$0xff]   ;;  %p22003_p13 = pneg %p22002_p11 }
 0x117   : > { %9241 = vperm.xlu0 %21873, %v23149_v39   ;;  %vm19148_vm14 = vmpackc.low %vm3078_vm12, %vm3070_vm13  ;;  %vm3077_vm0 = vcmp.eq.f32.partialorder %v16176_v46, %v22474_v19  ;;  %v1517_v39 = vsub.f32 %v23336_v10, %v23302_v55  ;;  %v1516_v62 = vsub.f32 %v23336_v10, %v23315_v45  ;;  %v17586_v35 = vclamps-f32 %v9441_v47, 32.0  ;;  %14725 = vmatprep.subr.bf16.mxu1 %v28314_v24 }
 0x118   : > { %1305 = vperm.xlu1 %21874, %v28354_v3   ;;  %19149 = vmatprep.mubr.msk.bf16.mxu0 %vm19148_vm14, %v28312_v16  ;;  %vm10985_vm1 = vcmp.eq.f32.partialorder %v17594_v8, %v22450_v2  ;;  %v17585_v32 = vclamps-f32 %v9440_v15, 32.0  ;;  %v23363_v4 = vrot.slane %v794_v42, %v22233_v6  ;;  %v23365_v3 = vpop.permute.xlu0 %1173  ;;  %vm10984_vm2 = vcmp.eq.f32.partialorder %v17593_v25, %v22474_v19  ;;  %vm23383_vm4 = vmpackc.low %vm3077_vm0, %vm3069_vm15 }
 0x119   : > { %v23367_v58 = vpop.permute.xlu1 %9125  ;;  %v16193_v59 = vclamps-f32 %v1517_v39, 32.0  ;;  %v23371_v10 = vrot.slane %v802_v26, %v22233_v6  ;;  %v8750_v34 = vcombine.high %v8742_v12, %v8742_v12  ;;  %v28356_v47 = vrot.slane %v23156_v57, %v22236_v7  ;;  %7209 = vmatpush1.bf16.msra.mxu0 %v21917_v33  ;;  %14726 = vmatpush1.bf16.msra.mxu1 %v21917_v33 }
 0x11a   : > { %28355 = vst [vmem:[#allocation43_spill] sm:$0xff] %v23367_v58  ;;  %vm10977_vm3 = vcmp.eq.f32.partialorder %v17586_v35, %v22450_v2  ;;  %vm10976_vm5 = vcmp.eq.f32.partialorder %v17585_v32, %v22474_v19  ;;  %v1509_v42 = vsub.f32 %v23365_v3, %v23302_v55  ;;  %v9465_v26 = vsub.f32 %v23367_v58, %v23302_v55 }
 0x11b   : > { %1301 = vperm.xlu0 %21873, %v28356_v47   ;;  %vm19980_vm6 = vmpackc.low %vm10985_vm1, %vm10977_vm3  ;;  %v28359_v57 = vrot.slane %v23202_v14, %v22236_v7  ;;  %v1508_v46 = vsub.f32 %v23365_v3, %v23315_v45  ;;  %v16192_v63 = vclamps-f32 %v1516_v62, 32.0  ;;  %v9464_v15 = vsub.f32 %v23367_v58, %v23315_v45  ;;  %7210 = vmatprep.subr.bf16.mxu0 %v28314_v24 }
 0x11c   : > { %v9007_v39 = vrot.slane %v8734_v50, %v22236_v7  ;;  %19981 = vmatprep.mubr.msk.bf16.mxu1 %vm19980_vm6, %v28312_v16  ;;  %vm19982_vm7 = vmpackc.low %vm10984_vm2, %vm10976_vm5  ;;  %v16185_v8 = vclamps-f32 %v1509_v42, 32.0  ;;  %vm3094_vm8 = vcmp.eq.f32.partialorder %v16193_v59, %v22450_v2  ;;  %v17610_v35 = vclamps-f32 %v9465_v26, 32.0  ;;  %v23409_v32 = vpop.permute.xlu0 %9121  ;;  %19151 = vmatmul.mubr.msk.bf16.gmra.mrb[36].mxu0 %vm23383_vm4, %v28312_v16 }
 0x11d   : > { %9253 = vperm.xlu1 %21874, %v28359_v57   ;;  %v23407_v14 = vrot.slane %v8742_v12, %v22233_v6  ;;  %28360 = vst [vmem:[#allocation44_spill] sm:$0xff] %v23409_v32  ;;  %19983 = vmatmul.mubr.msk.bf16.gmra.mrb[36].mxu1 %vm19982_vm7, %v28312_v16  ;;  %v23415_v50 = vpop.permute.xlu1 %1185  ;;  %v16184_v25 = vclamps-f32 %v1508_v46, 32.0  ;;  %v17609_v62 = vclamps-f32 %v9464_v15, 32.0  ;;  %v1067_v12 = vrot.slane %v23371_v10, %v22236_v7 }
 0x11e   : > { %28361 = vst [vmem:[#allocation45_spill] sm:$0xff] %v23415_v50  ;;  %v28362_v42 = vrot.slane %v23199_v37, %v22236_v7  ;;  %vm3086_vm9 = vcmp.eq.f32.partialorder %v16185_v8, %v22450_v2  ;;  %v9457_v9 = vsub.f32 %v23409_v32, %v23302_v55  ;;  %v9456_v26 = vsub.f32 %v23409_v32, %v23315_v45 }
 0x11f   : > { %v23430_v57 = vrot.slane %v8750_v34, %v22233_v6  ;;  %vm19152_vm10 = vmpackc.low %vm3094_vm8, %vm3086_vm9  ;;  %vm3085_vm11 = vcmp.eq.f32.partialorder %v16184_v25, %v22474_v19  ;;  %vm3093_vm12 = vcmp.eq.f32.partialorder %v16192_v63, %v22474_v19  ;;  %v1533_v37 = vsub.f32 %v23415_v50, %v23302_v55  ;;  %14727 = vmatprep.subr.bf16.mxu1 %v28314_v24 }
 0x120   : > { %9249 = vperm.xlu0 %21873, %v28362_v42   ;;  %v1532_v46 = vsub.f32 %v23415_v50, %v23315_v45  ;;  %19153 = vmatprep.mubr.msk.bf16.mxu0 %vm19152_vm10, %v28312_v16  ;;  %v17602_v15 = vclamps-f32 %v9457_v9, 32.0  ;;  %vm11001_vm13 = vcmp.eq.f32.partialorder %v17610_v35, %v22450_v2  ;;  %v17601_v34 = vclamps-f32 %v9456_v26, 32.0  ;;  %v23445_v8 = vpop.permute.xlu0 %1181  ;;  %vm23462_vm0 = vmpackc.low %vm3093_vm12, %vm3085_vm11 }
 0x121   : > { %1313 = vperm.xlu1 %21874, %v23322_v49   ;;  %v21918_v49 = vld [vmem:[#allocation2 + $0xd8] sm:$0xff]   ;;  %v23447_v42 = vpop.permute.xlu1 %9133  ;;  %vm11000_vm14 = vcmp.eq.f32.partialorder %v17609_v62, %v22474_v19  ;;  %v16209_v47 = vclamps-f32 %v1533_v37, 32.0  ;;  %v832_v50 = vcombine.high %v23363_v4, %v23363_v4  ;;  %v787_v9 = vcombine.high %v23263_v60, %v23263_v60 }
 0x122   : > { %28363 = vst [vmem:[#allocation46_spill] sm:$0xff] %v23447_v42  ;;  %vm10993_vm15 = vcmp.eq.f32.partialorder %v17602_v15, %v22450_v2  ;;  %vm10992_vm1 = vcmp.eq.f32.partialorder %v17601_v34, %v22474_v19  ;;  %v1525_v60 = vsub.f32 %v23445_v8, %v23302_v55  ;;  %v9481_v26 = vsub.f32 %v23447_v42, %v23302_v55 }
 0x123   : > { %vm19984_vm2 = vmpackc.low %vm11001_vm13, %vm10993_vm15  ;;  %v16208_v63 = vclamps-f32 %v1532_v46, 32.0  ;;  %v9480_v25 = vsub.f32 %v23447_v42, %v23315_v45  ;;  %v9015_v37 = vrot.slane %v23430_v57, %v22236_v7  ;;  %vm3110_vm4 = vcmp.eq.f32.partialorder %v16209_v47, %v22450_v2  ;;  %7211 = vmatpush1.bf16.msra.mxu0 %v21918_v49  ;;  %14728 = vmatpush1.bf16.msra.mxu1 %v21918_v49 }
 0x124   : > { %1309 = vperm.xlu0 %21873, %v23277_v1   ;;  %v1524_v1 = vsub.f32 %v23445_v8, %v23315_v45  ;;  %19985 = vmatprep.mubr.msk.bf16.mxu1 %vm19984_vm2, %v28312_v16  ;;  %vm19986_vm3 = vmpackc.low %vm11000_vm14, %vm10992_vm1  ;;  %v16201_v15 = vclamps-f32 %v1525_v60, 32.0  ;;  %v17626_v35 = vclamps-f32 %v9481_v26, 32.0  ;;  %v23485_v46 = vpop.permute.xlu0 %9129  ;;  %v23494_v60 = vrot.slane %v787_v9, %v22233_v6 }
 0x125   : > { %9261 = vperm.xlu1 %21874, %v9007_v39   ;;  %v834_v39 = vcombine.high %v23371_v10, %v23371_v10  ;;  %19155 = vmatmul.mubr.msk.bf16.gmra.mrb[40].mxu0 %vm23462_vm0, %v28312_v16  ;;  %v23491_v34 = vpop.permute.xlu1 %1193  ;;  %v17625_v59 = vclamps-f32 %v9480_v25, 32.0  ;;  %v8735_v26 = vcombine.high %v23309_v51, %v23309_v51  ;;  %v9473_v10 = vsub.f32 %v23485_v46, %v23302_v55 }
 0x126   : > { %19987 = vmatmul.mubr.msk.bf16.gmra.mrb[40].mxu1 %vm19986_vm3, %v28312_v16  ;;  %28366 = vst [vmem:[#allocation47_spill] sm:$0xff] %v23491_v34  ;;  %v16200_v62 = vclamps-f32 %v1524_v1, 32.0  ;;  %vm3102_vm5 = vcmp.eq.f32.partialorder %v16201_v15, %v22450_v2  ;;  %v9472_v33 = vsub.f32 %v23485_v46, %v23315_v45  ;;  %v23505_v42 = vrot.slane %v832_v50, %v22236_v7 }
 0x127   : > { %vm19156_vm6 = vmpackc.low %vm3110_vm4, %vm3102_vm5  ;;  %vm3109_vm8 = vcmp.eq.f32.partialorder %v16208_v63, %v22474_v19  ;;  %v1548_v51 = vsub.f32 %v23491_v34, %v23315_v45  ;;  %v17618_v9 = vclamps-f32 %v9473_v10, 32.0  ;;  %vm11017_vm9 = vcmp.eq.f32.partialorder %v17626_v35, %v22450_v2  ;;  %7212 = vmatprep.subr.bf16.mxu0 %v28314_v24  ;;  %14729 = vmatprep.subr.bf16.mxu1 %v28314_v24 }
 0x128   : > { %9257 = vperm.xlu0 %21873, %v23347_v17   ;;  %vm3101_vm7 = vcmp.eq.f32.partialorder %v16200_v62, %v22474_v19  ;;  %v1549_v17 = vsub.f32 %v23491_v34, %v23302_v55  ;;  %19157 = vmatprep.mubr.msk.bf16.mxu0 %vm19156_vm6, %v28312_v16  ;;  %v17617_v50 = vclamps-f32 %v9472_v33, 32.0  ;;  %v8782_v47 = vcombine.high %v23430_v57, %v23430_v57  ;;  %v23519_v1 = vpop.permute.xlu0 %1189 }
 0x129   : > { %1321 = vperm.xlu1 %21874, %v1067_v12   ;;  %v21919_v12 = vld [vmem:[#allocation2 + $0xe0] sm:$0xff]   ;;  %v23521_v25 = vpop.permute.xlu1 %9141  ;;  %vm11016_vm10 = vcmp.eq.f32.partialorder %v17625_v59, %v22474_v19  ;;  %v803_v34 = vcombine.high %v23494_v60, %v23494_v60  ;;  %v23527_v10 = vrot.slane %v8735_v26, %v22233_v6  ;;  %v28368_v57 = vrot.slane %v23363_v4, %v22236_v7  ;;  %vm23539_vm12 = vmpackc.low %vm3109_vm8, %vm3101_vm7 }
 0x12a   : > { %28367 = vst [vmem:[#allocation48_spill] sm:$0xff] %v23521_v25  ;;  %v16225_v15 = vclamps-f32 %v1549_v17, 32.0  ;;  %vm11009_vm11 = vcmp.eq.f32.partialorder %v17618_v9, %v22450_v2  ;;  %vm11008_vm13 = vcmp.eq.f32.partialorder %v17617_v50, %v22474_v19  ;;  %v1541_v26 = vsub.f32 %v23519_v1, %v23302_v55  ;;  %7213 = vmatpush1.bf16.msra.mxu0 %v21919_v12 }
 0x12b   : > { %v9497_v33 = vsub.f32 %v23521_v25, %v23302_v55  ;;  %vm19988_vm14 = vmpackc.low %vm11017_vm9, %vm11009_vm11  ;;  %v1075_v4 = vrot.slane %v834_v39, %v22236_v7  ;;  %v1540_v63 = vsub.f32 %v23519_v1, %v23315_v45  ;;  %v16224_v62 = vclamps-f32 %v1548_v51, 32.0  ;;  %14730 = vmatpush1.bf16.msra.mxu1 %v21919_v12  ;;  %7214 = vmatprep.subr.bf16.mxu0 %v28314_v24 }
 0x12c   : > { %1317 = vperm.xlu0 %21873, %v28368_v57   ;;  %v9496_v17 = vsub.f32 %v23521_v25, %v23315_v45  ;;  %19989 = vmatprep.mubr.msk.bf16.mxu1 %vm19988_vm14, %v28312_v16  ;;  %vm19990_vm15 = vmpackc.low %vm11016_vm10, %vm11008_vm13  ;;  %v16217_v9 = vclamps-f32 %v1541_v26, 32.0  ;;  %vm3126_vm0 = vcmp.eq.f32.partialorder %v16225_v15, %v22450_v2  ;;  %v23561_v39 = vpop.permute.xlu0 %9137  ;;  %v9023_v57 = vrot.slane %v8782_v47, %v22236_v7 }
 0x12d   : > { %9269 = vperm.xlu1 %21874, %v9015_v37   ;;  %v17642_v35 = vclamps-f32 %v9497_v33, 32.0  ;;  %v8780_v37 = vcombine.high %v23407_v14, %v23407_v14  ;;  %28371 = vst [vmem:[#allocation49_spill] sm:$0xff] %v23561_v39  ;;  %19159 = vmatmul.mubr.msk.bf16.gmra.mrb[44].mxu0 %vm23539_vm12, %v28312_v16  ;;  %v23567_v51 = vpop.permute.xlu1 %1201  ;;  %v16216_v59 = vclamps-f32 %v1540_v63, 32.0  ;;  %v8751_v26 = vcombine.high %v23527_v10, %v23527_v10 }
 0x12e   : > { %19991 = vmatmul.mubr.msk.bf16.gmra.mrb[44].mxu1 %vm19990_vm15, %v28312_v16  ;;  %28372 = vst [vmem:[#allocation50_spill] sm:$0xff] %v23567_v51  ;;  %v17641_v50 = vclamps-f32 %v9496_v17, 32.0  ;;  %v28373_v33 = vrot.slane %v23407_v14, %v22236_v7  ;;  %vm3118_vm1 = vcmp.eq.f32.partialorder %v16217_v9, %v22450_v2  ;;  %v9489_v49 = vsub.f32 %v23561_v39, %v23302_v55 }
 0x12f   : > { %v9488_v25 = vsub.f32 %v23561_v39, %v23315_v45  ;;  %v23581_v63 = vrot.slane %v803_v34, %v22233_v6  ;;  %vm19160_vm2 = vmpackc.low %vm3126_vm0, %vm3118_vm1  ;;  %vm3117_vm3 = vcmp.eq.f32.partialorder %v16216_v59, %v22474_v19  ;;  %vm3125_vm4 = vcmp.eq.f32.partialorder %v16224_v62, %v22474_v19  ;;  %14731 = vmatprep.subr.bf16.mxu1 %v28314_v24 }
 0x130   : > { %9265 = vperm.xlu0 %21873, %v28373_v33   ;;  %v1565_v14 = vsub.f32 %v23567_v51, %v23302_v55  ;;  %v1564_v47 = vsub.f32 %v23567_v51, %v23315_v45  ;;  %19161 = vmatprep.mubr.msk.bf16.mxu0 %vm19160_vm2, %v28312_v16  ;;  %v17634_v17 = vclamps-f32 %v9489_v49, 32.0  ;;  %vm11033_vm5 = vcmp.eq.f32.partialorder %v17642_v35, %v22450_v2  ;;  %v23594_v9 = vpop.permute.xlu0 %1197  ;;  %vm23614_vm8 = vmpackc.low %vm3125_vm4, %vm3117_vm3 }
 0x131   : > { %1329 = vperm.xlu1 %21874, %v1075_v4   ;;  %v17633_v34 = vclamps-f32 %v9488_v25, 32.0  ;;  %v9019_v15 = vrot.slane %v8780_v37, %v22236_v7  ;;  %v21920_v4 = vld [vmem:[#allocation2 + $0xe8] sm:$0xff]   ;;  %v23596_v33 = vpop.permute.xlu1 %9149  ;;  %vm11032_vm6 = vcmp.eq.f32.partialorder %v17641_v50, %v22474_v19  ;;  %v23601_v51 = vrot.slane %v23494_v60, %v22233_v6 }
 0x132   : > { %28374 = vst [vmem:[#allocation51_spill] sm:$0xff] %v23596_v33  ;;  %v16241_v39 = vclamps-f32 %v1565_v14, 32.0  ;;  %v23604_v49 = vrot.slane %v8751_v26, %v22233_v6  ;;  %vm11025_vm7 = vcmp.eq.f32.partialorder %v17634_v17, %v22450_v2  ;;  %v1557_v60 = vsub.f32 %v23594_v9, %v23302_v55  ;;  %7215 = vmatpush1.bf16.msra.mxu0 %v21920_v4 }
 0x133   : > { %vm11024_vm9 = vcmp.eq.f32.partialorder %v17633_v34, %v22474_v19  ;;  %v9513_v25 = vsub.f32 %v23596_v33, %v23302_v55  ;;  %vm19992_vm10 = vmpackc.low %vm11033_vm5, %vm11025_vm7  ;;  %v1556_v62 = vsub.f32 %v23594_v9, %v23315_v45  ;;  %v16240_v37 = vclamps-f32 %v1564_v47, 32.0  ;;  %14732 = vmatpush1.bf16.msra.mxu1 %v21920_v4  ;;  %7216 = vmatprep.subr.bf16.mxu0 %v28314_v24 }
 0x134   : > { %1325 = vperm.xlu0 %21873, %v23505_v42   ;;  %v1083_v42 = vrot.slane %v23581_v63, %v22236_v7  ;;  %v9512_v59 = vsub.f32 %v23596_v33, %v23315_v45  ;;  %19993 = vmatprep.mubr.msk.bf16.mxu1 %vm19992_vm10, %v28312_v16  ;;  %vm19994_vm11 = vmpackc.low %vm11032_vm6, %vm11024_vm9  ;;  %v16233_v26 = vclamps-f32 %v1557_v60, 32.0  ;;  %vm3142_vm12 = vcmp.eq.f32.partialorder %v16241_v39, %v22450_v2  ;;  %v23639_v14 = vpop.permute.xlu0 %9145 }
 0x135   : > { %9277 = vperm.xlu1 %21874, %v9023_v57   ;;  %v17658_v35 = vclamps-f32 %v9513_v25, 32.0  ;;  %v23637_v57 = vrot.slane %v23527_v10, %v22233_v6  ;;  %19163 = vmatmul.mubr.msk.bf16.gmra.mrb[48].mxu0 %vm23614_vm8, %v28312_v16  ;;  %v23645_v47 = vpop.permute.xlu1 %1209  ;;  %v1079_v50 = vrot.slane %v23601_v51, %v22236_v7  ;;  %v16232_v17 = vclamps-f32 %v1556_v62, 32.0 }
 0x136   : > { %19995 = vmatmul.mubr.msk.bf16.gmra.mrb[48].mxu1 %vm19994_vm11, %v28312_v16  ;;  %28377 = vst [vmem:[#allocation52_spill] sm:$0xff] %v23645_v47  ;;  %v17657_v34 = vclamps-f32 %v9512_v59, 32.0  ;;  %v9031_v6 = vrot.slane %v23604_v49, %v22236_v7  ;;  %vm3134_vm13 = vcmp.eq.f32.partialorder %v16233_v26, %v22450_v2  ;;  %v9505_v10 = vsub.f32 %v23639_v14, %v23302_v55 }
 0x137   : > { %v9504_v12 = vsub.f32 %v23639_v14, %v23315_v45  ;;  %v835_v60 = vcombine.high %v23581_v63, %v23581_v63  ;;  %vm19164_vm14 = vmpackc.low %vm3142_vm12, %vm3134_vm13  ;;  %vm3133_vm15 = vcmp.eq.f32.partialorder %v16232_v17, %v22474_v19  ;;  %vm3141_vm0 = vcmp.eq.f32.partialorder %v16240_v37, %v22474_v19  ;;  %14733 = vmatprep.subr.bf16.mxu1 %v28314_v24 }
 0x138   : > { %9273 = vperm.xlu0 %21873, %v9019_v15   ;;  %v1581_v15 = vsub.f32 %v23645_v47, %v23302_v55  ;;  %v1580_v25 = vsub.f32 %v23645_v47, %v23315_v45  ;;  %19165 = vmatprep.mubr.msk.bf16.mxu0 %vm19164_vm14, %v28312_v16  ;;  %v17650_v62 = vclamps-f32 %v9505_v10, 32.0  ;;  %vm11049_vm1 = vcmp.eq.f32.partialorder %v17658_v35, %v22450_v2  ;;  %v23670_v59 = vpop.permute.xlu0 %1205  ;;  %vm23686_vm4 = vmpackc.low %vm3141_vm0, %vm3133_vm15 }
 0x139   : > { %1337 = vperm.xlu1 %21874, %v1083_v42   ;;  %v17649_v63 = vclamps-f32 %v9504_v12, 32.0  ;;  %v9027_v39 = vrot.slane %v23637_v57, %v22236_v7  ;;  %v21921_v42 = vld [vmem:[#allocation2 + $0xf0] sm:$0xff]   ;;  %28378 = vst [vmem:[#allocation53_spill] sm:$0xff] %v23670_v59  ;;  %v23672_v26 = vpop.permute.xlu1 %9157  ;;  %vm11048_vm2 = vcmp.eq.f32.partialorder %v17657_v34, %v22474_v19  ;;  %v833_v47 = vcombine.high %v23601_v51, %v23601_v51 }
 0x13a   : > { %28379 = vst [vmem:[#allocation54_spill] sm:$0xff] %v23672_v26  ;;  %v16257_v33 = vclamps-f32 %v1581_v15, 32.0  ;;  %v8783_v10 = vcombine.high %v23604_v49, %v23604_v49  ;;  %vm11041_vm3 = vcmp.eq.f32.partialorder %v17650_v62, %v22450_v2  ;;  %v1573_v51 = vsub.f32 %v23670_v59, %v23302_v55  ;;  %7217 = vmatpush1.bf16.msra.mxu0 %v21921_v42 }
 0x13b   : > { %vm11040_vm5 = vcmp.eq.f32.partialorder %v17649_v63, %v22474_v19  ;;  %v9529_v49 = vsub.f32 %v23672_v26, %v23302_v55  ;;  %vm19996_vm6 = vmpackc.low %vm11049_vm1, %vm11041_vm3  ;;  %v1572_v37 = vsub.f32 %v23670_v59, %v23315_v45  ;;  %v16256_v17 = vclamps-f32 %v1580_v25, 32.0  ;;  %14734 = vmatpush1.bf16.msra.mxu1 %v21921_v42  ;;  %7218 = vmatprep.subr.bf16.mxu0 %v28314_v24 }
 0x13c   : > { %1333 = vperm.xlu0 %21873, %v1079_v50   ;;  %v1091_v50 = vrot.slane %v835_v60, %v22236_v7  ;;  %v9528_v12 = vsub.f32 %v23672_v26, %v23315_v45  ;;  %19997 = vmatprep.mubr.msk.bf16.mxu1 %vm19996_vm6, %v28312_v16  ;;  %vm19998_vm7 = vmpackc.low %vm11048_vm2, %vm11040_vm5  ;;  %v16249_v15 = vclamps-f32 %v1573_v51, 32.0  ;;  %vm3158_vm8 = vcmp.eq.f32.partialorder %v16257_v33, %v22450_v2 }
 0x13d   : > { %9285 = vperm.xlu1 %21874, %v9031_v6   ;;  %v17674_v35 = vclamps-f32 %v9529_v49, 32.0  ;;  %v23706_v6 = vpop.permute.xlu0 %9153  ;;  %19167 = vmatmul.mubr.msk.bf16.gmra.mrb[52].mxu0 %vm23686_vm4, %v28312_v16  ;;  %v23712_v60 = vpop.permute.xlu1 %1217  ;;  %v1087_v25 = vrot.slane %v833_v47, %v22236_v7  ;;  %v16248_v62 = vclamps-f32 %v1572_v37, 32.0  ;;  %v8781_v63 = vcombine.high %v23637_v57, %v23637_v57 }
 0x13e   : > { %28382 = vst [vmem:[#allocation55_spill] sm:$0xff] %v23706_v6  ;;  %19999 = vmatmul.mubr.msk.bf16.gmra.mrb[52].mxu1 %vm19998_vm7, %v28312_v16  ;;  %28383 = vst [vmem:[#allocation56_spill] sm:$0xff] %v23712_v60  ;;  %v17673_v34 = vclamps-f32 %v9528_v12, 32.0  ;;  %vm3150_vm9 = vcmp.eq.f32.partialorder %v16249_v15, %v22450_v2  ;;  %v9521_v51 = vsub.f32 %v23706_v6, %v23302_v55  ;;  %14735 = vmatprep.subr.bf16.mxu1 %v28314_v24 }
 0x13f   : > { %v9520_v4 = vsub.f32 %v23706_v6, %v23315_v45  ;;  %v9039_v49 = vrot.slane %v8783_v10, %v22236_v7  ;;  %vm19168_vm10 = vmpackc.low %vm3158_vm8, %vm3150_vm9  ;;  %vm3149_vm11 = vcmp.eq.f32.partialorder %v16248_v62, %v22474_v19  ;;  %vm3157_vm12 = vcmp.eq.f32.partialorder %v16256_v17, %v22474_v19 }
 0x140   : > { %9281 = vperm.xlu0 %21873, %v9027_v39   ;;  %v1597_v57 = vsub.f32 %v23712_v60, %v23302_v55  ;;  %v1596_v47 = vsub.f32 %v23712_v60, %v23315_v45  ;;  %19169 = vmatprep.mubr.msk.bf16.mxu0 %vm19168_vm10, %v28312_v16  ;;  %v17666_v39 = vclamps-f32 %v9521_v51, 32.0  ;;  %vm11065_vm13 = vcmp.eq.f32.partialorder %v17674_v35, %v22450_v2  ;;  %vm19170_vm0 = vmpackc.low %vm3157_vm12, %vm3149_vm11  ;;  %v24347_v60 = vld [vmem:[%s22461_s25 + $0x10] sm:$0xff] }
 0x141   : > { %1345 = vperm.xlu1 %21874, %v1091_v50   ;;  %v17665_v10 = vclamps-f32 %v9520_v4, 32.0  ;;  %v23733_v33 = vpop.permute.xlu0 %1213  ;;  %v23735_v50 = vpop.permute.xlu1 %9165  ;;  %vm11064_vm14 = vcmp.eq.f32.partialorder %v17673_v34, %v22474_v19  ;;  %v9035_v37 = vrot.slane %v8781_v63, %v22236_v7 }
 0x142   : > { %28384 = vst [vmem:[#allocation57_spill] sm:$0xff] %v23733_v33  ;;  %28385 = vst [vmem:[#allocation58_spill] sm:$0xff] %v23735_v50  ;;  %v16273_v12 = vclamps-f32 %v1597_v57, 32.0  ;;  %vm11057_vm15 = vcmp.eq.f32.partialorder %v17666_v39, %v22450_v2  ;;  %v1589_v42 = vsub.f32 %v23733_v33, %v23302_v55  ;;  %v9545_v7 = vsub.f32 %v23735_v50, %v23302_v55  ;;  %v21922_v57 = vld [vmem:[#allocation2 + $0xf8] sm:$0xff]  }
 0x143   : > { %vm11056_vm1 = vcmp.eq.f32.partialorder %v17665_v10, %v22474_v19  ;;  %vm20000_vm2 = vmpackc.low %vm11065_vm13, %vm11057_vm15  ;;  %v1588_v15 = vsub.f32 %v23733_v33, %v23315_v45  ;;  %v9544_v17 = vsub.f32 %v23735_v50, %v23315_v45  ;;  %7219 = vmatpush1.bf16.msra.mxu0 %v21922_v57  ;;  %14736 = vmatpush1.bf16.msra.mxu1 %v21922_v57 }
 0x144   : > { %1341 = vperm.xlu0 %21873, %v1087_v25   ;;  %v16272_v25 = vclamps-f32 %v1596_v47, 32.0  ;;  %20001 = vmatprep.mubr.msk.bf16.mxu1 %vm20000_vm2, %v28312_v16  ;;  %vm20002_vm3 = vmpackc.low %vm11064_vm14, %vm11056_vm1  ;;  %v16265_v62 = vclamps-f32 %v1589_v42, 32.0  ;;  %vm3174_vm4 = vcmp.eq.f32.partialorder %v16273_v12, %v22450_v2  ;;  %v17690_v63 = vclamps-f32 %v9545_v7, 32.0 }
 0x145   : > { %9293 = vperm.xlu1 %21874, %v9039_v49   ;;  %v23761_v51 = vpop.permute.xlu0 %9161  ;;  %19171 = vmatmul.mubr.msk.bf16.gmra.mrb[56].mxu0 %vm19170_vm0, %v28312_v16  ;;  %v23765_v35 = vpop.permute.xlu1 %1225  ;;  %v16264_v4 = vclamps-f32 %v1588_v15, 32.0  ;;  %v17689_v49 = vclamps-f32 %v9544_v17, 32.0 }
 0x146   : > { %28386 = vst [vmem:[#allocation59_spill] sm:$0xff] %v23761_v51  ;;  %20003 = vmatmul.mubr.msk.bf16.gmra.mrb[56].mxu1 %vm20002_vm3, %v28312_v16  ;;  %28387 = vst [vmem:[#allocation60_spill] sm:$0xff] %v23765_v35  ;;  %vm3166_vm5 = vcmp.eq.f32.partialorder %v16265_v62, %v22450_v2  ;;  %v9537_v34 = vsub.f32 %v23761_v51, %v23302_v55  ;;  %v9536_v47 = vsub.f32 %v23761_v51, %v23315_v45 }
 0x147   : > { %vm19172_vm6 = vmpackc.low %vm3174_vm4, %vm3166_vm5  ;;  %vm3165_vm7 = vcmp.eq.f32.partialorder %v16264_v4, %v22474_v19  ;;  %vm3173_vm8 = vcmp.eq.f32.partialorder %v16272_v25, %v22474_v19  ;;  %v1613_v39 = vsub.f32 %v23765_v35, %v23302_v55  ;;  %v1612_v10 = vsub.f32 %v23765_v35, %v23315_v45  ;;  %7477 = vmatprep.subr.bf16.mxu0 %v28314_v24 }
 0x148   : > { %9289 = vperm.xlu0 %21873, %v9035_v37   ;;  %19173 = vmatprep.mubr.msk.bf16.mxu0 %vm19172_vm6, %v28312_v16  ;;  %v17682_v37 = vclamps-f32 %v9537_v34, 32.0  ;;  %vm11081_vm9 = vcmp.eq.f32.partialorder %v17690_v63, %v22450_v2  ;;  %v17681_v12 = vclamps-f32 %v9536_v47, 32.0  ;;  %vm11080_vm10 = vcmp.eq.f32.partialorder %v17689_v49, %v22474_v19  ;;  %vm19174_vm12 = vmpackc.low %vm3173_vm8, %vm3165_vm7 }
 0x149   : > { %v23780_v42 = vpop.permute.xlu0 %1221  ;;  %v23782_v7 = vpop.permute.xlu1 %9173  ;;  %v16289_v15 = vclamps-f32 %v1613_v39, 32.0  ;;  %14994 = vmatprep.subr.bf16.mxu1 %v28314_v24  ;;  %v16288_v49 = vclamps-f32 %v1612_v10, 32.0 }
 0x14a   : > { %28388 = vst [vmem:[#allocation61_spill] sm:$0xff] %v23780_v42  ;;  %28389 = vst [vmem:[#allocation62_spill] sm:$0xff] %v23782_v7  ;;  %vm11073_vm11 = vcmp.eq.f32.partialorder %v17682_v37, %v22450_v2  ;;  %vm11072_vm13 = vcmp.eq.f32.partialorder %v17681_v12, %v22474_v19  ;;  %v1605_v17 = vsub.f32 %v23780_v42, %v23302_v55 }
 0x14b   : > { %v9561_v62 = vsub.f32 %v23782_v7, %v23302_v55  ;;  %vm20004_vm14 = vmpackc.low %vm11081_vm9, %vm11073_vm11  ;;  %v1604_v63 = vsub.f32 %v23780_v42, %v23315_v45  ;;  %v9560_v57 = vsub.f32 %v23782_v7, %v23315_v45  ;;  %vm3190_vm0 = vcmp.eq.f32.partialorder %v16289_v15, %v22450_v2 }
 0x14c   : > { %20005 = vmatprep.mubr.msk.bf16.mxu1 %vm20004_vm14, %v28312_v16  ;;  %vm20006_vm15 = vmpackc.low %vm11080_vm10, %vm11072_vm13  ;;  %v16281_v25 = vclamps-f32 %v1605_v17, 32.0  ;;  %vm3189_vm4 = vcmp.eq.f32.partialorder %v16288_v49, %v22474_v19 }
 0x14d   : > { %v17706_v4 = vclamps-f32 %v9561_v62, 32.0  ;;  %v23803_v34 = vpop.permute.xlu0 %9169  ;;  %19175 = vmatmul.mubr.msk.bf16.gmra.mrb[60].mxu0 %vm19174_vm12, %v28312_v16  ;;  %v23807_v47 = vpop.permute.xlu1 %1233  ;;  %v16280_v39 = vclamps-f32 %v1604_v63, 32.0  ;;  %v17705_v10 = vclamps-f32 %v9560_v57, 32.0 }
 0x14e   : > { %28390 = vst [vmem:[#allocation63_spill] sm:$0xff] %v23803_v34  ;;  %20007 = vmatmul.mubr.msk.bf16.gmra.mrb[60].mxu1 %vm20006_vm15, %v28312_v16  ;;  %28391 = vst [vmem:[#allocation64_spill] sm:$0xff] %v23807_v47  ;;  %vm3182_vm1 = vcmp.eq.f32.partialorder %v16281_v25, %v22450_v2  ;;  %v9553_v37 = vsub.f32 %v23803_v34, %v23302_v55  ;;  %v9552_v12 = vsub.f32 %v23803_v34, %v23315_v45 }
 0x14f   : > { %vm19176_vm2 = vmpackc.low %vm3190_vm0, %vm3182_vm1  ;;  %vm3181_vm3 = vcmp.eq.f32.partialorder %v16280_v39, %v22474_v19  ;;  %v1629_v15 = vsub.f32 %v23807_v47, %v23302_v55  ;;  %v1628_v17 = vsub.f32 %v23807_v47, %v23315_v45  ;;  %vm11097_vm5 = vcmp.eq.f32.partialorder %v17706_v4, %v22450_v2 }
 0x150   : > { %19177 = vmatprep.mubr.msk.bf16.mxu0 %vm19176_vm2, %v28312_v16  ;;  %v17698_v62 = vclamps-f32 %v9553_v37, 32.0  ;;  %v17697_v63 = vclamps-f32 %v9552_v12, 32.0  ;;  %vm11096_vm6 = vcmp.eq.f32.partialorder %v17705_v10, %v22474_v19  ;;  %vm19178_vm8 = vmpackc.low %vm3189_vm4, %vm3181_vm3 }
 0x151   : > { %v23822_v57 = vpop.permute.xlu0 %1229  ;;  %v23824_v25 = vpop.permute.xlu1 %9181  ;;  %v16305_v39 = vclamps-f32 %v1629_v15, 32.0  ;;  %v16304_v12 = vclamps-f32 %v1628_v17, 32.0 }
 0x152   : > { %28392 = vst [vmem:[#allocation65_spill] sm:$0xff] %v23822_v57  ;;  %28393 = vst [vmem:[#allocation66_spill] sm:$0xff] %v23824_v25  ;;  %vm11089_vm7 = vcmp.eq.f32.partialorder %v17698_v62, %v22450_v2  ;;  %vm11088_vm9 = vcmp.eq.f32.partialorder %v17697_v63, %v22474_v19  ;;  %v1621_v49 = vsub.f32 %v23822_v57, %v23302_v55 }
 0x153   : > { %v9577_v37 = vsub.f32 %v23824_v25, %v23302_v55  ;;  %vm20008_vm10 = vmpackc.low %vm11097_vm5, %vm11089_vm7  ;;  %v1620_v4 = vsub.f32 %v23822_v57, %v23315_v45  ;;  %v9576_v10 = vsub.f32 %v23824_v25, %v23315_v45  ;;  %vm3206_vm12 = vcmp.eq.f32.partialorder %v16305_v39, %v22450_v2  ;;  %v24282_v57 = vld [vmem:[%s22461_s25 + $0x18] sm:$0xff] }
 0x154   : > { %20009 = vmatprep.mubr.msk.bf16.mxu1 %vm20008_vm10, %v28312_v16  ;;  %vm20010_vm11 = vmpackc.low %vm11096_vm6, %vm11088_vm9  ;;  %v16297_v15 = vclamps-f32 %v1621_v49, 32.0  ;;  %vm3205_vm0 = vcmp.eq.f32.partialorder %v16304_v12, %v22474_v19  ;;  %v1359_v50 = vsub.f32 %v22589_v31, %v24282_v57 }
 0x155   : > { %v17722_v62 = vclamps-f32 %v9577_v37, 32.0  ;;  %v23839_v63 = vpop.permute.xlu0 %9177  ;;  %19179 = vmatmul.mubr.msk.bf16.gmra.mrb[64].mxu0 %vm19178_vm8, %v28312_v16  ;;  %v16296_v47 = vclamps-f32 %v1620_v4, 32.0  ;;  %v17721_v7 = vclamps-f32 %v9576_v10, 32.0  ;;  %v23844_v17 = vpop.permute.xlu1 %1241 }
 0x156   : > { %28394 = vst [vmem:[#allocation67_spill] sm:$0xff] %v23839_v63  ;;  %20011 = vmatmul.mubr.msk.bf16.gmra.mrb[64].mxu1 %vm20010_vm11, %v28312_v16  ;;  %vm3198_vm13 = vcmp.eq.f32.partialorder %v16297_v15, %v22450_v2  ;;  %28395 = vst [vmem:[#allocation68_spill] sm:$0xff] %v23844_v17  ;;  %v9569_v25 = vsub.f32 %v23839_v63, %v23302_v55  ;;  %v9568_v49 = vsub.f32 %v23839_v63, %v23315_v45 }
 0x157   : > { %vm19180_vm14 = vmpackc.low %vm3206_vm12, %vm3198_vm13  ;;  %vm3197_vm15 = vcmp.eq.f32.partialorder %v16296_v47, %v22474_v19  ;;  %v1645_v39 = vsub.f32 %v23844_v17, %v23302_v55  ;;  %v1644_v37 = vsub.f32 %v23844_v17, %v23315_v45  ;;  %vm11113_vm1 = vcmp.eq.f32.partialorder %v17722_v62, %v22450_v2 }
 0x158   : > { %19181 = vmatprep.mubr.msk.bf16.mxu0 %vm19180_vm14, %v28312_v16  ;;  %v17714_v4 = vclamps-f32 %v9569_v25, 32.0  ;;  %v17713_v10 = vclamps-f32 %v9568_v49, 32.0  ;;  %vm11112_vm2 = vcmp.eq.f32.partialorder %v17721_v7, %v22474_v19  ;;  %vm19182_vm4 = vmpackc.low %vm3205_vm0, %vm3197_vm15 }
 0x159   : > { %v23858_v15 = vpop.permute.xlu0 %1237  ;;  %v16321_v63 = vclamps-f32 %v1645_v39, 32.0  ;;  %v23862_v47 = vpop.permute.xlu1 %9189  ;;  %v16320_v49 = vclamps-f32 %v1644_v37, 32.0 }
 0x15a   : > { %28396 = vst [vmem:[#allocation69_spill] sm:$0xff] %v23858_v15  ;;  %vm11105_vm3 = vcmp.eq.f32.partialorder %v17714_v4, %v22450_v2  ;;  %28397 = vst [vmem:[#allocation70_spill] sm:$0xff] %v23862_v47  ;;  %vm11104_vm5 = vcmp.eq.f32.partialorder %v17713_v10, %v22474_v19  ;;  %v1637_v12 = vsub.f32 %v23858_v15, %v23302_v55 }
 0x15b   : > { %v1636_v25 = vsub.f32 %v23858_v15, %v23315_v45  ;;  %vm20012_vm6 = vmpackc.low %vm11113_vm1, %vm11105_vm3  ;;  %v9593_v62 = vsub.f32 %v23862_v47, %v23302_v55  ;;  %v9592_v7 = vsub.f32 %v23862_v47, %v23315_v45  ;;  %vm3222_vm8 = vcmp.eq.f32.partialorder %v16321_v63, %v22450_v2 }
 0x15c   : > { %20013 = vmatprep.mubr.msk.bf16.mxu1 %vm20012_vm6, %v28312_v16  ;;  %vm20014_vm7 = vmpackc.low %vm11112_vm2, %vm11104_vm5  ;;  %v16313_v39 = vclamps-f32 %v1637_v12, 32.0  ;;  %vm3221_vm12 = vcmp.eq.f32.partialorder %v16320_v49, %v22474_v19 }
 0x15d   : > { %v16312_v4 = vclamps-f32 %v1636_v25, 32.0  ;;  %v23875_v10 = vpop.permute.xlu0 %9185  ;;  %19183 = vmatmul.mubr.msk.bf16.gmra.mrb[68].mxu0 %vm19182_vm4, %v28312_v16  ;;  %v17738_v17 = vclamps-f32 %v9593_v62, 32.0  ;;  %v17737_v15 = vclamps-f32 %v9592_v7, 32.0  ;;  %v23880_v37 = vpop.permute.xlu1 %1249 }
 0x15e   : > { %28398 = vst [vmem:[#allocation71_spill] sm:$0xff] %v23875_v10  ;;  %20015 = vmatmul.mubr.msk.bf16.gmra.mrb[68].mxu1 %vm20014_vm7, %v28312_v16  ;;  %vm3214_vm9 = vcmp.eq.f32.partialorder %v16313_v39, %v22450_v2  ;;  %28399 = vst [vmem:[#allocation72_spill] sm:$0xff] %v23880_v37  ;;  %v9585_v47 = vsub.f32 %v23875_v10, %v23302_v55  ;;  %v9584_v12 = vsub.f32 %v23875_v10, %v23315_v45 }
 0x15f   : > { %vm19184_vm10 = vmpackc.low %vm3222_vm8, %vm3214_vm9  ;;  %vm3213_vm11 = vcmp.eq.f32.partialorder %v16312_v4, %v22474_v19  ;;  %v1661_v63 = vsub.f32 %v23880_v37, %v23302_v55  ;;  %v1660_v25 = vsub.f32 %v23880_v37, %v23315_v45  ;;  %vm11129_vm13 = vcmp.eq.f32.partialorder %v17738_v17, %v22450_v2 }
 0x160   : > { %19185 = vmatprep.mubr.msk.bf16.mxu0 %vm19184_vm10, %v28312_v16  ;;  %v17730_v62 = vclamps-f32 %v9585_v47, 32.0  ;;  %v17729_v7 = vclamps-f32 %v9584_v12, 32.0  ;;  %vm11128_vm14 = vcmp.eq.f32.partialorder %v17737_v15, %v22474_v19  ;;  %vm19186_vm0 = vmpackc.low %vm3221_vm12, %vm3213_vm11 }
 0x161   : > { %v23894_v39 = vpop.permute.xlu0 %1245  ;;  %v16337_v10 = vclamps-f32 %v1661_v63, 32.0  ;;  %v23898_v49 = vpop.permute.xlu1 %9197  ;;  %v16336_v12 = vclamps-f32 %v1660_v25, 32.0 }
 0x162   : > { %28400 = vst [vmem:[#allocation73_spill] sm:$0xff] %v23894_v39  ;;  %vm11121_vm15 = vcmp.eq.f32.partialorder %v17730_v62, %v22450_v2  ;;  %28401 = vst [vmem:[#allocation74_spill] sm:$0xff] %v23898_v49  ;;  %vm11120_vm1 = vcmp.eq.f32.partialorder %v17729_v7, %v22474_v19  ;;  %v1653_v4 = vsub.f32 %v23894_v39, %v23302_v55 }
 0x163   : > { %v1652_v47 = vsub.f32 %v23894_v39, %v23315_v45  ;;  %vm20016_vm2 = vmpackc.low %vm11129_vm13, %vm11121_vm15  ;;  %v9609_v17 = vsub.f32 %v23898_v49, %v23302_v55  ;;  %v9608_v15 = vsub.f32 %v23898_v49, %v23315_v45  ;;  %vm3238_vm4 = vcmp.eq.f32.partialorder %v16337_v10, %v22450_v2 }
 0x164   : > { %20017 = vmatprep.mubr.msk.bf16.mxu1 %vm20016_vm2, %v28312_v16  ;;  %vm20018_vm3 = vmpackc.low %vm11128_vm14, %vm11120_vm1  ;;  %v16329_v63 = vclamps-f32 %v1653_v4, 32.0  ;;  %vm3237_vm8 = vcmp.eq.f32.partialorder %v16336_v12, %v22474_v19 }
 0x165   : > { %v16328_v62 = vclamps-f32 %v1652_v47, 32.0  ;;  %v23911_v7 = vpop.permute.xlu0 %9193  ;;  %19187 = vmatmul.mubr.msk.bf16.gmra.mrb[72].mxu0 %vm19186_vm0, %v28312_v16  ;;  %v17754_v37 = vclamps-f32 %v9609_v17, 32.0  ;;  %v17753_v39 = vclamps-f32 %v9608_v15, 32.0  ;;  %v23916_v25 = vpop.permute.xlu1 %1257 }
 0x166   : > { %28402 = vst [vmem:[#allocation75_spill] sm:$0xff] %v23911_v7  ;;  %20019 = vmatmul.mubr.msk.bf16.gmra.mrb[72].mxu1 %vm20018_vm3, %v28312_v16  ;;  %vm3230_vm5 = vcmp.eq.f32.partialorder %v16329_v63, %v22450_v2  ;;  %28403 = vst [vmem:[#allocation76_spill] sm:$0xff] %v23916_v25  ;;  %v9601_v49 = vsub.f32 %v23911_v7, %v23302_v55  ;;  %v9600_v4 = vsub.f32 %v23911_v7, %v23315_v45 }
 0x167   : > { %vm19188_vm6 = vmpackc.low %vm3238_vm4, %vm3230_vm5  ;;  %vm3229_vm7 = vcmp.eq.f32.partialorder %v16328_v62, %v22474_v19  ;;  %v1677_v10 = vsub.f32 %v23916_v25, %v23302_v55  ;;  %v1676_v47 = vsub.f32 %v23916_v25, %v23315_v45  ;;  %vm11145_vm9 = vcmp.eq.f32.partialorder %v17754_v37, %v22450_v2 }
 0x168   : > { %19189 = vmatprep.mubr.msk.bf16.mxu0 %vm19188_vm6, %v28312_v16  ;;  %v17746_v17 = vclamps-f32 %v9601_v49, 32.0  ;;  %v17745_v15 = vclamps-f32 %v9600_v4, 32.0  ;;  %vm11144_vm10 = vcmp.eq.f32.partialorder %v17753_v39, %v22474_v19  ;;  %vm19190_vm12 = vmpackc.low %vm3237_vm8, %vm3229_vm7 }
 0x169   : > { %v23930_v63 = vpop.permute.xlu0 %1253  ;;  %v16353_v7 = vclamps-f32 %v1677_v10, 32.0  ;;  %v23934_v12 = vpop.permute.xlu1 %9205  ;;  %v16352_v39 = vclamps-f32 %v1676_v47, 32.0 }
 0x16a   : > { %28404 = vst [vmem:[#allocation77_spill] sm:$0xff] %v23930_v63  ;;  %vm11137_vm11 = vcmp.eq.f32.partialorder %v17746_v17, %v22450_v2  ;;  %28405 = vst [vmem:[#allocation78_spill] sm:$0xff] %v23934_v12  ;;  %vm11136_vm13 = vcmp.eq.f32.partialorder %v17745_v15, %v22474_v19  ;;  %v1669_v62 = vsub.f32 %v23930_v63, %v23302_v55 }
 0x16b   : > { %v1668_v49 = vsub.f32 %v23930_v63, %v23315_v45  ;;  %vm20020_vm14 = vmpackc.low %vm11145_vm9, %vm11137_vm11  ;;  %v9625_v37 = vsub.f32 %v23934_v12, %v23302_v55  ;;  %v9624_v4 = vsub.f32 %v23934_v12, %v23315_v45  ;;  %vm3254_vm0 = vcmp.eq.f32.partialorder %v16353_v7, %v22450_v2  ;;  %v23955_v45 = vld [vmem:[%s22461_s25 + $0x8] sm:$0xff]  ;;  %v23960_v12 = vld [vmem:[%s22461_s25] sm:$0xff] }
 0x16c   : > { %20021 = vmatprep.mubr.msk.bf16.mxu1 %vm20020_vm14, %v28312_v16  ;;  %vm20022_vm15 = vmpackc.low %vm11144_vm10, %vm11136_vm13  ;;  %v16345_v10 = vclamps-f32 %v1669_v62, 32.0  ;;  %vm3253_vm4 = vcmp.eq.f32.partialorder %v16352_v39, %v22474_v19 }
 0x16d   : > { %v16344_v17 = vclamps-f32 %v1668_v49, 32.0  ;;  %v23947_v15 = vpop.permute.xlu0 %9201  ;;  %19191 = vmatmul.mubr.msk.bf16.gmra.mrb[76].mxu0 %vm19190_vm12, %v28312_v16  ;;  %v17770_v25 = vclamps-f32 %v9625_v37, 32.0  ;;  %v17769_v55 = vclamps-f32 %v9624_v4, 32.0  ;;  %v23952_v47 = vpop.permute.xlu1 %1265 }
 0x16e   : > { %28406 = vst [vmem:[#allocation79_spill] sm:$0xff] %v23947_v15  ;;  %20023 = vmatmul.mubr.msk.bf16.gmra.mrb[76].mxu1 %vm20022_vm15, %v28312_v16  ;;  %vm3246_vm1 = vcmp.eq.f32.partialorder %v16345_v10, %v22450_v2  ;;  %28407 = vst [vmem:[#allocation80_spill] sm:$0xff] %v23952_v47  ;;  %v9617_v62 = vsub.f32 %v23947_v15, %v23955_v45  ;;  %v9616_v7 = vsub.f32 %v23947_v15, %v23960_v12 }
 0x16f   : > { %vm19192_vm2 = vmpackc.low %vm3254_vm0, %vm3246_vm1  ;;  %vm3245_vm3 = vcmp.eq.f32.partialorder %v16344_v17, %v22474_v19  ;;  %v1693_v49 = vsub.f32 %v23952_v47, %v23955_v45  ;;  %v1692_v37 = vsub.f32 %v23952_v47, %v23960_v12  ;;  %vm11161_vm5 = vcmp.eq.f32.partialorder %v17770_v25, %v22450_v2 }
 0x170   : > { %19193 = vmatprep.mubr.msk.bf16.mxu0 %vm19192_vm2, %v28312_v16  ;;  %v17762_v4 = vclamps-f32 %v9617_v62, 32.0  ;;  %v17761_v10 = vclamps-f32 %v9616_v7, 32.0  ;;  %vm11160_vm6 = vcmp.eq.f32.partialorder %v17769_v55, %v22474_v19  ;;  %vm19194_vm8 = vmpackc.low %vm3253_vm4, %vm3245_vm3 }
 0x171   : > { %v23972_v63 = vpop.permute.xlu0 %1261  ;;  %v16369_v15 = vclamps-f32 %v1693_v49, 32.0  ;;  %v23976_v39 = vpop.permute.xlu1 %9213  ;;  %v16368_v7 = vclamps-f32 %v1692_v37, 32.0 }
 0x172   : > { %28408 = vst [vmem:[#allocation81_spill] sm:$0xff] %v23972_v63  ;;  %vm11153_vm7 = vcmp.eq.f32.partialorder %v17762_v4, %v22450_v2  ;;  %28409 = vst [vmem:[#allocation82_spill] sm:$0xff] %v23976_v39  ;;  %vm11152_vm9 = vcmp.eq.f32.partialorder %v17761_v10, %v22474_v19  ;;  %v1685_v17 = vsub.f32 %v23972_v63, %v23955_v45 }
 0x173   : > { %v1684_v62 = vsub.f32 %v23972_v63, %v23960_v12  ;;  %vm20024_vm10 = vmpackc.low %vm11161_vm5, %vm11153_vm7  ;;  %v9641_v25 = vsub.f32 %v23976_v39, %v23955_v45  ;;  %v9640_v55 = vsub.f32 %v23976_v39, %v23960_v12  ;;  %vm3270_vm12 = vcmp.eq.f32.partialorder %v16369_v15, %v22450_v2 }
 0x174   : > { %20025 = vmatprep.mubr.msk.bf16.mxu1 %vm20024_vm10, %v28312_v16  ;;  %vm20026_vm11 = vmpackc.low %vm11160_vm6, %vm11152_vm9  ;;  %v16361_v49 = vclamps-f32 %v1685_v17, 32.0  ;;  %vm3269_vm0 = vcmp.eq.f32.partialorder %v16368_v7, %v22474_v19 }
 0x175   : > { %v16360_v4 = vclamps-f32 %v1684_v62, 32.0  ;;  %v23989_v10 = vpop.permute.xlu0 %9209  ;;  %19195 = vmatmul.mubr.msk.bf16.gmra.mrb[80].mxu0 %vm19194_vm8, %v28312_v16  ;;  %v17786_v47 = vclamps-f32 %v9641_v25, 32.0  ;;  %v17785_v63 = vclamps-f32 %v9640_v55, 32.0 }
 0x176   : > { %28410 = vst [vmem:[#allocation83_spill] sm:$0xff] %v23989_v10  ;;  %20027 = vmatmul.mubr.msk.bf16.gmra.mrb[80].mxu1 %vm20026_vm11, %v28312_v16  ;;  %vm3262_vm13 = vcmp.eq.f32.partialorder %v16361_v49, %v22450_v2  ;;  %v23994_v37 = vpop.permute.xlu1 %1273  ;;  %v9633_v39 = vsub.f32 %v23989_v10, %v23955_v45  ;;  %v9632_v17 = vsub.f32 %v23989_v10, %v23960_v12 }
 0x177   : > { %28411 = vst [vmem:[#allocation84_spill] sm:$0xff] %v23994_v37  ;;  %vm19196_vm14 = vmpackc.low %vm3270_vm12, %vm3262_vm13  ;;  %vm3261_vm15 = vcmp.eq.f32.partialorder %v16360_v4, %v22474_v19  ;;  %v1709_v15 = vsub.f32 %v23994_v37, %v23955_v45  ;;  %v1708_v62 = vsub.f32 %v23994_v37, %v23960_v12  ;;  %vm11177_vm1 = vcmp.eq.f32.partialorder %v17786_v47, %v22450_v2 }
 0x178   : > { %19197 = vmatprep.mubr.msk.bf16.mxu0 %vm19196_vm14, %v28312_v16  ;;  %v17778_v25 = vclamps-f32 %v9633_v39, 32.0  ;;  %v17777_v55 = vclamps-f32 %v9632_v17, 32.0  ;;  %vm11176_vm2 = vcmp.eq.f32.partialorder %v17785_v63, %v22474_v19  ;;  %vm19198_vm4 = vmpackc.low %vm3269_vm0, %vm3261_vm15 }
 0x179   : > { %v24008_v49 = vpop.permute.xlu0 %1269  ;;  %v16385_v10 = vclamps-f32 %v1709_v15, 32.0  ;;  %v16384_v17 = vclamps-f32 %v1708_v62, 32.0 }
 0x17a   : > { %28412 = vst [vmem:[#allocation85_spill] sm:$0xff] %v24008_v49  ;;  %vm11169_vm3 = vcmp.eq.f32.partialorder %v17778_v25, %v22450_v2  ;;  %v24012_v7 = vpop.permute.xlu1 %9221  ;;  %vm11168_vm5 = vcmp.eq.f32.partialorder %v17777_v55, %v22474_v19  ;;  %v1701_v4 = vsub.f32 %v24008_v49, %v23955_v45  ;;  %v1700_v39 = vsub.f32 %v24008_v49, %v23960_v12 }
 0x17b   : > { %28413 = vst [vmem:[#allocation86_spill] sm:$0xff] %v24012_v7  ;;  %vm20028_vm6 = vmpackc.low %vm11177_vm1, %vm11169_vm3  ;;  %v9657_v47 = vsub.f32 %v24012_v7, %v23955_v45  ;;  %v9656_v63 = vsub.f32 %v24012_v7, %v23960_v12  ;;  %vm3286_vm8 = vcmp.eq.f32.partialorder %v16385_v10, %v22450_v2  ;;  %vm3285_vm12 = vcmp.eq.f32.partialorder %v16384_v17, %v22474_v19 }
 0x17c   : > { %20029 = vmatprep.mubr.msk.bf16.mxu1 %vm20028_vm6, %v28312_v16  ;;  %vm20030_vm7 = vmpackc.low %vm11176_vm2, %vm11168_vm5  ;;  %v16377_v15 = vclamps-f32 %v1701_v4, 32.0  ;;  %v16376_v25 = vclamps-f32 %v1700_v39, 32.0 }
 0x17d   : > { %19199 = vmatmul.mubr.msk.bf16.gmra.mrb[84].mxu0 %vm19198_vm4, %v28312_v16  ;;  %v17802_v37 = vclamps-f32 %v9657_v47, 32.0  ;;  %v17801_v49 = vclamps-f32 %v9656_v63, 32.0 }
 0x17e   : > { %v24025_v55 = vpop.permute.xlu0 %9217  ;;  %20031 = vmatmul.mubr.msk.bf16.gmra.mrb[84].mxu1 %vm20030_vm7, %v28312_v16  ;;  %vm3278_vm9 = vcmp.eq.f32.partialorder %v16377_v15, %v22450_v2  ;;  %v24030_v62 = vpop.permute.xlu1 %1281  ;;  %vm3277_vm11 = vcmp.eq.f32.partialorder %v16376_v25, %v22474_v19 }
 0x17f   : > { %28414 = vst [vmem:[#allocation87_spill] sm:$0xff] %v24025_v55  ;;  %28415 = vst [vmem:[#allocation88_spill] sm:$0xff] %v24030_v62  ;;  %v9649_v7 = vsub.f32 %v24025_v55, %v23955_v45  ;;  %v9648_v4 = vsub.f32 %v24025_v55, %v23960_v12  ;;  %v1725_v10 = vsub.f32 %v24030_v62, %v23955_v45 }
 0x180   : > { %vm19200_vm10 = vmpackc.low %vm3286_vm8, %vm3278_vm9  ;;  %v1724_v39 = vsub.f32 %v24030_v62, %v23960_v12  ;;  %vm11193_vm13 = vcmp.eq.f32.partialorder %v17802_v37, %v22450_v2  ;;  %vm11192_vm14 = vcmp.eq.f32.partialorder %v17801_v49, %v22474_v19 }
 0x181   : > { %19201 = vmatprep.mubr.msk.bf16.mxu0 %vm19200_vm10, %v28312_v16  ;;  %v17794_v47 = vclamps-f32 %v9649_v7, 32.0  ;;  %v17793_v63 = vclamps-f32 %v9648_v4, 32.0  ;;  %v16401_v55 = vclamps-f32 %v1725_v10, 32.0  ;;  %vm19202_vm0 = vmpackc.low %vm3285_vm12, %vm3277_vm11 }
 0x182   : > { %v24044_v15 = vpop.permute.xlu0 %1277  ;;  %v24048_v17 = vpop.permute.xlu1 %9229  ;;  %v16400_v4 = vclamps-f32 %v1724_v39, 32.0 }
 0x183   : > { %28416 = vst [vmem:[#allocation89_spill] sm:$0xff] %v24044_v15  ;;  %vm11185_vm15 = vcmp.eq.f32.partialorder %v17794_v47, %v22450_v2  ;;  %28417 = vst [vmem:[#allocation90_spill] sm:$0xff] %v24048_v17  ;;  %vm11184_vm1 = vcmp.eq.f32.partialorder %v17793_v63, %v22474_v19  ;;  %v1717_v25 = vsub.f32 %v24044_v15, %v23955_v45 }
 0x184   : > { %v1716_v7 = vsub.f32 %v24044_v15, %v23960_v12  ;;  %vm20032_vm2 = vmpackc.low %vm11193_vm13, %vm11185_vm15  ;;  %v9673_v37 = vsub.f32 %v24048_v17, %v23955_v45  ;;  %v9672_v49 = vsub.f32 %v24048_v17, %v23960_v12  ;;  %vm3302_vm4 = vcmp.eq.f32.partialorder %v16401_v55, %v22450_v2 }
 0x185   : > { %20033 = vmatprep.mubr.msk.bf16.mxu1 %vm20032_vm2, %v28312_v16  ;;  %vm20034_vm3 = vmpackc.low %vm11192_vm14, %vm11184_vm1  ;;  %v16393_v10 = vclamps-f32 %v1717_v25, 32.0  ;;  %19203 = vmatmul.mubr.msk.bf16.gmra.mrb[88].mxu0 %vm19202_vm0, %v28312_v16  ;;  %vm3301_vm8 = vcmp.eq.f32.partialorder %v16400_v4, %v22474_v19 }
 0x186   : > { %v16392_v47 = vclamps-f32 %v1716_v7, 32.0  ;;  %v24061_v63 = vpop.permute.xlu0 %9225  ;;  %20035 = vmatmul.mubr.msk.bf16.gmra.mrb[88].mxu1 %vm20034_vm3, %v28312_v16  ;;  %v17818_v62 = vclamps-f32 %v9673_v37, 32.0  ;;  %v17817_v15 = vclamps-f32 %v9672_v49, 32.0 }
 0x187   : > { %28418 = vst [vmem:[#allocation91_spill] sm:$0xff] %v24061_v63  ;;  %vm3294_vm5 = vcmp.eq.f32.partialorder %v16393_v10, %v22450_v2  ;;  %v24066_v39 = vpop.permute.xlu1 %1289  ;;  %v9665_v17 = vsub.f32 %v24061_v63, %v23955_v45  ;;  %v9664_v25 = vsub.f32 %v24061_v63, %v23960_v12 }
 0x188   : > { %28419 = vst [vmem:[#allocation92_spill] sm:$0xff] %v24066_v39  ;;  %vm19204_vm6 = vmpackc.low %vm3302_vm4, %vm3294_vm5  ;;  %vm3293_vm7 = vcmp.eq.f32.partialorder %v16392_v47, %v22474_v19  ;;  %v1741_v55 = vsub.f32 %v24066_v39, %v23955_v45  ;;  %v1740_v7 = vsub.f32 %v24066_v39, %v23960_v12  ;;  %vm11209_vm9 = vcmp.eq.f32.partialorder %v17818_v62, %v22450_v2 }
 0x189   : > { %19205 = vmatprep.mubr.msk.bf16.mxu0 %vm19204_vm6, %v28312_v16  ;;  %v17810_v37 = vclamps-f32 %v9665_v17, 32.0  ;;  %v17809_v49 = vclamps-f32 %v9664_v25, 32.0  ;;  %vm11208_vm10 = vcmp.eq.f32.partialorder %v17817_v15, %v22474_v19  ;;  %vm19206_vm12 = vmpackc.low %vm3301_vm8, %vm3293_vm7 }
 0x18a   : > { %v24080_v10 = vpop.permute.xlu0 %1285  ;;  %v16417_v63 = vclamps-f32 %v1741_v55, 32.0  ;;  %v16416_v25 = vclamps-f32 %v1740_v7, 32.0 }
 0x18b   : > { %28420 = vst [vmem:[#allocation93_spill] sm:$0xff] %v24080_v10  ;;  %vm11201_vm11 = vcmp.eq.f32.partialorder %v17810_v37, %v22450_v2  ;;  %v24084_v4 = vpop.permute.xlu1 %9237  ;;  %vm11200_vm13 = vcmp.eq.f32.partialorder %v17809_v49, %v22474_v19  ;;  %v1733_v47 = vsub.f32 %v24080_v10, %v23955_v45  ;;  %v1732_v17 = vsub.f32 %v24080_v10, %v23960_v12 }
 0x18c   : > { %28421 = vst [vmem:[#allocation94_spill] sm:$0xff] %v24084_v4  ;;  %vm20036_vm14 = vmpackc.low %vm11209_vm9, %vm11201_vm11  ;;  %v9689_v62 = vsub.f32 %v24084_v4, %v23955_v45  ;;  %v9688_v15 = vsub.f32 %v24084_v4, %v23960_v12  ;;  %vm3318_vm0 = vcmp.eq.f32.partialorder %v16417_v63, %v22450_v2  ;;  %vm3317_vm4 = vcmp.eq.f32.partialorder %v16416_v25, %v22474_v19 }
 0x18d   : > { %20037 = vmatprep.mubr.msk.bf16.mxu1 %vm20036_vm14, %v28312_v16  ;;  %vm20038_vm15 = vmpackc.low %vm11208_vm10, %vm11200_vm13  ;;  %v16409_v55 = vclamps-f32 %v1733_v47, 32.0  ;;  %v16408_v37 = vclamps-f32 %v1732_v17, 32.0  ;;  %19207 = vmatmul.mubr.msk.bf16.gmra.mrb[92].mxu0 %vm19206_vm12, %v28312_v16 }
 0x18e   : > { %v24097_v49 = vpop.permute.xlu0 %9233  ;;  %20039 = vmatmul.mubr.msk.bf16.gmra.mrb[92].mxu1 %vm20038_vm15, %v28312_v16  ;;  %v17834_v39 = vclamps-f32 %v9689_v62, 32.0  ;;  %v17833_v10 = vclamps-f32 %v9688_v15, 32.0 }
 0x18f   : > { %28422 = vst [vmem:[#allocation95_spill] sm:$0xff] %v24097_v49  ;;  %vm3310_vm1 = vcmp.eq.f32.partialorder %v16409_v55, %v22450_v2  ;;  %v24102_v7 = vpop.permute.xlu1 %1297  ;;  %v9681_v4 = vsub.f32 %v24097_v49, %v23955_v45  ;;  %v9680_v47 = vsub.f32 %v24097_v49, %v23960_v12  ;;  %vm3309_vm3 = vcmp.eq.f32.partialorder %v16408_v37, %v22474_v19 }
 0x190   : > { %28423 = vst [vmem:[#allocation96_spill] sm:$0xff] %v24102_v7  ;;  %vm19208_vm2 = vmpackc.low %vm3318_vm0, %vm3310_vm1  ;;  %v1757_v63 = vsub.f32 %v24102_v7, %v23955_v45  ;;  %v1756_v17 = vsub.f32 %v24102_v7, %v23960_v12  ;;  %vm11225_vm5 = vcmp.eq.f32.partialorder %v17834_v39, %v22450_v2  ;;  %vm11224_vm6 = vcmp.eq.f32.partialorder %v17833_v10, %v22474_v19 }
 0x191   : > { %19209 = vmatprep.mubr.msk.bf16.mxu0 %vm19208_vm2, %v28312_v16  ;;  %v17826_v62 = vclamps-f32 %v9681_v4, 32.0  ;;  %v17825_v15 = vclamps-f32 %v9680_v47, 32.0  ;;  %vm19210_vm8 = vmpackc.low %vm3317_vm4, %vm3309_vm3 }
 0x192   : > { %v24116_v55 = vpop.permute.xlu0 %1293  ;;  %v16433_v49 = vclamps-f32 %v1757_v63, 32.0  ;;  %v16432_v47 = vclamps-f32 %v1756_v17, 32.0 }
 0x193   : > { %28424 = vst [vmem:[#allocation97_spill] sm:$0xff] %v24116_v55  ;;  %vm11217_vm7 = vcmp.eq.f32.partialorder %v17826_v62, %v22450_v2  ;;  %v24120_v25 = vpop.permute.xlu1 %9245  ;;  %vm11216_vm9 = vcmp.eq.f32.partialorder %v17825_v15, %v22474_v19  ;;  %v1749_v37 = vsub.f32 %v24116_v55, %v23955_v45  ;;  %v1748_v4 = vsub.f32 %v24116_v55, %v23960_v12 }
 0x194   : > { %28425 = vst [vmem:[#allocation98_spill] sm:$0xff] %v24120_v25  ;;  %vm20040_vm10 = vmpackc.low %vm11225_vm5, %vm11217_vm7  ;;  %v9705_v39 = vsub.f32 %v24120_v25, %v23955_v45  ;;  %v9704_v10 = vsub.f32 %v24120_v25, %v23960_v12  ;;  %vm3334_vm12 = vcmp.eq.f32.partialorder %v16433_v49, %v22450_v2  ;;  %vm3333_vm0 = vcmp.eq.f32.partialorder %v16432_v47, %v22474_v19 }
 0x195   : > { %20041 = vmatprep.mubr.msk.bf16.mxu1 %vm20040_vm10, %v28312_v16  ;;  %vm20042_vm11 = vmpackc.low %vm11224_vm6, %vm11216_vm9  ;;  %v16425_v63 = vclamps-f32 %v1749_v37, 32.0  ;;  %v16424_v62 = vclamps-f32 %v1748_v4, 32.0  ;;  %19211 = vmatmul.mubr.msk.bf16.gmra.mrb[96].mxu0 %vm19210_vm8, %v28312_v16 }
 0x196   : > { %v24133_v15 = vpop.permute.xlu0 %9241  ;;  %20043 = vmatmul.mubr.msk.bf16.gmra.mrb[96].mxu1 %vm20042_vm11, %v28312_v16  ;;  %v17850_v7 = vclamps-f32 %v9705_v39, 32.0  ;;  %v17849_v55 = vclamps-f32 %v9704_v10, 32.0 }
 0x197   : > { %28426 = vst [vmem:[#allocation99_spill] sm:$0xff] %v24133_v15  ;;  %vm3326_vm13 = vcmp.eq.f32.partialorder %v16425_v63, %v22450_v2  ;;  %v24138_v17 = vpop.permute.xlu1 %1305  ;;  %v9697_v25 = vsub.f32 %v24133_v15, %v23955_v45  ;;  %v9696_v37 = vsub.f32 %v24133_v15, %v23960_v12  ;;  %vm3325_vm15 = vcmp.eq.f32.partialorder %v16424_v62, %v22474_v19 }
 0x198   : > { %28427 = vst [vmem:[#allocation100_spill] sm:$0xff] %v24138_v17  ;;  %vm19212_vm14 = vmpackc.low %vm3334_vm12, %vm3326_vm13  ;;  %v1773_v49 = vsub.f32 %v24138_v17, %v23955_v45  ;;  %v1772_v4 = vsub.f32 %v24138_v17, %v23960_v12  ;;  %vm11241_vm1 = vcmp.eq.f32.partialorder %v17850_v7, %v22450_v2  ;;  %vm11240_vm2 = vcmp.eq.f32.partialorder %v17849_v55, %v22474_v19 }
 0x199   : > { %19213 = vmatprep.mubr.msk.bf16.mxu0 %vm19212_vm14, %v28312_v16  ;;  %v17842_v39 = vclamps-f32 %v9697_v25, 32.0  ;;  %v17841_v10 = vclamps-f32 %v9696_v37, 32.0  ;;  %vm19214_vm4 = vmpackc.low %vm3333_vm0, %vm3325_vm15 }
 0x19a   : > { %v24152_v63 = vpop.permute.xlu0 %1301  ;;  %v16449_v15 = vclamps-f32 %v1773_v49, 32.0  ;;  %v16448_v37 = vclamps-f32 %v1772_v4, 32.0 }
 0x19b   : > { %28428 = vst [vmem:[#allocation101_spill] sm:$0xff] %v24152_v63  ;;  %vm11233_vm3 = vcmp.eq.f32.partialorder %v17842_v39, %v22450_v2  ;;  %vm11232_vm5 = vcmp.eq.f32.partialorder %v17841_v10, %v22474_v19  ;;  %v1765_v62 = vsub.f32 %v24152_v63, %v23955_v45  ;;  %v1764_v25 = vsub.f32 %v24152_v63, %v23960_v12 }
 0x19c   : > { %v24156_v47 = vpop.permute.xlu1 %9253  ;;  %vm20044_vm6 = vmpackc.low %vm11241_vm1, %vm11233_vm3  ;;  %vm3350_vm8 = vcmp.eq.f32.partialorder %v16449_v15, %v22450_v2  ;;  %vm3349_vm12 = vcmp.eq.f32.partialorder %v16448_v37, %v22474_v19 }
 0x19d   : > { %28429 = vst [vmem:[#allocation102_spill] sm:$0xff] %v24156_v47  ;;  %v9721_v7 = vsub.f32 %v24156_v47, %v23955_v45  ;;  %v9720_v55 = vsub.f32 %v24156_v47, %v23960_v12  ;;  %20045 = vmatprep.mubr.msk.bf16.mxu1 %vm20044_vm6, %v28312_v16  ;;  %vm20046_vm7 = vmpackc.low %vm11240_vm2, %vm11232_vm5  ;;  %v16441_v49 = vclamps-f32 %v1765_v62, 32.0  ;;  %v16440_v39 = vclamps-f32 %v1764_v25, 32.0  ;;  %19215 = vmatmul.mubr.msk.bf16.gmra.mrb[100].mxu0 %vm19214_vm4, %v28312_v16 }
 0x19e   : > { %20047 = vmatmul.mubr.msk.bf16.gmra.mrb[100].mxu1 %vm20046_vm7, %v28312_v16 }
 0x19f   : > { %v24169_v10 = vpop.permute.xlu0 %9249  ;;  %v17866_v17 = vclamps-f32 %v9721_v7, 32.0  ;;  %v17865_v63 = vclamps-f32 %v9720_v55, 32.0  ;;  %vm3342_vm9 = vcmp.eq.f32.partialorder %v16441_v49, %v22450_v2  ;;  %vm3341_vm11 = vcmp.eq.f32.partialorder %v16440_v39, %v22474_v19 }
 0x1a0   : > { %28430 = vst [vmem:[#allocation103_spill] sm:$0xff] %v24169_v10  ;;  %v24174_v4 = vpop.permute.xlu1 %1313  ;;  %v9713_v47 = vsub.f32 %v24169_v10, %v23955_v45  ;;  %v9712_v62 = vsub.f32 %v24169_v10, %v23960_v12  ;;  %vm19216_vm10 = vmpackc.low %vm3350_vm8, %vm3342_vm9 }
 0x1a1   : > { %28431 = vst [vmem:[#allocation104_spill] sm:$0xff] %v24174_v4  ;;  %v1789_v15 = vsub.f32 %v24174_v4, %v23955_v45  ;;  %v1788_v25 = vsub.f32 %v24174_v4, %v23960_v12  ;;  %19217 = vmatprep.mubr.msk.bf16.mxu0 %vm19216_vm10, %v28312_v16  ;;  %vm11257_vm13 = vcmp.eq.f32.partialorder %v17866_v17, %v22450_v2  ;;  %vm19218_vm0 = vmpackc.low %vm3349_vm12, %vm3341_vm11 }
 0x1a2   : > { %v17858_v7 = vclamps-f32 %v9713_v47, 32.0  ;;  %v17857_v55 = vclamps-f32 %v9712_v62, 32.0  ;;  %vm11256_vm14 = vcmp.eq.f32.partialorder %v17865_v63, %v22474_v19 }
 0x1a3   : > { %v24188_v49 = vpop.permute.xlu0 %1309  ;;  %v16465_v10 = vclamps-f32 %v1789_v15, 32.0  ;;  %v16464_v62 = vclamps-f32 %v1788_v25, 32.0 }
 0x1a4   : > { %28432 = vst [vmem:[#allocation105_spill] sm:$0xff] %v24188_v49  ;;  %vm11249_vm15 = vcmp.eq.f32.partialorder %v17858_v7, %v22450_v2  ;;  %v24192_v37 = vpop.permute.xlu1 %9261  ;;  %vm11248_vm1 = vcmp.eq.f32.partialorder %v17857_v55, %v22474_v19  ;;  %v1781_v39 = vsub.f32 %v24188_v49, %v23955_v45  ;;  %v1780_v47 = vsub.f32 %v24188_v49, %v23960_v12 }
 0x1a5   : > { %28433 = vst [vmem:[#allocation106_spill] sm:$0xff] %v24192_v37  ;;  %vm20048_vm2 = vmpackc.low %vm11257_vm13, %vm11249_vm15  ;;  %v9737_v17 = vsub.f32 %v24192_v37, %v23955_v45  ;;  %v9736_v63 = vsub.f32 %v24192_v37, %v23960_v12  ;;  %vm3366_vm4 = vcmp.eq.f32.partialorder %v16465_v10, %v22450_v2  ;;  %19219 = vmatmul.mubr.msk.bf16.gmra.mrb[104].mxu0 %vm19218_vm0, %v28312_v16 }
 0x1a6   : > { %20049 = vmatprep.mubr.msk.bf16.mxu1 %vm20048_vm2, %v28312_v16  ;;  %vm20050_vm3 = vmpackc.low %vm11256_vm14, %vm11248_vm1  ;;  %v16457_v15 = vclamps-f32 %v1781_v39, 32.0  ;;  %v16456_v7 = vclamps-f32 %v1780_v47, 32.0  ;;  %vm3365_vm8 = vcmp.eq.f32.partialorder %v16464_v62, %v22474_v19 }
 0x1a7   : > { %v24205_v55 = vpop.permute.xlu0 %9257  ;;  %20051 = vmatmul.mubr.msk.bf16.gmra.mrb[104].mxu1 %vm20050_vm3, %v28312_v16  ;;  %v17882_v4 = vclamps-f32 %v9737_v17, 32.0  ;;  %v17881_v49 = vclamps-f32 %v9736_v63, 32.0 }
 0x1a8   : > { %28434 = vst [vmem:[#allocation107_spill] sm:$0xff] %v24205_v55  ;;  %vm3358_vm5 = vcmp.eq.f32.partialorder %v16457_v15, %v22450_v2  ;;  %v24210_v25 = vpop.permute.xlu1 %1321  ;;  %v9729_v37 = vsub.f32 %v24205_v55, %v23955_v45  ;;  %v9728_v39 = vsub.f32 %v24205_v55, %v23960_v12  ;;  %vm3357_vm7 = vcmp.eq.f32.partialorder %v16456_v7, %v22474_v19 }
 0x1a9   : > { %28435 = vst [vmem:[#allocation108_spill] sm:$0xff] %v24210_v25  ;;  %vm19220_vm6 = vmpackc.low %vm3366_vm4, %vm3358_vm5  ;;  %v1805_v10 = vsub.f32 %v24210_v25, %v23955_v45  ;;  %v1804_v47 = vsub.f32 %v24210_v25, %v23960_v12  ;;  %vm11273_vm9 = vcmp.eq.f32.partialorder %v17882_v4, %v22450_v2  ;;  %vm11272_vm10 = vcmp.eq.f32.partialorder %v17881_v49, %v22474_v19 }
 0x1aa   : > { %19221 = vmatprep.mubr.msk.bf16.mxu0 %vm19220_vm6, %v28312_v16  ;;  %v17874_v17 = vclamps-f32 %v9729_v37, 32.0  ;;  %v17873_v63 = vclamps-f32 %v9728_v39, 32.0  ;;  %vm19222_vm12 = vmpackc.low %vm3365_vm8, %vm3357_vm7 }
 0x1ab   : > { %v24224_v15 = vpop.permute.xlu0 %1317  ;;  %v16481_v55 = vclamps-f32 %v1805_v10, 32.0  ;;  %v16480_v39 = vclamps-f32 %v1804_v47, 32.0 }
 0x1ac   : > { %28436 = vst [vmem:[#allocation109_spill] sm:$0xff] %v24224_v15  ;;  %vm11265_vm11 = vcmp.eq.f32.partialorder %v17874_v17, %v22450_v2  ;;  %v24228_v62 = vpop.permute.xlu1 %9269  ;;  %vm11264_vm13 = vcmp.eq.f32.partialorder %v17873_v63, %v22474_v19  ;;  %v1797_v7 = vsub.f32 %v24224_v15, %v23955_v45  ;;  %v1796_v37 = vsub.f32 %v24224_v15, %v23960_v12 }
 0x1ad   : > { %28437 = vst [vmem:[#allocation110_spill] sm:$0xff] %v24228_v62  ;;  %vm20052_vm14 = vmpackc.low %vm11273_vm9, %vm11265_vm11  ;;  %v9753_v4 = vsub.f32 %v24228_v62, %v23955_v45  ;;  %v9752_v49 = vsub.f32 %v24228_v62, %v23960_v12  ;;  %vm3382_vm0 = vcmp.eq.f32.partialorder %v16481_v55, %v22450_v2  ;;  %19223 = vmatmul.mubr.msk.bf16.gmra.mrb[108].mxu0 %vm19222_vm12, %v28312_v16 }
 0x1ae   : > { %20053 = vmatprep.mubr.msk.bf16.mxu1 %vm20052_vm14, %v28312_v16  ;;  %vm20054_vm15 = vmpackc.low %vm11272_vm10, %vm11264_vm13  ;;  %v16473_v10 = vclamps-f32 %v1797_v7, 32.0  ;;  %v16472_v17 = vclamps-f32 %v1796_v37, 32.0  ;;  %vm3381_vm4 = vcmp.eq.f32.partialorder %v16480_v39, %v22474_v19 }
 0x1af   : > { %v24241_v63 = vpop.permute.xlu0 %9265  ;;  %20055 = vmatmul.mubr.msk.bf16.gmra.mrb[108].mxu1 %vm20054_vm15, %v28312_v16  ;;  %v17898_v25 = vclamps-f32 %v9753_v4, 32.0  ;;  %v17897_v15 = vclamps-f32 %v9752_v49, 32.0 }
 0x1b0   : > { %28438 = vst [vmem:[#allocation111_spill] sm:$0xff] %v24241_v63  ;;  %vm3374_vm1 = vcmp.eq.f32.partialorder %v16473_v10, %v22450_v2  ;;  %v24246_v47 = vpop.permute.xlu1 %1329  ;;  %v9745_v62 = vsub.f32 %v24241_v63, %v23955_v45  ;;  %v9744_v7 = vsub.f32 %v24241_v63, %v23960_v12  ;;  %vm3373_vm3 = vcmp.eq.f32.partialorder %v16472_v17, %v22474_v19 }
 0x1b1   : > { %28439 = vst [vmem:[#allocation112_spill] sm:$0xff] %v24246_v47  ;;  %vm19224_vm2 = vmpackc.low %vm3382_vm0, %vm3374_vm1  ;;  %v1821_v55 = vsub.f32 %v24246_v47, %v23955_v45  ;;  %v1820_v37 = vsub.f32 %v24246_v47, %v23960_v12  ;;  %vm11289_vm5 = vcmp.eq.f32.partialorder %v17898_v25, %v22450_v2  ;;  %vm11288_vm6 = vcmp.eq.f32.partialorder %v17897_v15, %v22474_v19 }
 0x1b2   : > { %19225 = vmatprep.mubr.msk.bf16.mxu0 %vm19224_vm2, %v28312_v16  ;;  %v17890_v4 = vclamps-f32 %v9745_v62, 32.0  ;;  %v17889_v49 = vclamps-f32 %v9744_v7, 32.0  ;;  %vm19226_vm8 = vmpackc.low %vm3381_vm4, %vm3373_vm3 }
 0x1b3   : > { %v24260_v10 = vpop.permute.xlu0 %1325  ;;  %v16497_v63 = vclamps-f32 %v1821_v55, 32.0  ;;  %v16496_v15 = vclamps-f32 %v1820_v37, 32.0 }
 0x1b4   : > { %28440 = vst [vmem:[#allocation113_spill] sm:$0xff] %v24260_v10  ;;  %vm11281_vm7 = vcmp.eq.f32.partialorder %v17890_v4, %v22450_v2  ;;  %v24264_v39 = vpop.permute.xlu1 %9277  ;;  %vm11280_vm9 = vcmp.eq.f32.partialorder %v17889_v49, %v22474_v19  ;;  %v1813_v17 = vsub.f32 %v24260_v10, %v23955_v45  ;;  %v1812_v25 = vsub.f32 %v24260_v10, %v23960_v12 }
 0x1b5   : > { %28441 = vst [vmem:[#allocation114_spill] sm:$0xff] %v24264_v39  ;;  %vm20056_vm10 = vmpackc.low %vm11289_vm5, %vm11281_vm7  ;;  %v9769_v62 = vsub.f32 %v24264_v39, %v23955_v45  ;;  %v9768_v7 = vsub.f32 %v24264_v39, %v23960_v12  ;;  %vm3398_vm12 = vcmp.eq.f32.partialorder %v16497_v63, %v22450_v2  ;;  %19227 = vmatmul.mubr.msk.bf16.gmra.mrb[112].mxu0 %vm19226_vm8, %v28312_v16 }
 0x1b6   : > { %20057 = vmatprep.mubr.msk.bf16.mxu1 %vm20056_vm10, %v28312_v16  ;;  %vm20058_vm11 = vmpackc.low %vm11288_vm6, %vm11280_vm9  ;;  %v16489_v55 = vclamps-f32 %v1813_v17, 32.0  ;;  %v16488_v4 = vclamps-f32 %v1812_v25, 32.0  ;;  %vm3397_vm0 = vcmp.eq.f32.partialorder %v16496_v15, %v22474_v19  ;;  %v9299_v15 = vsub.f32 %v22511_v40, %v24282_v57 }
 0x1b7   : > { %v24277_v49 = vpop.permute.xlu0 %9273  ;;  %20059 = vmatmul.mubr.msk.bf16.gmra.mrb[112].mxu1 %vm20058_vm11, %v28312_v16  ;;  %v17914_v47 = vclamps-f32 %v9769_v62, 32.0  ;;  %v17913_v10 = vclamps-f32 %v9768_v7, 32.0 }
 0x1b8   : > { %28442 = vst [vmem:[#allocation115_spill] sm:$0xff] %v24277_v49  ;;  %vm3390_vm13 = vcmp.eq.f32.partialorder %v16489_v55, %v22450_v2  ;;  %v24285_v37 = vpop.permute.xlu1 %1337  ;;  %v9761_v17 = vsub.f32 %v24277_v49, %v23955_v45  ;;  %v9760_v63 = vsub.f32 %v24277_v49, %v23960_v12  ;;  %vm3389_vm15 = vcmp.eq.f32.partialorder %v16488_v4, %v22474_v19 }
 0x1b9   : > { %28443 = vst [vmem:[#allocation116_spill] sm:$0xff] %v24285_v37  ;;  %vm19228_vm14 = vmpackc.low %vm3398_vm12, %vm3390_vm13  ;;  %v1837_v25 = vsub.f32 %v24285_v37, %v23955_v45  ;;  %v1836_v62 = vsub.f32 %v24285_v37, %v23960_v12  ;;  %vm11305_vm1 = vcmp.eq.f32.partialorder %v17914_v47, %v22450_v2  ;;  %vm11304_vm2 = vcmp.eq.f32.partialorder %v17913_v10, %v22474_v19 }
 0x1ba   : > { %19229 = vmatprep.mubr.msk.bf16.mxu0 %vm19228_vm14, %v28312_v16  ;;  %v17906_v7 = vclamps-f32 %v9761_v17, 32.0  ;;  %v17905_v55 = vclamps-f32 %v9760_v63, 32.0  ;;  %vm19230_vm4 = vmpackc.low %vm3397_vm0, %vm3389_vm15 }
 0x1bb   : > { %v24299_v39 = vpop.permute.xlu0 %1333  ;;  %v16513_v49 = vclamps-f32 %v1837_v25, 32.0  ;;  %v16512_v63 = vclamps-f32 %v1836_v62, 32.0  ;;  %v9307_v62 = vsub.f32 %v22548_v56, %v24282_v57 }
 0x1bc   : > { %28444 = vst [vmem:[#allocation117_spill] sm:$0xff] %v24299_v39  ;;  %vm11297_vm3 = vcmp.eq.f32.partialorder %v17906_v7, %v22450_v2  ;;  %v24305_v4 = vpop.permute.xlu1 %9285  ;;  %vm11296_vm5 = vcmp.eq.f32.partialorder %v17905_v55, %v22474_v19  ;;  %v1829_v17 = vsub.f32 %v24299_v39, %v23955_v45  ;;  %v1828_v47 = vsub.f32 %v24299_v39, %v23960_v12 }
 0x1bd   : > { %28445 = vst [vmem:[#allocation118_spill] sm:$0xff] %v24305_v4  ;;  %vm20060_vm6 = vmpackc.low %vm11305_vm1, %vm11297_vm3  ;;  %v9785_v10 = vsub.f32 %v24305_v4, %v23955_v45  ;;  %v9784_v25 = vsub.f32 %v24305_v4, %v23960_v12  ;;  %vm3414_vm8 = vcmp.eq.f32.partialorder %v16513_v49, %v22450_v2  ;;  %19231 = vmatmul.mubr.msk.bf16.gmra.mrb[116].mxu0 %vm19230_vm4, %v28312_v16  ;;  %v17452_v51 = vclamps-f32 %v9307_v62, 32.0 }
 0x1be   : > { %20061 = vmatprep.mubr.msk.bf16.mxu1 %vm20060_vm6, %v28312_v16  ;;  %vm20062_vm7 = vmpackc.low %vm11304_vm2, %vm11296_vm5  ;;  %v16505_v7 = vclamps-f32 %v1829_v17, 32.0  ;;  %v16504_v55 = vclamps-f32 %v1828_v47, 32.0  ;;  %v17444_v47 = vclamps-f32 %v9299_v15, 32.0  ;;  %vm3413_vm12 = vcmp.eq.f32.partialorder %v16512_v63, %v22474_v19 }
 0x1bf   : > { %v24318_v37 = vpop.permute.xlu0 %9281  ;;  %20063 = vmatmul.mubr.msk.bf16.gmra.mrb[116].mxu1 %vm20062_vm7, %v28312_v16  ;;  %v17930_v39 = vclamps-f32 %v9785_v10, 32.0  ;;  %v17929_v34 = vclamps-f32 %v9784_v25, 32.0  ;;  %v1351_v15 = vsub.f32 %v22561_v61, %v24282_v57  ;;  %vm10843_vm6 = vcmp.eq.f32.partialorder %v17452_v51, %v22257_v21 }
 0x1c0   : > { %28446 = vst [vmem:[#allocation119_spill] sm:$0xff] %v24318_v37  ;;  %vm3406_vm9 = vcmp.eq.f32.partialorder %v16505_v7, %v22450_v2  ;;  %v24325_v4 = vpop.permute.xlu1 %1345  ;;  %v9777_v17 = vsub.f32 %v24318_v37, %v23955_v45  ;;  %v9776_v49 = vsub.f32 %v24318_v37, %v23960_v12  ;;  %vm3405_vm11 = vcmp.eq.f32.partialorder %v16504_v55, %v22474_v19 }
 0x1c1   : > { %28447 = vst [vmem:[#allocation120_spill] sm:$0xff] %v24325_v4  ;;  %vm19232_vm10 = vmpackc.low %vm3414_vm8, %vm3406_vm9  ;;  %v1853_v10 = vsub.f32 %v24325_v4, %v23955_v45  ;;  %v1852_v25 = vsub.f32 %v24325_v4, %v23960_v12  ;;  %vm11321_vm13 = vcmp.eq.f32.partialorder %v17930_v39, %v22450_v2  ;;  %vm11320_vm14 = vcmp.eq.f32.partialorder %v17929_v34, %v22474_v19 }
 0x1c2   : > { %19233 = vmatprep.mubr.msk.bf16.mxu0 %vm19232_vm10, %v28312_v16  ;;  %v17922_v7 = vclamps-f32 %v9777_v17, 32.0  ;;  %v17921_v35 = vclamps-f32 %v9776_v49, 32.0  ;;  %vm24356_vm0 = vmpackc.low %vm3413_vm12, %vm3405_vm11  ;;  %vm10835_vm3 = vcmp.eq.f32.partialorder %v17444_v47, %v22257_v21  ;;  %v16027_v39 = vclamps-f32 %v1351_v15, 32.0 }
 0x1c3   : > { %v24341_v37 = vpop.permute.xlu0 %1341  ;;  %v16529_v42 = vclamps-f32 %v1853_v10, 32.0  ;;  %v1350_v34 = vsub.f32 %v22561_v61, %v24347_v60  ;;  %v1358_v49 = vsub.f32 %v22589_v31, %v24347_v60  ;;  %v9315_v47 = vsub.f32 %v22652_v43, %v24282_v57 }
 0x1c4   : > { %28448 = vst [vmem:[#allocation121_spill] sm:$0xff] %v24341_v37  ;;  %vm11313_vm15 = vcmp.eq.f32.partialorder %v17922_v7, %v22450_v2  ;;  %v24350_v17 = vpop.permute.xlu1 %9293  ;;  %vm11312_vm1 = vcmp.eq.f32.partialorder %v17921_v35, %v22474_v19  ;;  %v1845_v10 = vsub.f32 %v24341_v37, %v23955_v45  ;;  %v1844_v62 = vsub.f32 %v24341_v37, %v23960_v12 }
 0x1c5   : > { %28449 = vst [vmem:[#allocation122_spill] sm:$0xff] %v24350_v17  ;;  %vm20064_vm2 = vmpackc.low %vm11321_vm13, %vm11313_vm15  ;;  %v9801_v55 = vsub.f32 %v24350_v17, %v23955_v45  ;;  %v16528_v7 = vclamps-f32 %v1852_v25, 32.0  ;;  %v9800_v63 = vsub.f32 %v24350_v17, %v23960_v12  ;;  %vm3430_vm5 = vcmp.eq.f32.partialorder %v16529_v42, %v22450_v2  ;;  %19235 = vmatmul.mubr.msk.bf16.gmra.mrb[120].mxu0 %vm24356_vm0, %v28312_v16 }
 0x1c6   : > { %20065 = vmatprep.mubr.msk.bf16.mxu1 %vm20064_vm2, %v28312_v16  ;;  %vm20066_vm4 = vmpackc.low %vm11320_vm14, %vm11312_vm1  ;;  %v16521_v35 = vclamps-f32 %v1845_v10, 32.0  ;;  %v16520_v4 = vclamps-f32 %v1844_v62, 32.0  ;;  %v16035_v10 = vclamps-f32 %v1359_v50, 32.0  ;;  %v9306_v62 = vsub.f32 %v22548_v56, %v24347_v60 }
 0x1c7   : > { %v24376_v37 = vpop.permute.xlu0 %9289  ;;  %20067 = vmatmul.mubr.msk.bf16.gmra.mrb[120].mxu1 %vm20066_vm4, %v28312_v16  ;;  %v17946_v25 = vclamps-f32 %v9801_v55, 32.0  ;;  %v17945_v17 = vclamps-f32 %v9800_v63, 32.0  ;;  %vm3429_vm10 = vcmp.eq.f32.partialorder %v16528_v7, %v22474_v19  ;;  %v1367_v50 = vsub.f32 %v22619_v0, %v24282_v57  ;;  %vm24405_vm13 = vmpackc.low %vm10843_vm6, %vm10835_vm3 }
 0x1c8   : > { %vm3422_vm7 = vcmp.eq.f32.partialorder %v16521_v35, %v22450_v2  ;;  %v9793_v42 = vsub.f32 %v24376_v37, %v23955_v45  ;;  %v9792_v15 = vsub.f32 %v24376_v37, %v23960_v12  ;;  %vm3421_vm9 = vcmp.eq.f32.partialorder %v16520_v4, %v22474_v19 }
 0x1c9   : > { %vm19236_vm8 = vmpackc.low %vm3430_vm5, %vm3422_vm7  ;;  %vm11337_vm11 = vcmp.eq.f32.partialorder %v17946_v25, %v22450_v2  ;;  %vm11336_vm12 = vcmp.eq.f32.partialorder %v17945_v17, %v22474_v19  ;;  %v9298_v4 = vsub.f32 %v22511_v40, %v24347_v60  ;;  %vm2936_vm1 = vcmp.eq.f32.partialorder %v16035_v10, %v22257_v21 }
 0x1ca   : > { %19237 = vmatprep.mubr.msk.bf16.mxu0 %vm19236_vm8, %v28312_v16  ;;  %v17938_v55 = vclamps-f32 %v9793_v42, 32.0  ;;  %v17937_v45 = vclamps-f32 %v9792_v15, 32.0  ;;  %vm19238_vm15 = vmpackc.low %vm3429_vm10, %vm3421_vm9  ;;  %v1375_v17 = vsub.f32 %v22591_v36, %v24282_v57  ;;  %vm2928_vm4 = vcmp.eq.f32.partialorder %v16027_v39, %v22257_v21 }
 0x1cb   : > { %v16026_v51 = vclamps-f32 %v1350_v34, 32.0  ;;  %v9323_v7 = vsub.f32 %v22622_v5, %v24282_v57  ;;  %v16043_v63 = vclamps-f32 %v1367_v50, 32.0  ;;  %v1366_v35 = vsub.f32 %v22619_v0, %v24347_v60  ;;  %vm19240_vm5 = vmpackc.low %vm2936_vm1, %vm2928_vm4 }
 0x1cc   : > { %vm11329_vm14 = vcmp.eq.f32.partialorder %v17938_v55, %v22450_v2  ;;  %vm11328_vm0 = vcmp.eq.f32.partialorder %v17937_v45, %v22474_v19  ;;  %v16034_v2 = vclamps-f32 %v1358_v49, 32.0  ;;  %v17451_v19 = vclamps-f32 %v9306_v62, 32.0 }
 0x1cd   : > { %vm20068_vm2 = vmpackc.low %vm11337_vm11, %vm11329_vm14  ;;  %19239 = vmatmul.mubr.msk.bf16.gmra.mrb[124].mxu0 %vm19238_vm15, %v28312_v16  ;;  %v1374_v39 = vsub.f32 %v22591_v36, %v24347_v60  ;;  %v9314_v25 = vsub.f32 %v22652_v43, %v24347_v60  ;;  %v16051_v34 = vclamps-f32 %v1375_v17, 32.0  ;;  %v9322_v42 = vsub.f32 %v22622_v5, %v24347_v60  ;;  %v21923_v17 = vld [vmem:[#allocation2 + $0x100] sm:$0xff]  }
 0x1ce   : > { %20069 = vmatprep.mubr.msk.bf16.mxu1 %vm20068_vm2, %v28312_v16  ;;  %vm20070_vm3 = vmpackc.low %vm11336_vm12, %vm11328_vm0  ;;  %19241 = vmatprep.mubr.msk.bf16.mxu0 %vm19240_vm5, %v28312_v16  ;;  %vm2927_vm6 = vcmp.eq.f32.partialorder %v16026_v51, %v22254_v20  ;;  %v17443_v15 = vclamps-f32 %v9298_v4, 32.0  ;;  %v17460_v10 = vclamps-f32 %v9315_v47, 32.0  ;;  %v17468_v49 = vclamps-f32 %v9323_v7, 32.0 }
 0x1cf   : > { %20071 = vmatmul.mubr.msk.bf16.gmra.mrb[124].mxu1 %vm20070_vm3, %v28312_v16  ;;  %vm2935_vm7 = vcmp.eq.f32.partialorder %v16034_v2, %v22254_v20  ;;  %vm10842_vm8 = vcmp.eq.f32.partialorder %v17451_v19, %v22254_v20  ;;  %vm2944_vm9 = vcmp.eq.f32.partialorder %v16043_v63, %v22257_v21  ;;  %v16042_v62 = vclamps-f32 %v1366_v35, 32.0 }
 0x1d0   : > { %20073 = vmatprep.mubr.msk.bf16.mxu1 %vm24405_vm13, %v28312_v16  ;;  %v16050_v55 = vclamps-f32 %v1374_v39, 32.0  ;;  %v17459_v45 = vclamps-f32 %v9314_v25, 32.0  ;;  %v1383_v50 = vsub.f32 %v22688_v53, %v24282_v57  ;;  %v1391_v12 = vsub.f32 %v22655_v44, %v24282_v57  ;;  %vm19242_vm11 = vmpackc.low %vm2935_vm7, %vm2927_vm6  ;;  %v21924_v25 = vld [vmem:[#allocation2 + $0x108] sm:$0xff]  }
 0x1d1   : > { %vm2952_vm10 = vcmp.eq.f32.partialorder %v16051_v34, %v22257_v21  ;;  %v17467_v4 = vclamps-f32 %v9322_v42, 32.0  ;;  %v9331_v47 = vsub.f32 %v22740_v48, %v24282_v57  ;;  %v9339_v7 = vsub.f32 %v22690_v28, %v24282_v57 }
 0x1d2   : > { %vm10834_vm12 = vcmp.eq.f32.partialorder %v17443_v15, %v22254_v20  ;;  %vm10851_vm13 = vcmp.eq.f32.partialorder %v17460_v10, %v22257_v21  ;;  %vm10859_vm14 = vcmp.eq.f32.partialorder %v17468_v49, %v22257_v21  ;;  %vm2943_vm0 = vcmp.eq.f32.partialorder %v16042_v62, %v22254_v20  ;;  %vm19244_vm1 = vmpackc.low %vm2952_vm10, %vm2944_vm9 }
 0x1d3   : > { %vm20074_vm15 = vmpackc.low %vm10842_vm8, %vm10834_vm12  ;;  %vm2951_vm2 = vcmp.eq.f32.partialorder %v16050_v55, %v22254_v20  ;;  %vm10850_vm4 = vcmp.eq.f32.partialorder %v17459_v45, %v22254_v20  ;;  %v16059_v51 = vclamps-f32 %v1383_v50, 32.0  ;;  %v16067_v2 = vclamps-f32 %v1391_v12, 32.0 }
 0x1d4   : > { %vm20076_vm3 = vmpackc.low %vm10859_vm14, %vm10851_vm13  ;;  %vm10858_vm5 = vcmp.eq.f32.partialorder %v17467_v4, %v22254_v20  ;;  %v17476_v19 = vclamps-f32 %v9331_v47, 32.0  ;;  %v17484_v35 = vclamps-f32 %v9339_v7, 32.0  ;;  %v1382_v39 = vsub.f32 %v22688_v53, %v24347_v60  ;;  %v21925_v7 = vld [vmem:[#allocation2 + $0x110] sm:$0xff]  }
 0x1d5   : > { %19243 = vmatmul.mubr.msk.bf16.vlgmr.msra.gmra.mrb[0].mxu0 %vm19242_vm11, %v28312_v16  ;;  %v1390_v63 = vsub.f32 %v22655_v44, %v24347_v60  ;;  %v9330_v34 = vsub.f32 %v22740_v48, %v24347_v60  ;;  %v9338_v42 = vsub.f32 %v22690_v28, %v24347_v60  ;;  %v1399_v15 = vsub.f32 %v22780_v23, %v24282_v57  ;;  %vm24490_vm8 = vmpackc.low %vm2951_vm2, %vm2943_vm0 }
 0x1d6   : > { %7478 = vmatpush1.bf16.msra.mxu0 %v21923_v17  ;;  %19245 = vmatprep.mubr.msk.bf16.mxu0 %vm19244_vm1, %v28312_v16  ;;  %v1407_v10 = vsub.f32 %v22746_v30, %v24282_v57  ;;  %v9347_v49 = vsub.f32 %v22822_v54, %v24282_v57  ;;  %vm2960_vm6 = vcmp.eq.f32.partialorder %v16059_v51, %v22257_v21  ;;  %v16058_v12 = vclamps-f32 %v1382_v39, 32.0  ;;  %vm20078_vm11 = vmpackc.low %vm10858_vm5, %vm10850_vm4 }
 0x1d7   : > { %20075 = vmatmul.mubr.msk.bf16.vlgmr.msra.gmra.mrb[0].mxu1 %vm20074_vm15, %v28312_v16  ;;  %7479 = vmatprep.subr.bf16.mxu0 %v28314_v24  ;;  %vm2968_vm7 = vcmp.eq.f32.partialorder %v16067_v2, %v22257_v21  ;;  %vm10867_vm9 = vcmp.eq.f32.partialorder %v17476_v19, %v22257_v21  ;;  %vm10875_vm10 = vcmp.eq.f32.partialorder %v17484_v35, %v22257_v21  ;;  %v16066_v62 = vclamps-f32 %v1390_v63, 32.0  ;;  %v21926_v19 = vld [vmem:[#allocation2 + $0x118] sm:$0xff]  }
 0x1d8   : > { %14995 = vmatpush1.bf16.msra.mxu1 %v21923_v17  ;;  %20077 = vmatprep.mubr.msk.bf16.mxu1 %vm20076_vm3, %v28312_v16  ;;  %v9355_v17 = vsub.f32 %v22782_v41, %v24282_v57  ;;  %v17475_v55 = vclamps-f32 %v9330_v34, 32.0  ;;  %v17483_v47 = vclamps-f32 %v9338_v42, 32.0  ;;  %vm19248_vm12 = vmpackc.low %vm2968_vm7, %vm2960_vm6  ;;  %v16075_v39 = vclamps-f32 %v1399_v15, 32.0 }
 0x1d9   : > { %14996 = vmatprep.subr.bf16.mxu1 %v28314_v24  ;;  %v17492_v28 = vclamps-f32 %v9347_v49, 32.0  ;;  %v1398_v45 = vsub.f32 %v22780_v23, %v24347_v60  ;;  %vm20080_vm13 = vmpackc.low %vm10875_vm10, %vm10867_vm9  ;;  %v1406_v4 = vsub.f32 %v22746_v30, %v24347_v60  ;;  %v9346_v51 = vsub.f32 %v22822_v54, %v24347_v60 }
 0x1da   : > { %7480 = vmatpush1.bf16.msra.mxu0 %v21924_v25  ;;  %vm2959_vm14 = vcmp.eq.f32.partialorder %v16058_v12, %v22254_v20  ;;  %v17500_v2 = vclamps-f32 %v9355_v17, 32.0  ;;  %v9354_v63 = vsub.f32 %v22782_v41, %v24347_v60  ;;  %vm2967_vm15 = vcmp.eq.f32.partialorder %v16066_v62, %v22254_v20  ;;  %v21927_v12 = vld [vmem:[#allocation2 + $0x120] sm:$0xff]  }
 0x1db   : > { %7481 = vmatprep.subr.bf16.mxu0 %v28314_v24  ;;  %vm10866_vm0 = vcmp.eq.f32.partialorder %v17475_v55, %v22254_v20  ;;  %vm10874_vm1 = vcmp.eq.f32.partialorder %v17483_v47, %v22254_v20  ;;  %vm2976_vm2 = vcmp.eq.f32.partialorder %v16075_v39, %v22257_v21  ;;  %vm10883_vm3 = vcmp.eq.f32.partialorder %v17492_v28, %v22257_v21  ;;  %vm19250_vm5 = vmpackc.low %vm2967_vm15, %vm2959_vm14 }
 0x1dc   : > { %14997 = vmatpush1.bf16.msra.mxu1 %v21924_v25  ;;  %v16083_v25 = vclamps-f32 %v1407_v10, 32.0  ;;  %v16074_v35 = vclamps-f32 %v1398_v45, 32.0  ;;  %v16082_v34 = vclamps-f32 %v1406_v4, 32.0  ;;  %v17491_v42 = vclamps-f32 %v9346_v51, 32.0  ;;  %vm20082_vm7 = vmpackc.low %vm10874_vm1, %vm10866_vm0  ;;  %v21928_v4 = vld [vmem:[#allocation2 + $0x128] sm:$0xff]  }
 0x1dd   : > { %14998 = vmatprep.subr.bf16.mxu1 %v28314_v24  ;;  %19247 = vmatmul.mubr.msk.bf16.gmra.mrb[4].mxu0 %vm24490_vm8, %v28312_v16  ;;  %v1415_v15 = vsub.f32 %v22863_v13, %v24282_v57  ;;  %v1423_v10 = vsub.f32 %v22828_v27, %v24282_v57  ;;  %vm10891_vm6 = vcmp.eq.f32.partialorder %v17500_v2, %v22257_v21  ;;  %v17499_v49 = vclamps-f32 %v9354_v63, 32.0 }
 0x1de   : > { %19249 = vmatprep.mubr.msk.bf16.mxu0 %vm19248_vm12, %v28312_v16  ;;  %7482 = vmatpush1.bf16.msra.mxu0 %v21925_v7  ;;  %vm2984_vm4 = vcmp.eq.f32.partialorder %v16083_v25, %v22257_v21  ;;  %v9363_v50 = vsub.f32 %v22911_v29, %v24282_v57  ;;  %v9371_v17 = vsub.f32 %v22865_v18, %v24282_v57  ;;  %vm20084_vm10 = vmpackc.low %vm10891_vm6, %vm10883_vm3 }
 0x1df   : > { %20079 = vmatmul.mubr.msk.bf16.gmra.mrb[4].mxu1 %vm20078_vm11, %v28312_v16  ;;  %7483 = vmatprep.subr.bf16.mxu0 %v28314_v24  ;;  %vm19252_vm8 = vmpackc.low %vm2984_vm4, %vm2976_vm2  ;;  %vm2975_vm9 = vcmp.eq.f32.partialorder %v16074_v35, %v22254_v20  ;;  %vm2983_vm11 = vcmp.eq.f32.partialorder %v16082_v34, %v22254_v20  ;;  %vm10882_vm12 = vcmp.eq.f32.partialorder %v17491_v42, %v22254_v20  ;;  %v16091_v62 = vclamps-f32 %v1415_v15, 32.0 }
 0x1e0   : > { %20081 = vmatprep.mubr.msk.bf16.mxu1 %vm20080_vm13, %v28312_v16  ;;  %14999 = vmatpush1.bf16.msra.mxu1 %v21925_v7  ;;  %v16099_v55 = vclamps-f32 %v1423_v10, 32.0  ;;  %vm10890_vm13 = vcmp.eq.f32.partialorder %v17499_v49, %v22254_v20  ;;  %v17508_v47 = vclamps-f32 %v9363_v50, 32.0  ;;  %v17516_v7 = vclamps-f32 %v9371_v17, 32.0  ;;  %vm24590_vm0 = vmpackc.low %vm2983_vm11, %vm2975_vm9  ;;  %v28458_v10 = vld [vmem:[#allocation24_spill] sm:$0xff] }
 0x1e1   : > { %15000 = vmatprep.subr.bf16.mxu1 %v28314_v24  ;;  %v1414_v39 = vsub.f32 %v22863_v13, %v24347_v60  ;;  %v1422_v28 = vsub.f32 %v22828_v27, %v24347_v60  ;;  %v9362_v25 = vsub.f32 %v22911_v29, %v24347_v60  ;;  %v9370_v45 = vsub.f32 %v22865_v18, %v24347_v60  ;;  %vm20086_vm4 = vmpackc.low %vm10890_vm13, %vm10882_vm12 }
 0x1e2   : > { %7484 = vmatpush1.bf16.msra.mxu0 %v21926_v19  ;;  %v1431_v51 = vsub.f32 %v22947_v52, %v24282_v57  ;;  %v1439_v2 = vsub.f32 %v22917_v38, %v24282_v57  ;;  %v9379_v63 = vsub.f32 %v22993_v22, %v24282_v57  ;;  %vm2992_vm14 = vcmp.eq.f32.partialorder %v16091_v62, %v22257_v21 }
 0x1e3   : > { %7485 = vmatprep.subr.bf16.mxu0 %v28314_v24  ;;  %vm3000_vm15 = vcmp.eq.f32.partialorder %v16099_v55, %v22257_v21  ;;  %vm10899_vm1 = vcmp.eq.f32.partialorder %v17508_v47, %v22257_v21  ;;  %vm10907_vm2 = vcmp.eq.f32.partialorder %v17516_v7, %v22257_v21  ;;  %v16090_v15 = vclamps-f32 %v1414_v39, 32.0  ;;  %v21930_v47 = vld [vmem:[#allocation2 + $0x138] sm:$0xff]  }
 0x1e4   : > { %15001 = vmatpush1.bf16.msra.mxu1 %v21926_v19  ;;  %v9387_v50 = vsub.f32 %v28458_v10, %v24282_v57  ;;  %v16098_v35 = vclamps-f32 %v1422_v28, 32.0  ;;  %v17507_v17 = vclamps-f32 %v9362_v25, 32.0  ;;  %v17515_v34 = vclamps-f32 %v9370_v45, 32.0  ;;  %vm19256_vm3 = vmpackc.low %vm3000_vm15, %vm2992_vm14 }
 0x1e5   : > { %15002 = vmatprep.subr.bf16.mxu1 %v28314_v24  ;;  %19251 = vmatmul.mubr.msk.bf16.gmra.mrb[8].mxu0 %vm19250_vm5, %v28312_v16  ;;  %v16107_v62 = vclamps-f32 %v1431_v51, 32.0  ;;  %v16115_v55 = vclamps-f32 %v1439_v2, 32.0  ;;  %v17524_v18 = vclamps-f32 %v9379_v63, 32.0  ;;  %v1430_v39 = vsub.f32 %v22947_v52, %v24347_v60  ;;  %vm20088_vm5 = vmpackc.low %vm10907_vm2, %vm10899_vm1  ;;  %v28459_v2 = vld [vmem:[#allocation26_spill] sm:$0xff] }
 0x1e6   : > { %19253 = vmatprep.mubr.msk.bf16.mxu0 %vm19252_vm8, %v28312_v16  ;;  %7486 = vmatpush1.bf16.msra.mxu0 %v21927_v12  ;;  %v1438_v42 = vsub.f32 %v22917_v38, %v24347_v60  ;;  %v9378_v49 = vsub.f32 %v22993_v22, %v24347_v60  ;;  %vm2991_vm6 = vcmp.eq.f32.partialorder %v16090_v15, %v22254_v20  ;;  %v17532_v28 = vclamps-f32 %v9387_v50, 32.0  ;;  %v28460_v50 = vld [vmem:[#allocation29_spill] sm:$0xff]  ;;  %v21931_v15 = vld [vmem:[#allocation2 + $0x140] sm:$0xff]  }
 0x1e7   : > { %20083 = vmatmul.mubr.msk.bf16.gmra.mrb[8].mxu1 %vm20082_vm7, %v28312_v16  ;;  %7487 = vmatprep.subr.bf16.mxu0 %v28314_v24  ;;  %v9386_v25 = vsub.f32 %v28458_v10, %v24347_v60  ;;  %vm2999_vm7 = vcmp.eq.f32.partialorder %v16098_v35, %v22254_v20  ;;  %vm10898_vm8 = vcmp.eq.f32.partialorder %v17507_v17, %v22254_v20  ;;  %v16106_v7 = vclamps-f32 %v1430_v39, 32.0  ;;  %v28461_v39 = vld [vmem:[#allocation28_spill] sm:$0xff] }
 0x1e8   : > { %20085 = vmatprep.mubr.msk.bf16.mxu1 %vm20084_vm10, %v28312_v16  ;;  %15003 = vmatpush1.bf16.msra.mxu1 %v21927_v12  ;;  %v21929_v12 = vld [vmem:[#allocation2 + $0x130] sm:$0xff]   ;;  %vm10906_vm9 = vcmp.eq.f32.partialorder %v17515_v34, %v22254_v20  ;;  %vm3008_vm10 = vcmp.eq.f32.partialorder %v16107_v62, %v22257_v21  ;;  %vm3016_vm11 = vcmp.eq.f32.partialorder %v16115_v55, %v22257_v21  ;;  %v16114_v45 = vclamps-f32 %v1438_v42, 32.0  ;;  %vm19258_vm13 = vmpackc.low %vm2999_vm7, %vm2991_vm6 }
 0x1e9   : > { %15004 = vmatprep.subr.bf16.mxu1 %v28314_v24  ;;  %vm10915_vm12 = vcmp.eq.f32.partialorder %v17524_v18, %v22257_v21  ;;  %v1447_v51 = vsub.f32 %v23031_v11, %v24282_v57  ;;  %v1455_v63 = vsub.f32 %v28459_v2, %v24282_v57  ;;  %vm10923_vm14 = vcmp.eq.f32.partialorder %v17532_v28, %v22257_v21  ;;  %vm20090_vm15 = vmpackc.low %vm10906_vm9, %vm10898_vm8 }
 0x1ea   : > { %7488 = vmatpush1.bf16.msra.mxu0 %v21928_v4  ;;  %v17531_v19 = vclamps-f32 %v9386_v25, 32.0  ;;  %v9403_v42 = vsub.f32 %v28461_v39, %v24282_v57  ;;  %vm3007_vm1 = vcmp.eq.f32.partialorder %v16106_v7, %v22254_v20  ;;  %vm20092_vm2 = vmpackc.low %vm10923_vm14, %vm10915_vm12  ;;  %v1446_v55 = vsub.f32 %v23031_v11, %v24347_v60  ;;  %v21932_v25 = vld [vmem:[#allocation2 + $0x148] sm:$0xff]  }
 0x1eb   : > { %7489 = vmatprep.subr.bf16.mxu0 %v28314_v24  ;;  %v16123_v35 = vclamps-f32 %v1447_v51, 32.0  ;;  %v16131_v17 = vclamps-f32 %v1455_v63, 32.0  ;;  %v1454_v18 = vsub.f32 %v28459_v2, %v24347_v60  ;;  %v9402_v28 = vsub.f32 %v28461_v39, %v24347_v60  ;;  %v28463_v63 = vld [vmem:[#allocation30_spill] sm:$0xff] }
 0x1ec   : > { %15005 = vmatpush1.bf16.msra.mxu1 %v21928_v4  ;;  %v17523_v4 = vclamps-f32 %v9378_v49, 32.0  ;;  %v17548_v62 = vclamps-f32 %v9403_v42, 32.0  ;;  %v9394_v49 = vsub.f32 %v28460_v50, %v24347_v60  ;;  %v28464_v42 = vld [vmem:[#allocation33_spill] sm:$0xff]  ;;  %v16122_v39 = vclamps-f32 %v1446_v55, 32.0 }
 0x1ed   : > { %15006 = vmatprep.subr.bf16.mxu1 %v28314_v24  ;;  %19255 = vmatmul.mubr.msk.bf16.gmra.mrb[12].mxu0 %vm24590_vm0, %v28312_v16  ;;  %vm19260_vm0 = vmpackc.low %vm3016_vm11, %vm3008_vm10  ;;  %v9411_v11 = vsub.f32 %v28464_v42, %v24282_v57  ;;  %vm3024_vm6 = vcmp.eq.f32.partialorder %v16123_v35, %v22257_v21  ;;  %vm3032_vm7 = vcmp.eq.f32.partialorder %v16131_v17, %v22257_v21  ;;  %v16130_v7 = vclamps-f32 %v1454_v18, 32.0  ;;  %v21933_v17 = vld [vmem:[#allocation2 + $0x150] sm:$0xff]  }
 0x1ee   : > { %19257 = vmatprep.mubr.msk.bf16.mxu0 %vm19256_vm3, %v28312_v16  ;;  %7490 = vmatpush1.bf16.msra.mxu0 %v21929_v12  ;;  %vm10914_vm3 = vcmp.eq.f32.partialorder %v17523_v4, %v22254_v20  ;;  %vm10939_vm10 = vcmp.eq.f32.partialorder %v17548_v62, %v22257_v21  ;;  %v17539_v35 = vclamps-f32 %v9394_v49, 32.0  ;;  %vm19264_vm12 = vmpackc.low %vm3032_vm7, %vm3024_vm6  ;;  %v9410_v4 = vsub.f32 %v28464_v42, %v24347_v60  ;;  %v28468_v49 = vld [vmem:[#allocation35_spill] sm:$0xff] }
 0x1ef   : > { %20087 = vmatmul.mubr.msk.bf16.gmra.mrb[12].mxu1 %vm20086_vm4, %v28312_v16  ;;  %7491 = vmatprep.subr.bf16.mxu0 %v28314_v24  ;;  %vm3015_vm4 = vcmp.eq.f32.partialorder %v16114_v45, %v22254_v20  ;;  %v17547_v45 = vclamps-f32 %v9402_v28, 32.0  ;;  %v17556_v38 = vclamps-f32 %v9411_v11, 32.0  ;;  %v1470_v11 = vsub.f32 %v28463_v63, %v24347_v60 }
 0x1f0   : > { %20089 = vmatprep.mubr.msk.bf16.mxu1 %vm20088_vm5, %v28312_v16  ;;  %15007 = vmatpush1.bf16.msra.mxu1 %v21929_v12  ;;  %v9395_v12 = vsub.f32 %v28460_v50, %v24282_v57  ;;  %vm10922_vm5 = vcmp.eq.f32.partialorder %v17531_v19, %v22254_v20  ;;  %vm24686_vm8 = vmpackc.low %vm3015_vm4, %vm3007_vm1  ;;  %v28467_v50 = vld [vmem:[#allocation32_spill] sm:$0xff]  ;;  %vm3023_vm14 = vcmp.eq.f32.partialorder %v16122_v39, %v22254_v20  ;;  %v17555_v62 = vclamps-f32 %v9410_v4, 32.0 }
 0x1f1   : > { %15008 = vmatprep.subr.bf16.mxu1 %v28314_v24  ;;  %v9419_v2 = vsub.f32 %v28467_v50, %v24282_v57  ;;  %vm20094_vm11 = vmpackc.low %vm10922_vm5, %vm10914_vm3  ;;  %v9418_v18 = vsub.f32 %v28467_v50, %v24347_v60  ;;  %vm10938_vm1 = vcmp.eq.f32.partialorder %v17547_v45, %v22254_v20  ;;  %vm10947_vm3 = vcmp.eq.f32.partialorder %v17556_v38, %v22257_v21 }
 0x1f2   : > { %7492 = vmatpush1.bf16.msra.mxu0 %v21930_v47  ;;  %v17540_v34 = vclamps-f32 %v9395_v12, 32.0  ;;  %v1471_v12 = vsub.f32 %v28463_v63, %v24282_v57  ;;  %v1479_v28 = vsub.f32 %v28468_v49, %v24282_v57  ;;  %v1478_v45 = vsub.f32 %v28468_v49, %v24347_v60 }
 0x1f3   : > { %7493 = vmatprep.subr.bf16.mxu0 %v28314_v24  ;;  %v17564_v19 = vclamps-f32 %v9419_v2, 32.0  ;;  %v16146_v2 = vclamps-f32 %v1470_v11, 32.0 }
 0x1f4   : > { %15009 = vmatpush1.bf16.msra.mxu1 %v21930_v47  ;;  %v28462_v47 = vld [vmem:[#allocation31_spill] sm:$0xff]  ;;  %vm10931_vm9 = vcmp.eq.f32.partialorder %v17540_v34, %v22257_v21  ;;  %v16147_v22 = vclamps-f32 %v1471_v12, 32.0  ;;  %v17563_v12 = vclamps-f32 %v9418_v18, 32.0  ;;  %v16155_v39 = vclamps-f32 %v1479_v28, 32.0 }
 0x1f5   : > { %15010 = vmatprep.subr.bf16.mxu1 %v28314_v24  ;;  %19259 = vmatmul.mubr.msk.bf16.gmra.mrb[16].mxu0 %vm19258_vm13, %v28312_v16  ;;  %v1463_v51 = vsub.f32 %v28462_v47, %v24282_v57  ;;  %v1462_v55 = vsub.f32 %v28462_v47, %v24347_v60  ;;  %vm20096_vm13 = vmpackc.low %vm10939_vm10, %vm10931_vm9  ;;  %vm10955_vm6 = vcmp.eq.f32.partialorder %v17564_v19, %v22257_v21  ;;  %v28472_v18 = vld [vmem:[#allocation39_spill] sm:$0xff] }
 0x1f6   : > { %19261 = vmatprep.mubr.msk.bf16.mxu0 %vm19260_vm0, %v28312_v16  ;;  %7494 = vmatpush1.bf16.msra.mxu0 %v21931_v15  ;;  %vm10930_vm0 = vcmp.eq.f32.partialorder %v17539_v35, %v22254_v20  ;;  %vm3048_vm4 = vcmp.eq.f32.partialorder %v16147_v22, %v22257_v21  ;;  %vm20100_vm10 = vmpackc.low %vm10955_vm6, %vm10947_vm3  ;;  %v21934_v35 = vld [vmem:[#allocation2 + $0x158] sm:$0xff]   ;;  %v1495_v28 = vsub.f32 %v28472_v18, %v24282_v57 }
 0x1f7   : > { %20091 = vmatmul.mubr.msk.bf16.gmra.mrb[16].mxu1 %vm20090_vm15, %v28312_v16  ;;  %7495 = vmatprep.subr.bf16.mxu0 %v28314_v24  ;;  %v16139_v10 = vclamps-f32 %v1463_v51, 32.0  ;;  %vm3031_vm15 = vcmp.eq.f32.partialorder %v16130_v7, %v22254_v20  ;;  %v16138_v34 = vclamps-f32 %v1462_v55, 32.0  ;;  %v28471_v55 = vld [vmem:[#allocation36_spill] sm:$0xff]  ;;  %vm20098_vm7 = vmpackc.low %vm10938_vm1, %vm10930_vm0  ;;  %v1494_v42 = vsub.f32 %v28472_v18, %v24347_v60 }
 0x1f8   : > { %20093 = vmatprep.mubr.msk.bf16.mxu1 %vm20092_vm2, %v28312_v16  ;;  %15011 = vmatpush1.bf16.msra.mxu1 %v21931_v15  ;;  %vm19266_vm5 = vmpackc.low %vm3031_vm15, %vm3023_vm14  ;;  %v28470_v15 = vld [vmem:[#allocation37_spill] sm:$0xff]  ;;  %v9435_v11 = vsub.f32 %v28471_v55, %v24282_v57  ;;  %v9434_v19 = vsub.f32 %v28471_v55, %v24347_v60  ;;  %vm3056_vm14 = vcmp.eq.f32.partialorder %v16155_v39, %v22257_v21  ;;  %v16154_v39 = vclamps-f32 %v1478_v45, 32.0 }
 0x1f9   : > { %15012 = vmatprep.subr.bf16.mxu1 %v28314_v24  ;;  %vm3040_vm2 = vcmp.eq.f32.partialorder %v16139_v10, %v22257_v21  ;;  %vm3039_vm9 = vcmp.eq.f32.partialorder %v16138_v34, %v22254_v20  ;;  %v9426_v4 = vsub.f32 %v28470_v15, %v24347_v60  ;;  %v16171_v34 = vclamps-f32 %v1495_v28, 32.0 }
 0x1fa   : > { %7496 = vmatpush1.bf16.msra.mxu0 %v21932_v25  ;;  %v17580_v10 = vclamps-f32 %v9435_v11, 32.0  ;;  %v28474_v11 = vld [vmem:[#allocation41_spill] sm:$0xff]  ;;  %vm3055_vm6 = vcmp.eq.f32.partialorder %v16154_v39, %v22254_v20  ;;  %v9467_v28 = vsub.f32 %v23367_v58, %v24282_v57  ;;  %v21935_v39 = vld [vmem:[#allocation2 + $0x160] sm:$0xff]  }
 0x1fb   : > { %7497 = vmatprep.subr.bf16.mxu0 %v28314_v24  ;;  %v9443_v49 = vsub.f32 %v28474_v11, %v24282_v57 }
 0x1fc   : > { %15013 = vmatpush1.bf16.msra.mxu1 %v21932_v25  ;;  %v28469_v25 = vld [vmem:[#allocation34_spill] sm:$0xff] }
 0x1fd   : > { %15014 = vmatprep.subr.bf16.mxu1 %v28314_v24  ;;  %19263 = vmatmul.mubr.msk.bf16.gmra.mrb[20].mxu0 %vm24686_vm8, %v28312_v16  ;;  %v1487_v51 = vsub.f32 %v28469_v25, %v24282_v57  ;;  %vm19268_vm8 = vmpackc.low %vm3048_vm4, %vm3040_vm2  ;;  %v1486_v38 = vsub.f32 %v28469_v25, %v24347_v60  ;;  %vm10971_vm2 = vcmp.eq.f32.partialorder %v17580_v10, %v22257_v21  ;;  %v17579_v25 = vclamps-f32 %v9434_v19, 32.0 }
 0x1fe   : > { %19265 = vmatprep.mubr.msk.bf16.mxu0 %vm19264_vm12, %v28312_v16  ;;  %7498 = vmatpush1.bf16.msra.mxu0 %v21933_v17  ;;  %vm10946_vm12 = vcmp.eq.f32.partialorder %v17555_v62, %v22254_v20  ;;  %v17588_v50 = vclamps-f32 %v9443_v49, 32.0 }
 0x1ff   : > { %20095 = vmatmul.mubr.msk.bf16.gmra.mrb[20].mxu1 %vm20094_vm11, %v28312_v16  ;;  %7499 = vmatprep.subr.bf16.mxu0 %v28314_v24  ;;  %vm3047_vm11 = vcmp.eq.f32.partialorder %v16146_v2, %v22254_v20  ;;  %v16163_v7 = vclamps-f32 %v1487_v51, 32.0  ;;  %v28473_v51 = vld [vmem:[#allocation38_spill] sm:$0xff] }
 0x200   : > { %20097 = vmatprep.mubr.msk.bf16.mxu1 %vm20096_vm13, %v28312_v16  ;;  %15015 = vmatpush1.bf16.msra.mxu1 %v21933_v17  ;;  %v9427_v17 = vsub.f32 %v28470_v15, %v24282_v57  ;;  %vm10954_vm13 = vcmp.eq.f32.partialorder %v17563_v12, %v22254_v20  ;;  %vm19270_vm0 = vmpackc.low %vm3047_vm11, %vm3039_vm9  ;;  %v16162_v15 = vclamps-f32 %v1486_v38, 32.0  ;;  %v1502_v62 = vsub.f32 %v28473_v51, %v24347_v60 }
 0x201   : > { %15016 = vmatprep.subr.bf16.mxu1 %v28314_v24  ;;  %vm3064_vm15 = vcmp.eq.f32.partialorder %v16163_v7, %v22257_v21  ;;  %vm20102_vm4 = vmpackc.low %vm10954_vm13, %vm10946_vm12  ;;  %v17571_v7 = vclamps-f32 %v9426_v4, 32.0  ;;  %v9442_v12 = vsub.f32 %v28474_v11, %v24347_v60  ;;  %vm10970_vm9 = vcmp.eq.f32.partialorder %v17579_v25, %v22254_v20  ;;  %v28476_v4 = vld [vmem:[#allocation42_spill] sm:$0xff] }
 0x202   : > { %v17572_v22 = vclamps-f32 %v9427_v17, 32.0  ;;  %7500 = vmatpush1.bf16.msra.mxu0 %v21934_v35  ;;  %v1503_v17 = vsub.f32 %v28473_v51, %v24282_v57  ;;  %vm19272_vm3 = vmpackc.low %vm3064_vm15, %vm3056_vm14  ;;  %vm10979_vm12 = vcmp.eq.f32.partialorder %v17588_v50, %v22257_v21  ;;  %v16178_v45 = vclamps-f32 %v1502_v62, 32.0 }
 0x203   : > { %7501 = vmatprep.subr.bf16.mxu0 %v28314_v24  ;;  %v1511_v38 = vsub.f32 %v23365_v3, %v24282_v57  ;;  %v1519_v19 = vsub.f32 %v28476_v4, %v24282_v57  ;;  %v9459_v25 = vsub.f32 %v23409_v32, %v24282_v57  ;;  %v1518_v50 = vsub.f32 %v28476_v4, %v24347_v60 }
 0x204   : > { %15017 = vmatpush1.bf16.msra.mxu1 %v21934_v35  ;;  %vm10963_vm1 = vcmp.eq.f32.partialorder %v17572_v22, %v22257_v21  ;;  %v28475_v35 = vld [vmem:[#allocation40_spill] sm:$0xff]  ;;  %v16179_v2 = vclamps-f32 %v1503_v17, 32.0  ;;  %v16170_v22 = vclamps-f32 %v1494_v42, 32.0  ;;  %v9458_v62 = vsub.f32 %v23409_v32, %v24347_v60 }
 0x205   : > { %19267 = vmatmul.mubr.msk.bf16.gmra.mrb[24].mxu0 %vm19266_vm5, %v28312_v16  ;;  %15018 = vmatprep.subr.bf16.mxu1 %v28314_v24  ;;  %v9451_v55 = vsub.f32 %v28475_v35, %v24282_v57  ;;  %vm20104_vm5 = vmpackc.low %vm10971_vm2, %vm10963_vm1  ;;  %v9450_v10 = vsub.f32 %v28475_v35, %v24347_v60  ;;  %v16187_v42 = vclamps-f32 %v1511_v38, 32.0  ;;  %v16195_v17 = vclamps-f32 %v1519_v19, 32.0 }
 0x206   : > { %19269 = vmatprep.mubr.msk.bf16.mxu0 %vm19268_vm8, %v28312_v16  ;;  %vm10962_vm8 = vcmp.eq.f32.partialorder %v17571_v7, %v22254_v20  ;;  %vm3080_vm11 = vcmp.eq.f32.partialorder %v16179_v2, %v22257_v21  ;;  %vm3071_vm1 = vcmp.eq.f32.partialorder %v16170_v22, %v22254_v20  ;;  %v17604_v7 = vclamps-f32 %v9459_v25, 32.0  ;;  %7502 = vmatpush1.bf16.msra.mxu0 %v21935_v39  ;;  %v28478_v25 = vld [vmem:[#allocation46_spill] sm:$0xff] }
 0x207   : > { %20099 = vmatmul.mubr.msk.bf16.gmra.mrb[24].mxu1 %vm20098_vm7, %v28312_v16  ;;  %v17596_v49 = vclamps-f32 %v9451_v55, 32.0  ;;  %vm3063_vm7 = vcmp.eq.f32.partialorder %v16162_v15, %v22254_v20  ;;  %v17587_v55 = vclamps-f32 %v9442_v12, 32.0  ;;  %v17595_v15 = vclamps-f32 %v9450_v10, 32.0  ;;  %vm20106_vm15 = vmpackc.low %vm10970_vm9, %vm10962_vm8  ;;  %v28477_v10 = vld [vmem:[#allocation45_spill] sm:$0xff]  ;;  %7503 = vmatprep.subr.bf16.mxu0 %v28314_v24 }
 0x208   : > { %20101 = vmatprep.mubr.msk.bf16.mxu1 %vm20100_vm10, %v28312_v16  ;;  %vm3072_vm10 = vcmp.eq.f32.partialorder %v16171_v34, %v22257_v21  ;;  %vm19274_vm13 = vmpackc.low %vm3063_vm7, %vm3055_vm6  ;;  %v17612_v34 = vclamps-f32 %v9467_v28, 32.0  ;;  %v1510_v2 = vsub.f32 %v23365_v3, %v24347_v60  ;;  %v9466_v12 = vsub.f32 %v23367_v58, %v24347_v60  ;;  %15019 = vmatpush1.bf16.msra.mxu1 %v21935_v39 }
 0x209   : > { %vm10987_vm14 = vcmp.eq.f32.partialorder %v17596_v49, %v22257_v21  ;;  %v1527_v49 = vsub.f32 %v23445_v8, %v24282_v57  ;;  %v1535_v38 = vsub.f32 %v28477_v10, %v24282_v57  ;;  %v9475_v19 = vsub.f32 %v23485_v46, %v24282_v57  ;;  %15020 = vmatprep.subr.bf16.mxu1 %v28314_v24 }
 0x20a   : > { %vm20108_vm2 = vmpackc.low %vm10987_vm14, %vm10979_vm12  ;;  %vm3088_vm6 = vcmp.eq.f32.partialorder %v16187_v42, %v22257_v21  ;;  %vm3096_vm7 = vcmp.eq.f32.partialorder %v16195_v17, %v22257_v21  ;;  %vm10995_vm9 = vcmp.eq.f32.partialorder %v17604_v7, %v22257_v21  ;;  %v9483_v28 = vsub.f32 %v28478_v25, %v24282_v57 }
 0x20b   : > { %v16186_v42 = vclamps-f32 %v1510_v2, 32.0  ;;  %v16194_v39 = vclamps-f32 %v1518_v50, 32.0  ;;  %v17603_v17 = vclamps-f32 %v9458_v62, 32.0  ;;  %v17611_v58 = vclamps-f32 %v9466_v12, 32.0  ;;  %vm19280_vm12 = vmpackc.low %vm3096_vm7, %vm3088_vm6  ;;  %v24882_v62 = vld [vmem:[%s22461_s25 + $0x18] sm:$0xff] }
 0x20c   : > { %v16203_v22 = vclamps-f32 %v1527_v49, 32.0  ;;  %v17620_v32 = vclamps-f32 %v9475_v19, 32.0  ;;  %v1526_v4 = vsub.f32 %v23445_v8, %v24347_v60  ;;  %v1534_v57 = vsub.f32 %v28477_v10, %v24347_v60  ;;  %v28479_v49 = vld [vmem:[#allocation47_spill] sm:$0xff] }
 0x20d   : > { %19271 = vmatmul.mubr.msk.bf16.gmra.mrb[28].mxu0 %vm19270_vm0, %v28312_v16  ;;  %vm19276_vm0 = vmpackc.low %vm3080_vm11, %vm3072_vm10  ;;  %vm11003_vm10 = vcmp.eq.f32.partialorder %v17612_v34, %v22257_v21  ;;  %v9482_v34 = vsub.f32 %v28478_v25, %v24347_v60  ;;  %vm3087_vm14 = vcmp.eq.f32.partialorder %v16186_v42, %v22254_v20  ;;  %v1543_v12 = vsub.f32 %v23519_v1, %v24882_v62 }
 0x20e   : > { %19273 = vmatprep.mubr.msk.bf16.mxu0 %vm19272_vm3, %v28312_v16  ;;  %vm10978_vm3 = vcmp.eq.f32.partialorder %v17587_v55, %v22254_v20  ;;  %v9474_v55 = vsub.f32 %v23485_v46, %v24347_v60  ;;  %v16202_v7 = vclamps-f32 %v1526_v4, 32.0  ;;  %v16210_v2 = vclamps-f32 %v1534_v57, 32.0 }
 0x20f   : > { %20103 = vmatmul.mubr.msk.bf16.gmra.mrb[28].mxu1 %vm20102_vm4, %v28312_v16  ;;  %vm3079_vm4 = vcmp.eq.f32.partialorder %v16178_v45, %v22254_v20  ;;  %v16211_v45 = vclamps-f32 %v1535_v38, 32.0  ;;  %v1551_v38 = vsub.f32 %v28479_v49, %v24882_v62  ;;  %v17627_v19 = vclamps-f32 %v9482_v34, 32.0 }
 0x210   : > { %20105 = vmatprep.mubr.msk.bf16.mxu1 %vm20104_vm5, %v28312_v16  ;;  %vm10986_vm5 = vcmp.eq.f32.partialorder %v17595_v15, %v22254_v20  ;;  %vm19278_vm8 = vmpackc.low %vm3079_vm4, %vm3071_vm1  ;;  %v17628_v15 = vclamps-f32 %v9483_v28, 32.0  ;;  %vm11002_vm1 = vcmp.eq.f32.partialorder %v17611_v58, %v22254_v20  ;;  %v17619_v50 = vclamps-f32 %v9474_v55, 32.0  ;;  %v28480_v28 = vld [vmem:[#allocation49_spill] sm:$0xff] }
 0x211   : > { %vm20110_vm11 = vmpackc.low %vm10986_vm5, %vm10978_vm3  ;;  %vm3112_vm4 = vcmp.eq.f32.partialorder %v16211_v45, %v22257_v21  ;;  %vm11011_vm3 = vcmp.eq.f32.partialorder %v17620_v32, %v22257_v21  ;;  %v9491_v42 = vsub.f32 %v28480_v28, %v24882_v62  ;;  %v16227_v45 = vclamps-f32 %v1551_v38, 32.0  ;;  %v21936_v58 = vld [vmem:[#allocation2 + $0x168] sm:$0xff]   ;;  %v28482_v38 = vld [vmem:[#allocation50_spill] sm:$0xff] }
 0x212   : > { %vm11019_vm6 = vcmp.eq.f32.partialorder %v17628_v15, %v22257_v21  ;;  %v1542_v55 = vsub.f32 %v23519_v1, %v24347_v60  ;;  %v1550_v32 = vsub.f32 %v28479_v49, %v24347_v60  ;;  %v9490_v15 = vsub.f32 %v28480_v28, %v24347_v60  ;;  %7504 = vmatpush1.bf16.msra.mxu0 %v21936_v58 }
 0x213   : > { %15021 = vmatpush1.bf16.msra.mxu1 %v21936_v58  ;;  %7505 = vmatprep.subr.bf16.mxu0 %v28314_v24 }
 0x214   : > { %15022 = vmatprep.subr.bf16.mxu1 %v28314_v24 }
 0x215   : > { %19275 = vmatmul.mubr.msk.bf16.gmra.mrb[32].mxu0 %vm19274_vm13, %v28312_v16  ;;  %vm20112_vm13 = vmpackc.low %vm11003_vm10, %vm10995_vm9  ;;  %vm3103_vm9 = vcmp.eq.f32.partialorder %v16202_v7, %v22254_v20 }
 0x216   : > { %19277 = vmatprep.mubr.msk.bf16.mxu0 %vm19276_vm0, %v28312_v16  ;;  %vm10994_vm0 = vcmp.eq.f32.partialorder %v17603_v17, %v22254_v20  ;;  %vm20116_vm10 = vmpackc.low %vm11019_vm6, %vm11011_vm3  ;;  %v16219_v17 = vclamps-f32 %v1543_v12, 32.0  ;;  %v1559_v12 = vsub.f32 %v23594_v9, %v24882_v62 }
 0x217   : > { %20107 = vmatmul.mubr.msk.bf16.gmra.mrb[32].mxu1 %vm20106_vm15, %v28312_v16  ;;  %vm3095_vm15 = vcmp.eq.f32.partialorder %v16194_v39, %v22254_v20  ;;  %v28481_v39 = vld [vmem:[#allocation48_spill] sm:$0xff]  ;;  %vm20114_vm7 = vmpackc.low %vm11002_vm1, %vm10994_vm0 }
 0x218   : > { %20109 = vmatprep.mubr.msk.bf16.mxu1 %vm20108_vm2, %v28312_v16  ;;  %vm3104_vm2 = vcmp.eq.f32.partialorder %v16203_v22, %v22257_v21  ;;  %vm19282_vm5 = vmpackc.low %vm3095_vm15, %vm3087_vm14  ;;  %v9499_v4 = vsub.f32 %v28481_v39, %v24882_v62  ;;  %v17636_v22 = vclamps-f32 %v9491_v42, 32.0  ;;  %v9498_v34 = vsub.f32 %v28481_v39, %v24347_v60  ;;  %v28483_v60 = vld [vmem:[#allocation51_spill] sm:$0xff] }
 0x219   : > { %v1567_v42 = vsub.f32 %v28482_v38, %v24882_v62  ;;  %vm3120_vm14 = vcmp.eq.f32.partialorder %v16219_v17, %v22257_v21  ;;  %vm3128_vm15 = vcmp.eq.f32.partialorder %v16227_v45, %v22257_v21  ;;  %v9515_v58 = vsub.f32 %v28483_v60, %v24882_v62 }
 0x21a   : > { %v17644_v57 = vclamps-f32 %v9499_v4, 32.0  ;;  %v9507_v4 = vsub.f32 %v23639_v14, %v24882_v62  ;;  %vm11027_vm1 = vcmp.eq.f32.partialorder %v17636_v22, %v22257_v21  ;;  %v16218_v17 = vclamps-f32 %v1542_v55, 32.0  ;;  %vm19288_vm3 = vmpackc.low %vm3128_vm15, %vm3120_vm14  ;;  %v24942_v22 = vld [vmem:[%s22461_s25 + $0x10] sm:$0xff] }
 0x21b   : > { %v16226_v45 = vclamps-f32 %v1550_v32, 32.0  ;;  %v17635_v39 = vclamps-f32 %v9490_v15, 32.0  ;;  %v17643_v7 = vclamps-f32 %v9498_v34, 32.0  ;;  %v16243_v28 = vclamps-f32 %v1567_v42, 32.0  ;;  %v28484_v42 = vld [vmem:[#allocation52_spill] sm:$0xff] }
 0x21c   : > { %v17652_v49 = vclamps-f32 %v9507_v4, 32.0  ;;  %v9506_v55 = vsub.f32 %v23639_v14, %v24942_v22  ;;  %vm3119_vm6 = vcmp.eq.f32.partialorder %v16218_v17, %v22254_v20  ;;  %v9514_v32 = vsub.f32 %v28483_v60, %v24942_v22 }
 0x21d   : > { %19279 = vmatmul.mubr.msk.bf16.gmra.mrb[36].mxu0 %vm19278_vm8, %v28312_v16  ;;  %vm19284_vm8 = vmpackc.low %vm3112_vm4, %vm3104_vm2  ;;  %vm11035_vm2 = vcmp.eq.f32.partialorder %v17644_v57, %v22257_v21  ;;  %v17660_v57 = vclamps-f32 %v9515_v58, 32.0  ;;  %v1583_v4 = vsub.f32 %v28484_v42, %v24882_v62  ;;  %v9523_v17 = vsub.f32 %v23706_v6, %v24882_v62 }
 0x21e   : > { %19281 = vmatprep.mubr.msk.bf16.mxu0 %vm19280_vm12, %v28312_v16  ;;  %vm11010_vm12 = vcmp.eq.f32.partialorder %v17619_v50, %v22254_v20  ;;  %v1558_v50 = vsub.f32 %v23594_v9, %v24942_v22  ;;  %v17651_v58 = vclamps-f32 %v9506_v55, 32.0  ;;  %v9522_v55 = vsub.f32 %v23706_v6, %v24942_v22 }
 0x21f   : > { %20111 = vmatmul.mubr.msk.bf16.gmra.mrb[36].mxu1 %vm20110_vm11, %v28312_v16  ;;  %vm3111_vm11 = vcmp.eq.f32.partialorder %v16210_v2, %v22254_v20  ;;  %v16235_v2 = vclamps-f32 %v1559_v12, 32.0  ;;  %v1575_v12 = vsub.f32 %v23670_v59, %v24882_v62  ;;  %vm11051_vm14 = vcmp.eq.f32.partialorder %v17660_v57, %v22257_v21 }
 0x220   : > { %20113 = vmatprep.mubr.msk.bf16.mxu1 %vm20112_vm13, %v28312_v16  ;;  %vm11018_vm13 = vcmp.eq.f32.partialorder %v17627_v19, %v22254_v20  ;;  %vm19286_vm0 = vmpackc.low %vm3111_vm11, %vm3103_vm9  ;;  %v1566_v19 = vsub.f32 %v28482_v38, %v24942_v22  ;;  %vm11034_vm9 = vcmp.eq.f32.partialorder %v17643_v7, %v22254_v20  ;;  %vm3144_vm11 = vcmp.eq.f32.partialorder %v16243_v28, %v22257_v21 }
 0x221   : > { %vm20118_vm4 = vmpackc.low %vm11018_vm13, %vm11010_vm12  ;;  %vm11043_vm12 = vcmp.eq.f32.partialorder %v17652_v49, %v22257_v21  ;;  %v16234_v15 = vclamps-f32 %v1558_v50, 32.0  ;;  %v9531_v28 = vsub.f32 %v23672_v26, %v24882_v62  ;;  %v16251_v7 = vclamps-f32 %v1575_v12, 32.0  ;;  %v21937_v50 = vld [vmem:[#allocation2 + $0x170] sm:$0xff]  }
 0x222   : > { %v16242_v34 = vclamps-f32 %v1566_v19, 32.0  ;;  %v1574_v49 = vsub.f32 %v23670_v59, %v24942_v22  ;;  %v1582_v57 = vsub.f32 %v28484_v42, %v24942_v22  ;;  %7506 = vmatpush1.bf16.msra.mxu0 %v21937_v50  ;;  %15023 = vmatpush1.bf16.msra.mxu1 %v21937_v50  ;;  %v1591_v12 = vsub.f32 %v23733_v33, %v24882_v62 }
 0x223   : > { %v17676_v19 = vclamps-f32 %v9531_v28, 32.0  ;;  %7507 = vmatprep.subr.bf16.mxu0 %v28314_v24  ;;  %15024 = vmatprep.subr.bf16.mxu1 %v28314_v24  ;;  %v28486_v28 = vld [vmem:[#allocation59_spill] sm:$0xff] }
 0x224   : > { %v9539_v50 = vsub.f32 %v28486_v28, %v24882_v62  ;;  %v16267_v42 = vclamps-f32 %v1591_v12, 32.0 }
 0x225   : > { %19283 = vmatmul.mubr.msk.bf16.gmra.mrb[40].mxu0 %vm19282_vm5, %v28312_v16  ;;  %vm20120_vm5 = vmpackc.low %vm11035_vm2, %vm11027_vm1  ;;  %vm3135_vm2 = vcmp.eq.f32.partialorder %v16234_v15, %v22254_v20  ;;  %v16258_v15 = vclamps-f32 %v1582_v57, 32.0  ;;  %v9538_v57 = vsub.f32 %v28486_v28, %v24942_v22 }
 0x226   : > { %19285 = vmatprep.mubr.msk.bf16.mxu0 %vm19284_vm8, %v28312_v16  ;;  %vm11026_vm8 = vcmp.eq.f32.partialorder %v17635_v39, %v22254_v20  ;;  %vm20124_vm1 = vmpackc.low %vm11051_vm14, %vm11043_vm12  ;;  %v17668_v39 = vclamps-f32 %v9523_v17, 32.0 }
 0x227   : > { %20115 = vmatmul.mubr.msk.bf16.gmra.mrb[40].mxu1 %vm20114_vm7, %v28312_v16  ;;  %vm3127_vm7 = vcmp.eq.f32.partialorder %v16226_v45, %v22254_v20  ;;  %vm20122_vm15 = vmpackc.low %vm11034_vm9, %vm11026_vm8  ;;  %v17659_v45 = vclamps-f32 %v9514_v32, 32.0  ;;  %v9530_v32 = vsub.f32 %v23672_v26, %v24942_v22  ;;  %v28487_v26 = vld [vmem:[#allocation58_spill] sm:$0xff] }
 0x228   : > { %20117 = vmatprep.mubr.msk.bf16.mxu1 %vm20116_vm10, %v28312_v16  ;;  %vm3136_vm10 = vcmp.eq.f32.partialorder %v16235_v2, %v22257_v21  ;;  %vm19290_vm13 = vmpackc.low %vm3127_vm7, %vm3119_vm6  ;;  %v16259_v2 = vclamps-f32 %v1583_v4, 32.0  ;;  %vm3152_vm6 = vcmp.eq.f32.partialorder %v16251_v7, %v22257_v21  ;;  %v28485_v4 = vld [vmem:[#allocation56_spill] sm:$0xff]  ;;  %vm11059_vm9 = vcmp.eq.f32.partialorder %v17668_v39, %v22257_v21 }
 0x229   : > { %v1599_v17 = vsub.f32 %v28485_v4, %v24882_v62  ;;  %v9547_v7 = vsub.f32 %v28487_v26, %v24882_v62  ;;  %v17675_v6 = vclamps-f32 %v9530_v32, 32.0  ;;  %v28488_v32 = vld [vmem:[#allocation61_spill] sm:$0xff] }
 0x22a   : > { %vm3160_vm7 = vcmp.eq.f32.partialorder %v16259_v2, %v22257_v21  ;;  %v16250_v2 = vclamps-f32 %v1574_v49, 32.0  ;;  %v1607_v12 = vsub.f32 %v28488_v32, %v24882_v62 }
 0x22b   : > { %vm19296_vm12 = vmpackc.low %vm3160_vm7, %vm3152_vm6  ;;  %v16275_v39 = vclamps-f32 %v1599_v17, 32.0  ;;  %v17692_v49 = vclamps-f32 %v9547_v7, 32.0  ;;  %v28489_v7 = vld [vmem:[#allocation60_spill] sm:$0xff] }
 0x22c   : > { %vm3151_vm14 = vcmp.eq.f32.partialorder %v16250_v2, %v22254_v20  ;;  %v1615_v2 = vsub.f32 %v28489_v7, %v24882_v62 }
 0x22d   : > { %19287 = vmatmul.mubr.msk.bf16.gmra.mrb[44].mxu0 %vm19286_vm0, %v28312_v16  ;;  %vm19292_vm0 = vmpackc.low %vm3144_vm11, %vm3136_vm10  ;;  %vm11067_vm10 = vcmp.eq.f32.partialorder %v17676_v19, %v22257_v21  ;;  %v1590_v19 = vsub.f32 %v23733_v33, %v24942_v22  ;;  %vm11083_vm6 = vcmp.eq.f32.partialorder %v17692_v49, %v22257_v21 }
 0x22e   : > { %19289 = vmatprep.mubr.msk.bf16.mxu0 %vm19288_vm3, %v28312_v16  ;;  %vm11042_vm3 = vcmp.eq.f32.partialorder %v17651_v58, %v22254_v20  ;;  %v1598_v58 = vsub.f32 %v28485_v4, %v24942_v22 }
 0x22f   : > { %20119 = vmatmul.mubr.msk.bf16.gmra.mrb[44].mxu1 %vm20118_vm4, %v28312_v16  ;;  %vm3143_vm4 = vcmp.eq.f32.partialorder %v16242_v34, %v22254_v20  ;;  %v17667_v34 = vclamps-f32 %v9522_v55, 32.0  ;;  %v9546_v55 = vsub.f32 %v28487_v26, %v24942_v22  ;;  %v16266_v17 = vclamps-f32 %v1590_v19, 32.0 }
 0x230   : > { %20121 = vmatprep.mubr.msk.bf16.mxu1 %vm20120_vm5, %v28312_v16  ;;  %vm11050_vm5 = vcmp.eq.f32.partialorder %v17659_v45, %v22254_v20  ;;  %vm19294_vm8 = vmpackc.low %vm3143_vm4, %vm3135_vm2  ;;  %v17684_v45 = vclamps-f32 %v9539_v50, 32.0  ;;  %vm3168_vm2 = vcmp.eq.f32.partialorder %v16267_v42, %v22257_v21  ;;  %vm3176_vm4 = vcmp.eq.f32.partialorder %v16275_v39, %v22257_v21  ;;  %v28491_v42 = vld [vmem:[#allocation62_spill] sm:$0xff] }
 0x231   : > { %vm20126_vm11 = vmpackc.low %vm11050_vm5, %vm11042_vm3  ;;  %v16274_v50 = vclamps-f32 %v1598_v58, 32.0  ;;  %v17683_v26 = vclamps-f32 %v9538_v57, 32.0  ;;  %v17691_v28 = vclamps-f32 %v9546_v55, 32.0  ;;  %v16283_v39 = vclamps-f32 %v1607_v12, 32.0 }
 0x232   : > { %vm11075_vm5 = vcmp.eq.f32.partialorder %v17684_v45, %v22257_v21  ;;  %v16291_v19 = vclamps-f32 %v1615_v2, 32.0  ;;  %v1606_v58 = vsub.f32 %v28488_v32, %v24942_v22  ;;  %v21938_v45 = vld [vmem:[#allocation2 + $0x178] sm:$0xff]   ;;  %v1614_v55 = vsub.f32 %v28489_v7, %v24942_v22 }
 0x233   : > { %7508 = vmatpush1.bf16.msra.mxu0 %v21938_v45  ;;  %15025 = vmatpush1.bf16.msra.mxu1 %v21938_v45  ;;  %v9562_v2 = vsub.f32 %v28491_v42, %v24942_v22  ;;  %v28493_v45 = vld [vmem:[#allocation64_spill] sm:$0xff] }
 0x234   : > { %7766 = vmatprep.subr.bf16.mxu0 %v28314_v24  ;;  %15283 = vmatprep.subr.bf16.mxu1 %v28314_v24  ;;  %v1631_v32 = vsub.f32 %v28493_v45, %v24882_v62  ;;  %v16290_v4 = vclamps-f32 %v1614_v55, 32.0  ;;  %v1630_v55 = vsub.f32 %v28493_v45, %v24942_v22 }
 0x235   : > { %19291 = vmatmul.mubr.msk.bf16.gmra.mrb[48].mxu0 %vm19290_vm13, %v28312_v16  ;;  %vm20128_vm13 = vmpackc.low %vm11067_vm10, %vm11059_vm9  ;;  %vm3167_vm10 = vcmp.eq.f32.partialorder %v16266_v17, %v22254_v20 }
 0x236   : > { %19293 = vmatprep.mubr.msk.bf16.mxu0 %vm19292_vm0, %v28312_v16  ;;  %vm11058_vm0 = vcmp.eq.f32.partialorder %v17667_v34, %v22254_v20  ;;  %v9563_v34 = vsub.f32 %v28491_v42, %v24882_v62  ;;  %vm20132_vm9 = vmpackc.low %vm11083_vm6, %vm11075_vm5  ;;  %v28494_v42 = vld [vmem:[#allocation67_spill] sm:$0xff] }
 0x237   : > { %20123 = vmatmul.mubr.msk.bf16.gmra.mrb[48].mxu1 %vm20122_vm15, %v28312_v16  ;;  %vm3159_vm15 = vcmp.eq.f32.partialorder %v16258_v15, %v22254_v20  ;;  %v28490_v15 = vld [vmem:[#allocation63_spill] sm:$0xff] }
 0x238   : > { %20125 = vmatprep.mubr.msk.bf16.mxu1 %vm20124_vm1, %v28312_v16  ;;  %vm11066_vm1 = vcmp.eq.f32.partialorder %v17675_v6, %v22254_v20  ;;  %vm19298_vm3 = vmpackc.low %vm3159_vm15, %vm3151_vm14  ;;  %v9555_v6 = vsub.f32 %v28490_v15, %v24882_v62  ;;  %v17708_v57 = vclamps-f32 %v9563_v34, 32.0  ;;  %vm3184_vm14 = vcmp.eq.f32.partialorder %v16283_v39, %v22257_v21  ;;  %v28492_v34 = vld [vmem:[#allocation65_spill] sm:$0xff] }
 0x239   : > { %vm20130_vm7 = vmpackc.low %vm11066_vm1, %vm11058_vm0  ;;  %v9554_v12 = vsub.f32 %v28490_v15, %v24942_v22  ;;  %vm3192_vm15 = vcmp.eq.f32.partialorder %v16291_v19, %v22257_v21  ;;  %v1623_v7 = vsub.f32 %v28492_v34, %v24882_v62  ;;  %v9571_v15 = vsub.f32 %v28494_v42, %v24882_v62  ;;  %v28495_v19 = vld [vmem:[#allocation66_spill] sm:$0xff] }
 0x23a   : > { %v17700_v49 = vclamps-f32 %v9555_v6, 32.0  ;;  %v16282_v6 = vclamps-f32 %v1606_v58, 32.0  ;;  %v9579_v58 = vsub.f32 %v28495_v19, %v24882_v62  ;;  %v1622_v39 = vsub.f32 %v28492_v34, %v24942_v22 }
 0x23b   : > { %v17699_v17 = vclamps-f32 %v9554_v12, 32.0 }
 0x23c   : > { %vm11091_vm1 = vcmp.eq.f32.partialorder %v17700_v49, %v22257_v21  ;;  %v16299_v49 = vclamps-f32 %v1623_v7, 32.0  ;;  %vm3183_vm6 = vcmp.eq.f32.partialorder %v16282_v6, %v22254_v20  ;;  %v9570_v7 = vsub.f32 %v28494_v42, %v24942_v22  ;;  %v28498_v6 = vld [vmem:[#allocation71_spill] sm:$0xff] }
 0x23d   : > { %19295 = vmatmul.mubr.msk.bf16.gmra.mrb[52].mxu0 %vm19294_vm8, %v28312_v16  ;;  %vm19300_vm8 = vmpackc.low %vm3176_vm4, %vm3168_vm2  ;;  %vm11099_vm2 = vcmp.eq.f32.partialorder %v17708_v57, %v22257_v21  ;;  %v16307_v57 = vclamps-f32 %v1631_v32, 32.0  ;;  %v9578_v32 = vsub.f32 %v28495_v19, %v24942_v22  ;;  %v16298_v19 = vclamps-f32 %v1622_v39, 32.0 }
 0x23e   : > { %19297 = vmatprep.mubr.msk.bf16.mxu0 %vm19296_vm12, %v28312_v16  ;;  %vm11074_vm12 = vcmp.eq.f32.partialorder %v17683_v26, %v22254_v20  ;;  %vm20136_vm5 = vmpackc.low %vm11099_vm2, %vm11091_vm1  ;;  %v17716_v26 = vclamps-f32 %v9571_v15, 32.0  ;;  %v28496_v15 = vld [vmem:[#allocation69_spill] sm:$0xff]  ;;  %v16306_v42 = vclamps-f32 %v1630_v55, 32.0 }
 0x23f   : > { %20127 = vmatmul.mubr.msk.bf16.gmra.mrb[52].mxu1 %vm20126_vm11, %v28312_v16  ;;  %vm3175_vm11 = vcmp.eq.f32.partialorder %v16274_v50, %v22254_v20  ;;  %v17707_v50 = vclamps-f32 %v9562_v2, 32.0  ;;  %v1639_v12 = vsub.f32 %v28496_v15, %v24882_v62  ;;  %vm3199_vm2 = vcmp.eq.f32.partialorder %v16298_v19, %v22254_v20 }
 0x240   : > { %20129 = vmatprep.mubr.msk.bf16.mxu1 %vm20128_vm13, %v28312_v16  ;;  %vm11082_vm13 = vcmp.eq.f32.partialorder %v17691_v28, %v22254_v20  ;;  %vm19302_vm0 = vmpackc.low %vm3175_vm11, %vm3167_vm10  ;;  %v17724_v28 = vclamps-f32 %v9579_v58, 32.0  ;;  %vm3200_vm10 = vcmp.eq.f32.partialorder %v16299_v49, %v22257_v21  ;;  %vm3208_vm11 = vcmp.eq.f32.partialorder %v16307_v57, %v22257_v21 }
 0x241   : > { %vm20134_vm4 = vmpackc.low %vm11082_vm13, %vm11074_vm12  ;;  %vm11107_vm13 = vcmp.eq.f32.partialorder %v17716_v26, %v22257_v21  ;;  %v9587_v58 = vsub.f32 %v28498_v6, %v24882_v62  ;;  %v17715_v49 = vclamps-f32 %v9570_v7, 32.0  ;;  %v17723_v57 = vclamps-f32 %v9578_v32, 32.0 }
 0x242   : > { %v16315_v45 = vclamps-f32 %v1639_v12, 32.0  ;;  %v9586_v7 = vsub.f32 %v28498_v6, %v24942_v22 }
 0x243   : > { %v17732_v34 = vclamps-f32 %v9587_v58, 32.0 }
 0x245   : > { %19299 = vmatmul.mubr.msk.bf16.gmra.mrb[56].mxu0 %vm19298_vm3, %v28312_v16  ;;  %vm19304_vm3 = vmpackc.low %vm3192_vm15, %vm3184_vm14  ;;  %vm11115_vm14 = vcmp.eq.f32.partialorder %v17724_v28, %v22257_v21  ;;  %v1638_v28 = vsub.f32 %v28496_v15, %v24942_v22 }
 0x246   : > { %19301 = vmatprep.mubr.msk.bf16.mxu0 %vm19300_vm8, %v28312_v16  ;;  %vm11090_vm8 = vcmp.eq.f32.partialorder %v17699_v17, %v22254_v20  ;;  %v28499_v17 = vld [vmem:[#allocation70_spill] sm:$0xff]  ;;  %vm20140_vm1 = vmpackc.low %vm11115_vm14, %vm11107_vm13 }
 0x247   : > { %20131 = vmatmul.mubr.msk.bf16.gmra.mrb[56].mxu1 %vm20130_vm7, %v28312_v16  ;;  %vm3191_vm7 = vcmp.eq.f32.partialorder %v16290_v4, %v22254_v20  ;;  %v28497_v4 = vld [vmem:[#allocation68_spill] sm:$0xff]  ;;  %v9594_v32 = vsub.f32 %v28499_v17, %v24942_v22  ;;  %v16314_v19 = vclamps-f32 %v1638_v28, 32.0  ;;  %v17731_v28 = vclamps-f32 %v9586_v7, 32.0 }
 0x248   : > { %20133 = vmatprep.mubr.msk.bf16.mxu1 %vm20132_vm9, %v28312_v16  ;;  %vm11098_vm9 = vcmp.eq.f32.partialorder %v17707_v50, %v22254_v20  ;;  %v1647_v2 = vsub.f32 %v28497_v4, %v24882_v62  ;;  %vm19306_vm12 = vmpackc.low %vm3191_vm7, %vm3183_vm6  ;;  %v9595_v50 = vsub.f32 %v28499_v17, %v24882_v62  ;;  %v1646_v55 = vsub.f32 %v28497_v4, %v24942_v22 }
 0x249   : > { %vm20138_vm15 = vmpackc.low %vm11098_vm9, %vm11090_vm8  ;;  %vm3216_vm6 = vcmp.eq.f32.partialorder %v16315_v45, %v22257_v21  ;;  %vm11123_vm9 = vcmp.eq.f32.partialorder %v17732_v34, %v22257_v21  ;;  %v28502_v45 = vld [vmem:[#allocation75_spill] sm:$0xff]  ;;  %v17739_v6 = vclamps-f32 %v9594_v32, 32.0  ;;  %vm3215_vm14 = vcmp.eq.f32.partialorder %v16314_v19, %v22254_v20 }
 0x24a   : > { %v16323_v26 = vclamps-f32 %v1647_v2, 32.0  ;;  %v17740_v39 = vclamps-f32 %v9595_v50, 32.0  ;;  %v28501_v2 = vld [vmem:[#allocation72_spill] sm:$0xff]  ;;  %v9603_v50 = vsub.f32 %v28502_v45, %v24882_v62  ;;  %v9602_v32 = vsub.f32 %v28502_v45, %v24942_v22 }
 0x24b   : > { %v1663_v58 = vsub.f32 %v28501_v2, %v24882_v62  ;;  %v1662_v7 = vsub.f32 %v28501_v2, %v24942_v22 }
 0x24c   : > { %vm3224_vm7 = vcmp.eq.f32.partialorder %v16323_v26, %v22257_v21  ;;  %v16322_v26 = vclamps-f32 %v1646_v55, 32.0  ;;  %v17748_v4 = vclamps-f32 %v9603_v50, 32.0 }
 0x24d   : > { %19303 = vmatmul.mubr.msk.bf16.gmra.mrb[60].mxu0 %vm19302_vm0, %v28312_v16  ;;  %vm19308_vm0 = vmpackc.low %vm3208_vm11, %vm3200_vm10  ;;  %vm11131_vm10 = vcmp.eq.f32.partialorder %v17740_v39, %v22257_v21  ;;  %v16339_v39 = vclamps-f32 %v1663_v58, 32.0  ;;  %v28505_v58 = vld [vmem:[#allocation76_spill] sm:$0xff]  ;;  %v16338_v2 = vclamps-f32 %v1662_v7, 32.0 }
 0x24e   : > { %19305 = vmatprep.mubr.msk.bf16.mxu0 %vm19304_vm3, %v28312_v16  ;;  %vm11106_vm3 = vcmp.eq.f32.partialorder %v17715_v49, %v22254_v20  ;;  %vm20144_vm13 = vmpackc.low %vm11131_vm10, %vm11123_vm9  ;;  %v1679_v50 = vsub.f32 %v28505_v58, %v24882_v62  ;;  %v1678_v7 = vsub.f32 %v28505_v58, %v24942_v22 }
 0x24f   : > { %20135 = vmatmul.mubr.msk.bf16.gmra.mrb[60].mxu1 %vm20134_vm4, %v28312_v16  ;;  %vm3207_vm4 = vcmp.eq.f32.partialorder %v16306_v42, %v22254_v20  ;;  %v28500_v42 = vld [vmem:[#allocation73_spill] sm:$0xff] }
 0x250   : > { %20137 = vmatprep.mubr.msk.bf16.mxu1 %vm20136_vm5, %v28312_v16  ;;  %vm11114_vm5 = vcmp.eq.f32.partialorder %v17723_v57, %v22254_v20  ;;  %v1655_v12 = vsub.f32 %v28500_v42, %v24882_v62  ;;  %vm19310_vm8 = vmpackc.low %vm3207_vm4, %vm3199_vm2  ;;  %v28503_v57 = vld [vmem:[#allocation74_spill] sm:$0xff]  ;;  %v1654_v55 = vsub.f32 %v28500_v42, %v24942_v22  ;;  %vm3240_vm4 = vcmp.eq.f32.partialorder %v16339_v39, %v22257_v21 }
 0x251   : > { %v9611_v17 = vsub.f32 %v28503_v57, %v24882_v62  ;;  %vm20142_vm11 = vmpackc.low %vm11114_vm5, %vm11106_vm3  ;;  %v9610_v19 = vsub.f32 %v28503_v57, %v24942_v22  ;;  %vm11139_vm5 = vcmp.eq.f32.partialorder %v17748_v4, %v22257_v21  ;;  %v16355_v4 = vclamps-f32 %v1679_v50, 32.0 }
 0x252   : > { %v16331_v34 = vclamps-f32 %v1655_v12, 32.0  ;;  %v16330_v45 = vclamps-f32 %v1654_v55, 32.0 }
 0x253   : > { %v17756_v49 = vclamps-f32 %v9611_v17, 32.0  ;;  %v28504_v17 = vld [vmem:[#allocation77_spill] sm:$0xff]  ;;  %v17755_v39 = vclamps-f32 %v9610_v19, 32.0 }
 0x254   : > { %v1671_v12 = vsub.f32 %v28504_v17, %v24882_v62  ;;  %vm3232_vm2 = vcmp.eq.f32.partialorder %v16331_v34, %v22257_v21  ;;  %v17747_v34 = vclamps-f32 %v9602_v32, 32.0  ;;  %vm3231_vm10 = vcmp.eq.f32.partialorder %v16330_v45, %v22254_v20 }
 0x255   : > { %19307 = vmatmul.mubr.msk.bf16.gmra.mrb[64].mxu0 %vm19306_vm12, %v28312_v16  ;;  %vm19312_vm12 = vmpackc.low %vm3224_vm7, %vm3216_vm6  ;;  %vm11147_vm6 = vcmp.eq.f32.partialorder %v17756_v49, %v22257_v21  ;;  %v1670_v49 = vsub.f32 %v28504_v17, %v24942_v22 }
 0x256   : > { %19309 = vmatprep.mubr.msk.bf16.mxu0 %vm19308_vm0, %v28312_v16  ;;  %vm11122_vm0 = vcmp.eq.f32.partialorder %v17731_v28, %v22254_v20  ;;  %v28507_v28 = vld [vmem:[#allocation78_spill] sm:$0xff]  ;;  %v16347_v42 = vclamps-f32 %v1671_v12, 32.0  ;;  %vm20148_vm9 = vmpackc.low %vm11147_vm6, %vm11139_vm5  ;;  %v28509_v12 = vld [vmem:[#allocation80_spill] sm:$0xff] }
 0x257   : > { %20139 = vmatmul.mubr.msk.bf16.gmra.mrb[64].mxu1 %vm20138_vm15, %v28312_v16  ;;  %vm3223_vm15 = vcmp.eq.f32.partialorder %v16322_v26, %v22254_v20  ;;  %v9627_v57 = vsub.f32 %v28507_v28, %v24882_v62  ;;  %v9626_v19 = vsub.f32 %v28507_v28, %v24942_v22  ;;  %v16346_v45 = vclamps-f32 %v1670_v49, 32.0 }
 0x258   : > { %20141 = vmatprep.mubr.msk.bf16.mxu1 %vm20140_vm1, %v28312_v16  ;;  %vm11130_vm1 = vcmp.eq.f32.partialorder %v17739_v6, %v22254_v20  ;;  %vm19314_vm3 = vmpackc.low %vm3223_vm15, %vm3215_vm14  ;;  %v28506_v6 = vld [vmem:[#allocation79_spill] sm:$0xff]  ;;  %vm3248_vm14 = vcmp.eq.f32.partialorder %v16347_v42, %v22257_v21  ;;  %vm3256_vm15 = vcmp.eq.f32.partialorder %v16355_v4, %v22257_v21  ;;  %v1695_v50 = vsub.f32 %v28509_v12, %v24882_v62 }
 0x259   : > { %v9619_v26 = vsub.f32 %v28506_v6, %v24882_v62  ;;  %vm20146_vm7 = vmpackc.low %vm11130_vm1, %vm11122_vm0  ;;  %v17772_v55 = vclamps-f32 %v9627_v57, 32.0  ;;  %v9618_v32 = vsub.f32 %v28506_v6, %v24942_v22  ;;  %v28510_v42 = vld [vmem:[#allocation83_spill] sm:$0xff]  ;;  %v16354_v4 = vclamps-f32 %v1678_v7, 32.0 }
 0x25a   : > { %v17771_v6 = vclamps-f32 %v9626_v19, 32.0  ;;  %vm3247_vm6 = vcmp.eq.f32.partialorder %v16346_v45, %v22254_v20  ;;  %v9634_v19 = vsub.f32 %v28510_v42, %v24942_v22 }
 0x25b   : > { %v17764_v15 = vclamps-f32 %v9619_v26, 32.0  ;;  %v9635_v26 = vsub.f32 %v28510_v42, %v24882_v62  ;;  %v17763_v49 = vclamps-f32 %v9618_v32, 32.0  ;;  %v1694_v32 = vsub.f32 %v28509_v12, %v24942_v22 }
 0x25d   : > { %19311 = vmatmul.mubr.msk.bf16.gmra.mrb[68].mxu0 %vm19310_vm8, %v28312_v16  ;;  %vm19316_vm8 = vmpackc.low %vm3240_vm4, %vm3232_vm2  ;;  %vm11155_vm1 = vcmp.eq.f32.partialorder %v17764_v15, %v22257_v21  ;;  %vm11163_vm2 = vcmp.eq.f32.partialorder %v17772_v55, %v22257_v21  ;;  %v16371_v55 = vclamps-f32 %v1695_v50, 32.0  ;;  %v17780_v58 = vclamps-f32 %v9635_v26, 32.0  ;;  %v28513_v50 = vld [vmem:[#allocation84_spill] sm:$0xff] }
 0x25e   : > { %19313 = vmatprep.mubr.msk.bf16.mxu0 %vm19312_vm12, %v28312_v16  ;;  %vm11138_vm12 = vcmp.eq.f32.partialorder %v17747_v34, %v22254_v20  ;;  %vm20152_vm5 = vmpackc.low %vm11163_vm2, %vm11155_vm1  ;;  %v1711_v26 = vsub.f32 %v28513_v50, %v24882_v62  ;;  %v16370_v12 = vclamps-f32 %v1694_v32, 32.0  ;;  %v1710_v32 = vsub.f32 %v28513_v50, %v24942_v22 }
 0x25f   : > { %20143 = vmatmul.mubr.msk.bf16.gmra.mrb[68].mxu1 %vm20142_vm11, %v28312_v16  ;;  %vm3239_vm11 = vcmp.eq.f32.partialorder %v16338_v2, %v22254_v20  ;;  %v28508_v2 = vld [vmem:[#allocation81_spill] sm:$0xff] }
 0x260   : > { %20145 = vmatprep.mubr.msk.bf16.mxu1 %vm20144_vm13, %v28312_v16  ;;  %vm11146_vm13 = vcmp.eq.f32.partialorder %v17755_v39, %v22254_v20  ;;  %v1687_v57 = vsub.f32 %v28508_v2, %v24882_v62  ;;  %vm19318_vm0 = vmpackc.low %vm3239_vm11, %vm3231_vm10  ;;  %v28511_v39 = vld [vmem:[#allocation82_spill] sm:$0xff]  ;;  %v1686_v7 = vsub.f32 %v28508_v2, %v24942_v22  ;;  %vm3272_vm11 = vcmp.eq.f32.partialorder %v16371_v55, %v22257_v21 }
 0x261   : > { %v9643_v28 = vsub.f32 %v28511_v39, %v24882_v62  ;;  %vm20150_vm4 = vmpackc.low %vm11146_vm13, %vm11138_vm12  ;;  %v9642_v45 = vsub.f32 %v28511_v39, %v24942_v22  ;;  %vm11171_vm13 = vcmp.eq.f32.partialorder %v17780_v58, %v22257_v21  ;;  %v16387_v58 = vclamps-f32 %v1711_v26, 32.0 }
 0x262   : > { %v16363_v15 = vclamps-f32 %v1687_v57, 32.0  ;;  %v16362_v42 = vclamps-f32 %v1686_v7, 32.0 }
 0x263   : > { %v17788_v34 = vclamps-f32 %v9643_v28, 32.0  ;;  %v28512_v28 = vld [vmem:[#allocation85_spill] sm:$0xff]  ;;  %v17787_v55 = vclamps-f32 %v9642_v45, 32.0 }
 0x264   : > { %v1703_v57 = vsub.f32 %v28512_v28, %v24882_v62  ;;  %vm3264_vm10 = vcmp.eq.f32.partialorder %v16363_v15, %v22257_v21  ;;  %v17779_v15 = vclamps-f32 %v9634_v19, 32.0  ;;  %vm3263_vm2 = vcmp.eq.f32.partialorder %v16362_v42, %v22254_v20 }
 0x265   : > { %19315 = vmatmul.mubr.msk.bf16.gmra.mrb[72].mxu0 %vm19314_vm3, %v28312_v16  ;;  %vm19320_vm3 = vmpackc.low %vm3256_vm15, %vm3248_vm14  ;;  %vm11179_vm14 = vcmp.eq.f32.partialorder %v17788_v34, %v22257_v21  ;;  %v1702_v34 = vsub.f32 %v28512_v28, %v24942_v22 }
 0x266   : > { %19317 = vmatprep.mubr.msk.bf16.mxu0 %vm19316_vm8, %v28312_v16  ;;  %vm11154_vm8 = vcmp.eq.f32.partialorder %v17763_v49, %v22254_v20  ;;  %v28515_v49 = vld [vmem:[#allocation86_spill] sm:$0xff]  ;;  %v16379_v2 = vclamps-f32 %v1703_v57, 32.0  ;;  %vm20156_vm1 = vmpackc.low %vm11179_vm14, %vm11171_vm13  ;;  %v28517_v57 = vld [vmem:[#allocation88_spill] sm:$0xff] }
 0x267   : > { %20147 = vmatmul.mubr.msk.bf16.gmra.mrb[72].mxu1 %vm20146_vm7, %v28312_v16  ;;  %vm3255_vm7 = vcmp.eq.f32.partialorder %v16354_v4, %v22254_v20  ;;  %v9659_v39 = vsub.f32 %v28515_v49, %v24882_v62  ;;  %v9658_v45 = vsub.f32 %v28515_v49, %v24942_v22  ;;  %v16378_v42 = vclamps-f32 %v1702_v34, 32.0 }
 0x268   : > { %20149 = vmatprep.mubr.msk.bf16.mxu1 %vm20148_vm9, %v28312_v16  ;;  %vm11162_vm9 = vcmp.eq.f32.partialorder %v17771_v6, %v22254_v20  ;;  %vm19322_vm12 = vmpackc.low %vm3255_vm7, %vm3247_vm6  ;;  %v28514_v6 = vld [vmem:[#allocation87_spill] sm:$0xff]  ;;  %vm3280_vm6 = vcmp.eq.f32.partialorder %v16379_v2, %v22257_v21  ;;  %vm3288_vm7 = vcmp.eq.f32.partialorder %v16387_v58, %v22257_v21  ;;  %v1727_v26 = vsub.f32 %v28517_v57, %v24882_v62 }
 0x269   : > { %v9651_v4 = vsub.f32 %v28514_v6, %v24882_v62  ;;  %vm20154_vm15 = vmpackc.low %vm11162_vm9, %vm11154_vm8  ;;  %v17804_v7 = vclamps-f32 %v9659_v39, 32.0  ;;  %v9650_v19 = vsub.f32 %v28514_v6, %v24942_v22  ;;  %v28518_v2 = vld [vmem:[#allocation91_spill] sm:$0xff]  ;;  %v16386_v58 = vclamps-f32 %v1710_v32, 32.0 }
 0x26a   : > { %v17803_v6 = vclamps-f32 %v9658_v45, 32.0  ;;  %vm3279_vm14 = vcmp.eq.f32.partialorder %v16378_v42, %v22254_v20  ;;  %v9666_v45 = vsub.f32 %v28518_v2, %v24942_v22 }
 0x26b   : > { %v17796_v17 = vclamps-f32 %v9651_v4, 32.0  ;;  %v9667_v4 = vsub.f32 %v28518_v2, %v24882_v62  ;;  %v17795_v34 = vclamps-f32 %v9650_v19, 32.0  ;;  %v1726_v19 = vsub.f32 %v28517_v57, %v24942_v22 }
 0x26d   : > { %19319 = vmatmul.mubr.msk.bf16.gmra.mrb[76].mxu0 %vm19318_vm0, %v28312_v16  ;;  %vm19324_vm0 = vmpackc.low %vm3272_vm11, %vm3264_vm10  ;;  %vm11187_vm9 = vcmp.eq.f32.partialorder %v17796_v17, %v22257_v21  ;;  %vm11195_vm10 = vcmp.eq.f32.partialorder %v17804_v7, %v22257_v21  ;;  %v16403_v7 = vclamps-f32 %v1727_v26, 32.0  ;;  %v17812_v50 = vclamps-f32 %v9667_v4, 32.0  ;;  %v28521_v26 = vld [vmem:[#allocation92_spill] sm:$0xff] }
 0x26e   : > { %19321 = vmatprep.mubr.msk.bf16.mxu0 %vm19320_vm3, %v28312_v16  ;;  %vm11170_vm3 = vcmp.eq.f32.partialorder %v17779_v15, %v22254_v20  ;;  %vm20160_vm13 = vmpackc.low %vm11195_vm10, %vm11187_vm9  ;;  %v1743_v4 = vsub.f32 %v28521_v26, %v24882_v62  ;;  %v16402_v57 = vclamps-f32 %v1726_v19, 32.0  ;;  %v1742_v19 = vsub.f32 %v28521_v26, %v24942_v22 }
 0x26f   : > { %20151 = vmatmul.mubr.msk.bf16.gmra.mrb[76].mxu1 %vm20150_vm4, %v28312_v16  ;;  %vm3271_vm4 = vcmp.eq.f32.partialorder %v16370_v12, %v22254_v20  ;;  %v28516_v12 = vld [vmem:[#allocation89_spill] sm:$0xff] }
 0x270   : > { %20153 = vmatprep.mubr.msk.bf16.mxu1 %vm20152_vm5, %v28312_v16  ;;  %vm11178_vm5 = vcmp.eq.f32.partialorder %v17787_v55, %v22254_v20  ;;  %v1719_v39 = vsub.f32 %v28516_v12, %v24882_v62  ;;  %vm19326_vm8 = vmpackc.low %vm3271_vm4, %vm3263_vm2  ;;  %v28519_v55 = vld [vmem:[#allocation90_spill] sm:$0xff]  ;;  %v1718_v32 = vsub.f32 %v28516_v12, %v24942_v22  ;;  %vm3304_vm4 = vcmp.eq.f32.partialorder %v16403_v7, %v22257_v21 }
 0x271   : > { %v9675_v49 = vsub.f32 %v28519_v55, %v24882_v62  ;;  %vm20158_vm11 = vmpackc.low %vm11178_vm5, %vm11170_vm3  ;;  %v9674_v42 = vsub.f32 %v28519_v55, %v24942_v22  ;;  %vm11203_vm5 = vcmp.eq.f32.partialorder %v17812_v50, %v22257_v21  ;;  %v16419_v50 = vclamps-f32 %v1743_v4, 32.0 }
 0x272   : > { %v16395_v17 = vclamps-f32 %v1719_v39, 32.0  ;;  %v16394_v2 = vclamps-f32 %v1718_v32, 32.0 }
 0x273   : > { %v17820_v15 = vclamps-f32 %v9675_v49, 32.0  ;;  %v28520_v49 = vld [vmem:[#allocation93_spill] sm:$0xff]  ;;  %v17819_v7 = vclamps-f32 %v9674_v42, 32.0 }
 0x274   : > { %v1735_v39 = vsub.f32 %v28520_v49, %v24882_v62  ;;  %vm3296_vm2 = vcmp.eq.f32.partialorder %v16395_v17, %v22257_v21  ;;  %v17811_v17 = vclamps-f32 %v9666_v45, 32.0  ;;  %vm3295_vm10 = vcmp.eq.f32.partialorder %v16394_v2, %v22254_v20 }
 0x275   : > { %19323 = vmatmul.mubr.msk.bf16.gmra.mrb[80].mxu0 %vm19322_vm12, %v28312_v16  ;;  %vm19328_vm12 = vmpackc.low %vm3288_vm7, %vm3280_vm6  ;;  %vm11211_vm6 = vcmp.eq.f32.partialorder %v17820_v15, %v22257_v21  ;;  %v1734_v15 = vsub.f32 %v28520_v49, %v24942_v22 }
 0x276   : > { %19325 = vmatprep.mubr.msk.bf16.mxu0 %vm19324_vm0, %v28312_v16  ;;  %vm11186_vm0 = vcmp.eq.f32.partialorder %v17795_v34, %v22254_v20  ;;  %v28523_v34 = vld [vmem:[#allocation94_spill] sm:$0xff]  ;;  %v16411_v12 = vclamps-f32 %v1735_v39, 32.0  ;;  %vm20164_vm9 = vmpackc.low %vm11211_vm6, %vm11203_vm5  ;;  %v28525_v39 = vld [vmem:[#allocation96_spill] sm:$0xff] }
 0x277   : > { %20155 = vmatmul.mubr.msk.bf16.gmra.mrb[80].mxu1 %vm20154_vm15, %v28312_v16  ;;  %vm3287_vm15 = vcmp.eq.f32.partialorder %v16386_v58, %v22254_v20  ;;  %v9691_v55 = vsub.f32 %v28523_v34, %v24882_v62  ;;  %v9690_v42 = vsub.f32 %v28523_v34, %v24942_v22  ;;  %v16410_v2 = vclamps-f32 %v1734_v15, 32.0 }
 0x278   : > { %20157 = vmatprep.mubr.msk.bf16.mxu1 %vm20156_vm1, %v28312_v16  ;;  %vm11194_vm1 = vcmp.eq.f32.partialorder %v17803_v6, %v22254_v20  ;;  %vm19330_vm3 = vmpackc.low %vm3287_vm15, %vm3279_vm14  ;;  %v28522_v6 = vld [vmem:[#allocation95_spill] sm:$0xff]  ;;  %vm3312_vm14 = vcmp.eq.f32.partialorder %v16411_v12, %v22257_v21  ;;  %vm3320_vm15 = vcmp.eq.f32.partialorder %v16419_v50, %v22257_v21  ;;  %v1759_v4 = vsub.f32 %v28525_v39, %v24882_v62 }
 0x279   : > { %v9683_v58 = vsub.f32 %v28522_v6, %v24882_v62  ;;  %vm20162_vm7 = vmpackc.low %vm11194_vm1, %vm11186_vm0  ;;  %v17836_v32 = vclamps-f32 %v9691_v55, 32.0  ;;  %v9682_v45 = vsub.f32 %v28522_v6, %v24942_v22  ;;  %v28526_v12 = vld [vmem:[#allocation99_spill] sm:$0xff]  ;;  %v16418_v50 = vclamps-f32 %v1742_v19, 32.0 }
 0x27a   : > { %v17835_v6 = vclamps-f32 %v9690_v42, 32.0  ;;  %vm3311_vm6 = vcmp.eq.f32.partialorder %v16410_v2, %v22254_v20  ;;  %v9698_v42 = vsub.f32 %v28526_v12, %v24942_v22 }
 0x27b   : > { %v17828_v28 = vclamps-f32 %v9683_v58, 32.0  ;;  %v9699_v58 = vsub.f32 %v28526_v12, %v24882_v62  ;;  %v17827_v15 = vclamps-f32 %v9682_v45, 32.0  ;;  %v1758_v45 = vsub.f32 %v28525_v39, %v24942_v22 }
 0x27d   : > { %19327 = vmatmul.mubr.msk.bf16.gmra.mrb[84].mxu0 %vm19326_vm8, %v28312_v16  ;;  %vm19332_vm8 = vmpackc.low %vm3304_vm4, %vm3296_vm2  ;;  %vm11219_vm1 = vcmp.eq.f32.partialorder %v17828_v28, %v22257_v21  ;;  %vm11227_vm2 = vcmp.eq.f32.partialorder %v17836_v32, %v22257_v21  ;;  %v16435_v32 = vclamps-f32 %v1759_v4, 32.0  ;;  %v17844_v26 = vclamps-f32 %v9699_v58, 32.0  ;;  %v28529_v4 = vld [vmem:[#allocation100_spill] sm:$0xff] }
 0x27e   : > { %19329 = vmatprep.mubr.msk.bf16.mxu0 %vm19328_vm12, %v28312_v16  ;;  %vm11202_vm12 = vcmp.eq.f32.partialorder %v17811_v17, %v22254_v20  ;;  %vm20168_vm5 = vmpackc.low %vm11227_vm2, %vm11219_vm1  ;;  %v1775_v58 = vsub.f32 %v28529_v4, %v24882_v62  ;;  %v16434_v39 = vclamps-f32 %v1758_v45, 32.0  ;;  %v1774_v45 = vsub.f32 %v28529_v4, %v24942_v22 }
 0x27f   : > { %20159 = vmatmul.mubr.msk.bf16.gmra.mrb[84].mxu1 %vm20158_vm11, %v28312_v16  ;;  %vm3303_vm11 = vcmp.eq.f32.partialorder %v16402_v57, %v22254_v20  ;;  %v28524_v57 = vld [vmem:[#allocation97_spill] sm:$0xff] }
 0x280   : > { %20161 = vmatprep.mubr.msk.bf16.mxu1 %vm20160_vm13, %v28312_v16  ;;  %vm11210_vm13 = vcmp.eq.f32.partialorder %v17819_v7, %v22254_v20  ;;  %v1751_v55 = vsub.f32 %v28524_v57, %v24882_v62  ;;  %vm19334_vm0 = vmpackc.low %vm3303_vm11, %vm3295_vm10  ;;  %v28527_v7 = vld [vmem:[#allocation98_spill] sm:$0xff]  ;;  %v1750_v19 = vsub.f32 %v28524_v57, %v24942_v22  ;;  %vm3336_vm11 = vcmp.eq.f32.partialorder %v16435_v32, %v22257_v21 }
 0x281   : > { %v9707_v34 = vsub.f32 %v28527_v7, %v24882_v62  ;;  %vm20166_vm4 = vmpackc.low %vm11210_vm13, %vm11202_vm12  ;;  %v9706_v2 = vsub.f32 %v28527_v7, %v24942_v22  ;;  %vm11235_vm13 = vcmp.eq.f32.partialorder %v17844_v26, %v22257_v21  ;;  %v16451_v26 = vclamps-f32 %v1775_v58, 32.0 }
 0x282   : > { %v16427_v28 = vclamps-f32 %v1751_v55, 32.0  ;;  %v16426_v12 = vclamps-f32 %v1750_v19, 32.0 }
 0x283   : > { %v17852_v17 = vclamps-f32 %v9707_v34, 32.0  ;;  %v28528_v34 = vld [vmem:[#allocation101_spill] sm:$0xff]  ;;  %v17851_v32 = vclamps-f32 %v9706_v2, 32.0 }
 0x284   : > { %v1767_v55 = vsub.f32 %v28528_v34, %v24882_v62  ;;  %vm3328_vm10 = vcmp.eq.f32.partialorder %v16427_v28, %v22257_v21  ;;  %v17843_v28 = vclamps-f32 %v9698_v42, 32.0  ;;  %vm3327_vm2 = vcmp.eq.f32.partialorder %v16426_v12, %v22254_v20 }
 0x285   : > { %19331 = vmatmul.mubr.msk.bf16.gmra.mrb[88].mxu0 %vm19330_vm3, %v28312_v16  ;;  %vm19336_vm3 = vmpackc.low %vm3320_vm15, %vm3312_vm14  ;;  %vm11243_vm14 = vcmp.eq.f32.partialorder %v17852_v17, %v22257_v21  ;;  %v1766_v17 = vsub.f32 %v28528_v34, %v24942_v22 }
 0x286   : > { %19333 = vmatprep.mubr.msk.bf16.mxu0 %vm19332_vm8, %v28312_v16  ;;  %vm11218_vm8 = vcmp.eq.f32.partialorder %v17827_v15, %v22254_v20  ;;  %v28531_v15 = vld [vmem:[#allocation102_spill] sm:$0xff]  ;;  %v16443_v57 = vclamps-f32 %v1767_v55, 32.0  ;;  %vm20172_vm1 = vmpackc.low %vm11243_vm14, %vm11235_vm13  ;;  %v28533_v55 = vld [vmem:[#allocation104_spill] sm:$0xff] }
 0x287   : > { %20163 = vmatmul.mubr.msk.bf16.gmra.mrb[88].mxu1 %vm20162_vm7, %v28312_v16  ;;  %vm3319_vm7 = vcmp.eq.f32.partialorder %v16418_v50, %v22254_v20  ;;  %v9723_v7 = vsub.f32 %v28531_v15, %v24882_v62  ;;  %v9722_v2 = vsub.f32 %v28531_v15, %v24942_v22  ;;  %v16442_v12 = vclamps-f32 %v1766_v17, 32.0 }
 0x288   : > { %20165 = vmatprep.mubr.msk.bf16.mxu1 %vm20164_vm9, %v28312_v16  ;;  %vm11226_vm9 = vcmp.eq.f32.partialorder %v17835_v6, %v22254_v20  ;;  %vm19338_vm12 = vmpackc.low %vm3319_vm7, %vm3311_vm6  ;;  %v28530_v6 = vld [vmem:[#allocation103_spill] sm:$0xff]  ;;  %vm3344_vm6 = vcmp.eq.f32.partialorder %v16443_v57, %v22257_v21  ;;  %vm3352_vm7 = vcmp.eq.f32.partialorder %v16451_v26, %v22257_v21  ;;  %v1791_v58 = vsub.f32 %v28533_v55, %v24882_v62 }
 0x289   : > { %v9715_v50 = vsub.f32 %v28530_v6, %v24882_v62  ;;  %vm20170_vm15 = vmpackc.low %vm11226_vm9, %vm11218_vm8  ;;  %v17868_v19 = vclamps-f32 %v9723_v7, 32.0  ;;  %v9714_v42 = vsub.f32 %v28530_v6, %v24942_v22  ;;  %v28534_v57 = vld [vmem:[#allocation107_spill] sm:$0xff]  ;;  %v16450_v26 = vclamps-f32 %v1774_v45, 32.0 }
 0x28a   : > { %v17867_v6 = vclamps-f32 %v9722_v2, 32.0  ;;  %vm3343_vm14 = vcmp.eq.f32.partialorder %v16442_v12, %v22254_v20  ;;  %v9730_v2 = vsub.f32 %v28534_v57, %v24942_v22 }
 0x28b   : > { %v17860_v49 = vclamps-f32 %v9715_v50, 32.0  ;;  %v9731_v50 = vsub.f32 %v28534_v57, %v24882_v62  ;;  %v17859_v17 = vclamps-f32 %v9714_v42, 32.0  ;;  %v1790_v42 = vsub.f32 %v28533_v55, %v24942_v22 }
 0x28d   : > { %19335 = vmatmul.mubr.msk.bf16.gmra.mrb[92].mxu0 %vm19334_vm0, %v28312_v16  ;;  %vm19340_vm0 = vmpackc.low %vm3336_vm11, %vm3328_vm10  ;;  %vm11251_vm9 = vcmp.eq.f32.partialorder %v17860_v49, %v22257_v21  ;;  %vm11259_vm10 = vcmp.eq.f32.partialorder %v17868_v19, %v22257_v21  ;;  %v16467_v19 = vclamps-f32 %v1791_v58, 32.0  ;;  %v25387_v58 = vld [vmem:[%s22461_s25 + $0x18] sm:$0xff] }
 0x28e   : > { %19337 = vmatprep.mubr.msk.bf16.mxu0 %vm19336_vm3, %v28312_v16  ;;  %vm11234_vm3 = vcmp.eq.f32.partialorder %v17843_v28, %v22254_v20  ;;  %vm20176_vm13 = vmpackc.low %vm11259_vm10, %vm11251_vm9 }
 0x28f   : > { %20167 = vmatmul.mubr.msk.bf16.gmra.mrb[92].mxu1 %vm20166_vm4, %v28312_v16  ;;  %vm3335_vm4 = vcmp.eq.f32.partialorder %v16434_v39, %v22254_v20  ;;  %v28532_v39 = vld [vmem:[#allocation105_spill] sm:$0xff] }
 0x290   : > { %20169 = vmatprep.mubr.msk.bf16.mxu1 %vm20168_vm5, %v28312_v16  ;;  %vm11242_vm5 = vcmp.eq.f32.partialorder %v17851_v32, %v22254_v20  ;;  %v1783_v7 = vsub.f32 %v28532_v39, %v24882_v62  ;;  %vm19342_vm8 = vmpackc.low %vm3335_vm4, %vm3327_vm2  ;;  %v28535_v32 = vld [vmem:[#allocation106_spill] sm:$0xff]  ;;  %v1782_v45 = vsub.f32 %v28532_v39, %v24942_v22  ;;  %vm3368_vm4 = vcmp.eq.f32.partialorder %v16467_v19, %v22257_v21 }
 0x291   : > { %v9739_v15 = vsub.f32 %v28535_v32, %v24882_v62  ;;  %vm20174_vm11 = vmpackc.low %vm11242_vm5, %vm11234_vm3  ;;  %v17876_v62 = vclamps-f32 %v9731_v50, 32.0  ;;  %v16466_v39 = vclamps-f32 %v1790_v42, 32.0  ;;  %v17875_v19 = vclamps-f32 %v9730_v2, 32.0 }
 0x292   : > { %v16459_v49 = vclamps-f32 %v1783_v7, 32.0  ;;  %v9738_v7 = vsub.f32 %v28535_v32, %v24942_v22  ;;  %v28539_v32 = vld [vmem:[#allocation110_spill] sm:$0xff] }
 0x293   : > { %v17884_v28 = vclamps-f32 %v9739_v15, 32.0  ;;  %v28536_v15 = vld [vmem:[#allocation109_spill] sm:$0xff]  ;;  %vm11267_vm5 = vcmp.eq.f32.partialorder %v17876_v62, %v22257_v21  ;;  %v9755_v57 = vsub.f32 %v28539_v32, %v25387_v58  ;;  %v9754_v2 = vsub.f32 %v28539_v32, %v24942_v22 }
 0x294   : > { %v1799_v50 = vsub.f32 %v28536_v15, %v25387_v58  ;;  %vm3360_vm2 = vcmp.eq.f32.partialorder %v16459_v49, %v22257_v21  ;;  %v16458_v49 = vclamps-f32 %v1782_v45, 32.0  ;;  %v17883_v4 = vclamps-f32 %v9738_v7, 32.0 }
 0x295   : > { %19339 = vmatmul.mubr.msk.bf16.gmra.mrb[96].mxu0 %vm19338_vm12, %v28312_v16  ;;  %vm19344_vm12 = vmpackc.low %vm3352_vm7, %vm3344_vm6  ;;  %vm11275_vm6 = vcmp.eq.f32.partialorder %v17884_v28, %v22257_v21  ;;  %v1798_v62 = vsub.f32 %v28536_v15, %v24942_v22  ;;  %v17900_v45 = vclamps-f32 %v9755_v57, 32.0  ;;  %v17899_v32 = vclamps-f32 %v9754_v2, 32.0 }
 0x296   : > { %19341 = vmatprep.mubr.msk.bf16.mxu0 %vm19340_vm0, %v28312_v16  ;;  %vm11250_vm0 = vcmp.eq.f32.partialorder %v17859_v17, %v22254_v20  ;;  %v16475_v34 = vclamps-f32 %v1799_v50, 32.0  ;;  %vm20180_vm9 = vmpackc.low %vm11275_vm6, %vm11267_vm5  ;;  %vm3359_vm10 = vcmp.eq.f32.partialorder %v16458_v49, %v22254_v20  ;;  %v28541_v50 = vld [vmem:[#allocation112_spill] sm:$0xff]  ;;  %v28543_v49 = vld [vmem:[#allocation114_spill] sm:$0xff] }
 0x297   : > { %20171 = vmatmul.mubr.msk.bf16.gmra.mrb[96].mxu1 %vm20170_vm15, %v28312_v16  ;;  %vm3351_vm15 = vcmp.eq.f32.partialorder %v16450_v26, %v22254_v20  ;;  %v28537_v26 = vld [vmem:[#allocation108_spill] sm:$0xff]  ;;  %v16474_v57 = vclamps-f32 %v1798_v62, 32.0 }
 0x298   : > { %20173 = vmatprep.mubr.msk.bf16.mxu1 %vm20172_vm1, %v28312_v16  ;;  %vm11258_vm1 = vcmp.eq.f32.partialorder %v17867_v6, %v22254_v20  ;;  %v1807_v55 = vsub.f32 %v28537_v26, %v25387_v58  ;;  %vm19346_vm3 = vmpackc.low %vm3351_vm15, %vm3343_vm14  ;;  %v28538_v6 = vld [vmem:[#allocation111_spill] sm:$0xff]  ;;  %v1806_v42 = vsub.f32 %v28537_v26, %v24942_v22  ;;  %vm3376_vm14 = vcmp.eq.f32.partialorder %v16475_v34, %v22257_v21 }
 0x299   : > { %v9747_v17 = vsub.f32 %v28538_v6, %v25387_v58  ;;  %vm20178_vm7 = vmpackc.low %vm11258_vm1, %vm11250_vm0  ;;  %v28542_v34 = vld [vmem:[#allocation115_spill] sm:$0xff]  ;;  %vm3375_vm6 = vcmp.eq.f32.partialorder %v16474_v57, %v22254_v20 }
 0x29a   : > { %v16483_v12 = vclamps-f32 %v1807_v55, 32.0  ;;  %v9746_v55 = vsub.f32 %v28538_v6, %v24942_v22  ;;  %v9771_v22 = vsub.f32 %v28543_v49, %v25387_v58 }
 0x29b   : > { %v17892_v28 = vclamps-f32 %v9747_v17, 32.0  ;;  %v1823_v17 = vsub.f32 %v28541_v50, %v25387_v58 }
 0x29c   : > { %vm3384_vm15 = vcmp.eq.f32.partialorder %v16483_v12, %v22257_v21  ;;  %v16482_v12 = vclamps-f32 %v1806_v42, 32.0  ;;  %v17891_v62 = vclamps-f32 %v9746_v55, 32.0  ;;  %v17916_v6 = vclamps-f32 %v9771_v22, 32.0  ;;  %v25440_v42 = vld [vmem:[%s22461_s25 + $0x10] sm:$0xff] }
 0x29d   : > { %19343 = vmatmul.mubr.msk.bf16.gmra.mrb[100].mxu0 %vm19342_vm8, %v28312_v16  ;;  %vm19348_vm8 = vmpackc.low %vm3368_vm4, %vm3360_vm2  ;;  %vm11283_vm1 = vcmp.eq.f32.partialorder %v17892_v28, %v22257_v21  ;;  %vm11291_vm2 = vcmp.eq.f32.partialorder %v17900_v45, %v22257_v21  ;;  %v16499_v45 = vclamps-f32 %v1823_v17, 32.0  ;;  %v1822_v2 = vsub.f32 %v28541_v50, %v25440_v42 }
 0x29e   : > { %19345 = vmatprep.mubr.msk.bf16.mxu0 %vm19344_vm12, %v28312_v16  ;;  %vm11266_vm12 = vcmp.eq.f32.partialorder %v17875_v19, %v22254_v20  ;;  %vm20184_vm5 = vmpackc.low %vm11291_vm2, %vm11283_vm1  ;;  %v9770_v17 = vsub.f32 %v28543_v49, %v25440_v42  ;;  %v28547_v49 = vld [vmem:[#allocation118_spill] sm:$0xff] }
 0x29f   : > { %20175 = vmatmul.mubr.msk.bf16.gmra.mrb[100].mxu1 %vm20174_vm11, %v28312_v16  ;;  %vm3367_vm11 = vcmp.eq.f32.partialorder %v16466_v39, %v22254_v20  ;;  %v28540_v39 = vld [vmem:[#allocation113_spill] sm:$0xff] }
 0x2a0   : > { %20177 = vmatprep.mubr.msk.bf16.mxu1 %vm20176_vm13, %v28312_v16  ;;  %vm11274_vm13 = vcmp.eq.f32.partialorder %v17883_v4, %v22254_v20  ;;  %v1815_v7 = vsub.f32 %v28540_v39, %v25387_v58  ;;  %vm19350_vm0 = vmpackc.low %vm3367_vm11, %vm3359_vm10  ;;  %v9763_v4 = vsub.f32 %v28542_v34, %v25387_v58  ;;  %v1814_v55 = vsub.f32 %v28540_v39, %v25440_v42 }
 0x2a1   : > { %vm20182_vm4 = vmpackc.low %vm11274_vm13, %vm11266_vm12  ;;  %vm3400_vm11 = vcmp.eq.f32.partialorder %v16499_v45, %v22257_v21  ;;  %v16498_v39 = vclamps-f32 %v1822_v2, 32.0  ;;  %v17915_v26 = vclamps-f32 %v9770_v17, 32.0 }
 0x2a2   : > { %v16491_v28 = vclamps-f32 %v1815_v7, 32.0  ;;  %v17908_v19 = vclamps-f32 %v9763_v4, 32.0  ;;  %v9762_v7 = vsub.f32 %v28542_v34, %v25440_v42  ;;  %v28544_v4 = vld [vmem:[#allocation117_spill] sm:$0xff]  ;;  %v9787_v34 = vsub.f32 %v28547_v49, %v25387_v58 }
 0x2a3   : > { %v1831_v22 = vsub.f32 %v28544_v4, %v25387_v58 }
 0x2a4   : > { %vm3392_vm10 = vcmp.eq.f32.partialorder %v16491_v28, %v22257_v21  ;;  %vm11299_vm13 = vcmp.eq.f32.partialorder %v17908_v19, %v22257_v21  ;;  %v16490_v28 = vclamps-f32 %v1814_v55, 32.0  ;;  %v17907_v45 = vclamps-f32 %v9762_v7, 32.0 }
 0x2a5   : > { %19347 = vmatmul.mubr.msk.bf16.gmra.mrb[104].mxu0 %vm19346_vm3, %v28312_v16  ;;  %vm19352_vm3 = vmpackc.low %vm3384_vm15, %vm3376_vm14  ;;  %vm11307_vm14 = vcmp.eq.f32.partialorder %v17916_v6, %v22257_v21  ;;  %v16507_v15 = vclamps-f32 %v1831_v22, 32.0  ;;  %v1830_v6 = vsub.f32 %v28544_v4, %v25440_v42  ;;  %v17932_v55 = vclamps-f32 %v9787_v34, 32.0  ;;  %v28549_v22 = vld [vmem:[#allocation120_spill] sm:$0xff] }
 0x2a6   : > { %19349 = vmatprep.mubr.msk.bf16.mxu0 %vm19348_vm8, %v28312_v16  ;;  %vm11282_vm8 = vcmp.eq.f32.partialorder %v17891_v62, %v22254_v20  ;;  %vm20188_vm1 = vmpackc.low %vm11307_vm14, %vm11299_vm13  ;;  %vm3391_vm2 = vcmp.eq.f32.partialorder %v16490_v28, %v22254_v20  ;;  %v9786_v7 = vsub.f32 %v28547_v49, %v25440_v42 }
 0x2a7   : > { %20179 = vmatmul.mubr.msk.bf16.gmra.mrb[104].mxu1 %vm20178_vm7, %v28312_v16  ;;  %vm3383_vm7 = vcmp.eq.f32.partialorder %v16482_v12, %v22254_v20  ;;  %v28545_v12 = vld [vmem:[#allocation116_spill] sm:$0xff]  ;;  %v16506_v34 = vclamps-f32 %v1830_v6, 32.0 }
 0x2a8   : > { %20181 = vmatprep.mubr.msk.bf16.mxu1 %vm20180_vm9, %v28312_v16  ;;  %vm11290_vm9 = vcmp.eq.f32.partialorder %v17899_v32, %v22254_v20  ;;  %v1839_v50 = vsub.f32 %v28545_v12, %v25387_v58  ;;  %vm19354_vm12 = vmpackc.low %vm3383_vm7, %vm3375_vm6  ;;  %v28546_v32 = vld [vmem:[#allocation119_spill] sm:$0xff]  ;;  %v1838_v2 = vsub.f32 %v28545_v12, %v25440_v42  ;;  %vm3408_vm6 = vcmp.eq.f32.partialorder %v16507_v15, %v22257_v21 }
 0x2a9   : > { %v9779_v62 = vsub.f32 %v28546_v32, %v25387_v58  ;;  %vm20186_vm15 = vmpackc.low %vm11290_vm9, %vm11282_vm8  ;;  %v9795_v15 = vsub.f32 %v24376_v37, %v25387_v58  ;;  %v17931_v49 = vclamps-f32 %v9786_v7, 32.0  ;;  %vm3407_vm14 = vcmp.eq.f32.partialorder %v16506_v34, %v22254_v20 }
 0x2aa   : > { %v16515_v57 = vclamps-f32 %v1839_v50, 32.0  ;;  %v9778_v50 = vsub.f32 %v28546_v32, %v25440_v42  ;;  %v9794_v7 = vsub.f32 %v24376_v37, %v25440_v42 }
 0x2ab   : > { %v17924_v19 = vclamps-f32 %v9779_v62, 32.0  ;;  %v1855_v62 = vsub.f32 %v28549_v22, %v25387_v58 }
 0x2ac   : > { %vm3416_vm7 = vcmp.eq.f32.partialorder %v16515_v57, %v22257_v21  ;;  %v16514_v57 = vclamps-f32 %v1838_v2, 32.0  ;;  %v17923_v6 = vclamps-f32 %v9778_v50, 32.0  ;;  %v25504_v2 = vld [vmem:[%s22461_s25 + $0x28] sm:$0xff]  ;;  %v1854_v50 = vsub.f32 %v28549_v22, %v25440_v42 }
 0x2ad   : > { %19351 = vmatmul.mubr.msk.bf16.gmra.mrb[108].mxu0 %vm19350_vm0, %v28312_v16  ;;  %vm19356_vm0 = vmpackc.low %vm3400_vm11, %vm3392_vm10  ;;  %vm11315_vm9 = vcmp.eq.f32.partialorder %v17924_v19, %v22257_v21  ;;  %vm11323_vm10 = vcmp.eq.f32.partialorder %v17932_v55, %v22257_v21  ;;  %v16531_v55 = vclamps-f32 %v1855_v62, 32.0  ;;  %v1361_v62 = vsub.f32 %v22589_v31, %v25504_v2 }
 0x2ae   : > { %19353 = vmatprep.mubr.msk.bf16.mxu0 %vm19352_vm3, %v28312_v16  ;;  %vm11298_vm3 = vcmp.eq.f32.partialorder %v17907_v45, %v22254_v20  ;;  %vm20192_vm13 = vmpackc.low %vm11323_vm10, %vm11315_vm9 }
 0x2af   : > { %20183 = vmatmul.mubr.msk.bf16.gmra.mrb[108].mxu1 %vm20182_vm4, %v28312_v16  ;;  %vm3399_vm4 = vcmp.eq.f32.partialorder %v16498_v39, %v22254_v20  ;;  %v28548_v39 = vld [vmem:[#allocation121_spill] sm:$0xff] }
 0x2b0   : > { %20185 = vmatprep.mubr.msk.bf16.mxu1 %vm20184_vm5, %v28312_v16  ;;  %vm11306_vm5 = vcmp.eq.f32.partialorder %v17915_v26, %v22254_v20  ;;  %v1847_v17 = vsub.f32 %v28548_v39, %v25387_v58  ;;  %vm19358_vm8 = vmpackc.low %vm3399_vm4, %vm3391_vm2  ;;  %v28550_v26 = vld [vmem:[#allocation122_spill] sm:$0xff]  ;;  %v1846_v32 = vsub.f32 %v28548_v39, %v25440_v42  ;;  %vm3432_vm4 = vcmp.eq.f32.partialorder %v16531_v55, %v22257_v21 }
 0x2b1   : > { %v9803_v28 = vsub.f32 %v28550_v26, %v25387_v58  ;;  %vm20190_vm11 = vmpackc.low %vm11306_vm5, %vm11298_vm3  ;;  %v17940_v58 = vclamps-f32 %v9795_v15, 32.0  ;;  %v9309_v15 = vsub.f32 %v22548_v56, %v25504_v2 }
 0x2b2   : > { %v16523_v19 = vclamps-f32 %v1847_v17, 32.0  ;;  %v9802_v17 = vsub.f32 %v28550_v26, %v25440_v42  ;;  %v16522_v34 = vclamps-f32 %v1846_v32, 32.0  ;;  %v1353_v42 = vsub.f32 %v22561_v61, %v25504_v2 }
 0x2b3   : > { %v17948_v45 = vclamps-f32 %v9803_v28, 32.0  ;;  %vm11331_vm5 = vcmp.eq.f32.partialorder %v17940_v58, %v22257_v21  ;;  %v17939_v28 = vclamps-f32 %v9794_v7, 32.0  ;;  %v9301_v32 = vsub.f32 %v22511_v40, %v25504_v2 }
 0x2b4   : > { %vm3424_vm2 = vcmp.eq.f32.partialorder %v16523_v19, %v22257_v21  ;;  %vm3423_vm10 = vcmp.eq.f32.partialorder %v16522_v34, %v22254_v20  ;;  %v16029_v19 = vclamps-f32 %v1353_v42, 32.0  ;;  %v17454_v55 = vclamps-f32 %v9309_v15, 32.0  ;;  %v28551_v34 = vld [vmem:[#allocation9_spill] sm:$0xff] }
 0x2b5   : > { %19355 = vmatmul.mubr.msk.bf16.gmra.mrb[112].mxu0 %vm19354_vm12, %v28312_v16  ;;  %vm19360_vm12 = vmpackc.low %vm3416_vm7, %vm3408_vm6  ;;  %vm11339_vm6 = vcmp.eq.f32.partialorder %v17948_v45, %v22257_v21  ;;  %v16037_v21 = vclamps-f32 %v1361_v62, 32.0  ;;  %v17446_v45 = vclamps-f32 %v9301_v32, 32.0  ;;  %v9317_v15 = vsub.f32 %v22652_v43, %v25504_v2 }
 0x2b6   : > { %19357 = vmatprep.mubr.msk.bf16.mxu0 %vm19356_vm0, %v28312_v16  ;;  %vm11314_vm0 = vcmp.eq.f32.partialorder %v17923_v6, %v22254_v20  ;;  %v25526_v6 = vld [vmem:[%s22461_s25 + $0x20] sm:$0xff]  ;;  %vm20196_vm9 = vmpackc.low %vm11339_vm6, %vm11331_vm5 }
 0x2b7   : > { %20187 = vmatmul.mubr.msk.bf16.gmra.mrb[112].mxu1 %vm20186_vm15, %v28312_v16  ;;  %vm3415_vm15 = vcmp.eq.f32.partialorder %v16514_v57, %v22254_v20  ;;  %v17947_v57 = vclamps-f32 %v9802_v17, 32.0  ;;  %v1352_v58 = vsub.f32 %v22561_v61, %v25526_v6  ;;  %v9308_v7 = vsub.f32 %v22548_v56, %v25526_v6 }
 0x2b8   : > { %20189 = vmatprep.mubr.msk.bf16.mxu1 %vm20188_vm1, %v28312_v16  ;;  %vm11322_vm1 = vcmp.eq.f32.partialorder %v17931_v49, %v22254_v20  ;;  %vm19362_vm3 = vmpackc.low %vm3415_vm15, %vm3407_vm14  ;;  %v16530_v49 = vclamps-f32 %v1854_v50, 32.0  ;;  %v1360_v50 = vsub.f32 %v22589_v31, %v25526_v6  ;;  %v1369_v17 = vsub.f32 %v22619_v0, %v25504_v2 }
 0x2b9   : > { %vm20194_vm7 = vmpackc.low %vm11322_vm1, %vm11314_vm0  ;;  %vm2938_vm14 = vcmp.eq.f32.partialorder %v16037_v21, %v28551_v34  ;;  %vm2930_vm0 = vcmp.eq.f32.partialorder %v16029_v19, %v28551_v34  ;;  %vm10845_vm1 = vcmp.eq.f32.partialorder %v17454_v55, %v28551_v34  ;;  %v16028_v62 = vclamps-f32 %v1352_v58, 32.0 }
 0x2ba   : > { %v9300_v42 = vsub.f32 %v22511_v40, %v25526_v6  ;;  %v16045_v32 = vclamps-f32 %v1369_v17, 32.0  ;;  %v1368_v21 = vsub.f32 %v22619_v0, %v25526_v6  ;;  %v1376_v19 = vsub.f32 %v22591_v36, %v25526_v6 }
 0x2bb   : > { %v9316_v58 = vsub.f32 %v22652_v43, %v25526_v6  ;;  %v1393_v43 = vsub.f32 %v22655_v44, %v25504_v2 }
 0x2bc   : > { %v16044_v0 = vclamps-f32 %v1368_v21, 32.0  ;;  %v16052_v40 = vclamps-f32 %v1376_v19, 32.0 }
 0x2bd   : > { %19359 = vmatmul.mubr.msk.bf16.gmra.mrb[116].mxu0 %vm19358_vm8, %v28312_v16  ;;  %vm19364_vm8 = vmpackc.low %vm3432_vm4, %vm3424_vm2  ;;  %v16069_v19 = vclamps-f32 %v1393_v43, 32.0  ;;  %v9332_v43 = vsub.f32 %v22740_v48, %v25526_v6 }
 0x2be   : > { %19361 = vmatprep.mubr.msk.bf16.mxu0 %vm19360_vm12, %v28312_v16  ;;  %vm11330_vm12 = vcmp.eq.f32.partialorder %v17939_v28, %v22254_v20  ;;  %vm19368_vm4 = vmpackc.low %vm2938_vm14, %vm2930_vm0  ;;  %v16036_v28 = vclamps-f32 %v1360_v50, 32.0  ;;  %v17445_v50 = vclamps-f32 %v9300_v42, 32.0  ;;  %v21939_v42 = vld [vmem:[#allocation2 + $0x180] sm:$0xff]  }
 0x2bf   : > { %20191 = vmatmul.mubr.msk.bf16.gmra.mrb[116].mxu1 %vm20190_vm11, %v28312_v16  ;;  %vm3431_vm11 = vcmp.eq.f32.partialorder %v16530_v49, %v22254_v20  ;;  %v9325_v49 = vsub.f32 %v22622_v5, %v25504_v2 }
 0x2c0   : > { %20193 = vmatprep.mubr.msk.bf16.mxu1 %vm20192_vm13, %v28312_v16  ;;  %vm11338_vm13 = vcmp.eq.f32.partialorder %v17947_v57, %v22254_v20  ;;  %vm19366_vm15 = vmpackc.low %vm3431_vm11, %vm3423_vm10  ;;  %v1377_v20 = vsub.f32 %v22591_v36, %v25504_v2  ;;  %v17453_v57 = vclamps-f32 %v9308_v7, 32.0  ;;  %v17462_v7 = vclamps-f32 %v9317_v15, 32.0 }
 0x2c1   : > { %vm20198_vm2 = vmpackc.low %vm11338_vm13, %vm11330_vm12  ;;  %v17470_v17 = vclamps-f32 %v9325_v49, 32.0  ;;  %v9324_v36 = vsub.f32 %v22622_v5, %v25526_v6  ;;  %v17461_v15 = vclamps-f32 %v9316_v58, 32.0  ;;  %v9333_v49 = vsub.f32 %v22740_v48, %v25504_v2  ;;  %v21940_v58 = vld [vmem:[#allocation2 + $0x188] sm:$0xff]   ;;  %v21941_v48 = vld [vmem:[#allocation2 + $0x190] sm:$0xff]  }
 0x2c2   : > { %v16053_v55 = vclamps-f32 %v1377_v20, 32.0  ;;  %v1385_v20 = vsub.f32 %v22688_v53, %v25504_v2  ;;  %vm10853_vm13 = vcmp.eq.f32.partialorder %v17462_v7, %v28551_v34  ;;  %v1409_v7 = vsub.f32 %v22746_v30, %v25504_v2 }
 0x2c3   : > { %vm10861_vm14 = vcmp.eq.f32.partialorder %v17470_v17, %v28551_v34  ;;  %v17469_v21 = vclamps-f32 %v9324_v36, 32.0  ;;  %v9349_v17 = vsub.f32 %v22822_v54, %v25504_v2 }
 0x2c4   : > { %vm2954_vm10 = vcmp.eq.f32.partialorder %v16053_v55, %v28551_v34  ;;  %v1384_v55 = vsub.f32 %v22688_v53, %v25526_v6 }
 0x2c5   : > { %19363 = vmatmul.mubr.msk.bf16.gmra.mrb[120].mxu0 %vm19362_vm3, %v28312_v16  ;;  %vm10837_vm3 = vcmp.eq.f32.partialorder %v17446_v45, %v28551_v34  ;;  %v28552_v45 = vld [vmem:[#allocation8_spill] sm:$0xff] }
 0x2c6   : > { %19365 = vmatprep.mubr.msk.bf16.mxu0 %vm19364_vm8, %v28312_v16  ;;  %vm20200_vm5 = vmpackc.low %vm10845_vm1, %vm10837_vm3  ;;  %vm2929_vm6 = vcmp.eq.f32.partialorder %v16028_v62, %v28552_v45  ;;  %vm10844_vm8 = vcmp.eq.f32.partialorder %v17453_v57, %v28552_v45  ;;  %vm10836_vm12 = vcmp.eq.f32.partialorder %v17445_v50, %v28552_v45  ;;  %vm2945_vm1 = vcmp.eq.f32.partialorder %v16044_v0, %v28552_v45 }
 0x2c7   : > { %20195 = vmatmul.mubr.msk.bf16.gmra.mrb[120].mxu1 %vm20194_vm7, %v28312_v16  ;;  %vm2937_vm7 = vcmp.eq.f32.partialorder %v16036_v28, %v28552_v45  ;;  %v28553_v28 = vld [vmem:[#allocation17_spill] sm:$0xff]  ;;  %v16061_v62 = vclamps-f32 %v1385_v20, 32.0  ;;  %vm10852_vm3 = vcmp.eq.f32.partialorder %v17461_v15, %v28552_v45  ;;  %v17478_v57 = vclamps-f32 %v9333_v49, 32.0 }
 0x2c8   : > { %20197 = vmatprep.mubr.msk.bf16.mxu1 %vm20196_vm9, %v28312_v16  ;;  %vm2946_vm9 = vcmp.eq.f32.partialorder %v16045_v32, %v28551_v34  ;;  %v9341_v61 = vsub.f32 %v28553_v28, %v25504_v2  ;;  %vm19370_vm11 = vmpackc.low %vm2937_vm7, %vm2929_vm6  ;;  %v1392_v32 = vsub.f32 %v22655_v44, %v25526_v6  ;;  %v9340_v50 = vsub.f32 %v28553_v28, %v25526_v6  ;;  %v28556_v20 = vld [vmem:[#allocation21_spill] sm:$0xff] }
 0x2c9   : > { %vm19372_vm0 = vmpackc.low %vm2954_vm10, %vm2946_vm9  ;;  %vm2962_vm6 = vcmp.eq.f32.partialorder %v16061_v62, %v28551_v34  ;;  %vm2970_vm7 = vcmp.eq.f32.partialorder %v16069_v19, %v28551_v34  ;;  %vm10869_vm9 = vcmp.eq.f32.partialorder %v17478_v57, %v28551_v34  ;;  %v9357_v49 = vsub.f32 %v22782_v41, %v25504_v2  ;;  %v21942_v57 = vld [vmem:[#allocation2 + $0x198] sm:$0xff]  }
 0x2ca   : > { %v17486_v36 = vclamps-f32 %v9341_v61, 32.0  ;;  %v1401_v61 = vsub.f32 %v22780_v23, %v25504_v2  ;;  %v17477_v0 = vclamps-f32 %v9332_v43, 32.0  ;;  %v17485_v28 = vclamps-f32 %v9340_v50, 32.0 }
 0x2cb   : > { %v1400_v15 = vsub.f32 %v22780_v23, %v25526_v6  ;;  %v1408_v62 = vsub.f32 %v22746_v30, %v25526_v6  ;;  %v17502_v19 = vclamps-f32 %v9357_v49, 32.0  ;;  %v9356_v43 = vsub.f32 %v22782_v41, %v25526_v6 }
 0x2cc   : > { %vm10877_vm10 = vcmp.eq.f32.partialorder %v17486_v36, %v28551_v34  ;;  %v9373_v49 = vsub.f32 %v28556_v20, %v25504_v2 }
 0x2cd   : > { %19367 = vmatmul.mubr.msk.bf16.gmra.mrb[124].mxu0 %vm19366_vm15, %v28312_v16  ;;  %vm20202_vm15 = vmpackc.low %vm10844_vm8, %vm10836_vm12  ;;  %v16076_v36 = vclamps-f32 %v1400_v15, 32.0  ;;  %v16084_v50 = vclamps-f32 %v1408_v62, 32.0  ;;  %v1416_v15 = vsub.f32 %v22863_v13, %v25526_v6  ;;  %v9364_v62 = vsub.f32 %v22911_v29, %v25526_v6 }
 0x2ce   : > { %19369 = vmatprep.mubr.msk.bf16.mxu0 %vm19368_vm4, %v28312_v16  ;;  %vm20204_vm4 = vmpackc.low %vm10861_vm14, %vm10853_vm13 }
 0x2cf   : > { %20199 = vmatmul.mubr.msk.bf16.gmra.mrb[124].mxu1 %vm20198_vm2, %v28312_v16  ;;  %vm2953_vm2 = vcmp.eq.f32.partialorder %v16052_v40, %v28552_v45  ;;  %v16068_v40 = vclamps-f32 %v1392_v32, 32.0  ;;  %vm19376_vm12 = vmpackc.low %vm2970_vm7, %vm2962_vm6  ;;  %v9348_v32 = vsub.f32 %v22822_v54, %v25526_v6  ;;  %vm10893_vm6 = vcmp.eq.f32.partialorder %v17502_v19, %v28551_v34 }
 0x2d0   : > { %20201 = vmatprep.mubr.msk.bf16.mxu1 %vm20200_vm5, %v28312_v16  ;;  %vm10860_vm5 = vcmp.eq.f32.partialorder %v17469_v21, %v28552_v45  ;;  %vm25622_vm8 = vmpackc.low %vm2953_vm2, %vm2945_vm1  ;;  %v17494_v21 = vclamps-f32 %v9349_v17, 32.0  ;;  %vm10876_vm1 = vcmp.eq.f32.partialorder %v17485_v28, %v28552_v45  ;;  %v9365_v17 = vsub.f32 %v22911_v29, %v25504_v2 }
 0x2d1   : > { %vm20208_vm13 = vmpackc.low %vm10877_vm10, %vm10869_vm9  ;;  %vm2977_vm10 = vcmp.eq.f32.partialorder %v16076_v36, %v28552_v45  ;;  %v9372_v19 = vsub.f32 %v28556_v20, %v25526_v6  ;;  %v17509_v29 = vclamps-f32 %v9364_v62, 32.0 }
 0x2d3   : > { %v17517_v36 = vclamps-f32 %v9372_v19, 32.0 }
 0x2d5   : > { %19371 = vmatmul.mubr.msk.bf16.vlgmr.msra.gmra.mrb[0].mxu0 %vm19370_vm11, %v28312_v16  ;;  %vm20206_vm11 = vmpackc.low %vm10860_vm5, %vm10852_vm3  ;;  %vm10885_vm3 = vcmp.eq.f32.partialorder %v17494_v21, %v28551_v34  ;;  %v1424_v21 = vsub.f32 %v22828_v27, %v25526_v6 }
 0x2d6   : > { %7767 = vmatpush1.bf16.msra.mxu0 %v21939_v42  ;;  %19373 = vmatprep.mubr.msk.bf16.mxu0 %vm19372_vm0, %v28312_v16  ;;  %vm10868_vm0 = vcmp.eq.f32.partialorder %v17477_v0, %v28552_v45  ;;  %vm20212_vm9 = vmpackc.low %vm10893_vm6, %vm10885_vm3 }
 0x2d7   : > { %20203 = vmatmul.mubr.msk.bf16.vlgmr.msra.gmra.mrb[0].mxu1 %vm20202_vm15, %v28312_v16  ;;  %7768 = vmatprep.subr.bf16.mxu0 %v28314_v24  ;;  %vm2969_vm15 = vcmp.eq.f32.partialorder %v16068_v40, %v28552_v45  ;;  %vm20210_vm7 = vmpackc.low %vm10876_vm1, %vm10868_vm0  ;;  %v17501_v40 = vclamps-f32 %v9356_v43, 32.0  ;;  %v28557_v43 = vld [vmem:[#allocation23_spill] sm:$0xff] }
 0x2d8   : > { %15284 = vmatpush1.bf16.msra.mxu1 %v21939_v42  ;;  %20205 = vmatprep.mubr.msk.bf16.mxu1 %vm20204_vm4, %v28312_v16  ;;  %v16060_v42 = vclamps-f32 %v1384_v55, 32.0  ;;  %v16077_v55 = vclamps-f32 %v1401_v61, 32.0  ;;  %v1417_v61 = vsub.f32 %v22863_v13, %v25504_v2 }
 0x2d9   : > { %15285 = vmatprep.subr.bf16.mxu1 %v28314_v24 }
 0x2da   : > { %7769 = vmatpush1.bf16.msra.mxu0 %v21940_v58  ;;  %vm2961_vm14 = vcmp.eq.f32.partialorder %v16060_v42, %v28552_v45  ;;  %vm2978_vm2 = vcmp.eq.f32.partialorder %v16077_v55, %v28551_v34  ;;  %v21943_v42 = vld [vmem:[#allocation2 + $0x1a0] sm:$0xff]   ;;  %v16093_v28 = vclamps-f32 %v1417_v61, 32.0  ;;  %v17510_v55 = vclamps-f32 %v9365_v17, 32.0 }
 0x2db   : > { %7770 = vmatprep.subr.bf16.mxu0 %v28314_v24  ;;  %vm19378_vm5 = vmpackc.low %vm2969_vm15, %vm2961_vm14  ;;  %v1441_v61 = vsub.f32 %v28557_v43, %v25504_v2 }
 0x2dc   : > { %15286 = vmatpush1.bf16.msra.mxu1 %v21940_v58  ;;  %v16085_v58 = vclamps-f32 %v1409_v7, 32.0  ;;  %v17493_v7 = vclamps-f32 %v9348_v32, 32.0  ;;  %v21944_v32 = vld [vmem:[#allocation2 + $0x1a8] sm:$0xff]   ;;  %vm2994_vm14 = vcmp.eq.f32.partialorder %v16093_v28, %v28551_v34  ;;  %vm10901_vm1 = vcmp.eq.f32.partialorder %v17510_v55, %v28551_v34  ;;  %v21946_v55 = vld [vmem:[#allocation2 + $0x1b8] sm:$0xff]  }
 0x2dd   : > { %15287 = vmatprep.subr.bf16.mxu1 %v28314_v24  ;;  %19375 = vmatmul.mubr.msk.bf16.gmra.mrb[4].mxu0 %vm25622_vm8, %v28312_v16  ;;  %v16117_v13 = vclamps-f32 %v1441_v61, 32.0  ;;  %v1440_v28 = vsub.f32 %v28557_v43, %v25526_v6  ;;  %v28563_v61 = vld [vmem:[#allocation26_spill] sm:$0xff] }
 0x2de   : > { %19377 = vmatprep.mubr.msk.bf16.mxu0 %vm19376_vm12, %v28312_v16  ;;  %7771 = vmatpush1.bf16.msra.mxu0 %v21941_v48  ;;  %vm2986_vm4 = vcmp.eq.f32.partialorder %v16085_v58, %v28551_v34  ;;  %vm10884_vm12 = vcmp.eq.f32.partialorder %v17493_v7, %v28552_v45  ;;  %v17518_v58 = vclamps-f32 %v9373_v49, 32.0 }
 0x2df   : > { %20207 = vmatmul.mubr.msk.bf16.gmra.mrb[4].mxu1 %vm20206_vm11, %v28312_v16  ;;  %7772 = vmatprep.subr.bf16.mxu0 %v28314_v24  ;;  %vm19380_vm8 = vmpackc.low %vm2986_vm4, %vm2978_vm2  ;;  %vm2985_vm11 = vcmp.eq.f32.partialorder %v16084_v50, %v28552_v45  ;;  %v21945_v50 = vld [vmem:[#allocation2 + $0x1b0] sm:$0xff]   ;;  %v16116_v19 = vclamps-f32 %v1440_v28, 32.0 }
 0x2e0   : > { %20209 = vmatprep.mubr.msk.bf16.mxu1 %vm20208_vm13, %v28312_v16  ;;  %15288 = vmatpush1.bf16.msra.mxu1 %v21941_v48  ;;  %v1425_v48 = vsub.f32 %v22828_v27, %v25504_v2  ;;  %vm10892_vm13 = vcmp.eq.f32.partialorder %v17501_v40, %v28552_v45  ;;  %vm25722_vm0 = vmpackc.low %vm2985_vm11, %vm2977_vm10  ;;  %vm10909_vm2 = vcmp.eq.f32.partialorder %v17518_v58, %v28551_v34  ;;  %v28561_v40 = vld [vmem:[#allocation24_spill] sm:$0xff] }
 0x2e1   : > { %15289 = vmatprep.subr.bf16.mxu1 %v28314_v24  ;;  %v9389_v20 = vsub.f32 %v28561_v40, %v25504_v2  ;;  %vm20214_vm4 = vmpackc.low %vm10892_vm13, %vm10884_vm12  ;;  %vm3018_vm11 = vcmp.eq.f32.partialorder %v16117_v13, %v28551_v34 }
 0x2e2   : > { %7773 = vmatpush1.bf16.msra.mxu0 %v21942_v57  ;;  %v16101_v0 = vclamps-f32 %v1425_v48, 32.0  ;;  %v28558_v48 = vld [vmem:[#allocation25_spill] sm:$0xff] }
 0x2e3   : > { %7774 = vmatprep.subr.bf16.mxu0 %v28314_v24  ;;  %v9381_v17 = vsub.f32 %v28558_v48, %v25504_v2  ;;  %v9380_v62 = vsub.f32 %v28558_v48, %v25526_v6 }
 0x2e4   : > { %15290 = vmatpush1.bf16.msra.mxu1 %v21942_v57  ;;  %v1433_v57 = vsub.f32 %v22947_v52, %v25504_v2  ;;  %vm3002_vm15 = vcmp.eq.f32.partialorder %v16101_v0, %v28551_v34  ;;  %v16100_v0 = vclamps-f32 %v1424_v21, 32.0  ;;  %v17534_v21 = vclamps-f32 %v9389_v20, 32.0 }
 0x2e5   : > { %15291 = vmatprep.subr.bf16.mxu1 %v28314_v24  ;;  %19379 = vmatmul.mubr.msk.bf16.gmra.mrb[8].mxu0 %vm19378_vm5, %v28312_v16  ;;  %vm19384_vm3 = vmpackc.low %vm3002_vm15, %vm2994_vm14  ;;  %v17526_v7 = vclamps-f32 %v9381_v17, 32.0  ;;  %v9388_v20 = vsub.f32 %v28561_v40, %v25526_v6  ;;  %v1457_v17 = vsub.f32 %v28563_v61, %v25504_v2  ;;  %v17525_v49 = vclamps-f32 %v9380_v62, 32.0  ;;  %v28565_v40 = vld [vmem:[#allocation28_spill] sm:$0xff] }
 0x2e6   : > { %19381 = vmatprep.mubr.msk.bf16.mxu0 %vm19380_vm8, %v28312_v16  ;;  %7775 = vmatpush1.bf16.msra.mxu0 %v21943_v42  ;;  %v16109_v27 = vclamps-f32 %v1433_v57, 32.0  ;;  %vm20216_vm5 = vmpackc.low %vm10909_vm2, %vm10901_vm1  ;;  %vm10900_vm8 = vcmp.eq.f32.partialorder %v17509_v29, %v28552_v45  ;;  %vm10925_vm14 = vcmp.eq.f32.partialorder %v17534_v21, %v28551_v34  ;;  %v9405_v28 = vsub.f32 %v28565_v40, %v25504_v2 }
 0x2e7   : > { %20211 = vmatmul.mubr.msk.bf16.gmra.mrb[8].mxu1 %vm20210_vm7, %v28312_v16  ;;  %7776 = vmatprep.subr.bf16.mxu0 %v28314_v24  ;;  %vm3001_vm7 = vcmp.eq.f32.partialorder %v16100_v0, %v28552_v45  ;;  %vm10917_vm12 = vcmp.eq.f32.partialorder %v17526_v7, %v28551_v34  ;;  %v17533_v0 = vclamps-f32 %v9388_v20, 32.0  ;;  %v16133_v29 = vclamps-f32 %v1457_v17, 32.0  ;;  %v21948_v20 = vld [vmem:[#allocation2 + $0x1c8] sm:$0xff]  }
 0x2e8   : > { %20213 = vmatprep.mubr.msk.bf16.mxu1 %vm20212_vm9, %v28312_v16  ;;  %15292 = vmatpush1.bf16.msra.mxu1 %v21943_v42  ;;  %v16092_v42 = vclamps-f32 %v1416_v15, 32.0  ;;  %v1432_v15 = vsub.f32 %v22947_v52, %v25526_v6  ;;  %vm10908_vm9 = vcmp.eq.f32.partialorder %v17517_v36, %v28552_v45  ;;  %vm3010_vm10 = vcmp.eq.f32.partialorder %v16109_v27, %v28551_v34  ;;  %vm20220_vm1 = vmpackc.low %vm10925_vm14, %vm10917_vm12 }
 0x2e9   : > { %15293 = vmatprep.subr.bf16.mxu1 %v28314_v24  ;;  %vm20218_vm15 = vmpackc.low %vm10908_vm9, %vm10900_vm8  ;;  %v17550_v36 = vclamps-f32 %v9405_v28, 32.0  ;;  %v1456_v7 = vsub.f32 %v28563_v61, %v25526_v6  ;;  %v1473_v17 = vsub.f32 %v28463_v63, %v25504_v2 }
 0x2ea   : > { %7777 = vmatpush1.bf16.msra.mxu0 %v21944_v32  ;;  %vm2993_vm6 = vcmp.eq.f32.partialorder %v16092_v42, %v28552_v45  ;;  %v16108_v58 = vclamps-f32 %v1432_v15, 32.0  ;;  %v21947_v42 = vld [vmem:[#allocation2 + $0x1c0] sm:$0xff]  }
 0x2eb   : > { %7778 = vmatprep.subr.bf16.mxu0 %v28314_v24  ;;  %vm19386_vm13 = vmpackc.low %vm3001_vm7, %vm2993_vm6  ;;  %vm3034_vm7 = vcmp.eq.f32.partialorder %v16133_v29, %v28551_v34  ;;  %v16132_v29 = vclamps-f32 %v1456_v7, 32.0  ;;  %v16149_v48 = vclamps-f32 %v1473_v17, 32.0 }
 0x2ec   : > { %15294 = vmatpush1.bf16.msra.mxu1 %v21944_v32  ;;  %v28562_v32 = vld [vmem:[#allocation27_spill] sm:$0xff]  ;;  %vm3009_vm2 = vcmp.eq.f32.partialorder %v16108_v58, %v28552_v45 }
 0x2ed   : > { %15295 = vmatprep.subr.bf16.mxu1 %v28314_v24  ;;  %19383 = vmatmul.mubr.msk.bf16.gmra.mrb[12].mxu0 %vm25722_vm0, %v28312_v16  ;;  %v1449_v57 = vsub.f32 %v28562_v32, %v25504_v2  ;;  %vm19388_vm0 = vmpackc.low %vm3018_vm11, %vm3010_vm10  ;;  %v1448_v21 = vsub.f32 %v28562_v32, %v25526_v6  ;;  %vm10941_vm10 = vcmp.eq.f32.partialorder %v17550_v36, %v28551_v34 }
 0x2ee   : > { %19385 = vmatprep.mubr.msk.bf16.mxu0 %vm19384_vm3, %v28312_v16  ;;  %7779 = vmatpush1.bf16.msra.mxu0 %v21945_v50  ;;  %vm10916_vm3 = vcmp.eq.f32.partialorder %v17525_v49, %v28552_v45 }
 0x2ef   : > { %20215 = vmatmul.mubr.msk.bf16.gmra.mrb[12].mxu1 %vm20214_vm4, %v28312_v16  ;;  %7780 = vmatprep.subr.bf16.mxu0 %v28314_v24  ;;  %vm3017_vm4 = vcmp.eq.f32.partialorder %v16116_v19, %v28552_v45  ;;  %v16125_v27 = vclamps-f32 %v1449_v57, 32.0  ;;  %v1465_v57 = vsub.f32 %v28462_v47, %v25504_v2  ;;  %v21949_v19 = vld [vmem:[#allocation2 + $0x1d0] sm:$0xff]  }
 0x2f0   : > { %20217 = vmatprep.mubr.msk.bf16.mxu1 %vm20216_vm5, %v28312_v16  ;;  %15296 = vmatpush1.bf16.msra.mxu1 %v21945_v50  ;;  %v28564_v50 = vld [vmem:[#allocation29_spill] sm:$0xff]  ;;  %vm10924_vm5 = vcmp.eq.f32.partialorder %v17533_v0, %v28552_v45  ;;  %vm25818_vm8 = vmpackc.low %vm3017_vm4, %vm3009_vm2  ;;  %v16124_v0 = vclamps-f32 %v1448_v21, 32.0  ;;  %v1464_v21 = vsub.f32 %v28462_v47, %v25526_v6  ;;  %vm3050_vm4 = vcmp.eq.f32.partialorder %v16149_v48, %v28551_v34 }
 0x2f1   : > { %15297 = vmatprep.subr.bf16.mxu1 %v28314_v24  ;;  %v9397_v15 = vsub.f32 %v28564_v50, %v25504_v2  ;;  %v9396_v62 = vsub.f32 %v28564_v50, %v25526_v6  ;;  %vm3026_vm6 = vcmp.eq.f32.partialorder %v16125_v27, %v28551_v34  ;;  %vm20222_vm11 = vmpackc.low %vm10924_vm5, %vm10916_vm3  ;;  %v16141_v32 = vclamps-f32 %v1465_v57, 32.0  ;;  %v28571_v57 = vld [vmem:[#allocation34_spill] sm:$0xff] }
 0x2f2   : > { %7781 = vmatpush1.bf16.msra.mxu0 %v21946_v55  ;;  %vm19392_vm12 = vmpackc.low %vm3034_vm7, %vm3026_vm6  ;;  %v1472_v27 = vsub.f32 %v28463_v63, %v25526_v6  ;;  %vm3025_vm14 = vcmp.eq.f32.partialorder %v16124_v0, %v28552_v45  ;;  %v1489_v17 = vsub.f32 %v28571_v57, %v25504_v2 }
 0x2f3   : > { %7782 = vmatprep.subr.bf16.mxu0 %v28314_v24  ;;  %v17542_v13 = vclamps-f32 %v9397_v15, 32.0  ;;  %v28566_v15 = vld [vmem:[#allocation33_spill] sm:$0xff]  ;;  %v17541_v61 = vclamps-f32 %v9396_v62, 32.0  ;;  %vm3042_vm2 = vcmp.eq.f32.partialorder %v16141_v32, %v28551_v34 }
 0x2f4   : > { %15298 = vmatpush1.bf16.msra.mxu1 %v21946_v55  ;;  %v9404_v55 = vsub.f32 %v28565_v40, %v25526_v6  ;;  %v9413_v28 = vsub.f32 %v28566_v15, %v25504_v2  ;;  %v28569_v40 = vld [vmem:[#allocation32_spill] sm:$0xff]  ;;  %v9412_v62 = vsub.f32 %v28566_v15, %v25526_v6 }
 0x2f5   : > { %15299 = vmatprep.subr.bf16.mxu1 %v28314_v24  ;;  %19387 = vmatmul.mubr.msk.bf16.gmra.mrb[16].mxu0 %vm19386_vm13, %v28312_v16  ;;  %vm10933_vm9 = vcmp.eq.f32.partialorder %v17542_v13, %v28551_v34  ;;  %v9421_v50 = vsub.f32 %v28569_v40, %v25504_v2  ;;  %v16140_v13 = vclamps-f32 %v1464_v21, 32.0  ;;  %v9420_v36 = vsub.f32 %v28569_v40, %v25526_v6  ;;  %v28573_v21 = vld [vmem:[#allocation36_spill] sm:$0xff] }
 0x2f6   : > { %19389 = vmatprep.mubr.msk.bf16.mxu0 %vm19388_vm0, %v28312_v16  ;;  %7783 = vmatpush1.bf16.msra.mxu0 %v21947_v42  ;;  %v17549_v58 = vclamps-f32 %v9404_v55, 32.0  ;;  %vm20224_vm13 = vmpackc.low %vm10941_vm10, %vm10933_vm9  ;;  %v17558_v49 = vclamps-f32 %v9413_v28, 32.0  ;;  %vm10932_vm0 = vcmp.eq.f32.partialorder %v17541_v61, %v28552_v45  ;;  %v28570_v55 = vld [vmem:[#allocation35_spill] sm:$0xff]  ;;  %v17557_v28 = vclamps-f32 %v9412_v62, 32.0 }
 0x2f7   : > { %20219 = vmatmul.mubr.msk.bf16.gmra.mrb[16].mxu1 %vm20218_vm15, %v28312_v16  ;;  %7784 = vmatprep.subr.bf16.mxu0 %v28314_v24  ;;  %v17566_v7 = vclamps-f32 %v9421_v50, 32.0  ;;  %vm3033_vm15 = vcmp.eq.f32.partialorder %v16132_v29, %v28552_v45  ;;  %v16148_v50 = vclamps-f32 %v1472_v27, 32.0  ;;  %v17565_v0 = vclamps-f32 %v9420_v36, 32.0  ;;  %v21950_v27 = vld [vmem:[#allocation2 + $0x1d8] sm:$0xff]  }
 0x2f8   : > { %20221 = vmatprep.mubr.msk.bf16.mxu1 %vm20220_vm1, %v28312_v16  ;;  %15300 = vmatpush1.bf16.msra.mxu1 %v21947_v42  ;;  %vm10940_vm1 = vcmp.eq.f32.partialorder %v17549_v58, %v28552_v45  ;;  %vm10949_vm3 = vcmp.eq.f32.partialorder %v17558_v49, %v28551_v34  ;;  %vm19394_vm5 = vmpackc.low %vm3033_vm15, %vm3025_vm14  ;;  %v28572_v42 = vld [vmem:[#allocation37_spill] sm:$0xff]  ;;  %v9437_v49 = vsub.f32 %v28573_v21, %v25504_v2  ;;  %v16165_v61 = vclamps-f32 %v1489_v17, 32.0 }
 0x2f9   : > { %15301 = vmatprep.subr.bf16.mxu1 %v28314_v24  ;;  %vm10957_vm6 = vcmp.eq.f32.partialorder %v17566_v7, %v28551_v34  ;;  %vm20226_vm7 = vmpackc.low %vm10940_vm1, %vm10932_vm0  ;;  %vm3041_vm10 = vcmp.eq.f32.partialorder %v16140_v13, %v28552_v45  ;;  %v1480_v58 = vsub.f32 %v28570_v55, %v25526_v6  ;;  %v1488_v7 = vsub.f32 %v28571_v57, %v25526_v6 }
 0x2fa   : > { %7785 = vmatpush1.bf16.msra.mxu0 %v21948_v20  ;;  %vm20228_vm9 = vmpackc.low %vm10957_vm6, %vm10949_vm3  ;;  %v17582_v32 = vclamps-f32 %v9437_v49, 32.0  ;;  %v9428_v62 = vsub.f32 %v28572_v42, %v25526_v6  ;;  %v9436_v36 = vsub.f32 %v28573_v21, %v25526_v6  ;;  %v1505_v17 = vsub.f32 %v28473_v51, %v25504_v2 }
 0x2fb   : > { %7786 = vmatprep.subr.bf16.mxu0 %v28314_v24  ;;  %vm3066_vm15 = vcmp.eq.f32.partialorder %v16165_v61, %v28551_v34  ;;  %v9453_v49 = vsub.f32 %v28475_v35, %v25504_v2 }
 0x2fc   : > { %15302 = vmatpush1.bf16.msra.mxu1 %v21948_v20  ;;  %v1481_v20 = vsub.f32 %v28570_v55, %v25504_v2  ;;  %v17573_v61 = vclamps-f32 %v9428_v62, 32.0  ;;  %v16181_v13 = vclamps-f32 %v1505_v17, 32.0  ;;  %v9452_v62 = vsub.f32 %v28475_v35, %v25526_v6  ;;  %v28574_v17 = vld [vmem:[#allocation42_spill] sm:$0xff] }
 0x2fd   : > { %15303 = vmatprep.subr.bf16.mxu1 %v28314_v24  ;;  %19391 = vmatmul.mubr.msk.bf16.gmra.mrb[20].mxu0 %vm25818_vm8, %v28312_v16  ;;  %vm19396_vm8 = vmpackc.low %vm3050_vm4, %vm3042_vm2  ;;  %vm10973_vm2 = vcmp.eq.f32.partialorder %v17582_v32, %v28551_v34  ;;  %v17598_v32 = vclamps-f32 %v9453_v49, 32.0 }
 0x2fe   : > { %19393 = vmatprep.mubr.msk.bf16.mxu0 %vm19392_vm12, %v28312_v16  ;;  %7787 = vmatpush1.bf16.msra.mxu0 %v21949_v19  ;;  %v16157_v29 = vclamps-f32 %v1481_v20, 32.0  ;;  %vm10948_vm12 = vcmp.eq.f32.partialorder %v17557_v28, %v28552_v45  ;;  %v1497_v20 = vsub.f32 %v28472_v18, %v25504_v2  ;;  %v1504_v28 = vsub.f32 %v28473_v51, %v25526_v6 }
 0x2ff   : > { %20223 = vmatmul.mubr.msk.bf16.gmra.mrb[20].mxu1 %vm20222_vm11, %v28312_v16  ;;  %7788 = vmatprep.subr.bf16.mxu0 %v28314_v24  ;;  %vm3049_vm11 = vcmp.eq.f32.partialorder %v16148_v50, %v28552_v45  ;;  %v1496_v50 = vsub.f32 %v28472_v18, %v25526_v6 }
 0x300   : > { %20225 = vmatprep.mubr.msk.bf16.mxu1 %vm20224_vm13, %v28312_v16  ;;  %15304 = vmatpush1.bf16.msra.mxu1 %v21949_v19  ;;  %v9429_v19 = vsub.f32 %v28572_v42, %v25504_v2  ;;  %vm10956_vm13 = vcmp.eq.f32.partialorder %v17565_v0, %v28552_v45  ;;  %vm3058_vm14 = vcmp.eq.f32.partialorder %v16157_v29, %v28551_v34  ;;  %vm19398_vm0 = vmpackc.low %vm3049_vm11, %vm3041_vm10  ;;  %v16156_v0 = vclamps-f32 %v1480_v58, 32.0 }
 0x301   : > { %15305 = vmatprep.subr.bf16.mxu1 %v28314_v24  ;;  %vm20230_vm4 = vmpackc.low %vm10956_vm13, %vm10948_vm12  ;;  %v16164_v29 = vclamps-f32 %v1488_v7, 32.0  ;;  %v16173_v21 = vclamps-f32 %v1497_v20, 32.0  ;;  %v9444_v58 = vsub.f32 %v28474_v11, %v25526_v6  ;;  %vm3082_vm11 = vcmp.eq.f32.partialorder %v16181_v13, %v28551_v34 }
 0x302   : > { %v17574_v48 = vclamps-f32 %v9429_v19, 32.0  ;;  %7789 = vmatpush1.bf16.msra.mxu0 %v21950_v27  ;;  %v9445_v19 = vsub.f32 %v28474_v11, %v25504_v2  ;;  %vm19400_vm3 = vmpackc.low %vm3066_vm15, %vm3058_vm14  ;;  %vm3057_vm6 = vcmp.eq.f32.partialorder %v16156_v0, %v28552_v45  ;;  %v16172_v7 = vclamps-f32 %v1496_v50, 32.0 }
 0x303   : > { %7790 = vmatprep.subr.bf16.mxu0 %v28314_v24  ;;  %vm3074_vm10 = vcmp.eq.f32.partialorder %v16173_v21, %v28551_v34  ;;  %v1513_v20 = vsub.f32 %v23365_v3, %v25504_v2  ;;  %vm10989_vm14 = vcmp.eq.f32.partialorder %v17598_v32, %v28551_v34  ;;  %v17589_v49 = vclamps-f32 %v9444_v58, 32.0  ;;  %v28575_v21 = vld [vmem:[#allocation44_spill] sm:$0xff] }
 0x304   : > { %15306 = vmatpush1.bf16.msra.mxu1 %v21950_v27  ;;  %vm10965_vm1 = vcmp.eq.f32.partialorder %v17574_v48, %v28551_v34  ;;  %v17581_v27 = vclamps-f32 %v9436_v36, 32.0  ;;  %v17590_v48 = vclamps-f32 %v9445_v19, 32.0  ;;  %v16180_v36 = vclamps-f32 %v1504_v28, 32.0  ;;  %v21951_v28 = vld [vmem:[#allocation2 + $0x1e0] sm:$0xff]  }
 0x305   : > { %19395 = vmatmul.mubr.msk.bf16.gmra.mrb[24].mxu0 %vm19394_vm5, %v28312_v16  ;;  %15307 = vmatprep.subr.bf16.mxu1 %v28314_v24  ;;  %vm20232_vm5 = vmpackc.low %vm10973_vm2, %vm10965_vm1  ;;  %v1521_v19 = vsub.f32 %v28574_v17, %v25504_v2  ;;  %v9461_v0 = vsub.f32 %v28575_v21, %v25504_v2  ;;  %v17597_v13 = vclamps-f32 %v9452_v62, 32.0  ;;  %vm3073_vm2 = vcmp.eq.f32.partialorder %v16172_v7, %v28552_v45 }
 0x306   : > { %19397 = vmatprep.mubr.msk.bf16.mxu0 %vm19396_vm8, %v28312_v16  ;;  %vm10964_vm8 = vcmp.eq.f32.partialorder %v17573_v61, %v28552_v45  ;;  %vm10981_vm12 = vcmp.eq.f32.partialorder %v17590_v48, %v28551_v34  ;;  %v16189_v50 = vclamps-f32 %v1513_v20, 32.0  ;;  %v1512_v58 = vsub.f32 %v23365_v3, %v25526_v6  ;;  %7791 = vmatpush1.bf16.msra.mxu0 %v21951_v28 }
 0x307   : > { %20227 = vmatmul.mubr.msk.bf16.gmra.mrb[24].mxu1 %vm20226_vm7, %v28312_v16  ;;  %vm3065_vm7 = vcmp.eq.f32.partialorder %v16164_v29, %v28552_v45  ;;  %v28576_v29 = vld [vmem:[#allocation43_spill] sm:$0xff]  ;;  %vm20236_vm1 = vmpackc.low %vm10989_vm14, %vm10981_vm12  ;;  %v16197_v48 = vclamps-f32 %v1521_v19, 32.0  ;;  %v17606_v61 = vclamps-f32 %v9461_v0, 32.0  ;;  %v1520_v62 = vsub.f32 %v28574_v17, %v25526_v6  ;;  %7792 = vmatprep.subr.bf16.mxu0 %v28314_v24 }
 0x308   : > { %20229 = vmatprep.mubr.msk.bf16.mxu1 %vm20228_vm9, %v28312_v16  ;;  %vm10972_vm9 = vcmp.eq.f32.partialorder %v17581_v27, %v28552_v45  ;;  %vm19402_vm13 = vmpackc.low %vm3065_vm7, %vm3057_vm6  ;;  %v9469_v27 = vsub.f32 %v28576_v29, %v25504_v2  ;;  %v9460_v35 = vsub.f32 %v28575_v21, %v25526_v6  ;;  %v9468_v20 = vsub.f32 %v28576_v29, %v25526_v6 }
 0x309   : > { %vm20234_vm15 = vmpackc.low %vm10972_vm9, %vm10964_vm8  ;;  %15308 = vmatpush1.bf16.msra.mxu1 %v21951_v28  ;;  %v1529_v19 = vsub.f32 %v23445_v8, %v25504_v2  ;;  %v1537_v0 = vsub.f32 %v28477_v10, %v25504_v2  ;;  %vm3090_vm6 = vcmp.eq.f32.partialorder %v16189_v50, %v28551_v34  ;;  %vm3098_vm7 = vcmp.eq.f32.partialorder %v16197_v48, %v28551_v34 }
 0x30a   : > { %v17614_v32 = vclamps-f32 %v9469_v27, 32.0  ;;  %15309 = vmatprep.subr.bf16.mxu1 %v28314_v24  ;;  %v9477_v27 = vsub.f32 %v23485_v46, %v25504_v2  ;;  %vm10997_vm9 = vcmp.eq.f32.partialorder %v17606_v61, %v28551_v34  ;;  %v16188_v50 = vclamps-f32 %v1512_v58, 32.0  ;;  %vm19408_vm12 = vmpackc.low %vm3098_vm7, %vm3090_vm6 }
 0x30b   : > { %v16196_v48 = vclamps-f32 %v1520_v62, 32.0  ;;  %v17605_v28 = vclamps-f32 %v9460_v35, 32.0  ;;  %v17613_v29 = vclamps-f32 %v9468_v20, 32.0  ;;  %v16205_v21 = vclamps-f32 %v1529_v19, 32.0  ;;  %v28577_v19 = vld [vmem:[#allocation47_spill] sm:$0xff] }
 0x30c   : > { %v16213_v17 = vclamps-f32 %v1537_v0, 32.0  ;;  %v1528_v7 = vsub.f32 %v23445_v8, %v25526_v6  ;;  %v9476_v35 = vsub.f32 %v23485_v46, %v25526_v6  ;;  %vm3089_vm14 = vcmp.eq.f32.partialorder %v16188_v50, %v28552_v45 }
 0x30d   : > { %19399 = vmatmul.mubr.msk.bf16.gmra.mrb[28].mxu0 %vm19398_vm0, %v28312_v16  ;;  %vm19404_vm0 = vmpackc.low %vm3082_vm11, %vm3074_vm10  ;;  %vm11005_vm10 = vcmp.eq.f32.partialorder %v17614_v32, %v28551_v34  ;;  %v9484_v32 = vsub.f32 %v28478_v25, %v25526_v6  ;;  %v1545_v20 = vsub.f32 %v23519_v1, %v25504_v2  ;;  %v1553_v0 = vsub.f32 %v28577_v19, %v25504_v2 }
 0x30e   : > { %19401 = vmatprep.mubr.msk.bf16.mxu0 %vm19400_vm3, %v28312_v16  ;;  %vm10980_vm3 = vcmp.eq.f32.partialorder %v17589_v49, %v28552_v45  ;;  %v17622_v49 = vclamps-f32 %v9477_v27, 32.0  ;;  %v16204_v58 = vclamps-f32 %v1528_v7, 32.0  ;;  %v17621_v27 = vclamps-f32 %v9476_v35, 32.0 }
 0x30f   : > { %20231 = vmatmul.mubr.msk.bf16.gmra.mrb[28].mxu1 %vm20230_vm4, %v28312_v16  ;;  %vm3081_vm4 = vcmp.eq.f32.partialorder %v16180_v36, %v28552_v45  ;;  %v1536_v36 = vsub.f32 %v28477_v10, %v25526_v6  ;;  %v16229_v7 = vclamps-f32 %v1553_v0, 32.0  ;;  %v1552_v35 = vsub.f32 %v28577_v19, %v25526_v6 }
 0x310   : > { %20233 = vmatprep.mubr.msk.bf16.mxu1 %vm20232_vm5, %v28312_v16  ;;  %vm10988_vm5 = vcmp.eq.f32.partialorder %v17597_v13, %v28552_v45  ;;  %v9485_v13 = vsub.f32 %v28478_v25, %v25504_v2  ;;  %vm19406_vm8 = vmpackc.low %vm3081_vm4, %vm3073_vm2  ;;  %vm3106_vm2 = vcmp.eq.f32.partialorder %v16205_v21, %v28551_v34  ;;  %vm3114_vm4 = vcmp.eq.f32.partialorder %v16213_v17, %v28551_v34  ;;  %v28579_v17 = vld [vmem:[#allocation48_spill] sm:$0xff] }
 0x311   : > { %vm20238_vm11 = vmpackc.low %vm10988_vm5, %vm10980_vm3  ;;  %v16212_v62 = vclamps-f32 %v1536_v36, 32.0  ;;  %vm11013_vm3 = vcmp.eq.f32.partialorder %v17622_v49, %v28551_v34  ;;  %v9501_v50 = vsub.f32 %v28579_v17, %v25504_v2  ;;  %v21952_v36 = vld [vmem:[#allocation2 + $0x1e8] sm:$0xff]   ;;  %v1561_v0 = vsub.f32 %v23594_v9, %v25504_v2 }
 0x312   : > { %v17630_v61 = vclamps-f32 %v9485_v13, 32.0  ;;  %v17629_v13 = vclamps-f32 %v9484_v32, 32.0  ;;  %7793 = vmatpush1.bf16.msra.mxu0 %v21952_v36  ;;  %15310 = vmatpush1.bf16.msra.mxu1 %v21952_v36  ;;  %v9517_v36 = vsub.f32 %v28483_v60, %v25504_v2 }
 0x313   : > { %v17646_v49 = vclamps-f32 %v9501_v50, 32.0  ;;  %7794 = vmatprep.subr.bf16.mxu0 %v28314_v24  ;;  %15311 = vmatprep.subr.bf16.mxu1 %v28314_v24  ;;  %v9509_v50 = vsub.f32 %v23639_v14, %v25504_v2 }
 0x314   : > { %vm11021_vm5 = vcmp.eq.f32.partialorder %v17630_v61, %v28551_v34  ;;  %v1544_v61 = vsub.f32 %v23519_v1, %v25526_v6 }
 0x315   : > { %19403 = vmatmul.mubr.msk.bf16.gmra.mrb[32].mxu0 %vm19402_vm13, %v28312_v16  ;;  %vm20240_vm13 = vmpackc.low %vm11005_vm10, %vm10997_vm9  ;;  %vm3105_vm10 = vcmp.eq.f32.partialorder %v16204_v58, %v28552_v45  ;;  %v16228_v58 = vclamps-f32 %v1552_v35, 32.0  ;;  %v9516_v35 = vsub.f32 %v28483_v60, %v25526_v6 }
 0x316   : > { %19405 = vmatprep.mubr.msk.bf16.mxu0 %vm19404_vm0, %v28312_v16  ;;  %vm10996_vm0 = vcmp.eq.f32.partialorder %v17605_v28, %v28552_v45  ;;  %vm20244_vm9 = vmpackc.low %vm11021_vm5, %vm11013_vm3 }
 0x317   : > { %20235 = vmatmul.mubr.msk.bf16.gmra.mrb[32].mxu1 %vm20234_vm15, %v28312_v16  ;;  %vm3097_vm15 = vcmp.eq.f32.partialorder %v16196_v48, %v28552_v45  ;;  %v16221_v48 = vclamps-f32 %v1545_v20, 32.0  ;;  %v9500_v20 = vsub.f32 %v28579_v17, %v25526_v6  ;;  %v16237_v17 = vclamps-f32 %v1561_v0, 32.0  ;;  %v26069_v0 = vld [vmem:[%s22461_s25 + $0x28] sm:$0xff] }
 0x318   : > { %20237 = vmatprep.mubr.msk.bf16.mxu1 %vm20236_vm1, %v28312_v16  ;;  %vm11004_vm1 = vcmp.eq.f32.partialorder %v17613_v29, %v28552_v45  ;;  %vm19410_vm6 = vmpackc.low %vm3097_vm15, %vm3089_vm14  ;;  %v28578_v29 = vld [vmem:[#allocation49_spill] sm:$0xff]  ;;  %vm3130_vm15 = vcmp.eq.f32.partialorder %v16229_v7, %v28551_v34 }
 0x319   : > { %v9493_v21 = vsub.f32 %v28578_v29, %v25504_v2  ;;  %vm20242_vm7 = vmpackc.low %vm11004_vm1, %vm10996_vm0  ;;  %v9492_v32 = vsub.f32 %v28578_v29, %v25526_v6  ;;  %vm3122_vm14 = vcmp.eq.f32.partialorder %v16221_v48, %v28551_v34  ;;  %v16220_v48 = vclamps-f32 %v1544_v61, 32.0 }
 0x31a   : > { %vm19416_vm3 = vmpackc.low %vm3130_vm15, %vm3122_vm14  ;;  %v9508_v61 = vsub.f32 %v23639_v14, %v25526_v6 }
 0x31b   : > { %v17638_v28 = vclamps-f32 %v9493_v21, 32.0  ;;  %v1569_v21 = vsub.f32 %v28482_v38, %v25504_v2  ;;  %v17637_v7 = vclamps-f32 %v9492_v32, 32.0  ;;  %v1560_v2 = vsub.f32 %v23594_v9, %v25526_v6 }
 0x31d   : > { %19407 = vmatmul.mubr.msk.bf16.gmra.mrb[36].mxu0 %vm19406_vm8, %v28312_v16  ;;  %vm19412_vm8 = vmpackc.low %vm3114_vm4, %vm3106_vm2  ;;  %vm11029_vm1 = vcmp.eq.f32.partialorder %v17638_v28, %v28551_v34  ;;  %vm11037_vm2 = vcmp.eq.f32.partialorder %v17646_v49, %v28551_v34  ;;  %v16245_v28 = vclamps-f32 %v1569_v21, 32.0  ;;  %v17662_v49 = vclamps-f32 %v9517_v36, 32.0 }
 0x31e   : > { %19409 = vmatprep.mubr.msk.bf16.mxu0 %vm19408_vm12, %v28312_v16  ;;  %vm11012_vm12 = vcmp.eq.f32.partialorder %v17621_v27, %v28552_v45  ;;  %vm20248_vm5 = vmpackc.low %vm11037_vm2, %vm11029_vm1  ;;  %v1568_v27 = vsub.f32 %v28482_v38, %v25526_v6  ;;  %v16236_v32 = vclamps-f32 %v1560_v2, 32.0  ;;  %v1577_v21 = vsub.f32 %v23670_v59, %v26069_v0  ;;  %v28582_v6 = vld [vmem:[#allocation54_spill] sm:$0xff] }
 0x31f   : > { %20239 = vmatmul.mubr.msk.bf16.gmra.mrb[36].mxu1 %vm20238_vm11, %v28312_v16  ;;  %vm3113_vm11 = vcmp.eq.f32.partialorder %v16212_v62, %v28552_v45  ;;  %v17645_v62 = vclamps-f32 %v9500_v20, 32.0  ;;  %vm11053_vm14 = vcmp.eq.f32.partialorder %v17662_v49, %v28551_v34  ;;  %v17661_v2 = vclamps-f32 %v9516_v35, 32.0  ;;  %v21953_v49 = vld [vmem:[#allocation2 + $0x1f0] sm:$0xff]  }
 0x320   : > { %20241 = vmatprep.mubr.msk.bf16.mxu1 %vm20240_vm13, %v28312_v16  ;;  %vm11020_vm13 = vcmp.eq.f32.partialorder %v17629_v13, %v28552_v45  ;;  %vm19414_vm0 = vmpackc.low %vm3113_vm11, %vm3105_vm10  ;;  %v17654_v13 = vclamps-f32 %v9509_v50, 32.0  ;;  %vm3138_vm10 = vcmp.eq.f32.partialorder %v16237_v17, %v28551_v34  ;;  %vm3146_vm11 = vcmp.eq.f32.partialorder %v16245_v28, %v28551_v34  ;;  %v28580_v50 = vld [vmem:[#allocation52_spill] sm:$0xff]  ;;  %7795 = vmatpush1.bf16.msra.mxu0 %v21953_v49 }
 0x321   : > { %vm20246_vm4 = vmpackc.low %vm11020_vm13, %vm11012_vm12  ;;  %v16244_v20 = vclamps-f32 %v1568_v27, 32.0  ;;  %v1585_v36 = vsub.f32 %v28580_v50, %v26069_v0  ;;  %v17653_v28 = vclamps-f32 %v9508_v61, 32.0  ;;  %v16253_v27 = vclamps-f32 %v1577_v21, 32.0  ;;  %v26093_v61 = vld [vmem:[%s22461_s25 + $0x20] sm:$0xff]  ;;  %15312 = vmatpush1.bf16.msra.mxu1 %v21953_v49  ;;  %7796 = vmatprep.subr.bf16.mxu0 %v28314_v24 }
 0x322   : > { %vm11045_vm13 = vcmp.eq.f32.partialorder %v17654_v13, %v28551_v34  ;;  %vm3137_vm2 = vcmp.eq.f32.partialorder %v16236_v32, %v28552_v45  ;;  %v1576_v35 = vsub.f32 %v23670_v59, %v26093_v61  ;;  %v1584_v21 = vsub.f32 %v28580_v50, %v26093_v61  ;;  %15313 = vmatprep.subr.bf16.mxu1 %v28314_v24  ;;  %v28583_v49 = vld [vmem:[#allocation56_spill] sm:$0xff]  ;;  %v28584_v24 = vld [vmem:[#allocation59_spill] sm:$0xff] }
 0x323   : > { %vm20252_vm1 = vmpackc.low %vm11053_vm14, %vm11045_vm13  ;;  %v16261_v13 = vclamps-f32 %v1585_v36, 32.0 }
 0x324   : > { %v16260_v50 = vclamps-f32 %v1584_v21, 32.0  ;;  %v1600_v21 = vsub.f32 %v28583_v49, %v26093_v61 }
 0x325   : > { %19411 = vmatmul.mubr.msk.bf16.gmra.mrb[40].mxu0 %vm19410_vm6, %v28312_v16  ;;  %vm3121_vm6 = vcmp.eq.f32.partialorder %v16220_v48, %v28552_v45  ;;  %v28581_v48 = vld [vmem:[#allocation55_spill] sm:$0xff] }
 0x326   : > { %19413 = vmatprep.mubr.msk.bf16.mxu0 %vm19412_vm8, %v28312_v16  ;;  %vm11028_vm8 = vcmp.eq.f32.partialorder %v17637_v7, %v28552_v45  ;;  %v9524_v36 = vsub.f32 %v28581_v48, %v26093_v61 }
 0x327   : > { %20243 = vmatmul.mubr.msk.bf16.gmra.mrb[40].mxu1 %vm20242_vm7, %v28312_v16  ;;  %vm3129_vm7 = vcmp.eq.f32.partialorder %v16228_v58, %v28552_v45  ;;  %v9525_v58 = vsub.f32 %v28581_v48, %v26069_v0  ;;  %v16252_v48 = vclamps-f32 %v1576_v35, 32.0 }
 0x328   : > { %20245 = vmatprep.mubr.msk.bf16.mxu1 %vm20244_vm9, %v28312_v16  ;;  %vm11036_vm9 = vcmp.eq.f32.partialorder %v17645_v62, %v28552_v45  ;;  %vm19418_vm12 = vmpackc.low %vm3129_vm7, %vm3121_vm6  ;;  %v9533_v62 = vsub.f32 %v28582_v6, %v26069_v0  ;;  %vm3154_vm6 = vcmp.eq.f32.partialorder %v16253_v27, %v28551_v34  ;;  %vm3162_vm7 = vcmp.eq.f32.partialorder %v16261_v13, %v28551_v34  ;;  %v28585_v13 = vld [vmem:[#allocation58_spill] sm:$0xff] }
 0x329   : > { %vm20250_vm15 = vmpackc.low %vm11036_vm9, %vm11028_vm8  ;;  %v17670_v17 = vclamps-f32 %v9525_v58, 32.0  ;;  %v9532_v58 = vsub.f32 %v28582_v6, %v26093_v61  ;;  %v9541_v27 = vsub.f32 %v28584_v24, %v26069_v0  ;;  %v9549_v6 = vsub.f32 %v28585_v13, %v26069_v0 }
 0x32a   : > { %v17678_v7 = vclamps-f32 %v9533_v62, 32.0  ;;  %v1593_v62 = vsub.f32 %v23733_v33, %v26069_v0  ;;  %v17669_v32 = vclamps-f32 %v9524_v36, 32.0  ;;  %vm3153_vm14 = vcmp.eq.f32.partialorder %v16252_v48, %v28552_v45  ;;  %v28587_v48 = vld [vmem:[#allocation60_spill] sm:$0xff] }
 0x32b   : > { %vm11061_vm9 = vcmp.eq.f32.partialorder %v17670_v17, %v28551_v34  ;;  %v17677_v59 = vclamps-f32 %v9532_v58, 32.0  ;;  %v17694_v35 = vclamps-f32 %v9549_v6, 32.0  ;;  %v9540_v36 = vsub.f32 %v28584_v24, %v26093_v61 }
 0x32c   : > { %v9548_v58 = vsub.f32 %v28585_v13, %v26093_v61  ;;  %v16276_v24 = vclamps-f32 %v1600_v21, 32.0 }
 0x32d   : > { %19415 = vmatmul.mubr.msk.bf16.gmra.mrb[44].mxu0 %vm19414_vm0, %v28312_v16  ;;  %vm19420_vm0 = vmpackc.low %vm3146_vm11, %vm3138_vm10  ;;  %vm11069_vm10 = vcmp.eq.f32.partialorder %v17678_v7, %v28551_v34  ;;  %v1592_v7 = vsub.f32 %v23733_v33, %v26093_v61 }
 0x32e   : > { %19417 = vmatprep.mubr.msk.bf16.mxu0 %vm19416_vm3, %v28312_v16  ;;  %vm11044_vm3 = vcmp.eq.f32.partialorder %v17653_v28, %v28552_v45  ;;  %vm20256_vm13 = vmpackc.low %vm11069_vm10, %vm11061_vm9  ;;  %v17686_v28 = vclamps-f32 %v9541_v27, 32.0 }
 0x32f   : > { %20247 = vmatmul.mubr.msk.bf16.gmra.mrb[44].mxu1 %vm20246_vm4, %v28312_v16  ;;  %vm3145_vm4 = vcmp.eq.f32.partialorder %v16244_v20, %v28552_v45  ;;  %v16269_v20 = vclamps-f32 %v1593_v62, 32.0  ;;  %v28586_v62 = vld [vmem:[#allocation61_spill] sm:$0xff] }
 0x330   : > { %20249 = vmatprep.mubr.msk.bf16.mxu1 %vm20248_vm5, %v28312_v16  ;;  %vm11052_vm5 = vcmp.eq.f32.partialorder %v17661_v2, %v28552_v45  ;;  %v1601_v2 = vsub.f32 %v28583_v49, %v26069_v0  ;;  %vm19422_vm8 = vmpackc.low %vm3145_vm4, %vm3137_vm2  ;;  %v1609_v6 = vsub.f32 %v28586_v62, %v26069_v0  ;;  %v21954_v49 = vld [vmem:[#allocation2 + $0x1f8] sm:$0xff]  }
 0x331   : > { %vm20254_vm11 = vmpackc.low %vm11052_vm5, %vm11044_vm3  ;;  %vm3170_vm2 = vcmp.eq.f32.partialorder %v16269_v20, %v28551_v34  ;;  %vm11077_vm5 = vcmp.eq.f32.partialorder %v17686_v28, %v28551_v34  ;;  %v17685_v20 = vclamps-f32 %v9540_v36, 32.0  ;;  %7797 = vmatpush1.bf16.msra.mxu0 %v21954_v49  ;;  %15314 = vmatpush1.bf16.msra.mxu1 %v21954_v49  ;;  %v28592_v49 = vld [vmem:[#allocation67_spill] sm:$0xff] }
 0x332   : > { %v16277_v17 = vclamps-f32 %v1601_v2, 32.0  ;;  %v1617_v2 = vsub.f32 %v28587_v48, %v26069_v0 }
 0x334   : > { %vm3178_vm4 = vcmp.eq.f32.partialorder %v16277_v17, %v28551_v34  ;;  %v17693_v17 = vclamps-f32 %v9548_v58, 32.0  ;;  %v16293_v28 = vclamps-f32 %v1617_v2, 32.0  ;;  %v1616_v58 = vsub.f32 %v28587_v48, %v26093_v61  ;;  %v28591_v48 = vld [vmem:[#allocation64_spill] sm:$0xff] }
 0x335   : > { %19419 = vmatmul.mubr.msk.bf16.gmra.mrb[48].mxu0 %vm19418_vm12, %v28312_v16  ;;  %vm19424_vm12 = vmpackc.low %vm3162_vm7, %vm3154_vm6  ;;  %vm11085_vm6 = vcmp.eq.f32.partialorder %v17694_v35, %v28551_v34  ;;  %v1608_v35 = vsub.f32 %v28586_v62, %v26093_v61  ;;  %v1633_v62 = vsub.f32 %v28591_v48, %v26069_v0 }
 0x336   : > { %19421 = vmatprep.mubr.msk.bf16.mxu0 %vm19420_vm0, %v28312_v16  ;;  %vm11060_vm0 = vcmp.eq.f32.partialorder %v17669_v32, %v28552_v45  ;;  %v28589_v32 = vld [vmem:[#allocation62_spill] sm:$0xff]  ;;  %vm20260_vm9 = vmpackc.low %vm11085_vm6, %vm11077_vm5 }
 0x337   : > { %20251 = vmatmul.mubr.msk.bf16.gmra.mrb[48].mxu1 %vm20250_vm15, %v28312_v16  ;;  %vm3161_vm15 = vcmp.eq.f32.partialorder %v16260_v50, %v28552_v45  ;;  %v16268_v50 = vclamps-f32 %v1592_v7, 32.0  ;;  %v9565_v13 = vsub.f32 %v28589_v32, %v26069_v0  ;;  %v16285_v7 = vclamps-f32 %v1609_v6, 32.0 }
 0x338   : > { %20253 = vmatprep.mubr.msk.bf16.mxu1 %vm20252_vm1, %v28312_v16  ;;  %vm11068_vm1 = vcmp.eq.f32.partialorder %v17677_v59, %v28552_v45  ;;  %vm19426_vm3 = vmpackc.low %vm3161_vm15, %vm3153_vm14  ;;  %v28588_v59 = vld [vmem:[#allocation63_spill] sm:$0xff]  ;;  %v9564_v2 = vsub.f32 %v28589_v32, %v26093_v61  ;;  %vm3194_vm15 = vcmp.eq.f32.partialorder %v16293_v28, %v28551_v34 }
 0x339   : > { %v9557_v27 = vsub.f32 %v28588_v59, %v26069_v0  ;;  %vm20258_vm7 = vmpackc.low %vm11068_vm1, %vm11060_vm0  ;;  %vm3169_vm10 = vcmp.eq.f32.partialorder %v16268_v50, %v28552_v45  ;;  %v17710_v36 = vclamps-f32 %v9565_v13, 32.0  ;;  %vm3186_vm14 = vcmp.eq.f32.partialorder %v16285_v7, %v28551_v34  ;;  %v28590_v13 = vld [vmem:[#allocation65_spill] sm:$0xff]  ;;  %v28593_v7 = vld [vmem:[#allocation66_spill] sm:$0xff] }
 0x33a   : > { %v9556_v6 = vsub.f32 %v28588_v59, %v26093_v61  ;;  %v9581_v28 = vsub.f32 %v28593_v7, %v26069_v0  ;;  %v17709_v59 = vclamps-f32 %v9564_v2, 32.0  ;;  %v9572_v2 = vsub.f32 %v28592_v49, %v26093_v61 }
 0x33b   : > { %v17702_v21 = vclamps-f32 %v9557_v27, 32.0  ;;  %v1625_v27 = vsub.f32 %v28590_v13, %v26069_v0 }
 0x33c   : > { %v17701_v32 = vclamps-f32 %v9556_v6, 32.0  ;;  %v1632_v6 = vsub.f32 %v28591_v48, %v26093_v61 }
 0x33d   : > { %19423 = vmatmul.mubr.msk.bf16.gmra.mrb[52].mxu0 %vm19422_vm8, %v28312_v16  ;;  %vm19428_vm8 = vmpackc.low %vm3178_vm4, %vm3170_vm2  ;;  %vm11093_vm1 = vcmp.eq.f32.partialorder %v17702_v21, %v28551_v34  ;;  %vm11101_vm2 = vcmp.eq.f32.partialorder %v17710_v36, %v28551_v34  ;;  %v16301_v50 = vclamps-f32 %v1625_v27, 32.0  ;;  %v16309_v21 = vclamps-f32 %v1633_v62, 32.0 }
 0x33e   : > { %19425 = vmatprep.mubr.msk.bf16.mxu0 %vm19424_vm12, %v28312_v16  ;;  %vm11076_vm12 = vcmp.eq.f32.partialorder %v17685_v20, %v28552_v45  ;;  %vm20264_vm5 = vmpackc.low %vm11101_vm2, %vm11093_vm1  ;;  %v17726_v20 = vclamps-f32 %v9581_v28, 32.0  ;;  %v9580_v62 = vsub.f32 %v28593_v7, %v26093_v61  ;;  %v16308_v48 = vclamps-f32 %v1632_v6, 32.0 }
 0x33f   : > { %20255 = vmatmul.mubr.msk.bf16.gmra.mrb[52].mxu1 %vm20254_vm11, %v28312_v16  ;;  %vm3177_vm11 = vcmp.eq.f32.partialorder %v16276_v24, %v28552_v45  ;;  %v16284_v24 = vclamps-f32 %v1608_v35, 32.0  ;;  %v16292_v35 = vclamps-f32 %v1616_v58, 32.0  ;;  %v1624_v58 = vsub.f32 %v28590_v13, %v26093_v61 }
 0x340   : > { %20257 = vmatprep.mubr.msk.bf16.mxu1 %vm20256_vm13, %v28312_v16  ;;  %vm11084_vm13 = vcmp.eq.f32.partialorder %v17693_v17, %v28552_v45  ;;  %vm19430_vm0 = vmpackc.low %vm3177_vm11, %vm3169_vm10  ;;  %v9573_v17 = vsub.f32 %v28592_v49, %v26069_v0  ;;  %vm3202_vm10 = vcmp.eq.f32.partialorder %v16301_v50, %v28551_v34  ;;  %vm3210_vm11 = vcmp.eq.f32.partialorder %v16309_v21, %v28551_v34 }
 0x341   : > { %vm20262_vm4 = vmpackc.low %vm11084_vm13, %vm11076_vm12  ;;  %vm3185_vm6 = vcmp.eq.f32.partialorder %v16284_v24, %v28552_v45  ;;  %v28594_v24 = vld [vmem:[#allocation69_spill] sm:$0xff]  ;;  %v16300_v49 = vclamps-f32 %v1624_v58, 32.0  ;;  %v17717_v50 = vclamps-f32 %v9572_v2, 32.0  ;;  %v17725_v21 = vclamps-f32 %v9580_v62, 32.0 }
 0x342   : > { %v17718_v36 = vclamps-f32 %v9573_v17, 32.0  ;;  %v1641_v27 = vsub.f32 %v28594_v24, %v26069_v0  ;;  %v28595_v17 = vld [vmem:[#allocation68_spill] sm:$0xff] }
 0x343   : > { %v1649_v28 = vsub.f32 %v28595_v17, %v26069_v0  ;;  %vm3201_vm2 = vcmp.eq.f32.partialorder %v16300_v49, %v28552_v45  ;;  %v1648_v6 = vsub.f32 %v28595_v17, %v26093_v61 }
 0x344   : > { %vm11109_vm13 = vcmp.eq.f32.partialorder %v17718_v36, %v28551_v34  ;;  %v16317_v13 = vclamps-f32 %v1641_v27, 32.0  ;;  %v28599_v27 = vld [vmem:[#allocation72_spill] sm:$0xff] }
 0x345   : > { %19427 = vmatmul.mubr.msk.bf16.gmra.mrb[56].mxu0 %vm19426_vm3, %v28312_v16  ;;  %vm19432_vm3 = vmpackc.low %vm3194_vm15, %vm3186_vm14  ;;  %vm11117_vm14 = vcmp.eq.f32.partialorder %v17726_v20, %v28551_v34  ;;  %v16325_v36 = vclamps-f32 %v1649_v28, 32.0  ;;  %v1640_v20 = vsub.f32 %v28594_v24, %v26093_v61  ;;  %v1665_v28 = vsub.f32 %v28599_v27, %v26069_v0 }
 0x346   : > { %19429 = vmatprep.mubr.msk.bf16.mxu0 %vm19428_vm8, %v28312_v16  ;;  %vm11092_vm8 = vcmp.eq.f32.partialorder %v17701_v32, %v28552_v45  ;;  %vm20268_vm1 = vmpackc.low %vm11117_vm14, %vm11109_vm13 }
 0x347   : > { %20259 = vmatmul.mubr.msk.bf16.gmra.mrb[56].mxu1 %vm20258_vm7, %v28312_v16  ;;  %vm3193_vm7 = vcmp.eq.f32.partialorder %v16292_v35, %v28552_v45  ;;  %v28597_v35 = vld [vmem:[#allocation70_spill] sm:$0xff]  ;;  %v16316_v49 = vclamps-f32 %v1640_v20, 32.0 }
 0x348   : > { %20261 = vmatprep.mubr.msk.bf16.mxu1 %vm20260_vm9, %v28312_v16  ;;  %vm11100_vm9 = vcmp.eq.f32.partialorder %v17709_v59, %v28552_v45  ;;  %vm19434_vm12 = vmpackc.low %vm3193_vm7, %vm3185_vm6  ;;  %v28596_v59 = vld [vmem:[#allocation71_spill] sm:$0xff]  ;;  %v9597_v7 = vsub.f32 %v28597_v35, %v26069_v0  ;;  %vm3218_vm6 = vcmp.eq.f32.partialorder %v16317_v13, %v28551_v34  ;;  %v9596_v62 = vsub.f32 %v28597_v35, %v26093_v61 }
 0x349   : > { %v9589_v32 = vsub.f32 %v28596_v59, %v26069_v0  ;;  %vm20266_vm15 = vmpackc.low %vm11100_vm9, %vm11092_vm8  ;;  %v9588_v2 = vsub.f32 %v28596_v59, %v26093_v61  ;;  %vm3226_vm7 = vcmp.eq.f32.partialorder %v16325_v36, %v28551_v34  ;;  %v28600_v13 = vld [vmem:[#allocation75_spill] sm:$0xff]  ;;  %v16324_v36 = vclamps-f32 %v1648_v6, 32.0 }
 0x34a   : > { %v17742_v58 = vclamps-f32 %v9597_v7, 32.0  ;;  %v17741_v59 = vclamps-f32 %v9596_v62, 32.0  ;;  %vm3217_vm14 = vcmp.eq.f32.partialorder %v16316_v49, %v28552_v45  ;;  %v9604_v62 = vsub.f32 %v28600_v13, %v26093_v61 }
 0x34b   : > { %v17734_v33 = vclamps-f32 %v9589_v32, 32.0  ;;  %v9605_v32 = vsub.f32 %v28600_v13, %v26069_v0  ;;  %v17733_v20 = vclamps-f32 %v9588_v2, 32.0  ;;  %v1664_v2 = vsub.f32 %v28599_v27, %v26093_v61 }
 0x34d   : > { %19431 = vmatmul.mubr.msk.bf16.gmra.mrb[60].mxu0 %vm19430_vm0, %v28312_v16  ;;  %vm19436_vm0 = vmpackc.low %vm3210_vm11, %vm3202_vm10  ;;  %vm11125_vm9 = vcmp.eq.f32.partialorder %v17734_v33, %v28551_v34  ;;  %vm11133_vm10 = vcmp.eq.f32.partialorder %v17742_v58, %v28551_v34  ;;  %v16341_v58 = vclamps-f32 %v1665_v28, 32.0  ;;  %v17750_v17 = vclamps-f32 %v9605_v32, 32.0  ;;  %v28603_v28 = vld [vmem:[#allocation76_spill] sm:$0xff] }
 0x34e   : > { %19433 = vmatprep.mubr.msk.bf16.mxu0 %vm19432_vm3, %v28312_v16  ;;  %vm11108_vm3 = vcmp.eq.f32.partialorder %v17717_v50, %v28552_v45  ;;  %vm20272_vm13 = vmpackc.low %vm11133_vm10, %vm11125_vm9  ;;  %v1681_v32 = vsub.f32 %v28603_v28, %v26069_v0  ;;  %v16340_v27 = vclamps-f32 %v1664_v2, 32.0  ;;  %v1680_v2 = vsub.f32 %v28603_v28, %v26093_v61 }
 0x34f   : > { %20263 = vmatmul.mubr.msk.bf16.gmra.mrb[60].mxu1 %vm20262_vm4, %v28312_v16  ;;  %vm3209_vm4 = vcmp.eq.f32.partialorder %v16308_v48, %v28552_v45  ;;  %v28598_v48 = vld [vmem:[#allocation73_spill] sm:$0xff] }
 0x350   : > { %20265 = vmatprep.mubr.msk.bf16.mxu1 %vm20264_vm5, %v28312_v16  ;;  %vm11116_vm5 = vcmp.eq.f32.partialorder %v17725_v21, %v28552_v45  ;;  %v1657_v7 = vsub.f32 %v28598_v48, %v26069_v0  ;;  %vm19438_vm8 = vmpackc.low %vm3209_vm4, %vm3201_vm2  ;;  %v28601_v21 = vld [vmem:[#allocation74_spill] sm:$0xff]  ;;  %v1656_v6 = vsub.f32 %v28598_v48, %v26093_v61  ;;  %vm3242_vm4 = vcmp.eq.f32.partialorder %v16341_v58, %v28551_v34 }
 0x351   : > { %v9613_v35 = vsub.f32 %v28601_v21, %v26069_v0  ;;  %vm20270_vm11 = vmpackc.low %vm11116_vm5, %vm11108_vm3  ;;  %v9612_v49 = vsub.f32 %v28601_v21, %v26093_v61  ;;  %vm11141_vm5 = vcmp.eq.f32.partialorder %v17750_v17, %v28551_v34  ;;  %v16357_v17 = vclamps-f32 %v1681_v32, 32.0 }
 0x352   : > { %v16333_v33 = vclamps-f32 %v1657_v7, 32.0  ;;  %v16332_v13 = vclamps-f32 %v1656_v6, 32.0 }
 0x353   : > { %v17758_v50 = vclamps-f32 %v9613_v35, 32.0  ;;  %v28602_v35 = vld [vmem:[#allocation77_spill] sm:$0xff]  ;;  %v17757_v58 = vclamps-f32 %v9612_v49, 32.0 }
 0x354   : > { %v1673_v7 = vsub.f32 %v28602_v35, %v26069_v0  ;;  %vm3234_vm2 = vcmp.eq.f32.partialorder %v16333_v33, %v28551_v34  ;;  %v17749_v33 = vclamps-f32 %v9604_v62, 32.0  ;;  %vm3233_vm10 = vcmp.eq.f32.partialorder %v16332_v13, %v28552_v45 }
 0x355   : > { %19435 = vmatmul.mubr.msk.bf16.gmra.mrb[64].mxu0 %vm19434_vm12, %v28312_v16  ;;  %vm19440_vm12 = vmpackc.low %vm3226_vm7, %vm3218_vm6  ;;  %vm11149_vm6 = vcmp.eq.f32.partialorder %v17758_v50, %v28551_v34  ;;  %v1672_v50 = vsub.f32 %v28602_v35, %v26093_v61 }
 0x356   : > { %19437 = vmatprep.mubr.msk.bf16.mxu0 %vm19436_vm0, %v28312_v16  ;;  %vm11124_vm0 = vcmp.eq.f32.partialorder %v17733_v20, %v28552_v45  ;;  %v28605_v20 = vld [vmem:[#allocation78_spill] sm:$0xff]  ;;  %v16349_v48 = vclamps-f32 %v1673_v7, 32.0  ;;  %vm20276_vm9 = vmpackc.low %vm11149_vm6, %vm11141_vm5  ;;  %v28607_v7 = vld [vmem:[#allocation80_spill] sm:$0xff] }
 0x357   : > { %20267 = vmatmul.mubr.msk.bf16.gmra.mrb[64].mxu1 %vm20266_vm15, %v28312_v16  ;;  %vm3225_vm15 = vcmp.eq.f32.partialorder %v16324_v36, %v28552_v45  ;;  %v9629_v21 = vsub.f32 %v28605_v20, %v26069_v0  ;;  %v9628_v49 = vsub.f32 %v28605_v20, %v26093_v61  ;;  %v16348_v13 = vclamps-f32 %v1672_v50, 32.0 }
 0x358   : > { %20269 = vmatprep.mubr.msk.bf16.mxu1 %vm20268_vm1, %v28312_v16  ;;  %vm11132_vm1 = vcmp.eq.f32.partialorder %v17741_v59, %v28552_v45  ;;  %vm19442_vm3 = vmpackc.low %vm3225_vm15, %vm3217_vm14  ;;  %v28604_v59 = vld [vmem:[#allocation79_spill] sm:$0xff]  ;;  %vm3250_vm14 = vcmp.eq.f32.partialorder %v16349_v48, %v28551_v34  ;;  %vm3258_vm15 = vcmp.eq.f32.partialorder %v16357_v17, %v28551_v34  ;;  %v1697_v32 = vsub.f32 %v28607_v7, %v26069_v0 }
 0x359   : > { %v9621_v36 = vsub.f32 %v28604_v59, %v26069_v0  ;;  %vm20274_vm7 = vmpackc.low %vm11132_vm1, %vm11124_vm0  ;;  %v17774_v6 = vclamps-f32 %v9629_v21, 32.0  ;;  %v9620_v62 = vsub.f32 %v28604_v59, %v26093_v61  ;;  %v28608_v48 = vld [vmem:[#allocation83_spill] sm:$0xff]  ;;  %v16356_v17 = vclamps-f32 %v1680_v2, 32.0 }
 0x35a   : > { %v17773_v59 = vclamps-f32 %v9628_v49, 32.0  ;;  %vm3249_vm6 = vcmp.eq.f32.partialorder %v16348_v13, %v28552_v45  ;;  %v9636_v49 = vsub.f32 %v28608_v48, %v26093_v61 }
 0x35b   : > { %v17766_v24 = vclamps-f32 %v9621_v36, 32.0  ;;  %v9637_v36 = vsub.f32 %v28608_v48, %v26069_v0  ;;  %v17765_v50 = vclamps-f32 %v9620_v62, 32.0  ;;  %v1696_v62 = vsub.f32 %v28607_v7, %v26093_v61 }
 0x35d   : > { %19439 = vmatmul.mubr.msk.bf16.gmra.mrb[68].mxu0 %vm19438_vm8, %v28312_v16  ;;  %vm19444_vm8 = vmpackc.low %vm3242_vm4, %vm3234_vm2  ;;  %vm11157_vm1 = vcmp.eq.f32.partialorder %v17766_v24, %v28551_v34  ;;  %vm11165_vm2 = vcmp.eq.f32.partialorder %v17774_v6, %v28551_v34  ;;  %v16373_v6 = vclamps-f32 %v1697_v32, 32.0  ;;  %v17782_v28 = vclamps-f32 %v9637_v36, 32.0  ;;  %v28611_v32 = vld [vmem:[#allocation84_spill] sm:$0xff] }
 0x35e   : > { %19441 = vmatprep.mubr.msk.bf16.mxu0 %vm19440_vm12, %v28312_v16  ;;  %vm11140_vm12 = vcmp.eq.f32.partialorder %v17749_v33, %v28552_v45  ;;  %vm20280_vm5 = vmpackc.low %vm11165_vm2, %vm11157_vm1  ;;  %v1713_v36 = vsub.f32 %v28611_v32, %v26069_v0  ;;  %v16372_v7 = vclamps-f32 %v1696_v62, 32.0  ;;  %v1712_v62 = vsub.f32 %v28611_v32, %v26093_v61 }
 0x35f   : > { %20271 = vmatmul.mubr.msk.bf16.gmra.mrb[68].mxu1 %vm20270_vm11, %v28312_v16  ;;  %vm3241_vm11 = vcmp.eq.f32.partialorder %v16340_v27, %v28552_v45  ;;  %v28606_v27 = vld [vmem:[#allocation81_spill] sm:$0xff] }
 0x360   : > { %20273 = vmatprep.mubr.msk.bf16.mxu1 %vm20272_vm13, %v28312_v16  ;;  %vm11148_vm13 = vcmp.eq.f32.partialorder %v17757_v58, %v28552_v45  ;;  %v1689_v21 = vsub.f32 %v28606_v27, %v26069_v0  ;;  %vm19446_vm0 = vmpackc.low %vm3241_vm11, %vm3233_vm10  ;;  %v28609_v58 = vld [vmem:[#allocation82_spill] sm:$0xff]  ;;  %v1688_v2 = vsub.f32 %v28606_v27, %v26093_v61  ;;  %vm3274_vm11 = vcmp.eq.f32.partialorder %v16373_v6, %v28551_v34 }
 0x361   : > { %v9645_v20 = vsub.f32 %v28609_v58, %v26069_v0  ;;  %vm20278_vm4 = vmpackc.low %vm11148_vm13, %vm11140_vm12  ;;  %v9644_v13 = vsub.f32 %v28609_v58, %v26093_v61  ;;  %vm11173_vm13 = vcmp.eq.f32.partialorder %v17782_v28, %v28551_v34  ;;  %v16389_v28 = vclamps-f32 %v1713_v36, 32.0 }
 0x362   : > { %v16365_v24 = vclamps-f32 %v1689_v21, 32.0  ;;  %v16364_v48 = vclamps-f32 %v1688_v2, 32.0 }
 0x363   : > { %v17790_v33 = vclamps-f32 %v9645_v20, 32.0  ;;  %v28610_v20 = vld [vmem:[#allocation85_spill] sm:$0xff]  ;;  %v17789_v6 = vclamps-f32 %v9644_v13, 32.0 }
 0x364   : > { %v1705_v21 = vsub.f32 %v28610_v20, %v26069_v0  ;;  %vm3266_vm10 = vcmp.eq.f32.partialorder %v16365_v24, %v28551_v34  ;;  %v17781_v24 = vclamps-f32 %v9636_v49, 32.0  ;;  %vm3265_vm2 = vcmp.eq.f32.partialorder %v16364_v48, %v28552_v45 }
 0x365   : > { %19443 = vmatmul.mubr.msk.bf16.gmra.mrb[72].mxu0 %vm19442_vm3, %v28312_v16  ;;  %vm19448_vm3 = vmpackc.low %vm3258_vm15, %vm3250_vm14  ;;  %vm11181_vm14 = vcmp.eq.f32.partialorder %v17790_v33, %v28551_v34  ;;  %v1704_v33 = vsub.f32 %v28610_v20, %v26093_v61 }
 0x366   : > { %19445 = vmatprep.mubr.msk.bf16.mxu0 %vm19444_vm8, %v28312_v16  ;;  %vm11156_vm8 = vcmp.eq.f32.partialorder %v17765_v50, %v28552_v45  ;;  %v28613_v50 = vld [vmem:[#allocation86_spill] sm:$0xff]  ;;  %v16381_v27 = vclamps-f32 %v1705_v21, 32.0  ;;  %vm20284_vm1 = vmpackc.low %vm11181_vm14, %vm11173_vm13  ;;  %v28615_v21 = vld [vmem:[#allocation88_spill] sm:$0xff] }
 0x367   : > { %20275 = vmatmul.mubr.msk.bf16.gmra.mrb[72].mxu1 %vm20274_vm7, %v28312_v16  ;;  %vm3257_vm7 = vcmp.eq.f32.partialorder %v16356_v17, %v28552_v45  ;;  %v9661_v58 = vsub.f32 %v28613_v50, %v26069_v0  ;;  %v9660_v13 = vsub.f32 %v28613_v50, %v26093_v61  ;;  %v16380_v48 = vclamps-f32 %v1704_v33, 32.0 }
 0x368   : > { %20277 = vmatprep.mubr.msk.bf16.mxu1 %vm20276_vm9, %v28312_v16  ;;  %vm11164_vm9 = vcmp.eq.f32.partialorder %v17773_v59, %v28552_v45  ;;  %vm19450_vm12 = vmpackc.low %vm3257_vm7, %vm3249_vm6  ;;  %v28612_v59 = vld [vmem:[#allocation87_spill] sm:$0xff]  ;;  %vm3282_vm6 = vcmp.eq.f32.partialorder %v16381_v27, %v28551_v34  ;;  %vm3290_vm7 = vcmp.eq.f32.partialorder %v16389_v28, %v28551_v34  ;;  %v1729_v36 = vsub.f32 %v28615_v21, %v26069_v0 }
 0x369   : > { %v9653_v17 = vsub.f32 %v28612_v59, %v26069_v0  ;;  %vm20282_vm15 = vmpackc.low %vm11164_vm9, %vm11156_vm8  ;;  %v17806_v2 = vclamps-f32 %v9661_v58, 32.0  ;;  %v9652_v49 = vsub.f32 %v28612_v59, %v26093_v61  ;;  %v28616_v27 = vld [vmem:[#allocation91_spill] sm:$0xff]  ;;  %v16388_v28 = vclamps-f32 %v1712_v62, 32.0 }
 0x36a   : > { %v17805_v59 = vclamps-f32 %v9660_v13, 32.0  ;;  %vm3281_vm14 = vcmp.eq.f32.partialorder %v16380_v48, %v28552_v45  ;;  %v9668_v13 = vsub.f32 %v28616_v27, %v26093_v61 }
 0x36b   : > { %v17798_v35 = vclamps-f32 %v9653_v17, 32.0  ;;  %v9669_v17 = vsub.f32 %v28616_v27, %v26069_v0  ;;  %v17797_v33 = vclamps-f32 %v9652_v49, 32.0  ;;  %v1728_v49 = vsub.f32 %v28615_v21, %v26093_v61 }
 0x36d   : > { %19447 = vmatmul.mubr.msk.bf16.gmra.mrb[76].mxu0 %vm19446_vm0, %v28312_v16  ;;  %vm19452_vm0 = vmpackc.low %vm3274_vm11, %vm3266_vm10  ;;  %vm11189_vm9 = vcmp.eq.f32.partialorder %v17798_v35, %v28551_v34  ;;  %vm11197_vm10 = vcmp.eq.f32.partialorder %v17806_v2, %v28551_v34  ;;  %v16405_v2 = vclamps-f32 %v1729_v36, 32.0  ;;  %v17814_v32 = vclamps-f32 %v9669_v17, 32.0  ;;  %v28619_v36 = vld [vmem:[#allocation92_spill] sm:$0xff] }
 0x36e   : > { %19449 = vmatprep.mubr.msk.bf16.mxu0 %vm19448_vm3, %v28312_v16  ;;  %vm11172_vm3 = vcmp.eq.f32.partialorder %v17781_v24, %v28552_v45  ;;  %vm20288_vm13 = vmpackc.low %vm11197_vm10, %vm11189_vm9  ;;  %v1745_v17 = vsub.f32 %v28619_v36, %v26069_v0  ;;  %v16404_v21 = vclamps-f32 %v1728_v49, 32.0  ;;  %v1744_v49 = vsub.f32 %v28619_v36, %v26093_v61 }
 0x36f   : > { %20279 = vmatmul.mubr.msk.bf16.gmra.mrb[76].mxu1 %vm20278_vm4, %v28312_v16  ;;  %vm3273_vm4 = vcmp.eq.f32.partialorder %v16372_v7, %v28552_v45  ;;  %v28614_v7 = vld [vmem:[#allocation89_spill] sm:$0xff] }
 0x370   : > { %20281 = vmatprep.mubr.msk.bf16.mxu1 %vm20280_vm5, %v28312_v16  ;;  %vm11180_vm5 = vcmp.eq.f32.partialorder %v17789_v6, %v28552_v45  ;;  %v1721_v58 = vsub.f32 %v28614_v7, %v26069_v0  ;;  %vm19454_vm8 = vmpackc.low %vm3273_vm4, %vm3265_vm2  ;;  %v28617_v6 = vld [vmem:[#allocation90_spill] sm:$0xff]  ;;  %v1720_v62 = vsub.f32 %v28614_v7, %v26093_v61  ;;  %vm3306_vm4 = vcmp.eq.f32.partialorder %v16405_v2, %v28551_v34 }
 0x371   : > { %v9677_v50 = vsub.f32 %v28617_v6, %v26069_v0  ;;  %vm20286_vm11 = vmpackc.low %vm11180_vm5, %vm11172_vm3  ;;  %v9676_v48 = vsub.f32 %v28617_v6, %v26093_v61  ;;  %vm11205_vm5 = vcmp.eq.f32.partialorder %v17814_v32, %v28551_v34  ;;  %v16421_v32 = vclamps-f32 %v1745_v17, 32.0 }
 0x372   : > { %v16397_v35 = vclamps-f32 %v1721_v58, 32.0  ;;  %v16396_v27 = vclamps-f32 %v1720_v62, 32.0 }
 0x373   : > { %v17822_v24 = vclamps-f32 %v9677_v50, 32.0  ;;  %v28618_v50 = vld [vmem:[#allocation93_spill] sm:$0xff]  ;;  %v17821_v2 = vclamps-f32 %v9676_v48, 32.0 }
 0x374   : > { %v1737_v58 = vsub.f32 %v28618_v50, %v26069_v0  ;;  %vm3298_vm2 = vcmp.eq.f32.partialorder %v16397_v35, %v28551_v34  ;;  %v17813_v35 = vclamps-f32 %v9668_v13, 32.0  ;;  %vm3297_vm10 = vcmp.eq.f32.partialorder %v16396_v27, %v28552_v45 }
 0x375   : > { %19451 = vmatmul.mubr.msk.bf16.gmra.mrb[80].mxu0 %vm19450_vm12, %v28312_v16  ;;  %vm19456_vm12 = vmpackc.low %vm3290_vm7, %vm3282_vm6  ;;  %vm11213_vm6 = vcmp.eq.f32.partialorder %v17822_v24, %v28551_v34  ;;  %v1736_v24 = vsub.f32 %v28618_v50, %v26093_v61 }
 0x376   : > { %19453 = vmatprep.mubr.msk.bf16.mxu0 %vm19452_vm0, %v28312_v16  ;;  %vm11188_vm0 = vcmp.eq.f32.partialorder %v17797_v33, %v28552_v45  ;;  %v28621_v33 = vld [vmem:[#allocation94_spill] sm:$0xff]  ;;  %v16413_v7 = vclamps-f32 %v1737_v58, 32.0  ;;  %vm20292_vm9 = vmpackc.low %vm11213_vm6, %vm11205_vm5  ;;  %v28623_v58 = vld [vmem:[#allocation96_spill] sm:$0xff] }
 0x377   : > { %20283 = vmatmul.mubr.msk.bf16.gmra.mrb[80].mxu1 %vm20282_vm15, %v28312_v16  ;;  %vm3289_vm15 = vcmp.eq.f32.partialorder %v16388_v28, %v28552_v45  ;;  %v9693_v6 = vsub.f32 %v28621_v33, %v26069_v0  ;;  %v9692_v48 = vsub.f32 %v28621_v33, %v26093_v61  ;;  %v16412_v27 = vclamps-f32 %v1736_v24, 32.0 }
 0x378   : > { %20285 = vmatprep.mubr.msk.bf16.mxu1 %vm20284_vm1, %v28312_v16  ;;  %vm11196_vm1 = vcmp.eq.f32.partialorder %v17805_v59, %v28552_v45  ;;  %vm19458_vm3 = vmpackc.low %vm3289_vm15, %vm3281_vm14  ;;  %v28620_v59 = vld [vmem:[#allocation95_spill] sm:$0xff]  ;;  %vm3314_vm14 = vcmp.eq.f32.partialorder %v16413_v7, %v28551_v34  ;;  %vm3322_vm15 = vcmp.eq.f32.partialorder %v16421_v32, %v28551_v34  ;;  %v1761_v17 = vsub.f32 %v28623_v58, %v26069_v0 }
 0x379   : > { %v9685_v28 = vsub.f32 %v28620_v59, %v26069_v0  ;;  %vm20290_vm7 = vmpackc.low %vm11196_vm1, %vm11188_vm0  ;;  %v17838_v62 = vclamps-f32 %v9693_v6, 32.0  ;;  %v9684_v13 = vsub.f32 %v28620_v59, %v26093_v61  ;;  %v28624_v7 = vld [vmem:[#allocation99_spill] sm:$0xff]  ;;  %v16420_v32 = vclamps-f32 %v1744_v49, 32.0 }
 0x37a   : > { %v17837_v59 = vclamps-f32 %v9692_v48, 32.0  ;;  %vm3313_vm6 = vcmp.eq.f32.partialorder %v16412_v27, %v28552_v45  ;;  %v9700_v48 = vsub.f32 %v28624_v7, %v26093_v61 }
 0x37b   : > { %v17830_v20 = vclamps-f32 %v9685_v28, 32.0  ;;  %v9701_v28 = vsub.f32 %v28624_v7, %v26069_v0  ;;  %v17829_v24 = vclamps-f32 %v9684_v13, 32.0  ;;  %v1760_v13 = vsub.f32 %v28623_v58, %v26093_v61 }
 0x37d   : > { %19455 = vmatmul.mubr.msk.bf16.gmra.mrb[84].mxu0 %vm19454_vm8, %v28312_v16  ;;  %vm19460_vm8 = vmpackc.low %vm3306_vm4, %vm3298_vm2  ;;  %vm11221_vm1 = vcmp.eq.f32.partialorder %v17830_v20, %v28551_v34  ;;  %vm11229_vm2 = vcmp.eq.f32.partialorder %v17838_v62, %v28551_v34  ;;  %v16437_v62 = vclamps-f32 %v1761_v17, 32.0  ;;  %v17846_v36 = vclamps-f32 %v9701_v28, 32.0  ;;  %v28627_v17 = vld [vmem:[#allocation100_spill] sm:$0xff] }
 0x37e   : > { %19457 = vmatprep.mubr.msk.bf16.mxu0 %vm19456_vm12, %v28312_v16  ;;  %vm11204_vm12 = vcmp.eq.f32.partialorder %v17813_v35, %v28552_v45  ;;  %vm20296_vm5 = vmpackc.low %vm11229_vm2, %vm11221_vm1  ;;  %v1777_v28 = vsub.f32 %v28627_v17, %v26069_v0  ;;  %v16436_v58 = vclamps-f32 %v1760_v13, 32.0  ;;  %v1776_v13 = vsub.f32 %v28627_v17, %v26093_v61 }
 0x37f   : > { %20287 = vmatmul.mubr.msk.bf16.gmra.mrb[84].mxu1 %vm20286_vm11, %v28312_v16  ;;  %vm3305_vm11 = vcmp.eq.f32.partialorder %v16404_v21, %v28552_v45  ;;  %v28622_v21 = vld [vmem:[#allocation97_spill] sm:$0xff] }
 0x380   : > { %20289 = vmatprep.mubr.msk.bf16.mxu1 %vm20288_vm13, %v28312_v16  ;;  %vm11212_vm13 = vcmp.eq.f32.partialorder %v17821_v2, %v28552_v45  ;;  %v1753_v6 = vsub.f32 %v28622_v21, %v26069_v0  ;;  %vm19462_vm0 = vmpackc.low %vm3305_vm11, %vm3297_vm10  ;;  %v28625_v2 = vld [vmem:[#allocation98_spill] sm:$0xff]  ;;  %v1752_v49 = vsub.f32 %v28622_v21, %v26093_v61  ;;  %vm3338_vm11 = vcmp.eq.f32.partialorder %v16437_v62, %v28551_v34 }
 0x381   : > { %v9709_v33 = vsub.f32 %v28625_v2, %v26069_v0  ;;  %vm20294_vm4 = vmpackc.low %vm11212_vm13, %vm11204_vm12  ;;  %v9708_v27 = vsub.f32 %v28625_v2, %v26093_v61  ;;  %vm11237_vm13 = vcmp.eq.f32.partialorder %v17846_v36, %v28551_v34  ;;  %v16453_v36 = vclamps-f32 %v1777_v28, 32.0 }
 0x382   : > { %v16429_v20 = vclamps-f32 %v1753_v6, 32.0  ;;  %v16428_v7 = vclamps-f32 %v1752_v49, 32.0 }
 0x383   : > { %v17854_v35 = vclamps-f32 %v9709_v33, 32.0  ;;  %v28626_v33 = vld [vmem:[#allocation101_spill] sm:$0xff]  ;;  %v17853_v62 = vclamps-f32 %v9708_v27, 32.0 }
 0x384   : > { %v1769_v6 = vsub.f32 %v28626_v33, %v26069_v0  ;;  %vm3330_vm10 = vcmp.eq.f32.partialorder %v16429_v20, %v28551_v34  ;;  %v17845_v20 = vclamps-f32 %v9700_v48, 32.0  ;;  %vm3329_vm2 = vcmp.eq.f32.partialorder %v16428_v7, %v28552_v45 }
 0x385   : > { %19459 = vmatmul.mubr.msk.bf16.gmra.mrb[88].mxu0 %vm19458_vm3, %v28312_v16  ;;  %vm19464_vm3 = vmpackc.low %vm3322_vm15, %vm3314_vm14  ;;  %vm11245_vm14 = vcmp.eq.f32.partialorder %v17854_v35, %v28551_v34  ;;  %v1768_v35 = vsub.f32 %v28626_v33, %v26093_v61 }
 0x386   : > { %19461 = vmatprep.mubr.msk.bf16.mxu0 %vm19460_vm8, %v28312_v16  ;;  %vm11220_vm8 = vcmp.eq.f32.partialorder %v17829_v24, %v28552_v45  ;;  %v28629_v24 = vld [vmem:[#allocation102_spill] sm:$0xff]  ;;  %v16445_v21 = vclamps-f32 %v1769_v6, 32.0  ;;  %vm20300_vm1 = vmpackc.low %vm11245_vm14, %vm11237_vm13  ;;  %v28631_v6 = vld [vmem:[#allocation104_spill] sm:$0xff] }
 0x387   : > { %20291 = vmatmul.mubr.msk.bf16.gmra.mrb[88].mxu1 %vm20290_vm7, %v28312_v16  ;;  %vm3321_vm7 = vcmp.eq.f32.partialorder %v16420_v32, %v28552_v45  ;;  %v9725_v2 = vsub.f32 %v28629_v24, %v26069_v0  ;;  %v9724_v27 = vsub.f32 %v28629_v24, %v26093_v61  ;;  %v16444_v7 = vclamps-f32 %v1768_v35, 32.0 }
 0x388   : > { %20293 = vmatprep.mubr.msk.bf16.mxu1 %vm20292_vm9, %v28312_v16  ;;  %vm11228_vm9 = vcmp.eq.f32.partialorder %v17837_v59, %v28552_v45  ;;  %vm19466_vm12 = vmpackc.low %vm3321_vm7, %vm3313_vm6  ;;  %v28628_v59 = vld [vmem:[#allocation103_spill] sm:$0xff]  ;;  %vm3346_vm6 = vcmp.eq.f32.partialorder %v16445_v21, %v28551_v34  ;;  %vm3354_vm7 = vcmp.eq.f32.partialorder %v16453_v36, %v28551_v34  ;;  %v1793_v28 = vsub.f32 %v28631_v6, %v26069_v0 }
 0x389   : > { %v9717_v32 = vsub.f32 %v28628_v59, %v26069_v0  ;;  %vm20298_vm15 = vmpackc.low %vm11228_vm9, %vm11220_vm8  ;;  %v17870_v49 = vclamps-f32 %v9725_v2, 32.0  ;;  %v9716_v48 = vsub.f32 %v28628_v59, %v26093_v61  ;;  %v28632_v21 = vld [vmem:[#allocation107_spill] sm:$0xff]  ;;  %v16452_v36 = vclamps-f32 %v1776_v13, 32.0 }
 0x38a   : > { %v17869_v59 = vclamps-f32 %v9724_v27, 32.0  ;;  %vm3345_vm14 = vcmp.eq.f32.partialorder %v16444_v7, %v28552_v45  ;;  %v9732_v27 = vsub.f32 %v28632_v21, %v26093_v61 }
 0x38b   : > { %v17862_v50 = vclamps-f32 %v9717_v32, 32.0  ;;  %v9733_v32 = vsub.f32 %v28632_v21, %v26069_v0  ;;  %v17861_v35 = vclamps-f32 %v9716_v48, 32.0  ;;  %v1792_v48 = vsub.f32 %v28631_v6, %v26093_v61 }
 0x38d   : > { %19463 = vmatmul.mubr.msk.bf16.gmra.mrb[92].mxu0 %vm19462_vm0, %v28312_v16  ;;  %vm19468_vm0 = vmpackc.low %vm3338_vm11, %vm3330_vm10  ;;  %vm11253_vm9 = vcmp.eq.f32.partialorder %v17862_v50, %v28551_v34  ;;  %vm11261_vm10 = vcmp.eq.f32.partialorder %v17870_v49, %v28551_v34  ;;  %v16469_v49 = vclamps-f32 %v1793_v28, 32.0  ;;  %v17878_v17 = vclamps-f32 %v9733_v32, 32.0  ;;  %v28635_v28 = vld [vmem:[#allocation108_spill] sm:$0xff] }
 0x38e   : > { %19465 = vmatprep.mubr.msk.bf16.mxu0 %vm19464_vm3, %v28312_v16  ;;  %vm11236_vm3 = vcmp.eq.f32.partialorder %v17845_v20, %v28552_v45  ;;  %vm20304_vm13 = vmpackc.low %vm11261_vm10, %vm11253_vm9  ;;  %v1809_v32 = vsub.f32 %v28635_v28, %v26069_v0  ;;  %v16468_v6 = vclamps-f32 %v1792_v48, 32.0  ;;  %v1808_v48 = vsub.f32 %v28635_v28, %v26093_v61 }
 0x38f   : > { %20295 = vmatmul.mubr.msk.bf16.gmra.mrb[92].mxu1 %vm20294_vm4, %v28312_v16  ;;  %vm3337_vm4 = vcmp.eq.f32.partialorder %v16436_v58, %v28552_v45  ;;  %v28630_v58 = vld [vmem:[#allocation105_spill] sm:$0xff] }
 0x390   : > { %20297 = vmatprep.mubr.msk.bf16.mxu1 %vm20296_vm5, %v28312_v16  ;;  %vm11244_vm5 = vcmp.eq.f32.partialorder %v17853_v62, %v28552_v45  ;;  %v1785_v2 = vsub.f32 %v28630_v58, %v26069_v0  ;;  %vm19470_vm8 = vmpackc.low %vm3337_vm4, %vm3329_vm2  ;;  %v28633_v62 = vld [vmem:[#allocation106_spill] sm:$0xff]  ;;  %v1784_v13 = vsub.f32 %v28630_v58, %v26093_v61  ;;  %vm3370_vm4 = vcmp.eq.f32.partialorder %v16469_v49, %v28551_v34 }
 0x391   : > { %v9741_v24 = vsub.f32 %v28633_v62, %v26069_v0  ;;  %vm20302_vm11 = vmpackc.low %vm11244_vm5, %vm11236_vm3  ;;  %v9740_v7 = vsub.f32 %v28633_v62, %v26093_v61  ;;  %vm11269_vm5 = vcmp.eq.f32.partialorder %v17878_v17, %v28551_v34  ;;  %v16485_v17 = vclamps-f32 %v1809_v32, 32.0 }
 0x392   : > { %v16461_v50 = vclamps-f32 %v1785_v2, 32.0  ;;  %v16460_v21 = vclamps-f32 %v1784_v13, 32.0 }
 0x393   : > { %v17886_v20 = vclamps-f32 %v9741_v24, 32.0  ;;  %v28634_v24 = vld [vmem:[#allocation109_spill] sm:$0xff]  ;;  %v17885_v49 = vclamps-f32 %v9740_v7, 32.0 }
 0x394   : > { %v1801_v2 = vsub.f32 %v28634_v24, %v26069_v0  ;;  %vm3362_vm2 = vcmp.eq.f32.partialorder %v16461_v50, %v28551_v34  ;;  %v17877_v50 = vclamps-f32 %v9732_v27, 32.0  ;;  %vm3361_vm10 = vcmp.eq.f32.partialorder %v16460_v21, %v28552_v45 }
 0x395   : > { %19467 = vmatmul.mubr.msk.bf16.gmra.mrb[96].mxu0 %vm19466_vm12, %v28312_v16  ;;  %vm19472_vm12 = vmpackc.low %vm3354_vm7, %vm3346_vm6  ;;  %vm11277_vm6 = vcmp.eq.f32.partialorder %v17886_v20, %v28551_v34  ;;  %v1800_v20 = vsub.f32 %v28634_v24, %v26093_v61 }
 0x396   : > { %19469 = vmatprep.mubr.msk.bf16.mxu0 %vm19468_vm0, %v28312_v16  ;;  %vm11252_vm0 = vcmp.eq.f32.partialorder %v17861_v35, %v28552_v45  ;;  %v28637_v35 = vld [vmem:[#allocation110_spill] sm:$0xff]  ;;  %v16477_v58 = vclamps-f32 %v1801_v2, 32.0  ;;  %vm20308_vm9 = vmpackc.low %vm11277_vm6, %vm11269_vm5  ;;  %v28639_v2 = vld [vmem:[#allocation112_spill] sm:$0xff] }
 0x397   : > { %20299 = vmatmul.mubr.msk.bf16.gmra.mrb[96].mxu1 %vm20298_vm15, %v28312_v16  ;;  %vm3353_vm15 = vcmp.eq.f32.partialorder %v16452_v36, %v28552_v45  ;;  %v9757_v62 = vsub.f32 %v28637_v35, %v26069_v0  ;;  %v9756_v7 = vsub.f32 %v28637_v35, %v26093_v61  ;;  %v16476_v21 = vclamps-f32 %v1800_v20, 32.0 }
 0x398   : > { %20301 = vmatprep.mubr.msk.bf16.mxu1 %vm20300_vm1, %v28312_v16  ;;  %vm11260_vm1 = vcmp.eq.f32.partialorder %v17869_v59, %v28552_v45  ;;  %vm19474_vm3 = vmpackc.low %vm3353_vm15, %vm3345_vm14  ;;  %v28636_v59 = vld [vmem:[#allocation111_spill] sm:$0xff]  ;;  %vm3378_vm14 = vcmp.eq.f32.partialorder %v16477_v58, %v28551_v34  ;;  %vm3386_vm15 = vcmp.eq.f32.partialorder %v16485_v17, %v28551_v34  ;;  %v1825_v32 = vsub.f32 %v28639_v2, %v26069_v0 }
 0x399   : > { %v9749_v36 = vsub.f32 %v28636_v59, %v26069_v0  ;;  %vm20306_vm7 = vmpackc.low %vm11260_vm1, %vm11252_vm0  ;;  %v17902_v13 = vclamps-f32 %v9757_v62, 32.0  ;;  %v9748_v27 = vsub.f32 %v28636_v59, %v26093_v61  ;;  %v28640_v58 = vld [vmem:[#allocation115_spill] sm:$0xff]  ;;  %v16484_v17 = vclamps-f32 %v1808_v48, 32.0 }
 0x39a   : > { %v17901_v59 = vclamps-f32 %v9756_v7, 32.0  ;;  %vm3377_vm6 = vcmp.eq.f32.partialorder %v16476_v21, %v28552_v45  ;;  %v9764_v7 = vsub.f32 %v28640_v58, %v26093_v61 }
 0x39b   : > { %v17894_v33 = vclamps-f32 %v9749_v36, 32.0  ;;  %v9765_v36 = vsub.f32 %v28640_v58, %v26069_v0  ;;  %v17893_v20 = vclamps-f32 %v9748_v27, 32.0  ;;  %v1824_v27 = vsub.f32 %v28639_v2, %v26093_v61 }
 0x39d   : > { %19471 = vmatmul.mubr.msk.bf16.gmra.mrb[100].mxu0 %vm19470_vm8, %v28312_v16  ;;  %vm19476_vm8 = vmpackc.low %vm3370_vm4, %vm3362_vm2  ;;  %vm11285_vm1 = vcmp.eq.f32.partialorder %v17894_v33, %v28551_v34  ;;  %vm11293_vm2 = vcmp.eq.f32.partialorder %v17902_v13, %v28551_v34  ;;  %v16501_v13 = vclamps-f32 %v1825_v32, 32.0  ;;  %v21965_v32 = vld [vmem:[%s22461_s25 + $0x28] sm:$0xff]  ;;  %v16500_v58 = vclamps-f32 %v1824_v27, 32.0 }
 0x39e   : > { %19473 = vmatprep.mubr.msk.bf16.mxu0 %vm19472_vm12, %v28312_v16  ;;  %vm11268_vm12 = vcmp.eq.f32.partialorder %v17877_v50, %v28552_v45  ;;  %vm20312_vm5 = vmpackc.low %vm11293_vm2, %vm11285_vm1 }
 0x39f   : > { %20303 = vmatmul.mubr.msk.bf16.gmra.mrb[100].mxu1 %vm20302_vm11, %v28312_v16  ;;  %vm3369_vm11 = vcmp.eq.f32.partialorder %v16468_v6, %v28552_v45  ;;  %v28638_v6 = vld [vmem:[#allocation113_spill] sm:$0xff] }
 0x3a0   : > { %20305 = vmatprep.mubr.msk.bf16.mxu1 %vm20304_vm13, %v28312_v16  ;;  %vm11276_vm13 = vcmp.eq.f32.partialorder %v17885_v49, %v28552_v45  ;;  %v1817_v62 = vsub.f32 %v28638_v6, %v26069_v0  ;;  %vm19478_vm0 = vmpackc.low %vm3369_vm11, %vm3361_vm10  ;;  %v28641_v49 = vld [vmem:[#allocation114_spill] sm:$0xff]  ;;  %v1816_v48 = vsub.f32 %v28638_v6, %v26093_v61  ;;  %vm3402_vm11 = vcmp.eq.f32.partialorder %v16501_v13, %v28551_v34 }
 0x3a1   : > { %v9773_v35 = vsub.f32 %v28641_v49, %v26069_v0  ;;  %vm20310_vm4 = vmpackc.low %vm11276_vm13, %vm11268_vm12  ;;  %v17910_v0 = vclamps-f32 %v9765_v36, 32.0  ;;  %v1841_v36 = vsub.f32 %v28545_v12, %v21965_v32 }
 0x3a2   : > { %v16493_v33 = vclamps-f32 %v1817_v62, 32.0  ;;  %v9772_v62 = vsub.f32 %v28641_v49, %v26093_v61  ;;  %v28643_v61 = vld [vmem:[#allocation118_spill] sm:$0xff]  ;;  %v16492_v49 = vclamps-f32 %v1816_v48, 32.0 }
 0x3a3   : > { %v17918_v50 = vclamps-f32 %v9773_v35, 32.0  ;;  %v1833_v35 = vsub.f32 %v28544_v4, %v21965_v32  ;;  %vm11301_vm13 = vcmp.eq.f32.partialorder %v17910_v0, %v28551_v34  ;;  %v16517_v21 = vclamps-f32 %v1841_v36, 32.0  ;;  %v21966_v0 = vld [vmem:[%s22461_s25 + $0x20] sm:$0xff] }
 0x3a4   : > { %vm3394_vm10 = vcmp.eq.f32.partialorder %v16493_v33, %v28551_v34  ;;  %v17909_v33 = vclamps-f32 %v9764_v7, 32.0  ;;  %v17917_v13 = vclamps-f32 %v9772_v62, 32.0  ;;  %vm3393_vm2 = vcmp.eq.f32.partialorder %v16492_v49, %v28552_v45 }
 0x3a5   : > { %19475 = vmatmul.mubr.msk.bf16.gmra.mrb[104].mxu0 %vm19474_vm3, %v28312_v16  ;;  %vm19480_vm3 = vmpackc.low %vm3386_vm15, %vm3378_vm14  ;;  %vm11309_vm14 = vcmp.eq.f32.partialorder %v17918_v50, %v28551_v34  ;;  %v16509_v2 = vclamps-f32 %v1833_v35, 32.0  ;;  %v1832_v50 = vsub.f32 %v28544_v4, %v21966_v0  ;;  %v1840_v27 = vsub.f32 %v28545_v12, %v21966_v0 }
 0x3a6   : > { %19477 = vmatprep.mubr.msk.bf16.mxu0 %vm19476_vm8, %v28312_v16  ;;  %vm11284_vm8 = vcmp.eq.f32.partialorder %v17893_v20, %v28552_v45  ;;  %v9789_v20 = vsub.f32 %v28643_v61, %v21965_v32  ;;  %vm20316_vm1 = vmpackc.low %vm11309_vm14, %vm11301_vm13  ;;  %v9788_v62 = vsub.f32 %v28643_v61, %v21966_v0  ;;  %v1849_v36 = vsub.f32 %v28548_v39, %v21965_v32 }
 0x3a7   : > { %20307 = vmatmul.mubr.msk.bf16.gmra.mrb[104].mxu1 %vm20306_vm7, %v28312_v16  ;;  %vm3385_vm7 = vcmp.eq.f32.partialorder %v16484_v17, %v28552_v45  ;;  %v16508_v35 = vclamps-f32 %v1832_v50, 32.0  ;;  %v1857_v49 = vsub.f32 %v28549_v22, %v21965_v32  ;;  %v1848_v50 = vsub.f32 %v28548_v39, %v21966_v0 }
 0x3a8   : > { %20309 = vmatprep.mubr.msk.bf16.mxu1 %vm20308_vm9, %v28312_v16  ;;  %vm11292_vm9 = vcmp.eq.f32.partialorder %v17901_v59, %v28552_v45  ;;  %vm19482_vm12 = vmpackc.low %vm3385_vm7, %vm3377_vm6  ;;  %v28642_v59 = vld [vmem:[#allocation119_spill] sm:$0xff]  ;;  %v17934_v48 = vclamps-f32 %v9789_v20, 32.0  ;;  %vm3410_vm6 = vcmp.eq.f32.partialorder %v16509_v2, %v28551_v34  ;;  %vm3418_vm7 = vcmp.eq.f32.partialorder %v16517_v21, %v28551_v34 }
 0x3a9   : > { %v9781_v17 = vsub.f32 %v28642_v59, %v21965_v32  ;;  %vm20314_vm15 = vmpackc.low %vm11292_vm9, %vm11284_vm8  ;;  %v9780_v7 = vsub.f32 %v28642_v59, %v21966_v0  ;;  %v9805_v2 = vsub.f32 %v28550_v26, %v21965_v32  ;;  %v16533_v21 = vclamps-f32 %v1857_v49, 32.0 }
 0x3aa   : > { %vm3409_vm14 = vcmp.eq.f32.partialorder %v16508_v35, %v28552_v45  ;;  %v16524_v49 = vclamps-f32 %v1848_v50, 32.0 }
 0x3ab   : > { %v17926_v6 = vclamps-f32 %v9781_v17, 32.0  ;;  %v16516_v17 = vclamps-f32 %v1840_v27, 32.0  ;;  %v17925_v20 = vclamps-f32 %v9780_v7, 32.0  ;;  %v9796_v27 = vsub.f32 %v24376_v37, %v21966_v0  ;;  %v26592_v7 = vld [vmem:[%s22461_s25 + $0x38] sm:$0xff] }
 0x3ac   : > { %v1363_v35 = vsub.f32 %v22589_v31, %v26592_v7 }
 0x3ad   : > { %19479 = vmatmul.mubr.msk.bf16.gmra.mrb[108].mxu0 %vm19478_vm0, %v28312_v16  ;;  %vm19484_vm0 = vmpackc.low %vm3402_vm11, %vm3394_vm10  ;;  %vm11317_vm9 = vcmp.eq.f32.partialorder %v17926_v6, %v28551_v34  ;;  %vm11325_vm10 = vcmp.eq.f32.partialorder %v17934_v48, %v28551_v34  ;;  %v16525_v6 = vclamps-f32 %v1849_v36, 32.0  ;;  %v1856_v48 = vsub.f32 %v28549_v22, %v21966_v0 }
 0x3ae   : > { %19481 = vmatprep.mubr.msk.bf16.mxu0 %vm19480_vm3, %v28312_v16  ;;  %vm11300_vm3 = vcmp.eq.f32.partialorder %v17909_v33, %v28552_v45  ;;  %vm20320_vm13 = vmpackc.low %vm11325_vm10, %vm11317_vm9  ;;  %v17950_v33 = vclamps-f32 %v9805_v2, 32.0  ;;  %v9311_v36 = vsub.f32 %v22548_v56, %v26592_v7  ;;  %v28644_v2 = vld [vmem:[#allocation13_spill] sm:$0xff]  ;;  %vm3425_vm10 = vcmp.eq.f32.partialorder %v16524_v49, %v28552_v45 }
 0x3af   : > { %20311 = vmatmul.mubr.msk.bf16.gmra.mrb[108].mxu1 %vm20310_vm4, %v28312_v16  ;;  %vm3401_vm4 = vcmp.eq.f32.partialorder %v16500_v58, %v28552_v45  ;;  %v9797_v58 = vsub.f32 %v24376_v37, %v21965_v32 }
 0x3b0   : > { %20313 = vmatprep.mubr.msk.bf16.mxu1 %vm20312_vm5, %v28312_v16  ;;  %vm11308_vm5 = vcmp.eq.f32.partialorder %v17917_v13, %v28552_v45  ;;  %vm19486_vm8 = vmpackc.low %vm3401_vm4, %vm3393_vm2  ;;  %v17933_v13 = vclamps-f32 %v9788_v62, 32.0  ;;  %v9804_v62 = vsub.f32 %v28550_v26, %v21966_v0  ;;  %vm3426_vm2 = vcmp.eq.f32.partialorder %v16525_v6, %v28551_v34 }
 0x3b1   : > { %vm20318_vm11 = vmpackc.low %vm11308_vm5, %vm11300_vm3  ;;  %v17942_v32 = vclamps-f32 %v9797_v58, 32.0  ;;  %vm3434_vm4 = vcmp.eq.f32.partialorder %v16533_v21, %v28551_v34  ;;  %v16532_v58 = vclamps-f32 %v1856_v48, 32.0  ;;  %v17941_v0 = vclamps-f32 %v9796_v27, 32.0  ;;  %v26610_v21 = vld [vmem:[%s22461_s25 + $0x30] sm:$0xff] }
 0x3b2   : > { %v1354_v27 = vsub.f32 %v28644_v2, %v26610_v21 }
 0x3b3   : > { %vm11333_vm5 = vcmp.eq.f32.partialorder %v17942_v32, %v28551_v34  ;;  %v17456_v32 = vclamps-f32 %v9311_v36, 32.0  ;;  %v28647_v36 = vld [vmem:[#allocation15_spill] sm:$0xff] }
 0x3b4   : > { %v1371_v49 = vsub.f32 %v28647_v36, %v26592_v7 }
 0x3b5   : > { %19483 = vmatmul.mubr.msk.bf16.gmra.mrb[112].mxu0 %vm19482_vm12, %v28312_v16  ;;  %vm19488_vm12 = vmpackc.low %vm3418_vm7, %vm3410_vm6  ;;  %vm11341_vm6 = vcmp.eq.f32.partialorder %v17950_v33, %v28551_v34  ;;  %v16039_v34 = vclamps-f32 %v1363_v35, 32.0  ;;  %v1362_v33 = vsub.f32 %v22589_v31, %v26610_v21  ;;  %v28646_v35 = vld [vmem:[#allocation11_spill] sm:$0xff] }
 0x3b6   : > { %19485 = vmatprep.mubr.msk.bf16.mxu0 %vm19484_vm0, %v28312_v16  ;;  %vm11316_vm0 = vcmp.eq.f32.partialorder %v17925_v20, %v28552_v45  ;;  %v17949_v20 = vclamps-f32 %v9804_v62, 32.0  ;;  %vm20324_vm9 = vmpackc.low %vm11341_vm6, %vm11333_vm5  ;;  %v9310_v62 = vsub.f32 %v22548_v56, %v26610_v21  ;;  %v9327_v56 = vsub.f32 %v22622_v5, %v26592_v7 }
 0x3b7   : > { %20315 = vmatmul.mubr.msk.bf16.gmra.mrb[112].mxu1 %vm20314_vm15, %v28312_v16  ;;  %vm3417_vm15 = vcmp.eq.f32.partialorder %v16516_v17, %v28552_v45  ;;  %v1355_v17 = vsub.f32 %v28644_v2, %v26592_v7  ;;  %v28649_v2 = vld [vmem:[#allocation16_spill] sm:$0xff] }
 0x3b8   : > { %20317 = vmatprep.mubr.msk.bf16.mxu1 %vm20316_vm1, %v28312_v16  ;;  %vm11324_vm1 = vcmp.eq.f32.partialorder %v17933_v13, %v28552_v45  ;;  %vm19490_vm3 = vmpackc.low %vm3417_vm15, %vm3409_vm14  ;;  %v28645_v13 = vld [vmem:[#allocation12_spill] sm:$0xff]  ;;  %vm2940_vm14 = vcmp.eq.f32.partialorder %v16039_v34, %v28646_v35  ;;  %v16030_v34 = vclamps-f32 %v1354_v27, 32.0  ;;  %v9318_v27 = vsub.f32 %v28649_v2, %v26610_v21 }
 0x3b9   : > { %vm20322_vm7 = vmpackc.low %vm11324_vm1, %vm11316_vm0  ;;  %v9303_v6 = vsub.f32 %v28645_v13, %v26592_v7  ;;  %v16031_v50 = vclamps-f32 %v1355_v17, 32.0  ;;  %v9302_v31 = vsub.f32 %v28645_v13, %v26610_v21  ;;  %vm10847_vm0 = vcmp.eq.f32.partialorder %v17456_v32, %v28646_v35 }
 0x3ba   : > { %v17455_v13 = vclamps-f32 %v9310_v62, 32.0 }
 0x3bb   : > { %v17448_v48 = vclamps-f32 %v9303_v6, 32.0  ;;  %v9319_v6 = vsub.f32 %v28649_v2, %v26592_v7  ;;  %v17447_v32 = vclamps-f32 %v9302_v31, 32.0  ;;  %v9326_v31 = vsub.f32 %v22622_v5, %v26610_v21  ;;  %v28651_v5 = vld [vmem:[#allocation18_spill] sm:$0xff] }
 0x3bd   : > { %19487 = vmatmul.mubr.msk.bf16.gmra.mrb[116].mxu0 %vm19486_vm8, %v28312_v16  ;;  %vm19492_vm8 = vmpackc.low %vm3434_vm4, %vm3426_vm2  ;;  %vm2932_vm2 = vcmp.eq.f32.partialorder %v16031_v50, %v28646_v35  ;;  %v17472_v50 = vclamps-f32 %v9327_v56, 32.0  ;;  %v17463_v56 = vclamps-f32 %v9318_v27, 32.0  ;;  %v1403_v27 = vsub.f32 %v22780_v23, %v26592_v7 }
 0x3be   : > { %19489 = vmatprep.mubr.msk.bf16.mxu0 %vm19488_vm12, %v28312_v16  ;;  %vm11332_vm12 = vcmp.eq.f32.partialorder %v17941_v0, %v28552_v45  ;;  %vm19496_vm4 = vmpackc.low %vm2940_vm14, %vm2932_vm2  ;;  %v17464_v0 = vclamps-f32 %v9319_v6, 32.0 }
 0x3bf   : > { %20319 = vmatmul.mubr.msk.bf16.gmra.mrb[116].mxu1 %vm20318_vm11, %v28312_v16  ;;  %vm3433_vm11 = vcmp.eq.f32.partialorder %v16532_v58, %v28552_v45  ;;  %v28648_v58 = vld [vmem:[#allocation14_spill] sm:$0xff]  ;;  %vm10863_vm14 = vcmp.eq.f32.partialorder %v17472_v50, %v28646_v35 }
 0x3c0   : > { %20321 = vmatprep.mubr.msk.bf16.mxu1 %vm20320_vm13, %v28312_v16  ;;  %vm11340_vm13 = vcmp.eq.f32.partialorder %v17949_v20, %v28552_v45  ;;  %v1379_v17 = vsub.f32 %v28648_v58, %v26592_v7  ;;  %vm19494_vm15 = vmpackc.low %vm3433_vm11, %vm3425_vm10  ;;  %v16038_v20 = vclamps-f32 %v1362_v33, 32.0  ;;  %v16047_v33 = vclamps-f32 %v1371_v49, 32.0  ;;  %v28650_v45 = vld [vmem:[#allocation10_spill] sm:$0xff] }
 0x3c1   : > { %vm20326_vm1 = vmpackc.low %vm11340_vm13, %vm11332_vm12  ;;  %v1378_v62 = vsub.f32 %v28648_v58, %v26610_v21  ;;  %v1387_v49 = vsub.f32 %v22688_v53, %v26592_v7  ;;  %vm10855_vm13 = vcmp.eq.f32.partialorder %v17464_v0, %v28646_v35  ;;  %v28652_v58 = vld [vmem:[#allocation17_spill] sm:$0xff] }
 0x3c2   : > { %v16055_v26 = vclamps-f32 %v1379_v17, 32.0  ;;  %vm2939_vm6 = vcmp.eq.f32.partialorder %v16038_v20, %v28650_v45  ;;  %v1395_v17 = vsub.f32 %v22655_v44, %v26592_v7  ;;  %vm2948_vm10 = vcmp.eq.f32.partialorder %v16047_v33, %v28646_v35 }
 0x3c3   : > { %v9343_v20 = vsub.f32 %v28652_v58, %v26592_v7  ;;  %v16054_v6 = vclamps-f32 %v1378_v62, 32.0  ;;  %v1394_v33 = vsub.f32 %v22655_v44, %v26610_v21  ;;  %v9334_v44 = vsub.f32 %v28651_v5, %v26610_v21 }
 0x3c4   : > { %vm2956_vm11 = vcmp.eq.f32.partialorder %v16055_v26, %v28646_v35  ;;  %v1386_v26 = vsub.f32 %v22688_v53, %v26610_v21  ;;  %v9342_v53 = vsub.f32 %v28652_v58, %v26610_v21  ;;  %v16079_v58 = vclamps-f32 %v1403_v27, 32.0 }
 0x3c5   : > { %19491 = vmatmul.mubr.msk.bf16.gmra.mrb[120].mxu0 %vm19490_vm3, %v28312_v16  ;;  %vm10839_vm3 = vcmp.eq.f32.partialorder %v17448_v48, %v28646_v35  ;;  %v1370_v48 = vsub.f32 %v28647_v36, %v26610_v21  ;;  %v9335_v36 = vsub.f32 %v28651_v5, %v26592_v7  ;;  %v17488_v50 = vclamps-f32 %v9343_v20, 32.0 }
 0x3c6   : > { %19493 = vmatprep.mubr.msk.bf16.mxu0 %vm19492_vm8, %v28312_v16  ;;  %vm20328_vm5 = vmpackc.low %vm10847_vm0, %vm10839_vm3  ;;  %vm2931_vm8 = vcmp.eq.f32.partialorder %v16030_v34, %v28650_v45  ;;  %v16063_v34 = vclamps-f32 %v1387_v49, 32.0  ;;  %vm10854_vm3 = vcmp.eq.f32.partialorder %v17463_v56, %v28650_v45  ;;  %v16070_v62 = vclamps-f32 %v1394_v33, 32.0 }
 0x3c7   : > { %20323 = vmatmul.mubr.msk.bf16.gmra.mrb[120].mxu1 %vm20322_vm7, %v28312_v16  ;;  %vm10846_vm7 = vcmp.eq.f32.partialorder %v17455_v13, %v28650_v45  ;;  %vm19498_vm12 = vmpackc.low %vm2939_vm6, %vm2931_vm8  ;;  %v16046_v2 = vclamps-f32 %v1370_v48, 32.0  ;;  %v17471_v13 = vclamps-f32 %v9326_v31, 32.0  ;;  %v17480_v0 = vclamps-f32 %v9335_v36, 32.0 }
 0x3c8   : > { %20325 = vmatprep.mubr.msk.bf16.mxu1 %vm20324_vm9, %v28312_v16  ;;  %vm10838_vm9 = vcmp.eq.f32.partialorder %v17447_v32, %v28650_v45  ;;  %vm19500_vm0 = vmpackc.low %vm2956_vm11, %vm2948_vm10  ;;  %v16071_v32 = vclamps-f32 %v1395_v17, 32.0  ;;  %vm2964_vm6 = vcmp.eq.f32.partialorder %v16063_v34, %v28646_v35  ;;  %v16062_v48 = vclamps-f32 %v1386_v26, 32.0  ;;  %v28653_v26 = vld [vmem:[#allocation20_spill] sm:$0xff] }
 0x3c9   : > { %vm2947_vm2 = vcmp.eq.f32.partialorder %v16046_v2, %v28650_v45  ;;  %v1411_v31 = vsub.f32 %v22746_v30, %v26592_v7  ;;  %vm10879_vm10 = vcmp.eq.f32.partialorder %v17488_v50, %v28646_v35  ;;  %v9351_v49 = vsub.f32 %v22822_v54, %v26592_v7 }
 0x3ca   : > { %v9359_v17 = vsub.f32 %v22782_v41, %v26592_v7  ;;  %v17479_v5 = vclamps-f32 %v9334_v44, 32.0  ;;  %v17487_v36 = vclamps-f32 %v9342_v53, 32.0  ;;  %v1402_v56 = vsub.f32 %v22780_v23, %v26610_v21 }
 0x3cb   : > { %v16087_v20 = vclamps-f32 %v1411_v31, 32.0  ;;  %v17496_v2 = vclamps-f32 %v9351_v49, 32.0  ;;  %v9350_v34 = vsub.f32 %v22822_v54, %v26610_v21  ;;  %v1419_v33 = vsub.f32 %v28653_v26, %v26592_v7 }
 0x3cc   : > { %v16078_v44 = vclamps-f32 %v1402_v56, 32.0  ;;  %v1418_v49 = vsub.f32 %v28653_v26, %v26610_v21  ;;  %v1435_v56 = vsub.f32 %v22947_v52, %v26592_v7  ;;  %v28658_v26 = vld [vmem:[#allocation24_spill] sm:$0xff] }
 0x3cd   : > { %19495 = vmatmul.mubr.msk.bf16.gmra.mrb[124].mxu0 %vm19494_vm15, %v28312_v16  ;;  %vm20330_vm15 = vmpackc.low %vm10846_vm7, %vm10838_vm9  ;;  %vm2972_vm7 = vcmp.eq.f32.partialorder %v16071_v32, %v28646_v35  ;;  %vm10871_vm9 = vcmp.eq.f32.partialorder %v17480_v0, %v28646_v35  ;;  %v9358_v32 = vsub.f32 %v22782_v41, %v26610_v21  ;;  %v28654_v0 = vld [vmem:[#allocation19_spill] sm:$0xff]  ;;  %v28656_v41 = vld [vmem:[#allocation21_spill] sm:$0xff]  ;;  %v16095_v27 = vclamps-f32 %v1419_v33, 32.0 }
 0x3ce   : > { %19497 = vmatprep.mubr.msk.bf16.mxu0 %vm19496_vm4, %v28312_v16  ;;  %vm2955_vm4 = vcmp.eq.f32.partialorder %v16054_v6, %v28650_v45  ;;  %v17504_v6 = vclamps-f32 %v9359_v17, 32.0  ;;  %v1427_v50 = vsub.f32 %v28654_v0, %v26592_v7  ;;  %v9375_v54 = vsub.f32 %v28656_v41, %v26592_v7 }
 0x3cf   : > { %20327 = vmatmul.mubr.msk.bf16.gmra.mrb[124].mxu1 %vm20326_vm1, %v28312_v16  ;;  %vm20332_vm1 = vmpackc.low %vm10863_vm14, %vm10855_vm13  ;;  %vm2963_vm14 = vcmp.eq.f32.partialorder %v16062_v48, %v28650_v45  ;;  %v17495_v48 = vclamps-f32 %v9350_v34, 32.0  ;;  %v1426_v17 = vsub.f32 %v28654_v0, %v26610_v21  ;;  %v28657_v34 = vld [vmem:[#allocation25_spill] sm:$0xff]  ;;  %v9391_v33 = vsub.f32 %v28658_v26, %v26592_v7 }
 0x3d0   : > { %20329 = vmatprep.mubr.msk.bf16.mxu1 %vm20328_vm5, %v28312_v16  ;;  %vm10862_vm5 = vcmp.eq.f32.partialorder %v17471_v13, %v28650_v45  ;;  %vm19502_vm8 = vmpackc.low %vm2955_vm4, %vm2947_vm2  ;;  %v1410_v13 = vsub.f32 %v22746_v30, %v26610_v21  ;;  %vm2980_vm2 = vcmp.eq.f32.partialorder %v16079_v58, %v28646_v35  ;;  %vm2988_vm4 = vcmp.eq.f32.partialorder %v16087_v20, %v28646_v35  ;;  %v28655_v30 = vld [vmem:[#allocation22_spill] sm:$0xff] }
 0x3d1   : > { %vm20334_vm11 = vmpackc.low %vm10862_vm5, %vm10854_vm3  ;;  %vm10887_vm5 = vcmp.eq.f32.partialorder %v17496_v2, %v28646_v35  ;;  %v9367_v23 = vsub.f32 %v28655_v30, %v26592_v7  ;;  %v16103_v31 = vclamps-f32 %v1427_v50, 32.0  ;;  %v9366_v58 = vsub.f32 %v28655_v30, %v26610_v21 }
 0x3d2   : > { %vm20336_vm13 = vmpackc.low %vm10879_vm10, %vm10871_vm9  ;;  %v16086_v53 = vclamps-f32 %v1410_v13, 32.0  ;;  %vm2979_vm10 = vcmp.eq.f32.partialorder %v16078_v44, %v28650_v45  ;;  %v9374_v20 = vsub.f32 %v28656_v41, %v26610_v21  ;;  %v16094_v2 = vclamps-f32 %v1418_v49, 32.0  ;;  %v28660_v49 = vld [vmem:[#allocation26_spill] sm:$0xff] }
 0x3d3   : > { %v1443_v13 = vsub.f32 %v28557_v43, %v26592_v7  ;;  %v17511_v0 = vclamps-f32 %v9366_v58, 32.0  ;;  %v16111_v30 = vclamps-f32 %v1435_v56, 32.0  ;;  %v1434_v44 = vsub.f32 %v22947_v52, %v26610_v21  ;;  %v28661_v52 = vld [vmem:[#allocation29_spill] sm:$0xff] }
 0x3d4   : > { %v17519_v50 = vclamps-f32 %v9374_v20, 32.0 }
 0x3d5   : > { %19499 = vmatmul.mubr.msk.bf16.vlgmr.msra.gmra.mrb[0].mxu0 %vm19498_vm12, %v28312_v16  ;;  %vm19504_vm12 = vmpackc.low %vm2972_vm7, %vm2964_vm6  ;;  %vm10895_vm6 = vcmp.eq.f32.partialorder %v17504_v6, %v28646_v35  ;;  %v16102_v6 = vclamps-f32 %v1426_v17, 32.0  ;;  %v1459_v17 = vsub.f32 %v28660_v49, %v26592_v7  ;;  %v16110_v58 = vclamps-f32 %v1434_v44, 32.0 }
 0x3d6   : > { %19501 = vmatprep.mubr.msk.bf16.mxu0 %vm19500_vm0, %v28312_v16  ;;  %vm10870_vm0 = vcmp.eq.f32.partialorder %v17479_v5, %v28650_v45  ;;  %vm20340_vm9 = vmpackc.low %vm10895_vm6, %vm10887_vm5  ;;  %v17512_v5 = vclamps-f32 %v9367_v23, 32.0  ;;  %v16119_v23 = vclamps-f32 %v1443_v13, 32.0  ;;  %vm2995_vm6 = vcmp.eq.f32.partialorder %v16094_v2, %v28650_v45 }
 0x3d7   : > { %20331 = vmatmul.mubr.msk.bf16.vlgmr.msra.gmra.mrb[0].mxu1 %vm20330_vm15, %v28312_v16  ;;  %vm2971_vm15 = vcmp.eq.f32.partialorder %v16070_v62, %v28650_v45  ;;  %v17503_v62 = vclamps-f32 %v9358_v32, 32.0  ;;  %v9383_v32 = vsub.f32 %v28657_v34, %v26592_v7  ;;  %v16135_v13 = vclamps-f32 %v1459_v17, 32.0 }
 0x3d8   : > { %20333 = vmatprep.mubr.msk.bf16.mxu1 %vm20332_vm1, %v28312_v16  ;;  %vm10878_vm1 = vcmp.eq.f32.partialorder %v17487_v36, %v28650_v45  ;;  %vm19506_vm3 = vmpackc.low %vm2971_vm15, %vm2963_vm14  ;;  %v17520_v36 = vclamps-f32 %v9375_v54, 32.0  ;;  %vm2996_vm14 = vcmp.eq.f32.partialorder %v16095_v27, %v28646_v35  ;;  %vm3004_vm15 = vcmp.eq.f32.partialorder %v16103_v31, %v28646_v35  ;;  %v28659_v27 = vld [vmem:[#allocation27_spill] sm:$0xff] }
 0x3d9   : > { %vm20338_vm7 = vmpackc.low %vm10878_vm1, %vm10870_vm0  ;;  %vm10903_vm1 = vcmp.eq.f32.partialorder %v17512_v5, %v28646_v35  ;;  %v17528_v41 = vclamps-f32 %v9383_v32, 32.0  ;;  %v17536_v54 = vclamps-f32 %v9391_v33, 32.0  ;;  %v1451_v31 = vsub.f32 %v28659_v27, %v26592_v7  ;;  %v28662_v5 = vld [vmem:[#allocation28_spill] sm:$0xff] }
 0x3da   : > { %v1458_v32 = vsub.f32 %v28660_v49, %v26610_v21  ;;  %v9415_v44 = vsub.f32 %v28566_v15, %v26592_v7 }
 0x3db   : > { %v16127_v56 = vclamps-f32 %v1451_v31, 32.0 }
 0x3dc   : > { %v17560_v49 = vclamps-f32 %v9415_v44, 32.0 }
 0x3dd   : > { %19503 = vmatmul.mubr.msk.bf16.gmra.mrb[4].mxu0 %vm19502_vm8, %v28312_v16  ;;  %vm19508_vm8 = vmpackc.low %vm2988_vm4, %vm2980_vm2  ;;  %vm10911_vm2 = vcmp.eq.f32.partialorder %v17520_v36, %v28646_v35  ;;  %v9407_v36 = vsub.f32 %v28662_v5, %v26592_v7 }
 0x3de   : > { %19505 = vmatprep.mubr.msk.bf16.mxu0 %vm19504_vm12, %v28312_v16  ;;  %vm10886_vm12 = vcmp.eq.f32.partialorder %v17495_v48, %v28650_v45  ;;  %vm20344_vm5 = vmpackc.low %vm10911_vm2, %vm10903_vm1  ;;  %v9382_v48 = vsub.f32 %v28657_v34, %v26610_v21  ;;  %v1450_v34 = vsub.f32 %v28659_v27, %v26610_v21  ;;  %vm3011_vm2 = vcmp.eq.f32.partialorder %v16110_v58, %v28650_v45 }
 0x3df   : > { %20335 = vmatmul.mubr.msk.bf16.gmra.mrb[4].mxu1 %vm20334_vm11, %v28312_v16  ;;  %vm2987_vm11 = vcmp.eq.f32.partialorder %v16086_v53, %v28650_v45  ;;  %v1442_v53 = vsub.f32 %v28557_v43, %v26610_v21  ;;  %v9399_v43 = vsub.f32 %v28661_v52, %v26592_v7  ;;  %v17552_v33 = vclamps-f32 %v9407_v36, 32.0 }
 0x3e0   : > { %20337 = vmatprep.mubr.msk.bf16.mxu1 %vm20336_vm13, %v28312_v16  ;;  %vm10894_vm13 = vcmp.eq.f32.partialorder %v17503_v62, %v28650_v45  ;;  %vm19510_vm0 = vmpackc.low %vm2987_vm11, %vm2979_vm10  ;;  %v9390_v62 = vsub.f32 %v28658_v26, %v26610_v21  ;;  %vm3012_vm10 = vcmp.eq.f32.partialorder %v16111_v30, %v28646_v35  ;;  %vm3020_vm11 = vcmp.eq.f32.partialorder %v16119_v23, %v28646_v35 }
 0x3e1   : > { %vm20342_vm4 = vmpackc.low %vm10894_vm13, %vm10886_vm12  ;;  %vm10919_vm13 = vcmp.eq.f32.partialorder %v17528_v41, %v28646_v35  ;;  %v16118_v20 = vclamps-f32 %v1442_v53, 32.0  ;;  %v17527_v2 = vclamps-f32 %v9382_v48, 32.0  ;;  %v17544_v26 = vclamps-f32 %v9399_v43, 32.0 }
 0x3e2   : > { %v16126_v30 = vclamps-f32 %v1450_v34, 32.0  ;;  %v16134_v23 = vclamps-f32 %v1458_v32, 32.0  ;;  %v1467_v41 = vsub.f32 %v28462_v47, %v26592_v7  ;;  %v9423_v53 = vsub.f32 %v28569_v40, %v26592_v7 }
 0x3e3   : > { %v1474_v43 = vsub.f32 %v28463_v63, %v26610_v21  ;;  %v9422_v36 = vsub.f32 %v28569_v40, %v26610_v21  ;;  %v1483_v58 = vsub.f32 %v28570_v55, %v26592_v7  ;;  %v1482_v32 = vsub.f32 %v28570_v55, %v26610_v21 }
 0x3e4   : > { %v16143_v27 = vclamps-f32 %v1467_v41, 32.0  ;;  %v17568_v17 = vclamps-f32 %v9423_v53, 32.0  ;;  %v9430_v55 = vsub.f32 %v28572_v42, %v26610_v21  ;;  %v1507_v41 = vsub.f32 %v28473_v51, %v26592_v7 }
 0x3e5   : > { %19507 = vmatmul.mubr.msk.bf16.gmra.mrb[8].mxu0 %vm19506_vm3, %v28312_v16  ;;  %vm19512_vm3 = vmpackc.low %vm3004_vm15, %vm2996_vm14  ;;  %vm10927_vm14 = vcmp.eq.f32.partialorder %v17536_v54, %v28646_v35  ;;  %v1475_v54 = vsub.f32 %v28463_v63, %v26592_v7  ;;  %v28663_v63 = vld [vmem:[#allocation36_spill] sm:$0xff] }
 0x3e6   : > { %19509 = vmatprep.mubr.msk.bf16.mxu0 %vm19508_vm8, %v28312_v16  ;;  %vm10902_vm8 = vcmp.eq.f32.partialorder %v17511_v0, %v28650_v45  ;;  %vm20348_vm1 = vmpackc.low %vm10927_vm14, %vm10919_vm13  ;;  %v9398_v0 = vsub.f32 %v28661_v52, %v26610_v21  ;;  %vm3027_vm14 = vcmp.eq.f32.partialorder %v16126_v30, %v28650_v45  ;;  %v1466_v52 = vsub.f32 %v28462_v47, %v26610_v21 }
 0x3e7   : > { %20339 = vmatmul.mubr.msk.bf16.gmra.mrb[8].mxu1 %vm20338_vm7, %v28312_v16  ;;  %vm3003_vm7 = vcmp.eq.f32.partialorder %v16102_v6, %v28650_v45  ;;  %v17535_v6 = vclamps-f32 %v9390_v62, 32.0  ;;  %v16151_v31 = vclamps-f32 %v1475_v54, 32.0  ;;  %v9431_v47 = vsub.f32 %v28572_v42, %v26592_v7  ;;  %v28664_v42 = vld [vmem:[#allocation40_spill] sm:$0xff] }
 0x3e8   : > { %20341 = vmatprep.mubr.msk.bf16.mxu1 %vm20340_vm9, %v28312_v16  ;;  %vm10910_vm9 = vcmp.eq.f32.partialorder %v17519_v50, %v28650_v45  ;;  %vm19514_vm12 = vmpackc.low %vm3003_vm7, %vm2995_vm6  ;;  %vm3028_vm6 = vcmp.eq.f32.partialorder %v16127_v56, %v28646_v35  ;;  %vm3036_vm7 = vcmp.eq.f32.partialorder %v16135_v13, %v28646_v35  ;;  %v9406_v50 = vsub.f32 %v28662_v5, %v26610_v21 }
 0x3e9   : > { %vm20346_vm15 = vmpackc.low %vm10910_vm9, %vm10902_vm8  ;;  %vm10935_vm9 = vcmp.eq.f32.partialorder %v17544_v26, %v28646_v35  ;;  %v17543_v48 = vclamps-f32 %v9398_v0, 32.0  ;;  %v9414_v5 = vsub.f32 %v28566_v15, %v26610_v21  ;;  %v9439_v40 = vsub.f32 %v28663_v63, %v26592_v7 }
 0x3ea   : > { %v17551_v62 = vclamps-f32 %v9406_v50, 32.0  ;;  %v16142_v15 = vclamps-f32 %v1466_v52, 32.0  ;;  %v17567_v56 = vclamps-f32 %v9422_v36, 32.0  ;;  %v16159_v13 = vclamps-f32 %v1483_v58, 32.0  ;;  %v28665_v58 = vld [vmem:[#allocation42_spill] sm:$0xff] }
 0x3eb   : > { %v1490_v26 = vsub.f32 %v28571_v57, %v26610_v21  ;;  %v17584_v0 = vclamps-f32 %v9439_v40, 32.0  ;;  %v16158_v50 = vclamps-f32 %v1482_v32, 32.0  ;;  %v9447_v54 = vsub.f32 %v28474_v11, %v26592_v7 }
 0x3ec   : > { %v9455_v44 = vsub.f32 %v28664_v42, %v26592_v7  ;;  %v17575_v53 = vclamps-f32 %v9430_v55, 32.0  ;;  %v1506_v52 = vsub.f32 %v28473_v51, %v26610_v21  ;;  %v1515_v36 = vsub.f32 %v23365_v3, %v26592_v7 }
 0x3ed   : > { %19511 = vmatmul.mubr.msk.bf16.gmra.mrb[12].mxu0 %vm19510_vm0, %v28312_v16  ;;  %vm19516_vm0 = vmpackc.low %vm3020_vm11, %vm3012_vm10  ;;  %vm10943_vm10 = vcmp.eq.f32.partialorder %v17552_v33, %v28646_v35  ;;  %v17576_v33 = vclamps-f32 %v9431_v47, 32.0  ;;  %v16166_v30 = vclamps-f32 %v1490_v26, 32.0 }
 0x3ee   : > { %19513 = vmatprep.mubr.msk.bf16.mxu0 %vm19512_vm3, %v28312_v16  ;;  %vm10918_vm3 = vcmp.eq.f32.partialorder %v17527_v2, %v28650_v45  ;;  %vm20352_vm13 = vmpackc.low %vm10943_vm10, %vm10935_vm9  ;;  %v16150_v2 = vclamps-f32 %v1474_v43, 32.0  ;;  %vm3043_vm10 = vcmp.eq.f32.partialorder %v16142_v15, %v28650_v45  ;;  %v9446_v43 = vsub.f32 %v28474_v11, %v26610_v21  ;;  %v28667_v11 = vld [vmem:[#allocation43_spill] sm:$0xff] }
 0x3ef   : > { %20343 = vmatmul.mubr.msk.bf16.gmra.mrb[12].mxu1 %vm20342_vm4, %v28312_v16  ;;  %vm3019_vm4 = vcmp.eq.f32.partialorder %v16118_v20, %v28650_v45  ;;  %v1491_v20 = vsub.f32 %v28571_v57, %v26592_v7  ;;  %v9438_v57 = vsub.f32 %v28663_v63, %v26610_v21  ;;  %v9471_v47 = vsub.f32 %v28667_v11, %v26592_v7 }
 0x3f0   : > { %20345 = vmatprep.mubr.msk.bf16.mxu1 %vm20344_vm5, %v28312_v16  ;;  %vm10926_vm5 = vcmp.eq.f32.partialorder %v17535_v6, %v28650_v45  ;;  %vm19518_vm8 = vmpackc.low %vm3019_vm4, %vm3011_vm2  ;;  %vm3044_vm2 = vcmp.eq.f32.partialorder %v16143_v27, %v28646_v35  ;;  %vm3052_vm4 = vcmp.eq.f32.partialorder %v16151_v31, %v28646_v35  ;;  %v17559_v6 = vclamps-f32 %v9414_v5, 32.0 }
 0x3f1   : > { %vm20350_vm11 = vmpackc.low %vm10926_vm5, %vm10918_vm3  ;;  %vm10951_vm5 = vcmp.eq.f32.partialorder %v17560_v49, %v28646_v35  ;;  %v16167_v34 = vclamps-f32 %v1491_v20, 32.0  ;;  %v16183_v27 = vclamps-f32 %v1507_v41, 32.0  ;;  %v17592_v31 = vclamps-f32 %v9447_v54, 32.0 }
 0x3f2   : > { %v17600_v49 = vclamps-f32 %v9455_v44, 32.0  ;;  %v9454_v5 = vsub.f32 %v28664_v42, %v26610_v21  ;;  %v1523_v20 = vsub.f32 %v28665_v58, %v26592_v7  ;;  %v16182_v40 = vclamps-f32 %v1506_v52, 32.0 }
 0x3f3   : > { %v17591_v15 = vclamps-f32 %v9446_v43, 32.0  ;;  %v17616_v26 = vclamps-f32 %v9471_v47, 32.0  ;;  %v1555_v52 = vsub.f32 %v28577_v19, %v26592_v7 }
 0x3f5   : > { %19515 = vmatmul.mubr.msk.bf16.gmra.mrb[16].mxu0 %vm19514_vm12, %v28312_v16  ;;  %vm19520_vm12 = vmpackc.low %vm3036_vm7, %vm3028_vm6  ;;  %vm10959_vm6 = vcmp.eq.f32.partialorder %v17568_v17, %v28646_v35  ;;  %v1498_v17 = vsub.f32 %v28472_v18, %v26610_v21 }
 0x3f6   : > { %19517 = vmatprep.mubr.msk.bf16.mxu0 %vm19516_vm0, %v28312_v16  ;;  %vm10934_vm0 = vcmp.eq.f32.partialorder %v17543_v48, %v28650_v45  ;;  %vm20356_vm9 = vmpackc.low %vm10959_vm6, %vm10951_vm5  ;;  %v17583_v48 = vclamps-f32 %v9438_v57, 32.0  ;;  %vm3059_vm6 = vcmp.eq.f32.partialorder %v16158_v50, %v28650_v45  ;;  %v1531_v57 = vsub.f32 %v23445_v8, %v26592_v7 }
 0x3f7   : > { %20347 = vmatmul.mubr.msk.bf16.gmra.mrb[16].mxu1 %vm20346_vm15, %v28312_v16  ;;  %vm3035_vm15 = vcmp.eq.f32.partialorder %v16134_v23, %v28650_v45  ;;  %v1499_v23 = vsub.f32 %v28472_v18, %v26592_v7  ;;  %v28666_v18 = vld [vmem:[#allocation44_spill] sm:$0xff]  ;;  %v16174_v63 = vclamps-f32 %v1498_v17, 32.0  ;;  %v1539_v50 = vsub.f32 %v28477_v10, %v26592_v7 }
 0x3f8   : > { %20349 = vmatprep.mubr.msk.bf16.mxu1 %vm20348_vm1, %v28312_v16  ;;  %vm10942_vm1 = vcmp.eq.f32.partialorder %v17551_v62, %v28650_v45  ;;  %vm19522_vm3 = vmpackc.low %vm3035_vm15, %vm3027_vm14  ;;  %vm3060_vm14 = vcmp.eq.f32.partialorder %v16159_v13, %v28646_v35  ;;  %vm3068_vm15 = vcmp.eq.f32.partialorder %v16167_v34, %v28646_v35  ;;  %v9463_v51 = vsub.f32 %v28666_v18, %v26592_v7 }
 0x3f9   : > { %vm20354_vm7 = vmpackc.low %vm10942_vm1, %vm10934_vm0  ;;  %vm10967_vm1 = vcmp.eq.f32.partialorder %v17576_v33, %v28646_v35  ;;  %v16175_v62 = vclamps-f32 %v1499_v23, 32.0  ;;  %v1514_v13 = vsub.f32 %v23365_v3, %v26610_v21  ;;  %v1522_v34 = vsub.f32 %v28665_v58, %v26610_v21 }
 0x3fa   : > { %v17608_v32 = vclamps-f32 %v9463_v51, 32.0  ;;  %v9462_v3 = vsub.f32 %v28666_v18, %v26610_v21  ;;  %v9470_v33 = vsub.f32 %v28667_v11, %v26610_v21  ;;  %v9487_v23 = vsub.f32 %v28478_v25, %v26592_v7 }
 0x3fb   : > { %v16198_v55 = vclamps-f32 %v1522_v34, 32.0  ;;  %v16207_v42 = vclamps-f32 %v1531_v57, 32.0  ;;  %v16215_v44 = vclamps-f32 %v1539_v50, 32.0  ;;  %v1547_v17 = vsub.f32 %v23519_v1, %v26592_v7  ;;  %v28669_v50 = vld [vmem:[#allocation53_spill] sm:$0xff] }
 0x3fc   : > { %v17607_v41 = vclamps-f32 %v9462_v3, 32.0  ;;  %v17615_v54 = vclamps-f32 %v9470_v33, 32.0  ;;  %v1546_v18 = vsub.f32 %v23519_v1, %v26610_v21  ;;  %v1554_v51 = vsub.f32 %v28577_v19, %v26610_v21 }
 0x3fd   : > { %19519 = vmatmul.mubr.msk.bf16.gmra.mrb[20].mxu0 %vm19518_vm8, %v28312_v16  ;;  %vm19524_vm8 = vmpackc.low %vm3052_vm4, %vm3044_vm2  ;;  %vm10975_vm2 = vcmp.eq.f32.partialorder %v17584_v0, %v28646_v35  ;;  %v16190_v0 = vclamps-f32 %v1514_v13, 32.0  ;;  %v16223_v58 = vclamps-f32 %v1547_v17, 32.0  ;;  %v9494_v1 = vsub.f32 %v28578_v29, %v26610_v21 }
 0x3fe   : > { %19521 = vmatprep.mubr.msk.bf16.mxu0 %vm19520_vm12, %v28312_v16  ;;  %vm10950_vm12 = vcmp.eq.f32.partialorder %v17559_v6, %v28650_v45  ;;  %vm20360_vm5 = vmpackc.low %vm10975_vm2, %vm10967_vm1  ;;  %v16191_v6 = vclamps-f32 %v1515_v36, 32.0  ;;  %vm3075_vm2 = vcmp.eq.f32.partialorder %v16174_v63, %v28650_v45  ;;  %v16222_v63 = vclamps-f32 %v1546_v18, 32.0  ;;  %v28676_v18 = vld [vmem:[#allocation58_spill] sm:$0xff] }
 0x3ff   : > { %20351 = vmatmul.mubr.msk.bf16.gmra.mrb[20].mxu1 %vm20350_vm11, %v28312_v16  ;;  %vm3051_vm11 = vcmp.eq.f32.partialorder %v16150_v2, %v28650_v45  ;;  %v17599_v2 = vclamps-f32 %v9454_v5, 32.0  ;;  %v1562_v33 = vsub.f32 %v23594_v9, %v26610_v21  ;;  %v9518_v57 = vsub.f32 %v28483_v60, %v26610_v21 }
 0x400   : > { %20353 = vmatprep.mubr.msk.bf16.mxu1 %vm20352_vm13, %v28312_v16  ;;  %vm10958_vm13 = vcmp.eq.f32.partialorder %v17567_v56, %v28650_v45  ;;  %vm19526_vm0 = vmpackc.low %vm3051_vm11, %vm3043_vm10  ;;  %vm3076_vm10 = vcmp.eq.f32.partialorder %v16175_v62, %v28646_v35  ;;  %vm3084_vm11 = vcmp.eq.f32.partialorder %v16183_v27, %v28646_v35  ;;  %v16199_v56 = vclamps-f32 %v1523_v20, 32.0 }
 0x401   : > { %vm20358_vm4 = vmpackc.low %vm10958_vm13, %vm10950_vm12  ;;  %vm10983_vm13 = vcmp.eq.f32.partialorder %v17592_v31, %v28646_v35  ;;  %v1530_v62 = vsub.f32 %v23445_v8, %v26610_v21  ;;  %v1538_v27 = vsub.f32 %v28477_v10, %v26610_v21  ;;  %v9478_v31 = vsub.f32 %v23485_v46, %v26610_v21 }
 0x402   : > { %v9495_v8 = vsub.f32 %v28578_v29, %v26592_v7  ;;  %v16231_v20 = vclamps-f32 %v1555_v52, 32.0  ;;  %v9519_v29 = vsub.f32 %v28483_v60, %v26592_v7 }
 0x403   : > { %v16214_v43 = vclamps-f32 %v1538_v27, 32.0  ;;  %v17623_v5 = vclamps-f32 %v9478_v31, 32.0  ;;  %v1578_v27 = vsub.f32 %v28669_v50, %v26610_v21 }
 0x404   : > { %v17640_v11 = vclamps-f32 %v9495_v8, 32.0  ;;  %v17664_v3 = vclamps-f32 %v9519_v29, 32.0  ;;  %v27065_v29 = vld [vmem:[%s22461_s25 + $0x38] sm:$0xff] }
 0x405   : > { %19523 = vmatmul.mubr.msk.bf16.gmra.mrb[24].mxu0 %vm19522_vm3, %v28312_v16  ;;  %vm19528_vm3 = vmpackc.low %vm3068_vm15, %vm3060_vm14  ;;  %vm10991_vm14 = vcmp.eq.f32.partialorder %v17600_v49, %v28646_v35  ;;  %v9486_v49 = vsub.f32 %v28478_v25, %v26610_v21  ;;  %v16206_v25 = vclamps-f32 %v1530_v62, 32.0 }
 0x406   : > { %19525 = vmatprep.mubr.msk.bf16.mxu0 %vm19524_vm8, %v28312_v16  ;;  %vm10966_vm8 = vcmp.eq.f32.partialorder %v17575_v53, %v28650_v45  ;;  %vm20364_vm1 = vmpackc.low %vm10991_vm14, %vm10983_vm13  ;;  %vm3091_vm14 = vcmp.eq.f32.partialorder %v16190_v0, %v28650_v45  ;;  %v1570_v0 = vsub.f32 %v28482_v38, %v26610_v21 }
 0x407   : > { %20355 = vmatmul.mubr.msk.bf16.gmra.mrb[24].mxu1 %vm20354_vm7, %v28312_v16  ;;  %vm3067_vm7 = vcmp.eq.f32.partialorder %v16166_v30, %v28650_v45  ;;  %v9479_v30 = vsub.f32 %v23485_v46, %v26592_v7  ;;  %v28668_v46 = vld [vmem:[#allocation48_spill] sm:$0xff]  ;;  %v17631_v36 = vclamps-f32 %v9486_v49, 32.0 }
 0x408   : > { %20357 = vmatprep.mubr.msk.bf16.mxu1 %vm20356_vm9, %v28312_v16  ;;  %vm10974_vm9 = vcmp.eq.f32.partialorder %v17583_v48, %v28650_v45  ;;  %vm19530_vm12 = vmpackc.low %vm3067_vm7, %vm3059_vm6  ;;  %vm3092_vm6 = vcmp.eq.f32.partialorder %v16191_v6, %v28646_v35  ;;  %vm3100_vm7 = vcmp.eq.f32.partialorder %v16199_v56, %v28646_v35  ;;  %v17632_v48 = vclamps-f32 %v9487_v23, 32.0  ;;  %v28670_v23 = vld [vmem:[#allocation52_spill] sm:$0xff] }
 0x409   : > { %vm20362_vm15 = vmpackc.low %vm10974_vm9, %vm10966_vm8  ;;  %vm10999_vm9 = vcmp.eq.f32.partialorder %v17608_v32, %v28646_v35  ;;  %v17624_v53 = vclamps-f32 %v9479_v30, 32.0  ;;  %v9503_v10 = vsub.f32 %v28668_v46, %v26592_v7  ;;  %v9502_v19 = vsub.f32 %v28668_v46, %v26610_v21 }
 0x40a   : > { %v9511_v6 = vsub.f32 %v23639_v14, %v26592_v7  ;;  %v17639_v56 = vclamps-f32 %v9494_v1, 32.0  ;;  %v1579_v30 = vsub.f32 %v28669_v50, %v26592_v7  ;;  %v1586_v31 = vsub.f32 %v28670_v23, %v26610_v21 }
 0x40b   : > { %v17648_v47 = vclamps-f32 %v9503_v10, 32.0  ;;  %v17647_v13 = vclamps-f32 %v9502_v19, 32.0  ;;  %v16254_v46 = vclamps-f32 %v1578_v27, 32.0  ;;  %v28682_v27 = vld [vmem:[#allocation64_spill] sm:$0xff] }
 0x40c   : > { %v16262_v10 = vclamps-f32 %v1586_v31, 32.0  ;;  %v1635_v31 = vsub.f32 %v28682_v27, %v27065_v29 }
 0x40d   : > { %19527 = vmatmul.mubr.msk.bf16.gmra.mrb[28].mxu0 %vm19526_vm0, %v28312_v16  ;;  %vm19532_vm0 = vmpackc.low %vm3084_vm11, %vm3076_vm10  ;;  %vm11007_vm10 = vcmp.eq.f32.partialorder %v17616_v26, %v28646_v35  ;;  %v17656_v26 = vclamps-f32 %v9511_v6, 32.0  ;;  %v9550_v6 = vsub.f32 %v28676_v18, %v26610_v21 }
 0x40e   : > { %19529 = vmatprep.mubr.msk.bf16.mxu0 %vm19528_vm3, %v28312_v16  ;;  %vm10982_vm3 = vcmp.eq.f32.partialorder %v17591_v15, %v28650_v45  ;;  %vm20368_vm13 = vmpackc.low %vm11007_vm10, %vm10999_vm9  ;;  %vm3107_vm10 = vcmp.eq.f32.partialorder %v16206_v25, %v28650_v45  ;;  %v1563_v15 = vsub.f32 %v23594_v9, %v26592_v7  ;;  %v28671_v9 = vld [vmem:[#allocation55_spill] sm:$0xff]  ;;  %v28673_v25 = vld [vmem:[#allocation57_spill] sm:$0xff] }
 0x40f   : > { %20359 = vmatmul.mubr.msk.bf16.gmra.mrb[28].mxu1 %vm20358_vm4, %v28312_v16  ;;  %vm3083_vm4 = vcmp.eq.f32.partialorder %v16182_v40, %v28650_v45  ;;  %v16230_v40 = vclamps-f32 %v1554_v51, 32.0  ;;  %v9526_v52 = vsub.f32 %v28671_v9, %v26610_v21  ;;  %v9551_v51 = vsub.f32 %v28676_v18, %v26592_v7 }
 0x410   : > { %20361 = vmatprep.mubr.msk.bf16.mxu1 %vm20360_vm5, %v28312_v16  ;;  %vm10990_vm5 = vcmp.eq.f32.partialorder %v17599_v2, %v28650_v45  ;;  %vm19534_vm8 = vmpackc.low %vm3083_vm4, %vm3075_vm2  ;;  %vm3108_vm2 = vcmp.eq.f32.partialorder %v16207_v42, %v28646_v35  ;;  %vm3116_vm4 = vcmp.eq.f32.partialorder %v16215_v44, %v28646_v35  ;;  %v1571_v2 = vsub.f32 %v28482_v38, %v26592_v7  ;;  %v28672_v38 = vld [vmem:[#allocation54_spill] sm:$0xff] }
 0x411   : > { %vm20366_vm11 = vmpackc.low %vm10990_vm5, %vm10982_vm3  ;;  %vm11015_vm5 = vcmp.eq.f32.partialorder %v17624_v53, %v28646_v35  ;;  %v16239_v34 = vclamps-f32 %v1563_v15, 32.0  ;;  %v9535_v60 = vsub.f32 %v28672_v38, %v26592_v7  ;;  %v16246_v42 = vclamps-f32 %v1570_v0, 32.0 }
 0x412   : > { %v16247_v32 = vclamps-f32 %v1571_v2, 32.0  ;;  %v17663_v53 = vclamps-f32 %v9518_v57, 32.0  ;;  %v9534_v8 = vsub.f32 %v28672_v38, %v26610_v21  ;;  %v17695_v50 = vclamps-f32 %v9550_v6, 32.0 }
 0x413   : > { %v17680_v17 = vclamps-f32 %v9535_v60, 32.0 }
 0x415   : > { %19531 = vmatmul.mubr.msk.bf16.gmra.mrb[32].mxu0 %vm19530_vm12, %v28312_v16  ;;  %vm19536_vm12 = vmpackc.low %vm3100_vm7, %vm3092_vm6  ;;  %vm11023_vm6 = vcmp.eq.f32.partialorder %v17632_v48, %v28646_v35  ;;  %v16255_v48 = vclamps-f32 %v1579_v30, 32.0 }
 0x416   : > { %19533 = vmatprep.mubr.msk.bf16.mxu0 %vm19532_vm0, %v28312_v16  ;;  %vm10998_vm0 = vcmp.eq.f32.partialorder %v17607_v41, %v28650_v45  ;;  %vm20372_vm9 = vmpackc.low %vm11023_vm6, %vm11015_vm5  ;;  %vm3123_vm6 = vcmp.eq.f32.partialorder %v16222_v63, %v28650_v45  ;;  %v1587_v41 = vsub.f32 %v28670_v23, %v26592_v7  ;;  %v17696_v63 = vclamps-f32 %v9551_v51, 32.0 }
 0x417   : > { %20363 = vmatmul.mubr.msk.bf16.gmra.mrb[32].mxu1 %vm20362_vm15, %v28312_v16  ;;  %vm3099_vm15 = vcmp.eq.f32.partialorder %v16198_v55, %v28650_v45  ;;  %v9510_v55 = vsub.f32 %v23639_v14, %v26610_v21  ;;  %v9527_v14 = vsub.f32 %v28671_v9, %v26592_v7 }
 0x418   : > { %20365 = vmatprep.mubr.msk.bf16.mxu1 %vm20364_vm1, %v28312_v16  ;;  %vm11006_vm1 = vcmp.eq.f32.partialorder %v17615_v54, %v28650_v45  ;;  %vm19538_vm3 = vmpackc.low %vm3099_vm15, %vm3091_vm14  ;;  %vm3124_vm14 = vcmp.eq.f32.partialorder %v16223_v58, %v28646_v35  ;;  %vm3132_vm15 = vcmp.eq.f32.partialorder %v16231_v20, %v28646_v35  ;;  %v16238_v54 = vclamps-f32 %v1562_v33, 32.0  ;;  %v28675_v58 = vld [vmem:[#allocation59_spill] sm:$0xff] }
 0x419   : > { %vm20370_vm7 = vmpackc.low %vm11006_vm1, %vm10998_vm0  ;;  %vm11031_vm1 = vcmp.eq.f32.partialorder %v17640_v11, %v28646_v35  ;;  %v17655_v44 = vclamps-f32 %v9510_v55, 32.0  ;;  %v16263_v62 = vclamps-f32 %v1587_v41, 32.0  ;;  %v17672_v49 = vclamps-f32 %v9527_v14, 32.0  ;;  %v27084_v41 = vld [vmem:[%s22461_s25 + $0x30] sm:$0xff] }
 0x41a   : > { %v9543_v20 = vsub.f32 %v28675_v58, %v26592_v7  ;;  %v17671_v11 = vclamps-f32 %v9526_v52, 32.0  ;;  %v9542_v2 = vsub.f32 %v28675_v58, %v26610_v21  ;;  %v28684_v52 = vld [vmem:[#allocation66_spill] sm:$0xff] }
 0x41b   : > { %v9582_v51 = vsub.f32 %v28684_v52, %v27084_v41 }
 0x41c   : > { %v17687_v57 = vclamps-f32 %v9542_v2, 32.0 }
 0x41d   : > { %19535 = vmatmul.mubr.msk.bf16.gmra.mrb[36].mxu0 %vm19534_vm8, %v28312_v16  ;;  %vm19540_vm8 = vmpackc.low %vm3116_vm4, %vm3108_vm2  ;;  %vm11039_vm2 = vcmp.eq.f32.partialorder %v17648_v47, %v28646_v35  ;;  %v17679_v47 = vclamps-f32 %v9534_v8, 32.0  ;;  %v9583_v8 = vsub.f32 %v28684_v52, %v27065_v29 }
 0x41e   : > { %19537 = vmatprep.mubr.msk.bf16.mxu0 %vm19536_vm12, %v28312_v16  ;;  %vm11014_vm12 = vcmp.eq.f32.partialorder %v17623_v5, %v28650_v45  ;;  %vm20376_vm5 = vmpackc.low %vm11039_vm2, %vm11031_vm1  ;;  %vm3139_vm2 = vcmp.eq.f32.partialorder %v16238_v54, %v28650_v45  ;;  %v28674_v5 = vld [vmem:[#allocation56_spill] sm:$0xff] }
 0x41f   : > { %20367 = vmatmul.mubr.msk.bf16.gmra.mrb[36].mxu1 %vm20366_vm11, %v28312_v16  ;;  %vm3115_vm11 = vcmp.eq.f32.partialorder %v16214_v43, %v28650_v45  ;;  %v1595_v43 = vsub.f32 %v28673_v25, %v26592_v7  ;;  %v1602_v15 = vsub.f32 %v28674_v5, %v26610_v21 }
 0x420   : > { %20369 = vmatprep.mubr.msk.bf16.mxu1 %vm20368_vm13, %v28312_v16  ;;  %vm11022_vm13 = vcmp.eq.f32.partialorder %v17631_v36, %v28650_v45  ;;  %vm19542_vm0 = vmpackc.low %vm3115_vm11, %vm3107_vm10  ;;  %vm3140_vm10 = vcmp.eq.f32.partialorder %v16239_v34, %v28646_v35  ;;  %vm3148_vm11 = vcmp.eq.f32.partialorder %v16247_v32, %v28646_v35  ;;  %v1603_v36 = vsub.f32 %v28674_v5, %v26592_v7  ;;  %v28678_v34 = vld [vmem:[#allocation60_spill] sm:$0xff] }
 0x421   : > { %vm20374_vm4 = vmpackc.low %vm11022_vm13, %vm11014_vm12  ;;  %vm11047_vm13 = vcmp.eq.f32.partialorder %v17656_v26, %v28646_v35  ;;  %v16271_v1 = vclamps-f32 %v1595_v43, 32.0  ;;  %v17688_v7 = vclamps-f32 %v9543_v20, 32.0  ;;  %v1619_v32 = vsub.f32 %v28678_v34, %v27065_v29 }
 0x422   : > { %v16279_v19 = vclamps-f32 %v1603_v36, 32.0  ;;  %v16278_v55 = vclamps-f32 %v1602_v15, 32.0  ;;  %v1618_v14 = vsub.f32 %v28678_v34, %v27084_v41  ;;  %v16311_v43 = vclamps-f32 %v1635_v31, 32.0 }
 0x423   : > { %v16295_v23 = vclamps-f32 %v1619_v32, 32.0  ;;  %v17728_v36 = vclamps-f32 %v9583_v8, 32.0  ;;  %v1634_v20 = vsub.f32 %v28682_v27, %v27084_v41 }
 0x425   : > { %19539 = vmatmul.mubr.msk.bf16.gmra.mrb[40].mxu0 %vm19538_vm3, %v28312_v16  ;;  %vm19544_vm3 = vmpackc.low %vm3132_vm15, %vm3124_vm14  ;;  %vm11055_vm14 = vcmp.eq.f32.partialorder %v17664_v3, %v28646_v35  ;;  %v28680_v3 = vld [vmem:[#allocation62_spill] sm:$0xff]  ;;  %v16310_v6 = vclamps-f32 %v1634_v20, 32.0 }
 0x426   : > { %19541 = vmatprep.mubr.msk.bf16.mxu0 %vm19540_vm8, %v28312_v16  ;;  %vm11030_vm8 = vcmp.eq.f32.partialorder %v17639_v56, %v28650_v45  ;;  %vm20380_vm1 = vmpackc.low %vm11055_vm14, %vm11047_vm13  ;;  %vm3155_vm14 = vcmp.eq.f32.partialorder %v16254_v46, %v28650_v45  ;;  %v28677_v56 = vld [vmem:[#allocation61_spill] sm:$0xff]  ;;  %v9567_v33 = vsub.f32 %v28680_v3, %v27065_v29 }
 0x427   : > { %20371 = vmatmul.mubr.msk.bf16.gmra.mrb[40].mxu1 %vm20370_vm7, %v28312_v16  ;;  %vm3131_vm7 = vcmp.eq.f32.partialorder %v16230_v40, %v28650_v45  ;;  %v1594_v40 = vsub.f32 %v28673_v25, %v26610_v21  ;;  %v28679_v21 = vld [vmem:[#allocation63_spill] sm:$0xff]  ;;  %v1610_v9 = vsub.f32 %v28677_v56, %v27084_v41 }
 0x428   : > { %20373 = vmatprep.mubr.msk.bf16.mxu1 %vm20372_vm9, %v28312_v16  ;;  %vm11038_vm9 = vcmp.eq.f32.partialorder %v17647_v13, %v28650_v45  ;;  %vm19546_vm12 = vmpackc.low %vm3131_vm7, %vm3123_vm6  ;;  %vm3156_vm6 = vcmp.eq.f32.partialorder %v16255_v48, %v28646_v35  ;;  %vm3164_vm7 = vcmp.eq.f32.partialorder %v16263_v62, %v28646_v35  ;;  %v1611_v13 = vsub.f32 %v28677_v56, %v27065_v29  ;;  %v28681_v48 = vld [vmem:[#allocation65_spill] sm:$0xff] }
 0x429   : > { %vm20378_vm15 = vmpackc.low %vm11038_vm9, %vm11030_vm8  ;;  %vm11063_vm9 = vcmp.eq.f32.partialorder %v17672_v49, %v28646_v35  ;;  %v9559_v26 = vsub.f32 %v28679_v21, %v27065_v29  ;;  %v16270_v0 = vclamps-f32 %v1594_v40, 32.0  ;;  %v17712_v60 = vclamps-f32 %v9567_v33, 32.0  ;;  %v28683_v49 = vld [vmem:[#allocation67_spill] sm:$0xff]  ;;  %v28688_v40 = vld [vmem:[#allocation70_spill] sm:$0xff] }
 0x42a   : > { %v16287_v30 = vclamps-f32 %v1611_v13, 32.0  ;;  %v9558_v54 = vsub.f32 %v28679_v21, %v27084_v41  ;;  %v1627_v62 = vsub.f32 %v28681_v48, %v27065_v29  ;;  %v1626_v58 = vsub.f32 %v28681_v48, %v27084_v41 }
 0x42b   : > { %v17704_v38 = vclamps-f32 %v9559_v26, 32.0  ;;  %v9574_v18 = vsub.f32 %v28683_v49, %v27084_v41  ;;  %v9599_v15 = vsub.f32 %v28688_v40, %v27065_v29  ;;  %v17727_v13 = vclamps-f32 %v9582_v51, 32.0 }
 0x42c   : > { %v17703_v46 = vclamps-f32 %v9558_v54, 32.0  ;;  %v16303_v25 = vclamps-f32 %v1627_v62, 32.0  ;;  %v16302_v2 = vclamps-f32 %v1626_v58, 32.0  ;;  %v28692_v54 = vld [vmem:[#allocation74_spill] sm:$0xff] }
 0x42d   : > { %19543 = vmatmul.mubr.msk.bf16.gmra.mrb[44].mxu0 %vm19542_vm0, %v28312_v16  ;;  %vm19548_vm0 = vmpackc.low %vm3148_vm11, %vm3140_vm10  ;;  %vm11071_vm10 = vcmp.eq.f32.partialorder %v17680_v17, %v28646_v35  ;;  %v9575_v17 = vsub.f32 %v28683_v49, %v27065_v29  ;;  %v17719_v56 = vclamps-f32 %v9574_v18, 32.0  ;;  %v17744_v33 = vclamps-f32 %v9599_v15, 32.0  ;;  %v28696_v58 = vld [vmem:[#allocation78_spill] sm:$0xff] }
 0x42e   : > { %19545 = vmatprep.mubr.msk.bf16.mxu0 %vm19544_vm3, %v28312_v16  ;;  %vm11046_vm3 = vcmp.eq.f32.partialorder %v17655_v44, %v28650_v45  ;;  %vm20384_vm13 = vmpackc.low %vm11071_vm10, %vm11063_vm9  ;;  %vm3171_vm10 = vcmp.eq.f32.partialorder %v16270_v0, %v28650_v45  ;;  %v16286_v44 = vclamps-f32 %v1610_v9, 32.0  ;;  %v28690_v9 = vld [vmem:[#allocation72_spill] sm:$0xff]  ;;  %v9614_v8 = vsub.f32 %v28692_v54, %v27084_v41 }
 0x42f   : > { %20375 = vmatmul.mubr.msk.bf16.gmra.mrb[44].mxu1 %vm20374_vm4, %v28312_v16  ;;  %vm3147_vm4 = vcmp.eq.f32.partialorder %v16246_v42, %v28650_v45  ;;  %v9566_v42 = vsub.f32 %v28680_v3, %v27084_v41  ;;  %v17720_v5 = vclamps-f32 %v9575_v17, 32.0  ;;  %v1666_v17 = vsub.f32 %v28690_v9, %v27084_v41 }
 0x430   : > { %20377 = vmatprep.mubr.msk.bf16.mxu1 %vm20376_vm5, %v28312_v16  ;;  %vm11054_vm5 = vcmp.eq.f32.partialorder %v17663_v53, %v28650_v45  ;;  %vm19550_vm8 = vmpackc.low %vm3147_vm4, %vm3139_vm2  ;;  %vm3172_vm2 = vcmp.eq.f32.partialorder %v16271_v1, %v28646_v35  ;;  %vm3180_vm4 = vcmp.eq.f32.partialorder %v16279_v19, %v28646_v35  ;;  %v16294_v53 = vclamps-f32 %v1618_v14, 32.0  ;;  %v28686_v1 = vld [vmem:[#allocation68_spill] sm:$0xff] }
 0x431   : > { %vm20382_vm11 = vmpackc.low %vm11054_vm5, %vm11046_vm3  ;;  %vm11079_vm5 = vcmp.eq.f32.partialorder %v17688_v7, %v28646_v35  ;;  %v1651_v19 = vsub.f32 %v28686_v1, %v27065_v29  ;;  %v28687_v7 = vld [vmem:[#allocation71_spill] sm:$0xff]  ;;  %v1650_v26 = vsub.f32 %v28686_v1, %v27084_v41  ;;  %v1667_v14 = vsub.f32 %v28690_v9, %v27065_v29 }
 0x432   : > { %v9590_v0 = vsub.f32 %v28687_v7, %v27084_v41  ;;  %v9631_v20 = vsub.f32 %v28696_v58, %v27065_v29  ;;  %v16342_v51 = vclamps-f32 %v1666_v17, 32.0 }
 0x433   : > { %v16327_v32 = vclamps-f32 %v1651_v19, 32.0  ;;  %v16343_v62 = vclamps-f32 %v1667_v14, 32.0 }
 0x434   : > { %v17776_v15 = vclamps-f32 %v9631_v20, 32.0 }
 0x435   : > { %19547 = vmatmul.mubr.msk.bf16.gmra.mrb[48].mxu0 %vm19546_vm12, %v28312_v16  ;;  %vm19552_vm12 = vmpackc.low %vm3164_vm7, %vm3156_vm6  ;;  %vm11087_vm6 = vcmp.eq.f32.partialorder %v17696_v63, %v28646_v35  ;;  %v9591_v63 = vsub.f32 %v28687_v7, %v27065_v29 }
 0x436   : > { %19549 = vmatprep.mubr.msk.bf16.mxu0 %vm19548_vm0, %v28312_v16  ;;  %vm11062_vm0 = vcmp.eq.f32.partialorder %v17671_v11, %v28650_v45  ;;  %vm20388_vm9 = vmpackc.low %vm11087_vm6, %vm11079_vm5  ;;  %vm3187_vm6 = vcmp.eq.f32.partialorder %v16286_v44, %v28650_v45  ;;  %v28685_v11 = vld [vmem:[#allocation69_spill] sm:$0xff]  ;;  %v17735_v44 = vclamps-f32 %v9590_v0, 32.0  ;;  %v28700_v0 = vld [vmem:[#allocation82_spill] sm:$0xff] }
 0x437   : > { %20379 = vmatmul.mubr.msk.bf16.gmra.mrb[48].mxu1 %vm20378_vm15, %v28312_v16  ;;  %vm3163_vm15 = vcmp.eq.f32.partialorder %v16262_v10, %v28650_v45  ;;  %v17711_v10 = vclamps-f32 %v9566_v42, 32.0  ;;  %v1642_v21 = vsub.f32 %v28685_v11, %v27084_v41  ;;  %v17736_v3 = vclamps-f32 %v9591_v63, 32.0 }
 0x438   : > { %20381 = vmatprep.mubr.msk.bf16.mxu1 %vm20380_vm1, %v28312_v16  ;;  %vm11070_vm1 = vcmp.eq.f32.partialorder %v17679_v47, %v28650_v45  ;;  %vm19554_vm3 = vmpackc.low %vm3163_vm15, %vm3155_vm14  ;;  %vm3188_vm14 = vcmp.eq.f32.partialorder %v16287_v30, %v28646_v35  ;;  %vm3196_vm15 = vcmp.eq.f32.partialorder %v16295_v23, %v28646_v35  ;;  %v1643_v47 = vsub.f32 %v28685_v11, %v27065_v29  ;;  %v28689_v30 = vld [vmem:[#allocation73_spill] sm:$0xff] }
 0x439   : > { %vm20386_vm7 = vmpackc.low %vm11070_vm1, %vm11062_vm0  ;;  %vm11095_vm1 = vcmp.eq.f32.partialorder %v17704_v38, %v28646_v35  ;;  %v1659_v23 = vsub.f32 %v28689_v30, %v27065_v29  ;;  %v28691_v38 = vld [vmem:[#allocation75_spill] sm:$0xff]  ;;  %v9615_v42 = vsub.f32 %v28692_v54, %v27065_v29  ;;  %v1658_v49 = vsub.f32 %v28689_v30, %v27084_v41 }
 0x43a   : > { %v16319_v34 = vclamps-f32 %v1643_v47, 32.0  ;;  %v9606_v52 = vsub.f32 %v28691_v38, %v27084_v41  ;;  %v17759_v47 = vclamps-f32 %v9614_v8, 32.0 }
 0x43b   : > { %v16335_v48 = vclamps-f32 %v1659_v23, 32.0  ;;  %v17760_v31 = vclamps-f32 %v9615_v42, 32.0  ;;  %v16334_v18 = vclamps-f32 %v1658_v49, 32.0  ;;  %v9646_v42 = vsub.f32 %v28700_v0, %v27084_v41  ;;  %v28704_v49 = vld [vmem:[#allocation86_spill] sm:$0xff] }
 0x43c   : > { %v17751_v11 = vclamps-f32 %v9606_v52, 32.0  ;;  %v9663_v17 = vsub.f32 %v28704_v49, %v27065_v29 }
 0x43d   : > { %19551 = vmatmul.mubr.msk.bf16.gmra.mrb[52].mxu0 %vm19550_vm8, %v28312_v16  ;;  %vm19556_vm8 = vmpackc.low %vm3180_vm4, %vm3172_vm2  ;;  %vm11103_vm2 = vcmp.eq.f32.partialorder %v17712_v60, %v28646_v35  ;;  %v9607_v60 = vsub.f32 %v28691_v38, %v27065_v29 }
 0x43e   : > { %19553 = vmatprep.mubr.msk.bf16.mxu0 %vm19552_vm12, %v28312_v16  ;;  %vm11078_vm12 = vcmp.eq.f32.partialorder %v17687_v57, %v28650_v45  ;;  %vm20392_vm5 = vmpackc.low %vm11103_vm2, %vm11095_vm1  ;;  %vm3203_vm2 = vcmp.eq.f32.partialorder %v16302_v2, %v28650_v45  ;;  %v16318_v57 = vclamps-f32 %v1642_v21, 32.0  ;;  %v28698_v21 = vld [vmem:[#allocation80_spill] sm:$0xff]  ;;  %v17808_v20 = vclamps-f32 %v9663_v17, 32.0 }
 0x43f   : > { %20383 = vmatmul.mubr.msk.bf16.gmra.mrb[52].mxu1 %vm20382_vm11, %v28312_v16  ;;  %vm3179_vm11 = vcmp.eq.f32.partialorder %v16278_v55, %v28650_v45  ;;  %v9598_v55 = vsub.f32 %v28688_v40, %v27084_v41  ;;  %v17752_v27 = vclamps-f32 %v9607_v60, 32.0  ;;  %v1698_v60 = vsub.f32 %v28698_v21, %v27084_v41 }
 0x440   : > { %20385 = vmatprep.mubr.msk.bf16.mxu1 %vm20384_vm13, %v28312_v16  ;;  %vm11086_vm13 = vcmp.eq.f32.partialorder %v17695_v50, %v28650_v45  ;;  %vm19558_vm0 = vmpackc.low %vm3179_vm11, %vm3171_vm10  ;;  %vm3204_vm10 = vcmp.eq.f32.partialorder %v16303_v25, %v28646_v35  ;;  %vm3212_vm11 = vcmp.eq.f32.partialorder %v16311_v43, %v28646_v35  ;;  %v16326_v50 = vclamps-f32 %v1650_v26, 32.0  ;;  %v28694_v25 = vld [vmem:[#allocation76_spill] sm:$0xff] }
 0x441   : > { %vm20390_vm4 = vmpackc.low %vm11086_vm13, %vm11078_vm12  ;;  %vm11111_vm13 = vcmp.eq.f32.partialorder %v17720_v5, %v28646_v35  ;;  %v1683_v43 = vsub.f32 %v28694_v25, %v27065_v29  ;;  %v28695_v5 = vld [vmem:[#allocation79_spill] sm:$0xff]  ;;  %v1682_v63 = vsub.f32 %v28694_v25, %v27084_v41  ;;  %v1699_v26 = vsub.f32 %v28698_v21, %v27065_v29 }
 0x442   : > { %v9622_v2 = vsub.f32 %v28695_v5, %v27084_v41  ;;  %v16374_v8 = vclamps-f32 %v1698_v60, 32.0 }
 0x443   : > { %v16359_v19 = vclamps-f32 %v1683_v43, 32.0  ;;  %v16375_v23 = vclamps-f32 %v1699_v26, 32.0 }
 0x445   : > { %19555 = vmatmul.mubr.msk.bf16.gmra.mrb[56].mxu0 %vm19554_vm3, %v28312_v16  ;;  %vm19560_vm3 = vmpackc.low %vm3196_vm15, %vm3188_vm14  ;;  %vm11119_vm14 = vcmp.eq.f32.partialorder %v17728_v36, %v28646_v35  ;;  %v9623_v36 = vsub.f32 %v28695_v5, %v27065_v29 }
 0x446   : > { %19557 = vmatprep.mubr.msk.bf16.mxu0 %vm19556_vm8, %v28312_v16  ;;  %vm11094_vm8 = vcmp.eq.f32.partialorder %v17703_v46, %v28650_v45  ;;  %vm20396_vm1 = vmpackc.low %vm11119_vm14, %vm11111_vm13  ;;  %vm3219_vm14 = vcmp.eq.f32.partialorder %v16318_v57, %v28650_v45  ;;  %v28693_v46 = vld [vmem:[#allocation77_spill] sm:$0xff]  ;;  %v17767_v57 = vclamps-f32 %v9622_v2, 32.0  ;;  %v28708_v2 = vld [vmem:[#allocation90_spill] sm:$0xff] }
 0x447   : > { %20387 = vmatmul.mubr.msk.bf16.gmra.mrb[56].mxu1 %vm20386_vm7, %v28312_v16  ;;  %vm3195_vm7 = vcmp.eq.f32.partialorder %v16294_v53, %v28650_v45  ;;  %v17743_v53 = vclamps-f32 %v9598_v55, 32.0  ;;  %v1674_v7 = vsub.f32 %v28693_v46, %v27084_v41  ;;  %v17768_v40 = vclamps-f32 %v9623_v36, 32.0 }
 0x448   : > { %20389 = vmatprep.mubr.msk.bf16.mxu1 %vm20388_vm9, %v28312_v16  ;;  %vm11102_vm9 = vcmp.eq.f32.partialorder %v17711_v10, %v28650_v45  ;;  %vm19562_vm12 = vmpackc.low %vm3195_vm7, %vm3187_vm6  ;;  %vm3220_vm6 = vcmp.eq.f32.partialorder %v16319_v34, %v28646_v35  ;;  %vm3228_vm7 = vcmp.eq.f32.partialorder %v16327_v32, %v28646_v35  ;;  %v1675_v10 = vsub.f32 %v28693_v46, %v27065_v29  ;;  %v28697_v34 = vld [vmem:[#allocation81_spill] sm:$0xff] }
 0x449   : > { %vm20394_vm15 = vmpackc.low %vm11102_vm9, %vm11094_vm8  ;;  %vm11127_vm9 = vcmp.eq.f32.partialorder %v17736_v3, %v28646_v35  ;;  %v1691_v32 = vsub.f32 %v28697_v34, %v27065_v29  ;;  %v28699_v3 = vld [vmem:[#allocation83_spill] sm:$0xff]  ;;  %v9647_v55 = vsub.f32 %v28700_v0, %v27065_v29  ;;  %v1690_v38 = vsub.f32 %v28697_v34, %v27084_v41 }
 0x44a   : > { %v16351_v1 = vclamps-f32 %v1675_v10, 32.0  ;;  %v9638_v54 = vsub.f32 %v28699_v3, %v27084_v41  ;;  %v17791_v10 = vclamps-f32 %v9646_v42, 32.0 }
 0x44b   : > { %v16367_v30 = vclamps-f32 %v1691_v32, 32.0  ;;  %v17792_v14 = vclamps-f32 %v9647_v55, 32.0  ;;  %v16366_v52 = vclamps-f32 %v1690_v38, 32.0  ;;  %v9678_v55 = vsub.f32 %v28708_v2, %v27084_v41  ;;  %v28712_v38 = vld [vmem:[#allocation94_spill] sm:$0xff] }
 0x44c   : > { %v17783_v46 = vclamps-f32 %v9638_v54, 32.0  ;;  %v9695_v60 = vsub.f32 %v28712_v38, %v27065_v29 }
 0x44d   : > { %19559 = vmatmul.mubr.msk.bf16.gmra.mrb[60].mxu0 %vm19558_vm0, %v28312_v16  ;;  %vm19564_vm0 = vmpackc.low %vm3212_vm11, %vm3204_vm10  ;;  %vm11135_vm10 = vcmp.eq.f32.partialorder %v17744_v33, %v28646_v35  ;;  %v9639_v33 = vsub.f32 %v28699_v3, %v27065_v29 }
 0x44e   : > { %19561 = vmatprep.mubr.msk.bf16.mxu0 %vm19560_vm3, %v28312_v16  ;;  %vm11110_vm3 = vcmp.eq.f32.partialorder %v17719_v56, %v28650_v45  ;;  %vm20400_vm13 = vmpackc.low %vm11135_vm10, %vm11127_vm9  ;;  %vm3235_vm10 = vcmp.eq.f32.partialorder %v16334_v18, %v28650_v45  ;;  %v16350_v56 = vclamps-f32 %v1674_v7, 32.0  ;;  %v28706_v7 = vld [vmem:[#allocation88_spill] sm:$0xff]  ;;  %v17840_v17 = vclamps-f32 %v9695_v60, 32.0 }
 0x44f   : > { %20391 = vmatmul.mubr.msk.bf16.gmra.mrb[60].mxu1 %vm20390_vm4, %v28312_v16  ;;  %vm3211_vm4 = vcmp.eq.f32.partialorder %v16310_v6, %v28650_v45  ;;  %v9630_v6 = vsub.f32 %v28696_v58, %v27084_v41  ;;  %v17784_v9 = vclamps-f32 %v9639_v33, 32.0  ;;  %v1730_v33 = vsub.f32 %v28706_v7, %v27084_v41 }
 0x450   : > { %20393 = vmatprep.mubr.msk.bf16.mxu1 %vm20392_vm5, %v28312_v16  ;;  %vm11118_vm5 = vcmp.eq.f32.partialorder %v17727_v13, %v28650_v45  ;;  %vm19566_vm8 = vmpackc.low %vm3211_vm4, %vm3203_vm2  ;;  %vm3236_vm2 = vcmp.eq.f32.partialorder %v16335_v48, %v28646_v35  ;;  %vm3244_vm4 = vcmp.eq.f32.partialorder %v16343_v62, %v28646_v35  ;;  %v16358_v13 = vclamps-f32 %v1682_v63, 32.0  ;;  %v28702_v48 = vld [vmem:[#allocation84_spill] sm:$0xff] }
 0x451   : > { %vm20398_vm11 = vmpackc.low %vm11118_vm5, %vm11110_vm3  ;;  %vm11143_vm5 = vcmp.eq.f32.partialorder %v17752_v27, %v28646_v35  ;;  %v1715_v62 = vsub.f32 %v28702_v48, %v27065_v29  ;;  %v28703_v27 = vld [vmem:[#allocation87_spill] sm:$0xff]  ;;  %v1714_v36 = vsub.f32 %v28702_v48, %v27084_v41  ;;  %v1731_v63 = vsub.f32 %v28706_v7, %v27065_v29 }
 0x452   : > { %v9654_v18 = vsub.f32 %v28703_v27, %v27084_v41  ;;  %v16406_v42 = vclamps-f32 %v1730_v33, 32.0 }
 0x453   : > { %v16391_v43 = vclamps-f32 %v1715_v62, 32.0  ;;  %v16407_v32 = vclamps-f32 %v1731_v63, 32.0 }
 0x455   : > { %19563 = vmatmul.mubr.msk.bf16.gmra.mrb[64].mxu0 %vm19562_vm12, %v28312_v16  ;;  %vm19568_vm12 = vmpackc.low %vm3228_vm7, %vm3220_vm6  ;;  %vm11151_vm6 = vcmp.eq.f32.partialorder %v17760_v31, %v28646_v35  ;;  %v9655_v31 = vsub.f32 %v28703_v27, %v27065_v29 }
 0x456   : > { %19565 = vmatprep.mubr.msk.bf16.mxu0 %vm19564_vm0, %v28312_v16  ;;  %vm11126_vm0 = vcmp.eq.f32.partialorder %v17735_v44, %v28650_v45  ;;  %vm20404_vm9 = vmpackc.low %vm11151_vm6, %vm11143_vm5  ;;  %vm3251_vm6 = vcmp.eq.f32.partialorder %v16350_v56, %v28650_v45  ;;  %v28701_v44 = vld [vmem:[#allocation85_spill] sm:$0xff]  ;;  %v17799_v56 = vclamps-f32 %v9654_v18, 32.0  ;;  %v28716_v18 = vld [vmem:[#allocation98_spill] sm:$0xff] }
 0x457   : > { %20395 = vmatmul.mubr.msk.bf16.gmra.mrb[64].mxu1 %vm20394_vm15, %v28312_v16  ;;  %vm3227_vm15 = vcmp.eq.f32.partialorder %v16326_v50, %v28650_v45  ;;  %v17775_v50 = vclamps-f32 %v9630_v6, 32.0  ;;  %v1706_v5 = vsub.f32 %v28701_v44, %v27084_v41  ;;  %v17800_v58 = vclamps-f32 %v9655_v31, 32.0 }
 0x458   : > { %20397 = vmatprep.mubr.msk.bf16.mxu1 %vm20396_vm1, %v28312_v16  ;;  %vm11134_vm1 = vcmp.eq.f32.partialorder %v17743_v53, %v28650_v45  ;;  %vm19570_vm3 = vmpackc.low %vm3227_vm15, %vm3219_vm14  ;;  %vm3252_vm14 = vcmp.eq.f32.partialorder %v16351_v1, %v28646_v35  ;;  %vm3260_vm15 = vcmp.eq.f32.partialorder %v16359_v19, %v28646_v35  ;;  %v1707_v53 = vsub.f32 %v28701_v44, %v27065_v29  ;;  %v28705_v1 = vld [vmem:[#allocation89_spill] sm:$0xff] }
 0x459   : > { %vm20402_vm7 = vmpackc.low %vm11134_vm1, %vm11126_vm0  ;;  %vm11159_vm1 = vcmp.eq.f32.partialorder %v17768_v40, %v28646_v35  ;;  %v1723_v19 = vsub.f32 %v28705_v1, %v27065_v29  ;;  %v28707_v40 = vld [vmem:[#allocation91_spill] sm:$0xff]  ;;  %v9679_v6 = vsub.f32 %v28708_v2, %v27065_v29  ;;  %v1722_v3 = vsub.f32 %v28705_v1, %v27084_v41 }
 0x45a   : > { %v16383_v25 = vclamps-f32 %v1707_v53, 32.0  ;;  %v9670_v0 = vsub.f32 %v28707_v40, %v27084_v41  ;;  %v17823_v53 = vclamps-f32 %v9678_v55, 32.0 }
 0x45b   : > { %v16399_v34 = vclamps-f32 %v1723_v19, 32.0  ;;  %v17824_v26 = vclamps-f32 %v9679_v6, 32.0  ;;  %v16398_v54 = vclamps-f32 %v1722_v3, 32.0  ;;  %v9710_v6 = vsub.f32 %v28716_v18, %v27084_v41  ;;  %v28720_v3 = vld [vmem:[#allocation102_spill] sm:$0xff] }
 0x45c   : > { %v17815_v44 = vclamps-f32 %v9670_v0, 32.0  ;;  %v9727_v33 = vsub.f32 %v28720_v3, %v27065_v29 }
 0x45d   : > { %19567 = vmatmul.mubr.msk.bf16.gmra.mrb[68].mxu0 %vm19566_vm8, %v28312_v16  ;;  %vm19572_vm8 = vmpackc.low %vm3244_vm4, %vm3236_vm2  ;;  %vm11167_vm2 = vcmp.eq.f32.partialorder %v17776_v15, %v28646_v35  ;;  %v9671_v15 = vsub.f32 %v28707_v40, %v27065_v29 }
 0x45e   : > { %19569 = vmatprep.mubr.msk.bf16.mxu0 %vm19568_vm12, %v28312_v16  ;;  %vm11142_vm12 = vcmp.eq.f32.partialorder %v17751_v11, %v28650_v45  ;;  %vm20408_vm5 = vmpackc.low %vm11167_vm2, %vm11159_vm1  ;;  %vm3267_vm2 = vcmp.eq.f32.partialorder %v16366_v52, %v28650_v45  ;;  %v16382_v11 = vclamps-f32 %v1706_v5, 32.0  ;;  %v28714_v5 = vld [vmem:[#allocation96_spill] sm:$0xff]  ;;  %v17872_v60 = vclamps-f32 %v9727_v33, 32.0 }
 0x45f   : > { %20399 = vmatmul.mubr.msk.bf16.gmra.mrb[68].mxu1 %vm20398_vm11, %v28312_v16  ;;  %vm3243_vm11 = vcmp.eq.f32.partialorder %v16342_v51, %v28650_v45  ;;  %v9662_v51 = vsub.f32 %v28704_v49, %v27084_v41  ;;  %v17816_v21 = vclamps-f32 %v9671_v15, 32.0  ;;  %v1762_v15 = vsub.f32 %v28714_v5, %v27084_v41 }
 0x460   : > { %20401 = vmatprep.mubr.msk.bf16.mxu1 %vm20400_vm13, %v28312_v16  ;;  %vm11150_vm13 = vcmp.eq.f32.partialorder %v17759_v47, %v28650_v45  ;;  %vm19574_vm0 = vmpackc.low %vm3243_vm11, %vm3235_vm10  ;;  %vm3268_vm10 = vcmp.eq.f32.partialorder %v16367_v30, %v28646_v35  ;;  %vm3276_vm11 = vcmp.eq.f32.partialorder %v16375_v23, %v28646_v35  ;;  %v16390_v47 = vclamps-f32 %v1714_v36, 32.0  ;;  %v28710_v30 = vld [vmem:[#allocation92_spill] sm:$0xff] }
 0x461   : > { %vm20406_vm4 = vmpackc.low %vm11150_vm13, %vm11142_vm12  ;;  %vm11175_vm13 = vcmp.eq.f32.partialorder %v17784_v9, %v28646_v35  ;;  %v1747_v23 = vsub.f32 %v28710_v30, %v27065_v29  ;;  %v28711_v9 = vld [vmem:[#allocation95_spill] sm:$0xff]  ;;  %v1746_v31 = vsub.f32 %v28710_v30, %v27084_v41  ;;  %v1763_v36 = vsub.f32 %v28714_v5, %v27065_v29 }
 0x462   : > { %v9686_v52 = vsub.f32 %v28711_v9, %v27084_v41  ;;  %v16438_v55 = vclamps-f32 %v1762_v15, 32.0 }
 0x463   : > { %v16423_v62 = vclamps-f32 %v1747_v23, 32.0  ;;  %v16439_v19 = vclamps-f32 %v1763_v36, 32.0 }
 0x465   : > { %19571 = vmatmul.mubr.msk.bf16.gmra.mrb[72].mxu0 %vm19570_vm3, %v28312_v16  ;;  %vm19576_vm3 = vmpackc.low %vm3260_vm15, %vm3252_vm14  ;;  %vm11183_vm14 = vcmp.eq.f32.partialorder %v17792_v14, %v28646_v35  ;;  %v9687_v14 = vsub.f32 %v28711_v9, %v27065_v29 }
 0x466   : > { %19573 = vmatprep.mubr.msk.bf16.mxu0 %vm19572_vm8, %v28312_v16  ;;  %vm11158_vm8 = vcmp.eq.f32.partialorder %v17767_v57, %v28650_v45  ;;  %vm20412_vm1 = vmpackc.low %vm11183_vm14, %vm11175_vm13  ;;  %vm3283_vm14 = vcmp.eq.f32.partialorder %v16382_v11, %v28650_v45  ;;  %v28709_v57 = vld [vmem:[#allocation93_spill] sm:$0xff]  ;;  %v17831_v11 = vclamps-f32 %v9686_v52, 32.0  ;;  %v28724_v52 = vld [vmem:[#allocation106_spill] sm:$0xff] }
 0x467   : > { %20403 = vmatmul.mubr.msk.bf16.gmra.mrb[72].mxu1 %vm20402_vm7, %v28312_v16  ;;  %vm3259_vm7 = vcmp.eq.f32.partialorder %v16358_v13, %v28650_v45  ;;  %v17807_v13 = vclamps-f32 %v9662_v51, 32.0  ;;  %v1738_v27 = vsub.f32 %v28709_v57, %v27084_v41  ;;  %v17832_v49 = vclamps-f32 %v9687_v14, 32.0 }
 0x468   : > { %20405 = vmatprep.mubr.msk.bf16.mxu1 %vm20404_vm9, %v28312_v16  ;;  %vm11166_vm9 = vcmp.eq.f32.partialorder %v17775_v50, %v28650_v45  ;;  %vm19578_vm12 = vmpackc.low %vm3259_vm7, %vm3251_vm6  ;;  %vm3284_vm6 = vcmp.eq.f32.partialorder %v16383_v25, %v28646_v35  ;;  %vm3292_vm7 = vcmp.eq.f32.partialorder %v16391_v43, %v28646_v35  ;;  %v1739_v50 = vsub.f32 %v28709_v57, %v27065_v29  ;;  %v28713_v25 = vld [vmem:[#allocation97_spill] sm:$0xff] }
 0x469   : > { %vm20410_vm15 = vmpackc.low %vm11166_vm9, %vm11158_vm8  ;;  %vm11191_vm9 = vcmp.eq.f32.partialorder %v17800_v58, %v28646_v35  ;;  %v1755_v43 = vsub.f32 %v28713_v25, %v27065_v29  ;;  %v28715_v58 = vld [vmem:[#allocation99_spill] sm:$0xff]  ;;  %v9711_v51 = vsub.f32 %v28716_v18, %v27065_v29  ;;  %v1754_v40 = vsub.f32 %v28713_v25, %v27084_v41 }
 0x46a   : > { %v16415_v48 = vclamps-f32 %v1739_v50, 32.0  ;;  %v9702_v2 = vsub.f32 %v28715_v58, %v27084_v41  ;;  %v17855_v50 = vclamps-f32 %v9710_v6, 32.0 }
 0x46b   : > { %v16431_v1 = vclamps-f32 %v1755_v43, 32.0  ;;  %v17856_v63 = vclamps-f32 %v9711_v51, 32.0  ;;  %v16430_v0 = vclamps-f32 %v1754_v40, 32.0  ;;  %v9742_v51 = vsub.f32 %v28724_v52, %v27084_v41 }
 0x46c   : > { %v17847_v57 = vclamps-f32 %v9702_v2, 32.0 }
 0x46d   : > { %19575 = vmatmul.mubr.msk.bf16.gmra.mrb[76].mxu0 %vm19574_vm0, %v28312_v16  ;;  %vm19580_vm0 = vmpackc.low %vm3276_vm11, %vm3268_vm10  ;;  %vm11199_vm10 = vcmp.eq.f32.partialorder %v17808_v20, %v28646_v35  ;;  %v9703_v20 = vsub.f32 %v28715_v58, %v27065_v29  ;;  %v17887_v6 = vclamps-f32 %v9742_v51, 32.0 }
 0x46e   : > { %19577 = vmatprep.mubr.msk.bf16.mxu0 %vm19576_vm3, %v28312_v16  ;;  %vm11174_vm3 = vcmp.eq.f32.partialorder %v17783_v46, %v28650_v45  ;;  %vm20416_vm13 = vmpackc.low %vm11199_vm10, %vm11191_vm9  ;;  %vm3299_vm10 = vcmp.eq.f32.partialorder %v16398_v54, %v28650_v45  ;;  %v16414_v46 = vclamps-f32 %v1738_v27, 32.0  ;;  %v28722_v27 = vld [vmem:[#allocation104_spill] sm:$0xff] }
 0x46f   : > { %20407 = vmatmul.mubr.msk.bf16.gmra.mrb[76].mxu1 %vm20406_vm4, %v28312_v16  ;;  %vm3275_vm4 = vcmp.eq.f32.partialorder %v16374_v8, %v28650_v45  ;;  %v9694_v8 = vsub.f32 %v28712_v38, %v27084_v41  ;;  %v17848_v7 = vclamps-f32 %v9703_v20, 32.0  ;;  %v1794_v20 = vsub.f32 %v28722_v27, %v27084_v41 }
 0x470   : > { %20409 = vmatprep.mubr.msk.bf16.mxu1 %vm20408_vm5, %v28312_v16  ;;  %vm11182_vm5 = vcmp.eq.f32.partialorder %v17791_v10, %v28650_v45  ;;  %vm19582_vm8 = vmpackc.low %vm3275_vm4, %vm3267_vm2  ;;  %vm3300_vm2 = vcmp.eq.f32.partialorder %v16399_v34, %v28646_v35  ;;  %vm3308_vm4 = vcmp.eq.f32.partialorder %v16407_v32, %v28646_v35  ;;  %v16422_v10 = vclamps-f32 %v1746_v31, 32.0  ;;  %v28718_v34 = vld [vmem:[#allocation100_spill] sm:$0xff] }
 0x471   : > { %vm20414_vm11 = vmpackc.low %vm11182_vm5, %vm11174_vm3  ;;  %vm11207_vm5 = vcmp.eq.f32.partialorder %v17816_v21, %v28646_v35  ;;  %v1779_v32 = vsub.f32 %v28718_v34, %v27065_v29  ;;  %v28719_v21 = vld [vmem:[#allocation103_spill] sm:$0xff]  ;;  %v1778_v14 = vsub.f32 %v28718_v34, %v27084_v41  ;;  %v1795_v31 = vsub.f32 %v28722_v27, %v27065_v29 }
 0x472   : > { %v9718_v54 = vsub.f32 %v28719_v21, %v27084_v41  ;;  %v16470_v15 = vclamps-f32 %v1794_v20, 32.0  ;;  %v1802_v34 = vsub.f32 %v28634_v24, %v27084_v41 }
 0x473   : > { %v16455_v23 = vclamps-f32 %v1779_v32, 32.0  ;;  %v16471_v43 = vclamps-f32 %v1795_v31, 32.0  ;;  %v1810_v32 = vsub.f32 %v28635_v28, %v27084_v41 }
 0x475   : > { %19579 = vmatmul.mubr.msk.bf16.gmra.mrb[80].mxu0 %vm19578_vm12, %v28312_v16  ;;  %vm19584_vm12 = vmpackc.low %vm3292_vm7, %vm3284_vm6  ;;  %vm11215_vm6 = vcmp.eq.f32.partialorder %v17824_v26, %v28646_v35  ;;  %v9719_v26 = vsub.f32 %v28719_v21, %v27065_v29 }
 0x476   : > { %19581 = vmatprep.mubr.msk.bf16.mxu0 %vm19580_vm0, %v28312_v16  ;;  %vm11190_vm0 = vcmp.eq.f32.partialorder %v17799_v56, %v28650_v45  ;;  %vm20420_vm9 = vmpackc.low %vm11215_vm6, %vm11207_vm5  ;;  %vm3315_vm6 = vcmp.eq.f32.partialorder %v16414_v46, %v28650_v45  ;;  %v28717_v56 = vld [vmem:[#allocation101_spill] sm:$0xff]  ;;  %v17863_v46 = vclamps-f32 %v9718_v54, 32.0 }
 0x477   : > { %20411 = vmatmul.mubr.msk.bf16.gmra.mrb[80].mxu1 %vm20410_vm15, %v28312_v16  ;;  %vm3291_vm15 = vcmp.eq.f32.partialorder %v16390_v47, %v28650_v45  ;;  %v17839_v47 = vclamps-f32 %v9694_v8, 32.0  ;;  %v1770_v9 = vsub.f32 %v28717_v56, %v27084_v41  ;;  %v17864_v38 = vclamps-f32 %v9719_v26, 32.0 }
 0x478   : > { %20413 = vmatprep.mubr.msk.bf16.mxu1 %vm20412_vm1, %v28312_v16  ;;  %vm11198_vm1 = vcmp.eq.f32.partialorder %v17807_v13, %v28650_v45  ;;  %vm19586_vm3 = vmpackc.low %vm3291_vm15, %vm3283_vm14  ;;  %vm3316_vm14 = vcmp.eq.f32.partialorder %v16415_v48, %v28646_v35  ;;  %vm3324_vm15 = vcmp.eq.f32.partialorder %v16423_v62, %v28646_v35  ;;  %v1771_v13 = vsub.f32 %v28717_v56, %v27065_v29  ;;  %v28721_v48 = vld [vmem:[#allocation105_spill] sm:$0xff] }
 0x479   : > { %vm20418_vm7 = vmpackc.low %vm11198_vm1, %vm11190_vm0  ;;  %vm11223_vm1 = vcmp.eq.f32.partialorder %v17832_v49, %v28646_v35  ;;  %v1787_v62 = vsub.f32 %v28721_v48, %v27065_v29  ;;  %v28723_v49 = vld [vmem:[#allocation107_spill] sm:$0xff]  ;;  %v9743_v8 = vsub.f32 %v28724_v52, %v27065_v29  ;;  %v1786_v58 = vsub.f32 %v28721_v48, %v27084_v41 }
 0x47a   : > { %v16447_v30 = vclamps-f32 %v1771_v13, 32.0  ;;  %v9734_v18 = vsub.f32 %v28723_v49, %v27084_v41 }
 0x47b   : > { %v16463_v25 = vclamps-f32 %v1787_v62, 32.0  ;;  %v17888_v36 = vclamps-f32 %v9743_v8, 32.0  ;;  %v16462_v40 = vclamps-f32 %v1786_v58, 32.0 }
 0x47c   : > { %v17879_v2 = vclamps-f32 %v9734_v18, 32.0 }
 0x47d   : > { %19583 = vmatmul.mubr.msk.bf16.gmra.mrb[84].mxu0 %vm19582_vm8, %v28312_v16  ;;  %vm19588_vm8 = vmpackc.low %vm3308_vm4, %vm3300_vm2  ;;  %vm11231_vm2 = vcmp.eq.f32.partialorder %v17840_v17, %v28646_v35  ;;  %v9735_v17 = vsub.f32 %v28723_v49, %v27065_v29 }
 0x47e   : > { %19585 = vmatprep.mubr.msk.bf16.mxu0 %vm19584_vm12, %v28312_v16  ;;  %vm11206_vm12 = vcmp.eq.f32.partialorder %v17815_v44, %v28650_v45  ;;  %vm20424_vm5 = vmpackc.low %vm11231_vm2, %vm11223_vm1  ;;  %vm3331_vm2 = vcmp.eq.f32.partialorder %v16430_v0, %v28650_v45  ;;  %v16446_v44 = vclamps-f32 %v1770_v9, 32.0 }
 0x47f   : > { %20415 = vmatmul.mubr.msk.bf16.gmra.mrb[84].mxu1 %vm20414_vm11, %v28312_v16  ;;  %vm3307_vm11 = vcmp.eq.f32.partialorder %v16406_v42, %v28650_v45  ;;  %v9726_v42 = vsub.f32 %v28720_v3, %v27084_v41  ;;  %v17880_v5 = vclamps-f32 %v9735_v17, 32.0 }
 0x480   : > { %20417 = vmatprep.mubr.msk.bf16.mxu1 %vm20416_vm13, %v28312_v16  ;;  %vm11214_vm13 = vcmp.eq.f32.partialorder %v17823_v53, %v28650_v45  ;;  %vm19590_vm0 = vmpackc.low %vm3307_vm11, %vm3299_vm10  ;;  %vm3332_vm10 = vcmp.eq.f32.partialorder %v16431_v1, %v28646_v35  ;;  %vm3340_vm11 = vcmp.eq.f32.partialorder %v16439_v19, %v28646_v35  ;;  %v16454_v53 = vclamps-f32 %v1778_v14, 32.0  ;;  %v28725_v1 = vld [vmem:[#allocation111_spill] sm:$0xff] }
 0x481   : > { %vm20422_vm4 = vmpackc.low %vm11214_vm13, %vm11206_vm12  ;;  %vm11239_vm13 = vcmp.eq.f32.partialorder %v17848_v7, %v28646_v35  ;;  %v9751_v19 = vsub.f32 %v28725_v1, %v27065_v29  ;;  %v28726_v7 = vld [vmem:[#allocation110_spill] sm:$0xff]  ;;  %v9750_v3 = vsub.f32 %v28725_v1, %v27084_v41  ;;  %v16478_v14 = vclamps-f32 %v1802_v34, 32.0 }
 0x482   : > { %v9758_v33 = vsub.f32 %v28726_v7, %v27084_v41 }
 0x483   : > { %v17896_v21 = vclamps-f32 %v9751_v19, 32.0  ;;  %v17895_v27 = vclamps-f32 %v9750_v3, 32.0  ;;  %v9791_v3 = vsub.f32 %v28643_v61, %v27065_v29 }
 0x484   : > { %v17903_v31 = vclamps-f32 %v9758_v33, 32.0 }
 0x485   : > { %19587 = vmatmul.mubr.msk.bf16.gmra.mrb[88].mxu0 %vm19586_vm3, %v28312_v16  ;;  %vm19592_vm3 = vmpackc.low %vm3324_vm15, %vm3316_vm14  ;;  %vm11247_vm14 = vcmp.eq.f32.partialorder %v17856_v63, %v28646_v35  ;;  %v9759_v63 = vsub.f32 %v28726_v7, %v27065_v29  ;;  %v1835_v7 = vsub.f32 %v28544_v4, %v27065_v29 }
 0x486   : > { %19589 = vmatprep.mubr.msk.bf16.mxu0 %vm19588_vm8, %v28312_v16  ;;  %vm11222_vm8 = vcmp.eq.f32.partialorder %v17831_v11, %v28650_v45  ;;  %vm20428_vm1 = vmpackc.low %vm11247_vm14, %vm11239_vm13  ;;  %vm3347_vm14 = vcmp.eq.f32.partialorder %v16446_v44, %v28650_v45  ;;  %v1803_v11 = vsub.f32 %v28634_v24, %v27065_v29  ;;  %v27452_v24 = vld [vmem:[%s27893_s4] ss:$0 sm:$0xff] }
 0x487   : > { %20419 = vmatmul.mubr.msk.bf16.gmra.mrb[88].mxu1 %vm20418_vm7, %v28312_v16  ;;  %vm3323_vm7 = vcmp.eq.f32.partialorder %v16422_v10, %v28650_v45  ;;  %v17871_v10 = vclamps-f32 %v9726_v42, 32.0  ;;  %v17904_v26 = vclamps-f32 %v9759_v63, 32.0  ;;  %v28730_v42 = vld [vmem:[#allocation114_spill] sm:$0xff]  ;;  %v1843_v63 = vsub.f32 %v28545_v12, %v27065_v29 }
 0x488   : > { %20421 = vmatprep.mubr.msk.bf16.mxu1 %vm20420_vm9, %v28312_v16  ;;  %vm11230_vm9 = vcmp.eq.f32.partialorder %v17839_v47, %v28650_v45  ;;  %vm19594_vm12 = vmpackc.low %vm3323_vm7, %vm3315_vm6  ;;  %vm3348_vm6 = vcmp.eq.f32.partialorder %v16447_v30, %v28646_v35  ;;  %vm3356_vm7 = vcmp.eq.f32.partialorder %v16455_v23, %v28646_v35  ;;  %v1811_v47 = vsub.f32 %v28635_v28, %v27065_v29 }
 0x489   : > { %vm20426_vm15 = vmpackc.low %vm11230_vm9, %vm11222_vm8  ;;  %vm11255_vm9 = vcmp.eq.f32.partialorder %v17864_v38, %v28646_v35  ;;  %v16479_v56 = vclamps-f32 %v1803_v11, 32.0  ;;  %v16486_v38 = vclamps-f32 %v1810_v32, 32.0  ;;  %v9775_v44 = vsub.f32 %v28730_v42, %v27065_v29 }
 0x48a   : > { %v16487_v13 = vclamps-f32 %v1811_v47, 32.0  ;;  %v9774_v47 = vsub.f32 %v28730_v42, %v27084_v41 }
 0x48b   : > { %v17920_v51 = vclamps-f32 %v9775_v44, 32.0  ;;  %v9790_v44 = vsub.f32 %v28643_v61, %v27084_v41 }
 0x48d   : > { %19591 = vmatmul.mubr.msk.bf16.gmra.mrb[92].mxu0 %vm19590_vm0, %v28312_v16  ;;  %vm19596_vm0 = vmpackc.low %vm3340_vm11, %vm3332_vm10  ;;  %vm11263_vm10 = vcmp.eq.f32.partialorder %v17872_v60, %v28646_v35  ;;  %v28729_v60 = vld [vmem:[#allocation115_spill] sm:$0xff] }
 0x48e   : > { %19593 = vmatprep.mubr.msk.bf16.mxu0 %vm19592_vm3, %v28312_v16  ;;  %vm11238_vm3 = vcmp.eq.f32.partialorder %v17847_v57, %v28650_v45  ;;  %vm20432_vm13 = vmpackc.low %vm11263_vm10, %vm11255_vm9  ;;  %vm3363_vm10 = vcmp.eq.f32.partialorder %v16462_v40, %v28650_v45  ;;  %v9767_v54 = vsub.f32 %v28729_v60, %v27065_v29  ;;  %v9766_v11 = vsub.f32 %v28729_v60, %v27084_v41 }
 0x48f   : > { %20423 = vmatmul.mubr.msk.bf16.gmra.mrb[92].mxu1 %vm20422_vm4, %v28312_v16  ;;  %vm3339_vm4 = vcmp.eq.f32.partialorder %v16438_v55, %v28650_v45  ;;  %v28727_v55 = vld [vmem:[#allocation113_spill] sm:$0xff]  ;;  %v17936_v60 = vclamps-f32 %v9791_v3, 32.0 }
 0x490   : > { %20425 = vmatprep.mubr.msk.bf16.mxu1 %vm20424_vm5, %v28312_v16  ;;  %vm11246_vm5 = vcmp.eq.f32.partialorder %v17855_v50, %v28650_v45  ;;  %vm19598_vm8 = vmpackc.low %vm3339_vm4, %vm3331_vm2  ;;  %vm3364_vm2 = vcmp.eq.f32.partialorder %v16463_v25, %v28646_v35  ;;  %vm3372_vm4 = vcmp.eq.f32.partialorder %v16471_v43, %v28646_v35  ;;  %v1819_v57 = vsub.f32 %v28727_v55, %v27065_v29  ;;  %v28728_v50 = vld [vmem:[#allocation112_spill] sm:$0xff] }
 0x491   : > { %vm20430_vm11 = vmpackc.low %vm11246_vm5, %vm11238_vm3  ;;  %vm11271_vm5 = vcmp.eq.f32.partialorder %v17880_v5, %v28646_v35  ;;  %v1827_v30 = vsub.f32 %v28728_v50, %v27065_v29  ;;  %v1818_v5 = vsub.f32 %v28727_v55, %v27084_v41  ;;  %v17912_v18 = vclamps-f32 %v9767_v54, 32.0 }
 0x492   : > { %v16495_v25 = vclamps-f32 %v1819_v57, 32.0  ;;  %v17911_v32 = vclamps-f32 %v9766_v11, 32.0 }
 0x493   : > { %v16503_v43 = vclamps-f32 %v1827_v30, 32.0  ;;  %v16519_v30 = vclamps-f32 %v1843_v63, 32.0 }
 0x495   : > { %19595 = vmatmul.mubr.msk.bf16.gmra.mrb[96].mxu0 %vm19594_vm12, %v28312_v16  ;;  %vm19600_vm12 = vmpackc.low %vm3356_vm7, %vm3348_vm6  ;;  %vm11279_vm6 = vcmp.eq.f32.partialorder %v17888_v36, %v28646_v35  ;;  %v1826_v36 = vsub.f32 %v28728_v50, %v27084_v41 }
 0x496   : > { %19597 = vmatprep.mubr.msk.bf16.mxu0 %vm19596_vm0, %v28312_v16  ;;  %vm11254_vm0 = vcmp.eq.f32.partialorder %v17863_v46, %v28650_v45  ;;  %vm20436_vm9 = vmpackc.low %vm11279_vm6, %vm11271_vm5  ;;  %vm3379_vm6 = vcmp.eq.f32.partialorder %v16478_v14, %v28650_v45 }
 0x497   : > { %20427 = vmatmul.mubr.msk.bf16.gmra.mrb[96].mxu1 %vm20426_vm15, %v28312_v16  ;;  %vm3355_vm15 = vcmp.eq.f32.partialorder %v16454_v53, %v28650_v45 }
 0x498   : > { %20429 = vmatprep.mubr.msk.bf16.mxu1 %vm20428_vm1, %v28312_v16  ;;  %vm11262_vm1 = vcmp.eq.f32.partialorder %v17871_v10, %v28650_v45  ;;  %vm19602_vm3 = vmpackc.low %vm3355_vm15, %vm3347_vm14  ;;  %vm3380_vm14 = vcmp.eq.f32.partialorder %v16479_v56, %v28646_v35  ;;  %vm3388_vm15 = vcmp.eq.f32.partialorder %v16487_v13, %v28646_v35 }
 0x499   : > { %vm20434_vm7 = vmpackc.low %vm11262_vm1, %vm11254_vm0  ;;  %vm11287_vm1 = vcmp.eq.f32.partialorder %v17896_v21, %v28646_v35  ;;  %v17919_v21 = vclamps-f32 %v9774_v47, 32.0 }
 0x49d   : > { %19599 = vmatmul.mubr.msk.bf16.gmra.mrb[100].mxu0 %vm19598_vm8, %v28312_v16  ;;  %vm19604_vm8 = vmpackc.low %vm3372_vm4, %vm3364_vm2  ;;  %vm11295_vm2 = vcmp.eq.f32.partialorder %v17904_v26, %v28646_v35  ;;  %v9783_v26 = vsub.f32 %v28642_v59, %v27065_v29  ;;  %v16511_v29 = vclamps-f32 %v1835_v7, 32.0 }
 0x49e   : > { %19601 = vmatprep.mubr.msk.bf16.mxu0 %vm19600_vm12, %v28312_v16  ;;  %vm11270_vm12 = vcmp.eq.f32.partialorder %v17879_v2, %v28650_v45  ;;  %vm20440_vm5 = vmpackc.low %vm11295_vm2, %vm11287_vm1  ;;  %v16494_v2 = vclamps-f32 %v1818_v5, 32.0 }
 0x49f   : > { %20431 = vmatmul.mubr.msk.bf16.gmra.mrb[100].mxu1 %vm20430_vm11, %v28312_v16  ;;  %vm3371_vm11 = vcmp.eq.f32.partialorder %v16470_v15, %v28650_v45 }
 0x4a0   : > { %20433 = vmatprep.mubr.msk.bf16.mxu1 %vm20432_vm13, %v28312_v16  ;;  %vm11278_vm13 = vcmp.eq.f32.partialorder %v17887_v6, %v28650_v45  ;;  %vm27472_vm0 = vmpackc.low %vm3371_vm11, %vm3363_vm10  ;;  %vm3396_vm10 = vcmp.eq.f32.partialorder %v16495_v25, %v28646_v35  ;;  %vm3404_vm11 = vcmp.eq.f32.partialorder %v16503_v43, %v28646_v35  ;;  %v16502_v6 = vclamps-f32 %v1826_v36, 32.0 }
 0x4a1   : > { %vm20438_vm4 = vmpackc.low %vm11278_vm13, %vm11270_vm12  ;;  %vm11303_vm12 = vcmp.eq.f32.partialorder %v17912_v18, %v28646_v35  ;;  %vm11311_vm13 = vcmp.eq.f32.partialorder %v17920_v51, %v28646_v35  ;;  %vm3395_vm2 = vcmp.eq.f32.partialorder %v16494_v2, %v28650_v45  ;;  %v17935_v18 = vclamps-f32 %v9790_v44, 32.0 }
 0x4a2   : > { %vm20444_vm1 = vmpackc.low %vm11311_vm13, %vm11303_vm12 }
 0x4a5   : > { %19603 = vmatmul.mubr.msk.bf16.gmra.mrb[104].mxu0 %vm19602_vm3, %v28312_v16  ;;  %vm19608_vm3 = vmpackc.low %vm3388_vm15, %vm3380_vm14 }
 0x4a6   : > { %19605 = vmatprep.mubr.msk.bf16.mxu0 %vm19604_vm8, %v28312_v16  ;;  %vm11286_vm8 = vcmp.eq.f32.partialorder %v17895_v27, %v28650_v45 }
 0x4a7   : > { %20435 = vmatmul.mubr.msk.bf16.gmra.mrb[104].mxu1 %vm20434_vm7, %v28312_v16  ;;  %vm3387_vm7 = vcmp.eq.f32.partialorder %v16486_v38, %v28650_v45  ;;  %v1842_v38 = vsub.f32 %v28545_v12, %v27084_v41  ;;  %v9782_v12 = vsub.f32 %v28642_v59, %v27084_v41 }
 0x4a8   : > { %20437 = vmatprep.mubr.msk.bf16.mxu1 %vm20436_vm9, %v28312_v16  ;;  %v7800_v28 = vpop.f32.mrb[0].mxu0  ;;  %vm11294_vm9 = vcmp.eq.f32.partialorder %v17903_v31, %v28650_v45  ;;  %vm27529_vm14 = vmpackc.low %vm3387_vm7, %vm3379_vm6  ;;  %vm3412_vm6 = vcmp.eq.f32.partialorder %v16511_v29, %v28646_v35  ;;  %vm3420_vm7 = vcmp.eq.f32.partialorder %v16519_v30, %v28646_v35  ;;  %v21969_v31 = vld [vmem:[%s22461_s25 + $0x38] sm:$0xff] }
 0x4a9   : > { %v7802_v23 = vpop.f32.mrb[1].mxu0  ;;  %v20904_v49 = vadd.f32 %v27452_v24, %v7800_v28  ;;  %vm20442_vm15 = vmpackc.low %vm11294_vm9, %vm11286_vm8  ;;  %v16518_v27 = vclamps-f32 %v1842_v38, 32.0  ;;  %v9799_v61 = vsub.f32 %v24376_v37, %v21969_v31 }
 0x4aa   : > { %v15317_v0 = vpop.f32.mrb[0].mxu1  ;;  %v7803_v53 = vpop.f32.mrb[2].mxu0  ;;  %v1834_v23 = vsub.f32 %v28544_v4, %v27084_v41  ;;  %v17928_v4 = vclamps-f32 %v9783_v26, 32.0  ;;  %v28737_v41 = vld [vmem:[#allocation122_spill] sm:$0xff]  ;;  %vm19616_vm12 = vmpackc.low %vm3420_vm7, %vm3412_vm6 }
 0x4ab   : > { %v15319_v9 = vpop.f32.mrb[1].mxu1  ;;  %v20968_v17 = vadd.f32 %v27452_v24, %v15317_v0  ;;  %v20905_v52 = vadd.f32 %v27452_v24, %v7803_v53  ;;  %v7805_v46 = vpop.f32.mrb[3].mxu0 }
 0x4ac   : > { %v15320_v48 = vpop.f32.mrb[2].mxu1  ;;  %v16510_v62 = vclamps-f32 %v1834_v23, 32.0  ;;  %vm11319_vm9 = vcmp.eq.f32.partialorder %v17928_v4, %v28646_v35  ;;  %v9807_v46 = vsub.f32 %v28737_v41, %v21969_v31 }
 0x4ad   : > { %v20969_v8 = vadd.f32 %v27452_v24, %v15320_v48  ;;  %v15322_v10 = vpop.f32.mrb[3].mxu1  ;;  %v20524_v58 = vpack.c.bf16 %v20905_v52, %v20904_v49  ;;  %19607 = vmatmul.mubr.msk.bf16.gmra.mrb[108].mxu0 %vm27472_vm0, %v28312_v16  ;;  %vm19612_vm0 = vmpackc.low %vm3404_vm11, %vm3396_vm10  ;;  %v1851_v49 = vsub.f32 %v28548_v39, %v21969_v31  ;;  %vm11327_vm10 = vcmp.eq.f32.partialorder %v17936_v60, %v28646_v35 }
 0x4ae   : > { %19609 = vmatprep.mubr.msk.bf16.mxu0 %vm19608_vm3, %v28312_v16  ;;  %vm11302_vm3 = vcmp.eq.f32.partialorder %v17911_v32, %v28650_v45  ;;  %vm20448_vm13 = vmpackc.low %vm11327_vm10, %vm11319_vm9  ;;  %v17952_v7 = vclamps-f32 %v9807_v46, 32.0 }
 0x4af   : > { %v20684_v20 = vpack.c.bf16 %v20969_v8, %v20968_v17  ;;  %20439 = vmatmul.mubr.msk.bf16.gmra.mrb[108].mxu1 %vm20438_vm4, %v28312_v16  ;;  %20525 = vst [vmem:[%s27509_s10] sm:$0xff] %v20524_v58   ;;  %vm3403_vm4 = vcmp.eq.f32.partialorder %v16502_v6, %v28650_v45  ;;  %v1859_v17 = vsub.f32 %v28549_v22, %v21969_v31  ;;  %v16527_v47 = vclamps-f32 %v1851_v49, 32.0 }
 0x4b0   : > { %20441 = vmatprep.mubr.msk.bf16.mxu1 %vm20440_vm5, %v28312_v16  ;;  %v7808_v1 = vpop.f32.mrb[4].mxu0  ;;  %vm11310_vm5 = vcmp.eq.f32.partialorder %v17919_v21, %v28650_v45  ;;  %vm27582_vm8 = vmpackc.low %vm3403_vm4, %vm3395_vm2  ;;  %vm11343_vm6 = vcmp.eq.f32.partialorder %v17952_v7, %v28646_v35 }
 0x4b1   : > { %20872 = vst [vmem:[%s27509_s10 + $0x100] sm:$0xff] %v20684_v20   ;;  %v7810_v40 = vpop.f32.mrb[5].mxu0  ;;  %v20906_v33 = vadd.f32 %v27452_v24, %v7808_v1  ;;  %vm20446_vm11 = vmpackc.low %vm11310_vm5, %vm11302_vm3  ;;  %v17927_v20 = vclamps-f32 %v9782_v12, 32.0  ;;  %v16535_v1 = vclamps-f32 %v1859_v17, 32.0  ;;  %vm3428_vm2 = vcmp.eq.f32.partialorder %v16527_v47, %v28646_v35 }
 0x4b2   : > { %v15325_v19 = vpop.f32.mrb[4].mxu1  ;;  %v7811_v56 = vpop.f32.mrb[6].mxu0 }
 0x4b3   : > { %v15327_v15 = vpop.f32.mrb[5].mxu1  ;;  %v20970_v28 = vadd.f32 %v27452_v24, %v15325_v19  ;;  %v20907_v0 = vadd.f32 %v27452_v24, %v7811_v56  ;;  %v7813_v57 = vpop.f32.mrb[7].mxu0  ;;  %v17944_v19 = vclamps-f32 %v9799_v61, 32.0  ;;  %vm3436_vm4 = vcmp.eq.f32.partialorder %v16535_v1, %v28646_v35 }
 0x4b4   : > { %v15328_v13 = vpop.f32.mrb[6].mxu1  ;;  %v21970_v15 = vld [vmem:[%s22461_s25 + $0x30] sm:$0xff]  ;;  %s22004_s25 = sshll.u32 %s22090_s24, 4  ;;  %s22005_s25 = int_to_ptr.vmem [resolvable:$false] %s22004_s25 }
 0x4b5   : > { %v20971_v55 = vadd.f32 %v27452_v24, %v15328_v13  ;;  %v15330_v50 = vpop.f32.mrb[7].mxu1  ;;  %v20529_v9 = vpack.c.bf16 %v20907_v0, %v20906_v33  ;;  %19611 = vmatmul.mubr.msk.bf16.gmra.mrb[112].mxu0 %vm27529_vm14, %v28312_v16  ;;  %vm3411_vm14 = vcmp.eq.f32.partialorder %v16510_v62, %v28650_v45  ;;  %v1850_v2 = vsub.f32 %v28548_v39, %v21970_v15  ;;  %s22006_s29 = scalar_lea.vmem %s22005_s25, 16384  ;;  %p22007_p1 = scmp.lt.s32.totalorder %s27837_s13, %s22005_s25 }
 0x4b6   : > { %19613 = vmatprep.mubr.msk.bf16.mxu0 %vm19612_vm0, %v28312_v16  ;;  %vm11318_vm0 = vcmp.eq.f32.partialorder %v17927_v20, %v28650_v45  ;;  %v1858_v6 = vsub.f32 %v28549_v22, %v21970_v15  ;;  %v9798_v34 = vsub.f32 %v24376_v37, %v21970_v15  ;;  %v9806_v32 = vsub.f32 %v28737_v41, %v21970_v15  ;;  %p22008_p3 = scmp.lt.s32.totalorder %s22006_s29, %s22000_s17 }
 0x4b7   : > { %v20689_v14 = vpack.c.bf16 %v20971_v55, %v20970_v28  ;;  %20443 = vmatmul.mubr.msk.bf16.gmra.mrb[112].mxu1 %vm20442_vm15, %v28312_v16  ;;  %20841 = vst [vmem:[%s27509_s10 + $0x8] sm:$0xff] %v20529_v9   ;;  %vm3419_vm15 = vcmp.eq.f32.partialorder %v16518_v27, %v28650_v45  ;;  %vm11335_vm5 = vcmp.eq.f32.partialorder %v17944_v19, %v28646_v35  ;;  %v16526_v0 = vclamps-f32 %v1850_v2, 32.0 }
 0x4b8   : > { %20445 = vmatprep.mubr.msk.bf16.mxu1 %vm20444_vm1, %v28312_v16  ;;  %v7816_v54 = vpop.f32.mrb[8].mxu0  ;;  %vm11326_vm1 = vcmp.eq.f32.partialorder %v17935_v18, %v28650_v45  ;;  %vm19618_vm3 = vmpackc.low %vm3419_vm15, %vm3411_vm14  ;;  %v16534_v55 = vclamps-f32 %v1858_v6, 32.0  ;;  %v17943_v29 = vclamps-f32 %v9798_v34, 32.0  ;;  %v17951_v30 = vclamps-f32 %v9806_v32, 32.0  ;;  %p22009_p5 = por %p22008_p3, %p22007_p1 }
 0x4b9   : > { %20873 = vst [vmem:[%s27509_s10 + $0x108] sm:$0xff] %v20689_v14   ;;  %v7818_v53 = vpop.f32.mrb[9].mxu0  ;;  %v20908_v10 = vadd.f32 %v27452_v24, %v7816_v54  ;;  %vm20450_vm7 = vmpackc.low %vm11326_vm1, %vm11318_vm0  ;;  %vm3427_vm10 = vcmp.eq.f32.partialorder %v16526_v0, %v28650_v45 }
 0x4ba   : > { %v15333_v42 = vpop.f32.mrb[8].mxu1  ;;  %v7819_v52 = vpop.f32.mrb[10].mxu0  ;;  %vm20452_vm9 = vmpackc.low %vm11343_vm6, %vm11335_vm5  ;;  %p22010_p6 = pnand %p22009_p5, %p22003_p13 }
 0x4bb   : > { %v15335_v48 = vpop.f32.mrb[9].mxu1  ;;  %v20972_v25 = vadd.f32 %v27452_v24, %v15333_v42  ;;  %v20909_v43 = vadd.f32 %v27452_v24, %v7819_v52  ;;  %v7821_v36 = vpop.f32.mrb[11].mxu0 }
 0x4bc   : > { %v15336_v8 = vpop.f32.mrb[10].mxu1 }
 0x4bd   : > { %v20973_v5 = vadd.f32 %v27452_v24, %v15336_v8  ;;  %v15338_v58 = vpop.f32.mrb[11].mxu1  ;;  %v20534_v51 = vpack.c.bf16 %v20909_v43, %v20908_v10  ;;  %19615 = vmatmul.mubr.msk.bf16.gmra.mrb[116].mxu0 %vm27582_vm8, %v28312_v16  ;;  %vm19620_vm8 = vmpackc.low %vm3436_vm4, %vm3428_vm2 }
 0x4be   : > { %19617 = vmatprep.mubr.msk.bf16.mxu0 %vm19616_vm12, %v28312_v16  ;;  %vm11334_vm12 = vcmp.eq.f32.partialorder %v17943_v29, %v28650_v45 }
 0x4bf   : > { %v20694_v11 = vpack.c.bf16 %v20973_v5, %v20972_v25  ;;  %20447 = vmatmul.mubr.msk.bf16.gmra.mrb[116].mxu1 %vm20446_vm11, %v28312_v16  ;;  %20842 = vst [vmem:[%s27509_s10 + $0x10] sm:$0xff] %v20534_v51   ;;  %vm3435_vm11 = vcmp.eq.f32.partialorder %v16534_v55, %v28650_v45 }
 0x4c0   : > { %20449 = vmatprep.mubr.msk.bf16.mxu1 %vm20448_vm13, %v28312_v16  ;;  %v7824_v63 = vpop.f32.mrb[12].mxu0  ;;  %vm11342_vm13 = vcmp.eq.f32.partialorder %v17951_v30, %v28650_v45  ;;  %vm19622_vm14 = vmpackc.low %vm3435_vm11, %vm3427_vm10 }
 0x4c1   : > { %20874 = vst [vmem:[%s27509_s10 + $0x110] sm:$0xff] %v20694_v11   ;;  %v7826_v56 = vpop.f32.mrb[13].mxu0  ;;  %v20910_v39 = vadd.f32 %v27452_v24, %v7824_v63  ;;  %vm20454_vm15 = vmpackc.low %vm11342_vm13, %vm11334_vm12 }
 0x4c2   : > { %v15341_v40 = vpop.f32.mrb[12].mxu1  ;;  %v7827_v21 = vpop.f32.mrb[14].mxu0 }
 0x4c3   : > { %v15343_v13 = vpop.f32.mrb[13].mxu1  ;;  %v20974_v22 = vadd.f32 %v27452_v24, %v15341_v40  ;;  %v20911_v3 = vadd.f32 %v27452_v24, %v7827_v21  ;;  %v7829_v33 = vpop.f32.mrb[15].mxu0 }
 0x4c4   : > { %v15344_v26 = vpop.f32.mrb[14].mxu1 }
 0x4c5   : > { %v20975_v37 = vadd.f32 %v27452_v24, %v15344_v26  ;;  %v15346_v28 = vpop.f32.mrb[15].mxu1  ;;  %v20539_v57 = vpack.c.bf16 %v20911_v3, %v20910_v39  ;;  %19619 = vmatmul.mubr.msk.bf16.gmra.mrb[120].mxu0 %vm19618_vm3, %v28312_v16 }
 0x4c6   : > { %19621 = vmatprep.mubr.msk.bf16.mxu0 %vm19620_vm8, %v28312_v16 }
 0x4c7   : > { %v20699_v50 = vpack.c.bf16 %v20975_v37, %v20974_v22  ;;  %20451 = vmatmul.mubr.msk.bf16.gmra.mrb[120].mxu1 %vm20450_vm7, %v28312_v16  ;;  %20843 = vst [vmem:[%s27509_s10 + $0x18] sm:$0xff] %v20539_v57  }
 0x4c8   : > { %20453 = vmatprep.mubr.msk.bf16.mxu1 %vm20452_vm9, %v28312_v16  ;;  %v7832_v23 = vpop.f32.mrb[16].mxu0 }
 0x4c9   : > { %20875 = vst [vmem:[%s27509_s10 + $0x118] sm:$0xff] %v20699_v50   ;;  %v7834_v14 = vpop.f32.mrb[17].mxu0  ;;  %v20912_v60 = vadd.f32 %v27452_v24, %v7832_v23 }
 0x4ca   : > { %v15349_v9 = vpop.f32.mrb[16].mxu1  ;;  %v7835_v35 = vpop.f32.mrb[18].mxu0 }
 0x4cb   : > { %v15351_v38 = vpop.f32.mrb[17].mxu1  ;;  %v20976_v54 = vadd.f32 %v27452_v24, %v15349_v9  ;;  %v20913_v42 = vadd.f32 %v27452_v24, %v7835_v35  ;;  %v7837_v44 = vpop.f32.mrb[19].mxu0 }
 0x4cc   : > { %v15352_v4 = vpop.f32.mrb[18].mxu1 }
 0x4cd   : > { %v20977_v12 = vadd.f32 %v27452_v24, %v15352_v4  ;;  %v15354_v53 = vpop.f32.mrb[19].mxu1  ;;  %v20544_v48 = vpack.c.bf16 %v20913_v42, %v20912_v60  ;;  %19623 = vmatmul.mubr.msk.bf16.gmra.mrb[124].mxu0 %vm19622_vm14, %v28312_v16 }
 0x4cf   : > { %v20704_v62 = vpack.c.bf16 %v20977_v12, %v20976_v54  ;;  %20455 = vmatmul.mubr.msk.bf16.gmra.mrb[124].mxu1 %vm20454_vm15, %v28312_v16  ;;  %20844 = vst [vmem:[%s27509_s10 + $0x20] sm:$0xff] %v20544_v48  }
 0x4d0   : > { %v7840_v45 = vpop.f32.mrb[20].mxu0 }
 0x4d1   : > { %20876 = vst [vmem:[%s27509_s10 + $0x120] sm:$0xff] %v20704_v62   ;;  %v7842_v31 = vpop.f32.mrb[21].mxu0  ;;  %v20914_v8 = vadd.f32 %v27452_v24, %v7840_v45 }
 0x4d2   : > { %v15357_v27 = vpop.f32.mrb[20].mxu1  ;;  %v7843_v17 = vpop.f32.mrb[22].mxu0 }
 0x4d3   : > { %v15359_v49 = vpop.f32.mrb[21].mxu1  ;;  %v20978_v59 = vadd.f32 %v27452_v24, %v15357_v27  ;;  %v20915_v61 = vadd.f32 %v27452_v24, %v7843_v17  ;;  %v7845_v46 = vpop.f32.mrb[23].mxu0 }
 0x4d4   : > { %v15360_v52 = vpop.f32.mrb[22].mxu1 }
 0x4d5   : > { %v20979_v41 = vadd.f32 %v27452_v24, %v15360_v52  ;;  %v15362_v16 = vpop.f32.mrb[23].mxu1  ;;  %v20549_v10 = vpack.c.bf16 %v20915_v61, %v20914_v8 }
 0x4d7   : > { %v20709_v25 = vpack.c.bf16 %v20979_v41, %v20978_v59  ;;  %20845 = vst [vmem:[%s27509_s10 + $0x28] sm:$0xff] %v20549_v10  }
 0x4d8   : > { %v7848_v43 = vpop.f32.mrb[24].mxu0 }
 0x4d9   : > { %20877 = vst [vmem:[%s27509_s10 + $0x128] sm:$0xff] %v20709_v25   ;;  %v7850_v36 = vpop.f32.mrb[25].mxu0  ;;  %v20916_v51 = vadd.f32 %v27452_v24, %v7848_v43 }
 0x4da   : > { %v15365_v5 = vpop.f32.mrb[24].mxu1  ;;  %v7851_v20 = vpop.f32.mrb[26].mxu0 }
 0x4db   : > { %v15367_v58 = vpop.f32.mrb[25].mxu1  ;;  %v20980_v11 = vadd.f32 %v27452_v24, %v15365_v5  ;;  %v20917_v47 = vadd.f32 %v27452_v24, %v7851_v20  ;;  %v7853_v19 = vpop.f32.mrb[27].mxu0 }
 0x4dc   : > { %v15368_v18 = vpop.f32.mrb[26].mxu1 }
 0x4dd   : > { %v20981_v1 = vadd.f32 %v27452_v24, %v15368_v18  ;;  %v15370_v7 = vpop.f32.mrb[27].mxu1  ;;  %v20554_v63 = vpack.c.bf16 %v20917_v47, %v20916_v51 }
 0x4df   : > { %v20714_v40 = vpack.c.bf16 %v20981_v1, %v20980_v11  ;;  %20846 = vst [vmem:[%s27509_s10 + $0x30] sm:$0xff] %v20554_v63  }
 0x4e0   : > { %v7856_v15 = vpop.f32.mrb[28].mxu0 }
 0x4e1   : > { %20878 = vst [vmem:[%s27509_s10 + $0x130] sm:$0xff] %v20714_v40   ;;  %v7858_v6 = vpop.f32.mrb[29].mxu0  ;;  %v20918_v32 = vadd.f32 %v27452_v24, %v7856_v15 }
 0x4e2   : > { %v15373_v2 = vpop.f32.mrb[28].mxu1  ;;  %v7859_v13 = vpop.f32.mrb[30].mxu0 }
 0x4e3   : > { %v15375_v56 = vpop.f32.mrb[29].mxu1  ;;  %v20982_v21 = vadd.f32 %v27452_v24, %v15373_v2  ;;  %v20919_v26 = vadd.f32 %v27452_v24, %v7859_v13  ;;  %v7861_v22 = vpop.f32.mrb[31].mxu0 }
 0x4e4   : > { %v15376_v34 = vpop.f32.mrb[30].mxu1 }
 0x4e5   : > { %v20983_v39 = vadd.f32 %v27452_v24, %v15376_v34  ;;  %v15378_v3 = vpop.f32.mrb[31].mxu1  ;;  %v20559_v37 = vpack.c.bf16 %v20919_v26, %v20918_v32 }
 0x4e7   : > { %v20719_v33 = vpack.c.bf16 %v20983_v39, %v20982_v21  ;;  %20847 = vst [vmem:[%s27509_s10 + $0x38] sm:$0xff] %v20559_v37  }
 0x4e8   : > { %v7864_v28 = vpop.f32.mrb[32].mxu0 }
 0x4e9   : > { %20879 = vst [vmem:[%s27509_s10 + $0x138] sm:$0xff] %v20719_v33   ;;  %v7866_v55 = vpop.f32.mrb[33].mxu0  ;;  %v20920_v30 = vadd.f32 %v27452_v24, %v7864_v28 }
 0x4ea   : > { %v15381_v0 = vpop.f32.mrb[32].mxu1  ;;  %v7867_v50 = vpop.f32.mrb[34].mxu0 }
 0x4eb   : > { %v15383_v57 = vpop.f32.mrb[33].mxu1  ;;  %v20984_v23 = vadd.f32 %v27452_v24, %v15381_v0  ;;  %v20921_v9 = vadd.f32 %v27452_v24, %v7867_v50  ;;  %v7869_v38 = vpop.f32.mrb[35].mxu0 }
 0x4ec   : > { %v15384_v29 = vpop.f32.mrb[34].mxu1 }
 0x4ed   : > { %v20985_v14 = vadd.f32 %v27452_v24, %v15384_v29  ;;  %v15386_v35 = vpop.f32.mrb[35].mxu1  ;;  %v20564_v4 = vpack.c.bf16 %v20921_v9, %v20920_v30 }
 0x4ef   : > { %v20724_v60 = vpack.c.bf16 %v20985_v14, %v20984_v23  ;;  %20848 = vst [vmem:[%s27509_s10 + $0x40] sm:$0xff] %v20564_v4  }
 0x4f0   : > { %v7872_v54 = vpop.f32.mrb[36].mxu0 }
 0x4f1   : > { %20880 = vst [vmem:[%s27509_s10 + $0x140] sm:$0xff] %v20724_v60   ;;  %v7874_v12 = vpop.f32.mrb[37].mxu0  ;;  %v20922_v62 = vadd.f32 %v27452_v24, %v7872_v54 }
 0x4f2   : > { %v15389_v42 = vpop.f32.mrb[36].mxu1  ;;  %v7875_v53 = vpop.f32.mrb[38].mxu0 }
 0x4f3   : > { %v15391_v44 = vpop.f32.mrb[37].mxu1  ;;  %v20986_v45 = vadd.f32 %v27452_v24, %v15389_v42  ;;  %v20923_v27 = vadd.f32 %v27452_v24, %v7875_v53  ;;  %v7877_v49 = vpop.f32.mrb[39].mxu0 }
 0x4f4   : > { %v15392_v48 = vpop.f32.mrb[38].mxu1 }
 0x4f5   : > { %v20987_v31 = vadd.f32 %v27452_v24, %v15392_v48  ;;  %v15394_v17 = vpop.f32.mrb[39].mxu1  ;;  %v20569_v52 = vpack.c.bf16 %v20923_v27, %v20922_v62 }
 0x4f7   : > { %v20729_v8 = vpack.c.bf16 %v20987_v31, %v20986_v45  ;;  %20849 = vst [vmem:[%s27509_s10 + $0x48] sm:$0xff] %v20569_v52  }
 0x4f8   : > { %v7880_v59 = vpop.f32.mrb[40].mxu0 }
 0x4f9   : > { %20881 = vst [vmem:[%s27509_s10 + $0x148] sm:$0xff] %v20729_v8   ;;  %v7882_v41 = vpop.f32.mrb[41].mxu0  ;;  %v20924_v25 = vadd.f32 %v27452_v24, %v7880_v59 }
 0x4fa   : > { %v15397_v61 = vpop.f32.mrb[40].mxu1  ;;  %v7883_v16 = vpop.f32.mrb[42].mxu0 }
 0x4fb   : > { %v15399_v46 = vpop.f32.mrb[41].mxu1  ;;  %v20988_v43 = vadd.f32 %v27452_v24, %v15397_v61  ;;  %v20925_v5 = vadd.f32 %v27452_v24, %v7883_v16  ;;  %v7885_v58 = vpop.f32.mrb[43].mxu0 }
 0x4fc   : > { %v15400_v10 = vpop.f32.mrb[42].mxu1 }
 0x4fd   : > { %v20989_v36 = vadd.f32 %v27452_v24, %v15400_v10  ;;  %v15402_v20 = vpop.f32.mrb[43].mxu1  ;;  %v20574_v18 = vpack.c.bf16 %v20925_v5, %v20924_v25 }
 0x4ff   : > { %v20734_v51 = vpack.c.bf16 %v20989_v36, %v20988_v43  ;;  %20850 = vst [vmem:[%s27509_s10 + $0x50] sm:$0xff] %v20574_v18  }
 0x500   : > { %v7888_v11 = vpop.f32.mrb[44].mxu0 }
 0x501   : > { %20882 = vst [vmem:[%s27509_s10 + $0x150] sm:$0xff] %v20734_v51   ;;  %v7890_v1 = vpop.f32.mrb[45].mxu0  ;;  %v20926_v40 = vadd.f32 %v27452_v24, %v7888_v11 }
 0x502   : > { %v15405_v47 = vpop.f32.mrb[44].mxu1  ;;  %v7891_v7 = vpop.f32.mrb[46].mxu0 }
 0x503   : > { %v15407_v19 = vpop.f32.mrb[45].mxu1  ;;  %v20990_v15 = vadd.f32 %v27452_v24, %v15405_v47  ;;  %v20927_v2 = vadd.f32 %v27452_v24, %v7891_v7  ;;  %v7893_v56 = vpop.f32.mrb[47].mxu0 }
 0x504   : > { %v15408_v63 = vpop.f32.mrb[46].mxu1 }
 0x505   : > { %v20991_v6 = vadd.f32 %v27452_v24, %v15408_v63  ;;  %v15410_v13 = vpop.f32.mrb[47].mxu1  ;;  %v20579_v34 = vpack.c.bf16 %v20927_v2, %v20926_v40 }
 0x507   : > { %v20739_v32 = vpack.c.bf16 %v20991_v6, %v20990_v15  ;;  %20851 = vst [vmem:[%s27509_s10 + $0x58] sm:$0xff] %v20579_v34  }
 0x508   : > { %v7896_v21 = vpop.f32.mrb[48].mxu0 }
 0x509   : > { %20883 = vst [vmem:[%s27509_s10 + $0x158] sm:$0xff] %v20739_v32   ;;  %v7898_v39 = vpop.f32.mrb[49].mxu0  ;;  %v20928_v33 = vadd.f32 %v27452_v24, %v7896_v21 }
 0x50a   : > { %v15413_v26 = vpop.f32.mrb[48].mxu1  ;;  %v7899_v3 = vpop.f32.mrb[50].mxu0 }
 0x50b   : > { %v15415_v22 = vpop.f32.mrb[49].mxu1  ;;  %v20992_v28 = vadd.f32 %v27452_v24, %v15413_v26  ;;  %v20929_v0 = vadd.f32 %v27452_v24, %v7899_v3  ;;  %v7901_v57 = vpop.f32.mrb[51].mxu0 }
 0x50c   : > { %v15416_v37 = vpop.f32.mrb[50].mxu1 }
 0x50d   : > { %v20993_v55 = vadd.f32 %v27452_v24, %v15416_v37  ;;  %v15418_v50 = vpop.f32.mrb[51].mxu1  ;;  %v20584_v29 = vpack.c.bf16 %v20929_v0, %v20928_v33 }
 0x50f   : > { %v20744_v30 = vpack.c.bf16 %v20993_v55, %v20992_v28  ;;  %20852 = vst [vmem:[%s27509_s10 + $0x60] sm:$0xff] %v20584_v29  }
 0x510   : > { %v7904_v23 = vpop.f32.mrb[52].mxu0 }
 0x511   : > { %20884 = vst [vmem:[%s27509_s10 + $0x160] sm:$0xff] %v20744_v30   ;;  %v7906_v14 = vpop.f32.mrb[53].mxu0  ;;  %v20930_v60 = vadd.f32 %v27452_v24, %v7904_v23 }
 0x512   : > { %v15421_v9 = vpop.f32.mrb[52].mxu1  ;;  %v7907_v35 = vpop.f32.mrb[54].mxu0 }
 0x513   : > { %v15423_v38 = vpop.f32.mrb[53].mxu1  ;;  %v20994_v54 = vadd.f32 %v27452_v24, %v15421_v9  ;;  %v20931_v42 = vadd.f32 %v27452_v24, %v7907_v35  ;;  %v7909_v44 = vpop.f32.mrb[55].mxu0 }
 0x514   : > { %v15424_v4 = vpop.f32.mrb[54].mxu1 }
 0x515   : > { %v20995_v12 = vadd.f32 %v27452_v24, %v15424_v4  ;;  %v15426_v53 = vpop.f32.mrb[55].mxu1  ;;  %v20589_v48 = vpack.c.bf16 %v20931_v42, %v20930_v60 }
 0x517   : > { %v20749_v62 = vpack.c.bf16 %v20995_v12, %v20994_v54  ;;  %20853 = vst [vmem:[%s27509_s10 + $0x68] sm:$0xff] %v20589_v48  }
 0x518   : > { %v7912_v45 = vpop.f32.mrb[56].mxu0 }
 0x519   : > { %20885 = vst [vmem:[%s27509_s10 + $0x168] sm:$0xff] %v20749_v62   ;;  %v7914_v31 = vpop.f32.mrb[57].mxu0  ;;  %v20932_v8 = vadd.f32 %v27452_v24, %v7912_v45 }
 0x51a   : > { %v15429_v27 = vpop.f32.mrb[56].mxu1  ;;  %v7915_v17 = vpop.f32.mrb[58].mxu0 }
 0x51b   : > { %v15431_v49 = vpop.f32.mrb[57].mxu1  ;;  %v20996_v59 = vadd.f32 %v27452_v24, %v15429_v27  ;;  %v20933_v61 = vadd.f32 %v27452_v24, %v7915_v17  ;;  %v7917_v46 = vpop.f32.mrb[59].mxu0 }
 0x51c   : > { %v15432_v52 = vpop.f32.mrb[58].mxu1 }
 0x51d   : > { %v20997_v41 = vadd.f32 %v27452_v24, %v15432_v52  ;;  %v15434_v16 = vpop.f32.mrb[59].mxu1  ;;  %v20594_v10 = vpack.c.bf16 %v20933_v61, %v20932_v8 }
 0x51f   : > { %v20754_v25 = vpack.c.bf16 %v20997_v41, %v20996_v59  ;;  %20854 = vst [vmem:[%s27509_s10 + $0x70] sm:$0xff] %v20594_v10  }
 0x520   : > { %v7920_v43 = vpop.f32.mrb[60].mxu0 }
 0x521   : > { %20886 = vst [vmem:[%s27509_s10 + $0x170] sm:$0xff] %v20754_v25   ;;  %v7922_v36 = vpop.f32.mrb[61].mxu0  ;;  %v20934_v51 = vadd.f32 %v27452_v24, %v7920_v43 }
 0x522   : > { %v15437_v5 = vpop.f32.mrb[60].mxu1  ;;  %v7923_v20 = vpop.f32.mrb[62].mxu0 }
 0x523   : > { %v15439_v58 = vpop.f32.mrb[61].mxu1  ;;  %v20998_v11 = vadd.f32 %v27452_v24, %v15437_v5  ;;  %v20935_v47 = vadd.f32 %v27452_v24, %v7923_v20  ;;  %v7925_v19 = vpop.f32.mrb[63].mxu0 }
 0x524   : > { %v15440_v18 = vpop.f32.mrb[62].mxu1 }
 0x525   : > { %v20999_v1 = vadd.f32 %v27452_v24, %v15440_v18  ;;  %v15442_v7 = vpop.f32.mrb[63].mxu1  ;;  %v20599_v63 = vpack.c.bf16 %v20935_v47, %v20934_v51 }
 0x527   : > { %v20759_v40 = vpack.c.bf16 %v20999_v1, %v20998_v11  ;;  %20855 = vst [vmem:[%s27509_s10 + $0x78] sm:$0xff] %v20599_v63  }
 0x528   : > { %v7928_v15 = vpop.f32.mrb[64].mxu0 }
 0x529   : > { %20887 = vst [vmem:[%s27509_s10 + $0x178] sm:$0xff] %v20759_v40   ;;  %v7930_v6 = vpop.f32.mrb[65].mxu0  ;;  %v20936_v32 = vadd.f32 %v27452_v24, %v7928_v15 }
 0x52a   : > { %v15445_v2 = vpop.f32.mrb[64].mxu1  ;;  %v7931_v13 = vpop.f32.mrb[66].mxu0 }
 0x52b   : > { %v15447_v56 = vpop.f32.mrb[65].mxu1  ;;  %v21000_v21 = vadd.f32 %v27452_v24, %v15445_v2  ;;  %v20937_v26 = vadd.f32 %v27452_v24, %v7931_v13  ;;  %v7933_v22 = vpop.f32.mrb[67].mxu0 }
 0x52c   : > { %v15448_v34 = vpop.f32.mrb[66].mxu1 }
 0x52d   : > { %v21001_v39 = vadd.f32 %v27452_v24, %v15448_v34  ;;  %v15450_v3 = vpop.f32.mrb[67].mxu1  ;;  %v20604_v37 = vpack.c.bf16 %v20937_v26, %v20936_v32 }
 0x52f   : > { %v20764_v33 = vpack.c.bf16 %v21001_v39, %v21000_v21  ;;  %20856 = vst [vmem:[%s27509_s10 + $0x80] sm:$0xff] %v20604_v37  }
 0x530   : > { %v7936_v28 = vpop.f32.mrb[68].mxu0 }
 0x531   : > { %20888 = vst [vmem:[%s27509_s10 + $0x180] sm:$0xff] %v20764_v33   ;;  %v7938_v55 = vpop.f32.mrb[69].mxu0  ;;  %v20938_v30 = vadd.f32 %v27452_v24, %v7936_v28 }
 0x532   : > { %v15453_v0 = vpop.f32.mrb[68].mxu1  ;;  %v7939_v50 = vpop.f32.mrb[70].mxu0 }
 0x533   : > { %v15455_v57 = vpop.f32.mrb[69].mxu1  ;;  %v21002_v23 = vadd.f32 %v27452_v24, %v15453_v0  ;;  %v20939_v9 = vadd.f32 %v27452_v24, %v7939_v50  ;;  %v7941_v38 = vpop.f32.mrb[71].mxu0 }
 0x534   : > { %v15456_v29 = vpop.f32.mrb[70].mxu1 }
 0x535   : > { %v21003_v14 = vadd.f32 %v27452_v24, %v15456_v29  ;;  %v15458_v35 = vpop.f32.mrb[71].mxu1  ;;  %v20609_v4 = vpack.c.bf16 %v20939_v9, %v20938_v30 }
 0x537   : > { %v20769_v60 = vpack.c.bf16 %v21003_v14, %v21002_v23  ;;  %20857 = vst [vmem:[%s27509_s10 + $0x88] sm:$0xff] %v20609_v4  }
 0x538   : > { %v7944_v54 = vpop.f32.mrb[72].mxu0 }
 0x539   : > { %20889 = vst [vmem:[%s27509_s10 + $0x188] sm:$0xff] %v20769_v60   ;;  %v7946_v12 = vpop.f32.mrb[73].mxu0  ;;  %v20940_v62 = vadd.f32 %v27452_v24, %v7944_v54 }
 0x53a   : > { %v15461_v42 = vpop.f32.mrb[72].mxu1  ;;  %v7947_v53 = vpop.f32.mrb[74].mxu0 }
 0x53b   : > { %v15463_v44 = vpop.f32.mrb[73].mxu1  ;;  %v21004_v45 = vadd.f32 %v27452_v24, %v15461_v42  ;;  %v20941_v27 = vadd.f32 %v27452_v24, %v7947_v53  ;;  %v7949_v49 = vpop.f32.mrb[75].mxu0 }
 0x53c   : > { %v15464_v48 = vpop.f32.mrb[74].mxu1 }
 0x53d   : > { %v21005_v31 = vadd.f32 %v27452_v24, %v15464_v48  ;;  %v15466_v17 = vpop.f32.mrb[75].mxu1  ;;  %v20614_v52 = vpack.c.bf16 %v20941_v27, %v20940_v62 }
 0x53f   : > { %v20774_v8 = vpack.c.bf16 %v21005_v31, %v21004_v45  ;;  %20858 = vst [vmem:[%s27509_s10 + $0x90] sm:$0xff] %v20614_v52  }
 0x540   : > { %v7952_v59 = vpop.f32.mrb[76].mxu0 }
 0x541   : > { %20890 = vst [vmem:[%s27509_s10 + $0x190] sm:$0xff] %v20774_v8   ;;  %v7954_v41 = vpop.f32.mrb[77].mxu0  ;;  %v20942_v25 = vadd.f32 %v27452_v24, %v7952_v59 }
 0x542   : > { %v15469_v61 = vpop.f32.mrb[76].mxu1  ;;  %v7955_v16 = vpop.f32.mrb[78].mxu0 }
 0x543   : > { %v15471_v46 = vpop.f32.mrb[77].mxu1  ;;  %v21006_v43 = vadd.f32 %v27452_v24, %v15469_v61  ;;  %v20943_v5 = vadd.f32 %v27452_v24, %v7955_v16  ;;  %v7957_v58 = vpop.f32.mrb[79].mxu0 }
 0x544   : > { %v15472_v10 = vpop.f32.mrb[78].mxu1 }
 0x545   : > { %v21007_v36 = vadd.f32 %v27452_v24, %v15472_v10  ;;  %v15474_v20 = vpop.f32.mrb[79].mxu1  ;;  %v20619_v18 = vpack.c.bf16 %v20943_v5, %v20942_v25 }
 0x547   : > { %v20779_v51 = vpack.c.bf16 %v21007_v36, %v21006_v43  ;;  %20859 = vst [vmem:[%s27509_s10 + $0x98] sm:$0xff] %v20619_v18  }
 0x548   : > { %v7960_v11 = vpop.f32.mrb[80].mxu0 }
 0x549   : > { %20891 = vst [vmem:[%s27509_s10 + $0x198] sm:$0xff] %v20779_v51   ;;  %v7962_v1 = vpop.f32.mrb[81].mxu0  ;;  %v20944_v40 = vadd.f32 %v27452_v24, %v7960_v11  ;;  %v27782_v51 = vld [vmem:[%s27893_s4] ss:$0 sm:$0xff] }
 0x54a   : > { %v15477_v47 = vpop.f32.mrb[80].mxu1  ;;  %v7963_v7 = vpop.f32.mrb[82].mxu0 }
 0x54b   : > { %v15479_v19 = vpop.f32.mrb[81].mxu1  ;;  %v21008_v15 = vadd.f32 %v27452_v24, %v15477_v47  ;;  %v20945_v2 = vadd.f32 %v27452_v24, %v7963_v7  ;;  %v7965_v56 = vpop.f32.mrb[83].mxu0 }
 0x54c   : > { %v15480_v63 = vpop.f32.mrb[82].mxu1 }
 0x54d   : > { %v21009_v6 = vadd.f32 %v27452_v24, %v15480_v63  ;;  %v15482_v13 = vpop.f32.mrb[83].mxu1  ;;  %v20624_v34 = vpack.c.bf16 %v20945_v2, %v20944_v40 }
 0x54f   : > { %v20784_v32 = vpack.c.bf16 %v21009_v6, %v21008_v15  ;;  %20860 = vst [vmem:[%s27509_s10 + $0xa0] sm:$0xff] %v20624_v34  }
 0x550   : > { %v7968_v21 = vpop.f32.mrb[84].mxu0 }
 0x551   : > { %20892 = vst [vmem:[%s27509_s10 + $0x1a0] sm:$0xff] %v20784_v32   ;;  %v7970_v39 = vpop.f32.mrb[85].mxu0  ;;  %v20946_v33 = vadd.f32 %v27452_v24, %v7968_v21 }
 0x552   : > { %v15485_v26 = vpop.f32.mrb[84].mxu1  ;;  %v7971_v3 = vpop.f32.mrb[86].mxu0 }
 0x553   : > { %v15487_v22 = vpop.f32.mrb[85].mxu1  ;;  %v21010_v28 = vadd.f32 %v27452_v24, %v15485_v26  ;;  %v20947_v0 = vadd.f32 %v27452_v24, %v7971_v3  ;;  %v7973_v57 = vpop.f32.mrb[87].mxu0 }
 0x554   : > { %v15488_v37 = vpop.f32.mrb[86].mxu1 }
 0x555   : > { %v21011_v55 = vadd.f32 %v27452_v24, %v15488_v37  ;;  %v15490_v50 = vpop.f32.mrb[87].mxu1  ;;  %v20629_v29 = vpack.c.bf16 %v20947_v0, %v20946_v33 }
 0x557   : > { %v20789_v30 = vpack.c.bf16 %v21011_v55, %v21010_v28  ;;  %20861 = vst [vmem:[%s27509_s10 + $0xa8] sm:$0xff] %v20629_v29  }
 0x558   : > { %v7976_v23 = vpop.f32.mrb[88].mxu0 }
 0x559   : > { %20893 = vst [vmem:[%s27509_s10 + $0x1a8] sm:$0xff] %v20789_v30   ;;  %v7978_v14 = vpop.f32.mrb[89].mxu0  ;;  %v20948_v60 = vadd.f32 %v27452_v24, %v7976_v23 }
 0x55a   : > { %v15493_v9 = vpop.f32.mrb[88].mxu1  ;;  %v7979_v35 = vpop.f32.mrb[90].mxu0 }
 0x55b   : > { %v15495_v38 = vpop.f32.mrb[89].mxu1  ;;  %v21012_v54 = vadd.f32 %v27452_v24, %v15493_v9  ;;  %v20949_v42 = vadd.f32 %v27452_v24, %v7979_v35  ;;  %v7981_v44 = vpop.f32.mrb[91].mxu0 }
 0x55c   : > { %v15496_v4 = vpop.f32.mrb[90].mxu1 }
 0x55d   : > { %v21013_v12 = vadd.f32 %v27452_v24, %v15496_v4  ;;  %v15498_v53 = vpop.f32.mrb[91].mxu1  ;;  %v20634_v48 = vpack.c.bf16 %v20949_v42, %v20948_v60 }
 0x55f   : > { %v20794_v62 = vpack.c.bf16 %v21013_v12, %v21012_v54  ;;  %20862 = vst [vmem:[%s27509_s10 + $0xb0] sm:$0xff] %v20634_v48  }
 0x560   : > { %v7984_v45 = vpop.f32.mrb[92].mxu0 }
 0x561   : > { %20894 = vst [vmem:[%s27509_s10 + $0x1b0] sm:$0xff] %v20794_v62   ;;  %v7986_v31 = vpop.f32.mrb[93].mxu0  ;;  %v20950_v8 = vadd.f32 %v27452_v24, %v7984_v45 }
 0x562   : > { %v15501_v27 = vpop.f32.mrb[92].mxu1  ;;  %v7987_v17 = vpop.f32.mrb[94].mxu0 }
 0x563   : > { %v15503_v49 = vpop.f32.mrb[93].mxu1  ;;  %v21014_v59 = vadd.f32 %v27452_v24, %v15501_v27  ;;  %v20951_v61 = vadd.f32 %v27452_v24, %v7987_v17  ;;  %v7989_v46 = vpop.f32.mrb[95].mxu0 }
 0x564   : > { %v15504_v52 = vpop.f32.mrb[94].mxu1 }
 0x565   : > { %v21015_v41 = vadd.f32 %v27452_v24, %v15504_v52  ;;  %v15506_v16 = vpop.f32.mrb[95].mxu1  ;;  %v20639_v10 = vpack.c.bf16 %v20951_v61, %v20950_v8 }
 0x567   : > { %v20799_v25 = vpack.c.bf16 %v21015_v41, %v21014_v59  ;;  %20863 = vst [vmem:[%s27509_s10 + $0xb8] sm:$0xff] %v20639_v10  }
 0x568   : > { %v7992_v43 = vpop.f32.mrb[96].mxu0 }
 0x569   : > { %20895 = vst [vmem:[%s27509_s10 + $0x1b8] sm:$0xff] %v20799_v25   ;;  %v7994_v36 = vpop.f32.mrb[97].mxu0  ;;  %v20952_v24 = vadd.f32 %v27782_v51, %v7992_v43 }
 0x56a   : > { %v15509_v5 = vpop.f32.mrb[96].mxu1  ;;  %v7995_v20 = vpop.f32.mrb[98].mxu0 }
 0x56b   : > { %v15511_v58 = vpop.f32.mrb[97].mxu1  ;;  %v21016_v11 = vadd.f32 %v27782_v51, %v15509_v5  ;;  %v20953_v47 = vadd.f32 %v27782_v51, %v7995_v20  ;;  %v7997_v19 = vpop.f32.mrb[99].mxu0 }
 0x56c   : > { %v15512_v18 = vpop.f32.mrb[98].mxu1 }
 0x56d   : > { %v21017_v1 = vadd.f32 %v27782_v51, %v15512_v18  ;;  %v15514_v7 = vpop.f32.mrb[99].mxu1  ;;  %v20644_v63 = vpack.c.bf16 %v20953_v47, %v20952_v24 }
 0x56f   : > { %v20804_v40 = vpack.c.bf16 %v21017_v1, %v21016_v11  ;;  %20864 = vst [vmem:[%s27509_s10 + $0xc0] sm:$0xff] %v20644_v63  }
 0x570   : > { %v8000_v15 = vpop.f32.mrb[100].mxu0 }
 0x571   : > { %20896 = vst [vmem:[%s27509_s10 + $0x1c0] sm:$0xff] %v20804_v40   ;;  %v8002_v6 = vpop.f32.mrb[101].mxu0  ;;  %v20954_v32 = vadd.f32 %v27782_v51, %v8000_v15 }
 0x572   : > { %v15517_v2 = vpop.f32.mrb[100].mxu1  ;;  %v8003_v13 = vpop.f32.mrb[102].mxu0 }
 0x573   : > { %v15519_v56 = vpop.f32.mrb[101].mxu1  ;;  %v21018_v21 = vadd.f32 %v27782_v51, %v15517_v2  ;;  %v20955_v26 = vadd.f32 %v27782_v51, %v8003_v13  ;;  %v8005_v22 = vpop.f32.mrb[103].mxu0 }
 0x574   : > { %v15520_v34 = vpop.f32.mrb[102].mxu1 }
 0x575   : > { %v21019_v39 = vadd.f32 %v27782_v51, %v15520_v34  ;;  %v15522_v3 = vpop.f32.mrb[103].mxu1  ;;  %v20649_v37 = vpack.c.bf16 %v20955_v26, %v20954_v32 }
 0x577   : > { %v20809_v33 = vpack.c.bf16 %v21019_v39, %v21018_v21  ;;  %20865 = vst [vmem:[%s27509_s10 + $0xc8] sm:$0xff] %v20649_v37  }
 0x578   : > { %v8008_v28 = vpop.f32.mrb[104].mxu0 }
 0x579   : > { %20897 = vst [vmem:[%s27509_s10 + $0x1c8] sm:$0xff] %v20809_v33   ;;  %v8010_v55 = vpop.f32.mrb[105].mxu0  ;;  %v20956_v30 = vadd.f32 %v27782_v51, %v8008_v28 }
 0x57a   : > { %v15525_v0 = vpop.f32.mrb[104].mxu1  ;;  %v8011_v50 = vpop.f32.mrb[106].mxu0 }
 0x57b   : > { %v15527_v57 = vpop.f32.mrb[105].mxu1  ;;  %v21020_v23 = vadd.f32 %v27782_v51, %v15525_v0  ;;  %v20957_v9 = vadd.f32 %v27782_v51, %v8011_v50  ;;  %v8013_v38 = vpop.f32.mrb[107].mxu0 }
 0x57c   : > { %v15528_v29 = vpop.f32.mrb[106].mxu1 }
 0x57d   : > { %v21021_v14 = vadd.f32 %v27782_v51, %v15528_v29  ;;  %v15530_v35 = vpop.f32.mrb[107].mxu1  ;;  %v20654_v4 = vpack.c.bf16 %v20957_v9, %v20956_v30 }
 0x57f   : > { %v20814_v60 = vpack.c.bf16 %v21021_v14, %v21020_v23  ;;  %20866 = vst [vmem:[%s27509_s10 + $0xd0] sm:$0xff] %v20654_v4  }
 0x580   : > { %v8016_v54 = vpop.f32.mrb[108].mxu0 }
 0x581   : > { %20898 = vst [vmem:[%s27509_s10 + $0x1d0] sm:$0xff] %v20814_v60   ;;  %v8018_v12 = vpop.f32.mrb[109].mxu0  ;;  %v20958_v62 = vadd.f32 %v27782_v51, %v8016_v54 }
 0x582   : > { %v15533_v42 = vpop.f32.mrb[108].mxu1  ;;  %v8019_v53 = vpop.f32.mrb[110].mxu0 }
 0x583   : > { %v15535_v44 = vpop.f32.mrb[109].mxu1  ;;  %v21022_v45 = vadd.f32 %v27782_v51, %v15533_v42  ;;  %v20959_v27 = vadd.f32 %v27782_v51, %v8019_v53  ;;  %v8021_v49 = vpop.f32.mrb[111].mxu0 }
 0x584   : > { %v15536_v48 = vpop.f32.mrb[110].mxu1 }
 0x585   : > { %v21023_v31 = vadd.f32 %v27782_v51, %v15536_v48  ;;  %v15538_v17 = vpop.f32.mrb[111].mxu1  ;;  %v20659_v52 = vpack.c.bf16 %v20959_v27, %v20958_v62 }
 0x587   : > { %v20819_v8 = vpack.c.bf16 %v21023_v31, %v21022_v45  ;;  %20867 = vst [vmem:[%s27509_s10 + $0xd8] sm:$0xff] %v20659_v52  }
 0x588   : > { %v8024_v59 = vpop.f32.mrb[112].mxu0 }
 0x589   : > { %20899 = vst [vmem:[%s27509_s10 + $0x1d8] sm:$0xff] %v20819_v8   ;;  %v8026_v41 = vpop.f32.mrb[113].mxu0  ;;  %v20960_v25 = vadd.f32 %v27782_v51, %v8024_v59 }
 0x58a   : > { %v15541_v61 = vpop.f32.mrb[112].mxu1  ;;  %v8027_v16 = vpop.f32.mrb[114].mxu0 }
 0x58b   : > { %v15543_v46 = vpop.f32.mrb[113].mxu1  ;;  %v21024_v43 = vadd.f32 %v27782_v51, %v15541_v61  ;;  %v20961_v5 = vadd.f32 %v27782_v51, %v8027_v16  ;;  %v8029_v58 = vpop.f32.mrb[115].mxu0 }
 0x58c   : > { %v15544_v10 = vpop.f32.mrb[114].mxu1 }
 0x58d   : > { %v21025_v36 = vadd.f32 %v27782_v51, %v15544_v10  ;;  %v15546_v20 = vpop.f32.mrb[115].mxu1  ;;  %v20664_v18 = vpack.c.bf16 %v20961_v5, %v20960_v25 }
 0x58f   : > { %v20824_v24 = vpack.c.bf16 %v21025_v36, %v21024_v43  ;;  %20868 = vst [vmem:[%s27509_s10 + $0xe0] sm:$0xff] %v20664_v18  }
 0x590   : > { %v8032_v11 = vpop.f32.mrb[116].mxu0 }
 0x591   : > { %20900 = vst [vmem:[%s27509_s10 + $0x1e0] sm:$0xff] %v20824_v24   ;;  %v8034_v1 = vpop.f32.mrb[117].mxu0  ;;  %v20962_v40 = vadd.f32 %v27782_v51, %v8032_v11 }
 0x592   : > { %v15549_v47 = vpop.f32.mrb[116].mxu1  ;;  %v8035_v7 = vpop.f32.mrb[118].mxu0 }
 0x593   : > { %v15551_v19 = vpop.f32.mrb[117].mxu1  ;;  %v21026_v15 = vadd.f32 %v27782_v51, %v15549_v47  ;;  %v20963_v2 = vadd.f32 %v27782_v51, %v8035_v7  ;;  %v8037_v56 = vpop.f32.mrb[119].mxu0 }
 0x594   : > { %v15552_v63 = vpop.f32.mrb[118].mxu1 }
 0x595   : > { %v21027_v6 = vadd.f32 %v27782_v51, %v15552_v63  ;;  %v15554_v13 = vpop.f32.mrb[119].mxu1  ;;  %v20669_v34 = vpack.c.bf16 %v20963_v2, %v20962_v40 }
 0x597   : > { %v20829_v32 = vpack.c.bf16 %v21027_v6, %v21026_v15  ;;  %20869 = vst [vmem:[%s27509_s10 + $0xe8] sm:$0xff] %v20669_v34  }
 0x598   : > { %v8040_v21 = vpop.f32.mrb[120].mxu0 }
 0x599   : > { %20901 = vst [vmem:[%s27509_s10 + $0x1e8] sm:$0xff] %v20829_v32   ;;  %v8042_v39 = vpop.f32.mrb[121].mxu0  ;;  %v20964_v33 = vadd.f32 %v27782_v51, %v8040_v21 }
 0x59a   : > { %v15557_v26 = vpop.f32.mrb[120].mxu1  ;;  %v8043_v3 = vpop.f32.mrb[122].mxu0 }
 0x59b   : > { %v15559_v22 = vpop.f32.mrb[121].mxu1  ;;  %v21028_v28 = vadd.f32 %v27782_v51, %v15557_v26  ;;  %v20965_v0 = vadd.f32 %v27782_v51, %v8043_v3  ;;  %v8045_v57 = vpop.f32.mrb[123].mxu0 }
 0x59c   : > { %v15560_v37 = vpop.f32.mrb[122].mxu1 }
 0x59d   : > { %v21029_v55 = vadd.f32 %v27782_v51, %v15560_v37  ;;  %v15562_v50 = vpop.f32.mrb[123].mxu1  ;;  %v20674_v29 = vpack.c.bf16 %v20965_v0, %v20964_v33 }
 0x59f   : > { %v20834_v30 = vpack.c.bf16 %v21029_v55, %v21028_v28  ;;  %20870 = vst [vmem:[%s27509_s10 + $0xf0] sm:$0xff] %v20674_v29  }
 0x5a0   : > { %v8048_v23 = vpop.f32.mrb[124].mxu0 }
 0x5a1   : > { %20902 = vst [vmem:[%s27509_s10 + $0x1f0] sm:$0xff] %v20834_v30   ;;  %v8050_v14 = vpop.f32.mrb[125].mxu0  ;;  %v20966_v60 = vadd.f32 %v27782_v51, %v8048_v23 }
 0x5a2   : > { %v15565_v9 = vpop.f32.mrb[124].mxu1  ;;  %v8051_v35 = vpop.f32.mrb[126].mxu0 }
 0x5a3   : > { %v15567_v38 = vpop.f32.mrb[125].mxu1  ;;  %v21030_v54 = vadd.f32 %v27782_v51, %v15565_v9  ;;  %v20967_v42 = vadd.f32 %v27782_v51, %v8051_v35  ;;  %v8053_v44 = vpop.f32.mrb[127].mxu0 }
 0x5a4   : > { %v15568_v4 = vpop.f32.mrb[126].mxu1 }
 0x5a5   : > { %v21031_v12 = vadd.f32 %v27782_v51, %v15568_v4  ;;  %v15570_v53 = vpop.f32.mrb[127].mxu1  ;;  %v20679_v48 = vpack.c.bf16 %v20967_v42, %v20966_v60 }
 0x5a7   : > { %v20839_v62 = vpack.c.bf16 %v21031_v12, %v21030_v54  ;;  %20871 = vst [vmem:[%s27509_s10 + $0xf8] sm:$0xff] %v20679_v48  }
 0x5a9   : > { %20903 = vst [vmem:[%s27509_s10 + $0x1f8] sm:$0xff] %v20839_v62  }
 0x5aa   : > { %22013 = shalt.err (!%p22010_p6)
}
 0x5ab   : > { %s22014_s27 = scalar_lea.hbm %s27835_s16, 8192  ;;  %s22018_s10 = scalar_lea.hbm %s27894_s5, 16384 }
 0x5ac   : > { %p22015_p7 = scmp.ne.s32.totalorder %s27835_s16, %s22014_s27  ;;  %p22019_p0 = scmp.lt.u32.totalorder %s27835_s16, %s27894_s5 }
 0x5ad   : > { %p22020_p2 = scmp.lt.u32.totalorder %s22018_s10, %s22014_s27  ;;  %p22022_p8 = scmp.lt.u32.totalorder %s22014_s27, %s27835_s16 }
 0x5ae   : > { %p22016_p9 = pnand %p22015_p7, %p28738_p10 }
 0x5af   : > { %p22021_p4 = por %p22020_p2, %p22019_p0 }
 0x5b0   : > { %p22017_p12 = pneg %p22016_p9 }
 0x5b1   : > { %p22023_p11 = por %p22022_p8, %p22021_p4 }
 0x5b3   : > { %p22024_p13 = pnand %p22023_p11, %p22017_p12 }
 0x5b5   : > { %22027 = shalt.err (!%p22024_p13)
}
 0x5b6   : > { %s22091_s11 = smov 64   ;;  %s22092_s14 = smov 4  }
 0x5b7   : > { %21804 = dma.vmem_to_hbm [thread:$0]  (%p28738_p10), %s27837_s13, 8192, %s27835_s16, %s27843_s21, %s22091_s11, %s22091_s11, %s22092_s14  }
 0x5b8 PF: > { %p21816_p1 = scmp.ge.s32.totalorder %s22082_s23, 2  ;;  %s15924_s15 = sand.u32 1, %s22062_s18  }
 0x5b9   : > { %p28739_p3 = scmp.ne.s32.totalorder %s28281_s30, 0  ;;  %s15925_s17 = scalar_lea.sflag [#allocation4], %s15924_s15 }
 0x5bb   : > { %p21811_p5 = pnand %p21816_p1, %p28739_p3 }
 0x5bd   : > { %22057 = dma.done.wait (!%p21811_p5), %s15925_s17, 8192  }
 0x5be   : > { %22059 = vsyncadd (!%p21811_p5), %s15925_s17, 4294959104  ;;  %s19_s23 = sadd.s32 1, %s22082_s23   ;;  %s28740_s18 = smov %s22066_s19 }
 0x5bf   : > { %p16_p6 = scmp.ge.s32.totalorder %s19_s23, 4   ;;  %s28741_s19 = smov %s22070_s20 }
 0x5c0   : > { %s28742_s20 = smov %s22176_s6  ;;  %s28743_s21 = smov %s22078_s22 }
 0x5c1   : > { %s28744_s22 = smov %s28746_s26  ;;  %18 = sbr.rel (!%p16_p6) target bundleno = 5 (0x5), region = 85 }
 0x5c8   :  { %15930 = vsyncpa [#allocation3], 1 }
 0x5c9   :  { %15932 = vsyncpa [#allocation3 + $0x1], 1 }
 0x5ca   :  { %15933 = vsyncpa [#allocation4], 1 }
 0x5cb   :  { %15935 = vsyncpa [#allocation4 + $0x1], 1 }

</bundles_post_ra>
